<compile_context>
chip_gen: v5e
topology: v5e:2x2
jax: 0.10.0
libtpu: 0.0.40
codegen_flags: <defaults>
</compile_context>

<pallas_src>
import functools

import jax
import jax.numpy as jnp
from jax.experimental import pallas as pl
from jax.experimental.pallas import tpu as pltpu

BN_EPS = 1e-5
CP = 128                      # lane-dense channel padding (32 real channels)
MM_DTYPE = jnp.bfloat16       # MXU operand dtype (accumulation stays f32)


# ---------------------------------------------------------------------------
# Fused Pallas kernel (whole forward pass for B stacked images per grid step)
# ---------------------------------------------------------------------------
def _pnet_kernel(x_ref, w1_ref, s1_ref, w2_ref, s2_ref, w3_ref, s3_ref,
                 w45_ref, s45_ref, out_ref,
                 h1_ref, tmp_ref, hp_ref, h2_ref, h3_ref,
                 *, B, S, Sp, p, c1H, c1W, pH, Mx, Mxh, Mp_img,
                 off, Rc1, Rt, Rc2, Rc3):
    cp = out_ref.shape[-1]

    def conv3x3(load, w_ref, s_ref, rows, stride):
        # 3x3 VALID conv as 9 accumulating MXU matmuls over shifted row slices
        # (shift = i*stride + j); bf16 operands, f32 accumulation.
        acc = None
        for i in range(3):
            for j in range(3):
                lhs = load(i * stride + j, rows).astype(MM_DTYPE)
                part = jnp.dot(lhs, w_ref[3 * i + j],
                               preferred_element_type=jnp.float32)
                acc = part if acc is None else acc + part
        # TODO(synk): on v7x accumulate the 9 taps in the MXU result buffer
        # (pltpu.matmul_push_rhs/acc_lhs/pop) instead of 8 VPU adds.
        return jnp.maximum(acc + s_ref[...], 0.0)      # folded BN shift + ReLU

    # ---- conv1 + bn1 + relu over all B stacked images -----------------------
    h1_ref[pl.ds(off, Rc1), :] = conv3x3(
        lambda s, n: x_ref[0, pl.ds(s, n), :], w1_ref, s1_ref, Rc1, S)

    if p:
        # MaxPool2d(padding=1): -inf frame around each image's conv1 output.
        # TODO(synk): odd-width path untested; the frame offset also makes the
        # conv1 store sublane-misaligned (review item 7).
        rows = h1_ref.shape[0]
        r = jax.lax.broadcasted_iota(jnp.int32, (rows, 1), 0)
        local = r % Mx
        w_id, h_id = local % S, local // S
        is_pad = ((w_id < p) | (w_id >= p + c1W) |
                  (h_id < p) | (h_id >= p + c1H))
        h1_ref[...] = jnp.where(is_pad, -jnp.inf, h1_ref[...])

    # ---- maxpool 2x2 / stride 2, output COMPACTED to row stride Sp ----------
    # pass 1: pool along w via one big stride-2 sublane pass (all h rows kept).
    tmp_ref[pl.ds(0, Rt), :] = jnp.maximum(h1_ref[pl.ds(0, Rt, stride=2), :],
                                           h1_ref[pl.ds(1, Rt, stride=2), :])
    # pass 2: pool along h per pooled row, writing contiguous Sp-row chunks so
    # conv2/conv3/head see a dense stride-Sp layout (no garbage rows between
    # valid pooled rows).
    for b in range(B):
        for hq in range(pH):
            src = b * Mxh + 2 * hq * Sp
            dst = b * Mp_img + hq * Sp
            hp_ref[pl.ds(dst, Sp), :] = jnp.maximum(
                tmp_ref[pl.ds(src, Sp), :], tmp_ref[pl.ds(src + Sp, Sp), :])

    # ---- conv2 + bn2 + relu ; conv3 + bn3 + relu (stride-Sp layout) ---------
    h2_ref[pl.ds(0, Rc2), :] = conv3x3(
        lambda s, n: hp_ref[pl.ds(s, n), :], w2_ref, s2_ref, Rc2, Sp)
    h3_ref[pl.ds(0, Rc3), :] = conv3x3(
        lambda s, n: h2_ref[pl.ds(s, n), :], w3_ref, s3_ref, Rc3, Sp)

    # ---- heads: conv4 (2ch channel-softmax) + conv5 (4ch) as one 1x1 matmul -
    rows_out = h3_ref.shape[0]                          # == out_ref.shape[1]
    y = jnp.dot(h3_ref[...].astype(MM_DTYPE), w45_ref[...],
                preferred_element_type=jnp.float32) + s45_ref[...]
    d = y[:, 0:1] - y[:, 1:2]
    p0 = 1.0 / (1.0 + jnp.exp(-d))                      # 2-way softmax, closed form
    col = jax.lax.broadcasted_iota(jnp.int32, (rows_out, cp), 1)
    out = jnp.where(col == 0, p0, jnp.where(col == 1, 1.0 - p0, y))
    out_ref[0] = out.astype(out_ref.dtype)


# ---------------------------------------------------------------------------
# Parameter folding (BN scale into weights; pad to lane-dense 128; bf16)
# ---------------------------------------------------------------------------
def _fold_bn(bn):
    gamma, beta, mean, var = bn
    scale = gamma * jax.lax.rsqrt(var + BN_EPS)
    shift = beta - mean * scale
    return scale, shift


def _fold_conv3x3(w, bn, cin_pad):
    # w: [Cout, Cin, 3, 3] (OIHW) -> [9, cin_pad, CP] bf16 with BN scale folded.
    Cout, Cin, KH, KW = w.shape
    scale, shift = _fold_bn(bn)
    wk = jnp.transpose(w, (2, 3, 1, 0)).reshape(KH * KW, Cin, Cout)
    wk = wk * scale[None, None, :]
    wk = jnp.pad(wk, ((0, 0), (0, cin_pad - Cin), (0, CP - Cout)))
    sh = jnp.pad(shift, (0, CP - Cout)).reshape(1, CP)
    return wk.astype(MM_DTYPE), sh.astype(jnp.float32)


def _fold_heads(w4, bn4, w5, bn5):
    # Two 1x1 convs on the same input -> one [CP, CP] bf16 matrix
    # (cols 0:2 = conv4, cols 2:6 = conv5).
    s4, sh4 = _fold_bn(bn4)
    s5, sh5 = _fold_bn(bn5)
    m4 = (w4[:, :, 0, 0] * s4[:, None]).T          # [32, 2]
    m5 = (w5[:, :, 0, 0] * s5[:, None]).T          # [32, 4]
    m = jnp.concatenate([m4, m5], axis=1)          # [32, 6]
    m = jnp.pad(m, ((0, CP - m.shape[0]), (0, CP - m.shape[1])))
    sh = jnp.pad(jnp.concatenate([sh4, sh5]), (0, CP - 6)).reshape(1, CP)
    return m.astype(MM_DTYPE), sh.astype(jnp.float32)


# ---------------------------------------------------------------------------
# pnet forward (single fused pallas_call)
# ---------------------------------------------------------------------------
def pnet_forward(x, params, *, batch_block=8):
    """x: NCHW float32.  Returns (out1, out2) in NCHW, matching pnet.forward."""
    N, Cin, H, W = x.shape
    p = W % 2                                  # pool padding, as in PyTorch forward
    S = W + p                                  # even row stride for the flat layout
    Sp = S // 2                                # compacted row stride after pooling
    c1H, c1W = H - 2, W - 2                    # conv1 output spatial
    pH = (c1H + 2 * p - 2) // 2 + 1            # pool output (floor mode)
    pW = (c1W + 2 * p - 2) // 2 + 1
    c2H, c2W = pH - 2, pW - 2                  # conv2 output spatial
    c3H, c3W = pH - 4, pW - 4                  # conv3 / head output spatial
    assert c3H >= 1 and c3W >= 1, "input too small for pnet"
    assert pW <= Sp                            # layout invariant (no column carry)

    ceil8 = lambda v: -(-v // 8) * 8
    B = max(1, min(batch_block, N))            # images stacked per grid step
    G = -(-N // B)                             # grid length
    Np = G * B

    Mx, Mxh = S * H, (S * H) // 2              # per-image row strides (x/h1, tmp)
    BMx = B * Mx
    off = (S + 1) * p                          # pool-padding frame offset
    M1c = S * (c1H - 1) + c1W                  # conv1 rows per image
    Rc1 = (B - 1) * Mx + M1c                   # conv1 rows computed (stacked)
    Mh1 = ceil8(BMx)
    Rt = (B - 1) * Mxh + 2 * pH * Sp           # w-pooled rows needed
    Mt = ceil8(Rt)
    Mp_img = pH * Sp                           # per-image pooled row stride
    Mhp = ceil8(B * Mp_img)
    Rc2 = (B - 1) * Mp_img + Sp * (c2H - 1) + c2W
    Mh2 = ceil8(Rc2)
    Rc3 = (B - 1) * Mp_img + Sp * (c3H - 1) + c3W
    Rout = ceil8(Rc3)                          # head rows written to HBM
    Mh3 = Rout

    # NCHW -> NHWC once, pad width to S, flatten spatial onto the row axis,
    # stack B images per grid step along the row axis.
    x_nhwc = jnp.transpose(x, (0, 2, 3, 1))
    if S != W:
        x_nhwc = jnp.pad(x_nhwc, ((0, 0), (0, 0), (0, S - W), (0, 0)))
    x_flat = x_nhwc.reshape(N, Mx, Cin).astype(jnp.float32)
    if Np != N:
        x_flat = jnp.pad(x_flat, ((0, Np - N), (0, 0), (0, 0)))
    x_stack = x_flat.reshape(G, BMx, Cin)

    w1, s1 = _fold_conv3x3(params["conv1_w"], params["bn1"], Cin)
    w2, s2 = _fold_conv3x3(params["conv2_w"], params["bn2"], CP)
    w3, s3 = _fold_conv3x3(params["conv3_w"], params["bn3"], CP)
    w45, s45 = _fold_heads(params["conv4_w"], params["bn4"],
                           params["conv5_w"], params["bn5"])

    kern = functools.partial(
        _pnet_kernel, B=B, S=S, Sp=Sp, p=p, c1H=c1H, c1W=c1W, pH=pH,
        Mx=Mx, Mxh=Mxh, Mp_img=Mp_img, off=off, Rc1=Rc1, Rt=Rt,
        Rc2=Rc2, Rc3=Rc3)

    out = pl.pallas_call(
        kern,
        out_shape=jax.ShapeDtypeStruct((G, Rout, CP), jnp.float32),
        grid=(G,),
        in_specs=[
            pl.BlockSpec((1, BMx, Cin), lambda g: (g, 0, 0)),
            pl.BlockSpec((9, Cin, CP), lambda g: (0, 0, 0)),
            pl.BlockSpec((1, CP), lambda g: (0, 0)),
            pl.BlockSpec((9, CP, CP), lambda g: (0, 0, 0)),
            pl.BlockSpec((1, CP), lambda g: (0, 0)),
            pl.BlockSpec((9, CP, CP), lambda g: (0, 0, 0)),
            pl.BlockSpec((1, CP), lambda g: (0, 0)),
            pl.BlockSpec((CP, CP), lambda g: (0, 0)),
            pl.BlockSpec((1, CP), lambda g: (0, 0)),
        ],
        out_specs=pl.BlockSpec((1, Rout, CP), lambda g: (g, 0, 0)),
        scratch_shapes=[
            pltpu.VMEM((Mh1, CP), jnp.float32),   # conv1 output (framed)
            pltpu.VMEM((Mt, CP), jnp.float32),    # w-pooled
            pltpu.VMEM((Mhp, CP), jnp.float32),   # pooled, compacted (stride Sp)
            pltpu.VMEM((Mh2, CP), jnp.float32),   # conv2 output
            pltpu.VMEM((Mh3, CP), jnp.float32),   # conv3 output
        ],
        compiler_params=pltpu.CompilerParams(
            dimension_semantics=("parallel",)),   # batch-group axis -> megacore
    )(x_stack, w1, s1, w2, s2, w3, s3, w45, s45)

    # Extract valid head rows: image b of group g at row b*Mp_img + hc*Sp + wc.
    out = jnp.pad(out, ((0, 0), (0, B * Mp_img - Rout), (0, 0)))
    head = out.reshape(G, B, pH, Sp, CP)[:, :, :c3H, :c3W, :]
    head = head.reshape(G * B, c3H, c3W, CP)[:N]
    out1 = jnp.transpose(head[..., 0:2], (0, 3, 1, 2))   # softmax(bn4(conv4)) NCHW
    out2 = jnp.transpose(head[..., 2:6], (0, 3, 1, 2))   # bn5(conv5)          NCHW
    return out1, out2


# ---------------------------------------------------------------------------
# Pure-JAX reference (driver-side correctness check only)
# ---------------------------------------------------------------------------
def _reference_forward(x, params):
    prec = jax.lax.Precision.HIGHEST

    def conv(h, w):
        return jax.lax.conv_general_dilated(
            h, w, (1, 1), "VALID",
            dimension_numbers=("NCHW", "OIHW", "NCHW"), precision=prec)

    def bn(h, bnp):
        gamma, beta, mean, var = bnp
        inv = gamma * jax.lax.rsqrt(var + BN_EPS)
        return h * inv[None, :, None, None] + (beta - mean * inv)[None, :, None, None]

    p = 0 if x.shape[-1] % 2 == 0 else 1
    h = jax.nn.relu(bn(conv(x, params["conv1_w"]), params["bn1"]))
    if p:
        h = jnp.pad(h, ((0, 0), (0, 0), (p, p), (p, p)), constant_values=-jnp.inf)
    h = jax.lax.reduce_window(h, -jnp.inf, jax.lax.max,
                              (1, 1, 2, 2), (1, 1, 2, 2), "VALID")
    h = jax.nn.relu(bn(conv(h, params["conv2_w"]), params["bn2"]))
    h = jax.nn.relu(bn(conv(h, params["conv3_w"]), params["bn3"]))
    out1 = jax.nn.softmax(bn(conv(h, params["conv4_w"]), params["bn4"]), axis=1)
    out2 = bn(conv(h, params["conv5_w"]), params["bn5"])
    return out1, out2


# ---------------------------------------------------------------------------
# Deterministic parameter init (synthetic; shapes per pnet.__init__)
# ---------------------------------------------------------------------------
def init_params(key):
    ks = jax.random.split(key, 10)

    def bn_params(k, c):
        k1, k2, k3, k4 = jax.random.split(k, 4)
        gamma = 1.0 + 0.1 * jax.random.normal(k1, (c,), jnp.float32)
        beta = 0.1 * jax.random.normal(k2, (c,), jnp.float32)
        mean = 0.05 * jax.random.normal(k3, (c,), jnp.float32)
        var = 1.0 + 0.1 * jnp.abs(jax.random.normal(k4, (c,), jnp.float32))
        return (gamma, beta, mean, var)

    return {
        "conv1_w": 0.1 * jax.random.normal(ks[0], (32, 3, 3, 3), jnp.float32),
        "conv2_w": 0.1 * jax.random.normal(ks[1], (32, 32, 3, 3), jnp.float32),
        "conv3_w": 0.1 * jax.random.normal(ks[2], (32, 32, 3, 3), jnp.float32),
        "conv4_w": 0.1 * jax.random.normal(ks[3], (2, 32, 1, 1), jnp.float32),
        "conv5_w": 0.1 * jax.random.normal(ks[4], (4, 32, 1, 1), jnp.float32),
        "bn1": bn_params(ks[5], 32),
        "bn2": bn_params(ks[6], 32),
        "bn3": bn_params(ks[7], 32),
        "bn4": bn_params(ks[8], 2),
        "bn5": bn_params(ks[9], 4),
    }


if __name__ == "__main__":
    key = jax.random.PRNGKey(0)
    kx, kp = jax.random.split(key)
    N, H, W = 5, 16, 16                                   # exercises B=2 stacking,
    x = jax.random.normal(kx, (N, 3, H, W), jnp.float32)  # G=3 grid and batch padding
    params = init_params(kp)

    fwd = jax.jit(functools.partial(pnet_forward, batch_block=2))
    out1, out2 = fwd(x, params)
    jax.block_until_ready((out1, out2))

    assert out1.shape == (N, 2, 3, 3), out1.shape
    assert out2.shape == (N, 4, 3, 3), out2.shape
    # softmax over dim=1 sums to 1
    assert jnp.allclose(jnp.sum(out1, axis=1), 1.0, atol=1e-5)

    # match the pure-JAX reference forward (bf16 MXU operands -> 3e-2 tolerance)
    r1, r2 = _reference_forward(x, params)
    err1 = float(jnp.max(jnp.abs(out1 - r1)))
    err2 = float(jnp.max(jnp.abs(out2 - r2)))
    assert jnp.allclose(out1, r1, atol=3e-2, rtol=3e-2), err1
    assert jnp.allclose(out2, r2, atol=3e-2, rtol=3e-2), err2
    print("KERNEL_OK")
</pallas_src>

<mosaic_0001>
module attributes {stable_mosaic.version = 11 : i64} {
  func.func @_pnet_kernel(%arg0: i32, %arg1: memref<1x512x3xf32, #tpu.memory_space<vmem>>, %arg2: memref<9x3x128xbf16, #tpu.memory_space<vmem>>, %arg3: memref<1x128xf32, #tpu.memory_space<vmem>>, %arg4: memref<9x128x128xbf16, #tpu.memory_space<vmem>>, %arg5: memref<1x128xf32, #tpu.memory_space<vmem>>, %arg6: memref<9x128x128xbf16, #tpu.memory_space<vmem>>, %arg7: memref<1x128xf32, #tpu.memory_space<vmem>>, %arg8: memref<128x128xbf16, #tpu.memory_space<vmem>>, %arg9: memref<1x128xf32, #tpu.memory_space<vmem>>, %arg10: memref<1x80x128xf32, #tpu.memory_space<vmem>>, %arg11: memref<512x128xf32, #tpu.memory_space<vmem>>, %arg12: memref<240x128xf32, #tpu.memory_space<vmem>>, %arg13: memref<112x128xf32, #tpu.memory_space<vmem>>, %arg14: memref<96x128xf32, #tpu.memory_space<vmem>>, %arg15: memref<80x128xf32, #tpu.memory_space<vmem>>) attributes {dimension_semantics = [#tpu.dimension_semantics<parallel>], iteration_bounds = array<i64: 3>, scalar_prefetch = 0 : i64, scratch_operands = 5 : i64, tpu.core_type = #tpu.core_type<tc>, window_params = [{transform_indices = @transform_0, window_bounds = array<i64: 1, 512, 3>}, {pipeline_mode = #tpu.pipeline_mode<synchronous>, transform_indices = @transform_1, window_bounds = array<i64: 9, 3, 128>}, {pipeline_mode = #tpu.pipeline_mode<synchronous>, transform_indices = @transform_2, window_bounds = array<i64: 1, 128>}, {pipeline_mode = #tpu.pipeline_mode<synchronous>, transform_indices = @transform_3, window_bounds = array<i64: 9, 128, 128>}, {pipeline_mode = #tpu.pipeline_mode<synchronous>, transform_indices = @transform_4, window_bounds = array<i64: 1, 128>}, {pipeline_mode = #tpu.pipeline_mode<synchronous>, transform_indices = @transform_5, window_bounds = array<i64: 9, 128, 128>}, {pipeline_mode = #tpu.pipeline_mode<synchronous>, transform_indices = @transform_6, window_bounds = array<i64: 1, 128>}, {pipeline_mode = #tpu.pipeline_mode<synchronous>, transform_indices = @transform_7, window_bounds = array<i64: 128, 128>}, {pipeline_mode = #tpu.pipeline_mode<synchronous>, transform_indices = @transform_8, window_bounds = array<i64: 1, 128>}, {transform_indices = @transform_9, window_bounds = array<i64: 1, 80, 128>}]} {
    %c0 = arith.constant 0 : index
    %c0_0 = arith.constant 0 : index
    %c0_1 = arith.constant 0 : index
    %0 = vector.load %arg1[%c0, %c0_0, %c0_1] : memref<1x512x3xf32, #tpu.memory_space<vmem>>, vector<1x478x3xf32>
    %1 = vector.shape_cast %0 : vector<1x478x3xf32> to vector<478x3xf32>
    %2 = arith.truncf %1 : vector<478x3xf32> to vector<478x3xbf16>
    %c0_2 = arith.constant 0 : index
    %c0_3 = arith.constant 0 : index
    %c0_4 = arith.constant 0 : index
    %3 = vector.load %arg2[%c0_2, %c0_3, %c0_4] : memref<9x3x128xbf16, #tpu.memory_space<vmem>>, vector<1x3x128xbf16>
    %4 = vector.shape_cast %3 : vector<1x3x128xbf16> to vector<3x128xbf16>
    %cst = arith.constant dense<0.000000e+00> : vector<478x128xf32>
    %5 = tpu.matmul %2, %4, %cst {dimension_numbers = #tpu.dot_dimension_numbers<[1], [0], [0], [1], [0, 0, 1, 1], [], []>} : vector<478x3xbf16>, vector<3x128xbf16>, vector<478x128xf32> -> vector<478x128xf32>
    %c0_5 = arith.constant 0 : index
    %c1 = arith.constant 1 : index
    %c0_6 = arith.constant 0 : index
    %6 = vector.load %arg1[%c0_5, %c1, %c0_6] : memref<1x512x3xf32, #tpu.memory_space<vmem>>, vector<1x478x3xf32>
    %7 = vector.shape_cast %6 : vector<1x478x3xf32> to vector<478x3xf32>
    %8 = arith.truncf %7 : vector<478x3xf32> to vector<478x3xbf16>
    %c1_7 = arith.constant 1 : index
    %c0_8 = arith.constant 0 : index
    %c0_9 = arith.constant 0 : index
    %9 = vector.load %arg2[%c1_7, %c0_8, %c0_9] : memref<9x3x128xbf16, #tpu.memory_space<vmem>>, vector<1x3x128xbf16>
    %10 = vector.shape_cast %9 : vector<1x3x128xbf16> to vector<3x128xbf16>
    %cst_10 = arith.constant dense<0.000000e+00> : vector<478x128xf32>
    %11 = tpu.matmul %8, %10, %cst_10 {dimension_numbers = #tpu.dot_dimension_numbers<[1], [0], [0], [1], [0, 0, 1, 1], [], []>} : vector<478x3xbf16>, vector<3x128xbf16>, vector<478x128xf32> -> vector<478x128xf32>
    %12 = arith.addf %5, %11 : vector<478x128xf32>
    %c0_11 = arith.constant 0 : index
    %c2 = arith.constant 2 : index
    %c0_12 = arith.constant 0 : index
    %13 = vector.load %arg1[%c0_11, %c2, %c0_12] : memref<1x512x3xf32, #tpu.memory_space<vmem>>, vector<1x478x3xf32>
    %14 = vector.shape_cast %13 : vector<1x478x3xf32> to vector<478x3xf32>
    %15 = arith.truncf %14 : vector<478x3xf32> to vector<478x3xbf16>
    %c2_13 = arith.constant 2 : index
    %c0_14 = arith.constant 0 : index
    %c0_15 = arith.constant 0 : index
    %16 = vector.load %arg2[%c2_13, %c0_14, %c0_15] : memref<9x3x128xbf16, #tpu.memory_space<vmem>>, vector<1x3x128xbf16>
    %17 = vector.shape_cast %16 : vector<1x3x128xbf16> to vector<3x128xbf16>
    %cst_16 = arith.constant dense<0.000000e+00> : vector<478x128xf32>
    %18 = tpu.matmul %15, %17, %cst_16 {dimension_numbers = #tpu.dot_dimension_numbers<[1], [0], [0], [1], [0, 0, 1, 1], [], []>} : vector<478x3xbf16>, vector<3x128xbf16>, vector<478x128xf32> -> vector<478x128xf32>
    %19 = arith.addf %12, %18 : vector<478x128xf32>
    %c0_17 = arith.constant 0 : index
    %c16 = arith.constant 16 : index
    %c0_18 = arith.constant 0 : index
    %20 = vector.load %arg1[%c0_17, %c16, %c0_18] : memref<1x512x3xf32, #tpu.memory_space<vmem>>, vector<1x478x3xf32>
    %21 = vector.shape_cast %20 : vector<1x478x3xf32> to vector<478x3xf32>
    %22 = arith.truncf %21 : vector<478x3xf32> to vector<478x3xbf16>
    %c3 = arith.constant 3 : index
    %c0_19 = arith.constant 0 : index
    %c0_20 = arith.constant 0 : index
    %23 = vector.load %arg2[%c3, %c0_19, %c0_20] : memref<9x3x128xbf16, #tpu.memory_space<vmem>>, vector<1x3x128xbf16>
    %24 = vector.shape_cast %23 : vector<1x3x128xbf16> to vector<3x128xbf16>
    %cst_21 = arith.constant dense<0.000000e+00> : vector<478x128xf32>
    %25 = tpu.matmul %22, %24, %cst_21 {dimension_numbers = #tpu.dot_dimension_numbers<[1], [0], [0], [1], [0, 0, 1, 1], [], []>} : vector<478x3xbf16>, vector<3x128xbf16>, vector<478x128xf32> -> vector<478x128xf32>
    %26 = arith.addf %19, %25 : vector<478x128xf32>
    %c0_22 = arith.constant 0 : index
    %c17 = arith.constant 17 : index
    %c0_23 = arith.constant 0 : index
    %27 = vector.load %arg1[%c0_22, %c17, %c0_23] : memref<1x512x3xf32, #tpu.memory_space<vmem>>, vector<1x478x3xf32>
    %28 = vector.shape_cast %27 : vector<1x478x3xf32> to vector<478x3xf32>
    %29 = arith.truncf %28 : vector<478x3xf32> to vector<478x3xbf16>
    %c4 = arith.constant 4 : index
    %c0_24 = arith.constant 0 : index
    %c0_25 = arith.constant 0 : index
    %30 = vector.load %arg2[%c4, %c0_24, %c0_25] : memref<9x3x128xbf16, #tpu.memory_space<vmem>>, vector<1x3x128xbf16>
    %31 = vector.shape_cast %30 : vector<1x3x128xbf16> to vector<3x128xbf16>
    %cst_26 = arith.constant dense<0.000000e+00> : vector<478x128xf32>
    %32 = tpu.matmul %29, %31, %cst_26 {dimension_numbers = #tpu.dot_dimension_numbers<[1], [0], [0], [1], [0, 0, 1, 1], [], []>} : vector<478x3xbf16>, vector<3x128xbf16>, vector<478x128xf32> -> vector<478x128xf32>
    %33 = arith.addf %26, %32 : vector<478x128xf32>
    %c0_27 = arith.constant 0 : index
    %c18 = arith.constant 18 : index
    %c0_28 = arith.constant 0 : index
    %34 = vector.load %arg1[%c0_27, %c18, %c0_28] : memref<1x512x3xf32, #tpu.memory_space<vmem>>, vector<1x478x3xf32>
    %35 = vector.shape_cast %34 : vector<1x478x3xf32> to vector<478x3xf32>
    %36 = arith.truncf %35 : vector<478x3xf32> to vector<478x3xbf16>
    %c5 = arith.constant 5 : index
    %c0_29 = arith.constant 0 : index
    %c0_30 = arith.constant 0 : index
    %37 = vector.load %arg2[%c5, %c0_29, %c0_30] : memref<9x3x128xbf16, #tpu.memory_space<vmem>>, vector<1x3x128xbf16>
    %38 = vector.shape_cast %37 : vector<1x3x128xbf16> to vector<3x128xbf16>
    %cst_31 = arith.constant dense<0.000000e+00> : vector<478x128xf32>
    %39 = tpu.matmul %36, %38, %cst_31 {dimension_numbers = #tpu.dot_dimension_numbers<[1], [0], [0], [1], [0, 0, 1, 1], [], []>} : vector<478x3xbf16>, vector<3x128xbf16>, vector<478x128xf32> -> vector<478x128xf32>
    %40 = arith.addf %33, %39 : vector<478x128xf32>
    %c0_32 = arith.constant 0 : index
    %c32 = arith.constant 32 : index
    %c0_33 = arith.constant 0 : index
    %41 = vector.load %arg1[%c0_32, %c32, %c0_33] : memref<1x512x3xf32, #tpu.memory_space<vmem>>, vector<1x478x3xf32>
    %42 = vector.shape_cast %41 : vector<1x478x3xf32> to vector<478x3xf32>
    %43 = arith.truncf %42 : vector<478x3xf32> to vector<478x3xbf16>
    %c6 = arith.constant 6 : index
    %c0_34 = arith.constant 0 : index
    %c0_35 = arith.constant 0 : index
    %44 = vector.load %arg2[%c6, %c0_34, %c0_35] : memref<9x3x128xbf16, #tpu.memory_space<vmem>>, vector<1x3x128xbf16>
    %45 = vector.shape_cast %44 : vector<1x3x128xbf16> to vector<3x128xbf16>
    %cst_36 = arith.constant dense<0.000000e+00> : vector<478x128xf32>
    %46 = tpu.matmul %43, %45, %cst_36 {dimension_numbers = #tpu.dot_dimension_numbers<[1], [0], [0], [1], [0, 0, 1, 1], [], []>} : vector<478x3xbf16>, vector<3x128xbf16>, vector<478x128xf32> -> vector<478x128xf32>
    %47 = arith.addf %40, %46 : vector<478x128xf32>
    %c0_37 = arith.constant 0 : index
    %c33 = arith.constant 33 : index
    %c0_38 = arith.constant 0 : index
    %48 = vector.load %arg1[%c0_37, %c33, %c0_38] : memref<1x512x3xf32, #tpu.memory_space<vmem>>, vector<1x478x3xf32>
    %49 = vector.shape_cast %48 : vector<1x478x3xf32> to vector<478x3xf32>
    %50 = arith.truncf %49 : vector<478x3xf32> to vector<478x3xbf16>
    %c7 = arith.constant 7 : index
    %c0_39 = arith.constant 0 : index
    %c0_40 = arith.constant 0 : index
    %51 = vector.load %arg2[%c7, %c0_39, %c0_40] : memref<9x3x128xbf16, #tpu.memory_space<vmem>>, vector<1x3x128xbf16>
    %52 = vector.shape_cast %51 : vector<1x3x128xbf16> to vector<3x128xbf16>
    %cst_41 = arith.constant dense<0.000000e+00> : vector<478x128xf32>
    %53 = tpu.matmul %50, %52, %cst_41 {dimension_numbers = #tpu.dot_dimension_numbers<[1], [0], [0], [1], [0, 0, 1, 1], [], []>} : vector<478x3xbf16>, vector<3x128xbf16>, vector<478x128xf32> -> vector<478x128xf32>
    %54 = arith.addf %47, %53 : vector<478x128xf32>
    %c0_42 = arith.constant 0 : index
    %c34 = arith.constant 34 : index
    %c0_43 = arith.constant 0 : index
    %55 = vector.load %arg1[%c0_42, %c34, %c0_43] : memref<1x512x3xf32, #tpu.memory_space<vmem>>, vector<1x478x3xf32>
    %56 = vector.shape_cast %55 : vector<1x478x3xf32> to vector<478x3xf32>
    %57 = arith.truncf %56 : vector<478x3xf32> to vector<478x3xbf16>
    %c8 = arith.constant 8 : index
    %c0_44 = arith.constant 0 : index
    %c0_45 = arith.constant 0 : index
    %58 = vector.load %arg2[%c8, %c0_44, %c0_45] : memref<9x3x128xbf16, #tpu.memory_space<vmem>>, vector<1x3x128xbf16>
    %59 = vector.shape_cast %58 : vector<1x3x128xbf16> to vector<3x128xbf16>
    %cst_46 = arith.constant dense<0.000000e+00> : vector<478x128xf32>
    %60 = tpu.matmul %57, %59, %cst_46 {dimension_numbers = #tpu.dot_dimension_numbers<[1], [0], [0], [1], [0, 0, 1, 1], [], []>} : vector<478x3xbf16>, vector<3x128xbf16>, vector<478x128xf32> -> vector<478x128xf32>
    %61 = arith.addf %54, %60 : vector<478x128xf32>
    %c0_47 = arith.constant 0 : index
    %c0_48 = arith.constant 0 : index
    %62 = vector.load %arg3[%c0_47, %c0_48] : memref<1x128xf32, #tpu.memory_space<vmem>>, vector<1x128xf32>
    %63 = vector.broadcast %62 : vector<1x128xf32> to vector<478x128xf32>
    %64 = arith.addf %61, %63 : vector<478x128xf32>
    %cst_49 = arith.constant 0.000000e+00 : f32
    %65 = vector.broadcast %cst_49 : f32 to vector<478x128xf32>
    %66 = arith.maximumf %64, %65 : vector<478x128xf32>
    %c0_50 = arith.constant 0 : index
    %c0_51 = arith.constant 0 : index
    %67 = vector.load %arg11[%c0_50, %c0_51] : memref<512x128xf32, #tpu.memory_space<vmem>>, vector<478x128xf32>
    tpu.vector_store %arg11[%c0_50, %c0_51], %66 {strides = array<i32>} : memref<512x128xf32, #tpu.memory_space<vmem>>, vector<478x128xf32>,
    %c0_52 = arith.constant 0 : index
    %c0_53 = arith.constant 0 : index
    %68 = tpu.strided_load %arg11[%c0_52, %c0_53] {strides = array<i32: 2, 1>} : memref<512x128xf32, #tpu.memory_space<vmem>>, vector<240x128xf32>
    %c1_54 = arith.constant 1 : index
    %c0_55 = arith.constant 0 : index
    %69 = tpu.strided_load %arg11[%c1_54, %c0_55] {strides = array<i32: 2, 1>} : memref<512x128xf32, #tpu.memory_space<vmem>>, vector<240x128xf32>
    %70 = arith.maximumf %68, %69 : vector<240x128xf32>
    %c0_56 = arith.constant 0 : index
    %c0_57 = arith.constant 0 : index
    %71 = vector.load %arg12[%c0_56, %c0_57] : memref<240x128xf32, #tpu.memory_space<vmem>>, vector<240x128xf32>
    tpu.vector_store %arg12[%c0_56, %c0_57], %70 {strides = array<i32>} : memref<240x128xf32, #tpu.memory_space<vmem>>, vector<240x128xf32>,
    %c0_58 = arith.constant 0 : index
    %c0_59 = arith.constant 0 : index
    %72 = vector.load %arg12[%c0_58, %c0_59] : memref<240x128xf32, #tpu.memory_space<vmem>>, vector<8x128xf32>
    %c8_60 = arith.constant 8 : index
    %c0_61 = arith.constant 0 : index
    %73 = vector.load %arg12[%c8_60, %c0_61] : memref<240x128xf32, #tpu.memory_space<vmem>>, vector<8x128xf32>
    %74 = arith.maximumf %72, %73 : vector<8x128xf32>
    %c0_62 = arith.constant 0 : index
    %c0_63 = arith.constant 0 : index
    %75 = vector.load %arg13[%c0_62, %c0_63] : memref<112x128xf32, #tpu.memory_space<vmem>>, vector<8x128xf32>
    tpu.vector_store %arg13[%c0_62, %c0_63], %74 {strides = array<i32>} : memref<112x128xf32, #tpu.memory_space<vmem>>, vector<8x128xf32>,
    %c16_64 = arith.constant 16 : index
    %c0_65 = arith.constant 0 : index
    %76 = vector.load %arg12[%c16_64, %c0_65] : memref<240x128xf32, #tpu.memory_space<vmem>>, vector<8x128xf32>
    %c24 = arith.constant 24 : index
    %c0_66 = arith.constant 0 : index
    %77 = vector.load %arg12[%c24, %c0_66] : memref<240x128xf32, #tpu.memory_space<vmem>>, vector<8x128xf32>
    %78 = arith.maximumf %76, %77 : vector<8x128xf32>
    %c8_67 = arith.constant 8 : index
    %c0_68 = arith.constant 0 : index
    %79 = vector.load %arg13[%c8_67, %c0_68] : memref<112x128xf32, #tpu.memory_space<vmem>>, vector<8x128xf32>
    tpu.vector_store %arg13[%c8_67, %c0_68], %78 {strides = array<i32>} : memref<112x128xf32, #tpu.memory_space<vmem>>, vector<8x128xf32>,
    %c32_69 = arith.constant 32 : index
    %c0_70 = arith.constant 0 : index
    %80 = vector.load %arg12[%c32_69, %c0_70] : memref<240x128xf32, #tpu.memory_space<vmem>>, vector<8x128xf32>
    %c40 = arith.constant 40 : index
    %c0_71 = arith.constant 0 : index
    %81 = vector.load %arg12[%c40, %c0_71] : memref<240x128xf32, #tpu.memory_space<vmem>>, vector<8x128xf32>
    %82 = arith.maximumf %80, %81 : vector<8x128xf32>
    %c16_72 = arith.constant 16 : index
    %c0_73 = arith.constant 0 : index
    %83 = vector.load %arg13[%c16_72, %c0_73] : memref<112x128xf32, #tpu.memory_space<vmem>>, vector<8x128xf32>
    tpu.vector_store %arg13[%c16_72, %c0_73], %82 {strides = array<i32>} : memref<112x128xf32, #tpu.memory_space<vmem>>, vector<8x128xf32>,
    %c48 = arith.constant 48 : index
    %c0_74 = arith.constant 0 : index
    %84 = vector.load %arg12[%c48, %c0_74] : memref<240x128xf32, #tpu.memory_space<vmem>>, vector<8x128xf32>
    %c56 = arith.constant 56 : index
    %c0_75 = arith.constant 0 : index
    %85 = vector.load %arg12[%c56, %c0_75] : memref<240x128xf32, #tpu.memory_space<vmem>>, vector<8x128xf32>
    %86 = arith.maximumf %84, %85 : vector<8x128xf32>
    %c24_76 = arith.constant 24 : index
    %c0_77 = arith.constant 0 : index
    %87 = vector.load %arg13[%c24_76, %c0_77] : memref<112x128xf32, #tpu.memory_space<vmem>>, vector<8x128xf32>
    tpu.vector_store %arg13[%c24_76, %c0_77], %86 {strides = array<i32>} : memref<112x128xf32, #tpu.memory_space<vmem>>, vector<8x128xf32>,
    %c64 = arith.constant 64 : index
    %c0_78 = arith.constant 0 : index
    %88 = vector.load %arg12[%c64, %c0_78] : memref<240x128xf32, #tpu.memory_space<vmem>>, vector<8x128xf32>
    %c72 = arith.constant 72 : index
    %c0_79 = arith.constant 0 : index
    %89 = vector.load %arg12[%c72, %c0_79] : memref<240x128xf32, #tpu.memory_space<vmem>>, vector<8x128xf32>
    %90 = arith.maximumf %88, %89 : vector<8x128xf32>
    %c32_80 = arith.constant 32 : index
    %c0_81 = arith.constant 0 : index
    %91 = vector.load %arg13[%c32_80, %c0_81] : memref<112x128xf32, #tpu.memory_space<vmem>>, vector<8x128xf32>
    tpu.vector_store %arg13[%c32_80, %c0_81], %90 {strides = array<i32>} : memref<112x128xf32, #tpu.memory_space<vmem>>, vector<8x128xf32>,
    %c80 = arith.constant 80 : index
    %c0_82 = arith.constant 0 : index
    %92 = vector.load %arg12[%c80, %c0_82] : memref<240x128xf32, #tpu.memory_space<vmem>>, vector<8x128xf32>
    %c88 = arith.constant 88 : index
    %c0_83 = arith.constant 0 : index
    %93 = vector.load %arg12[%c88, %c0_83] : memref<240x128xf32, #tpu.memory_space<vmem>>, vector<8x128xf32>
    %94 = arith.maximumf %92, %93 : vector<8x128xf32>
    %c40_84 = arith.constant 40 : index
    %c0_85 = arith.constant 0 : index
    %95 = vector.load %arg13[%c40_84, %c0_85] : memref<112x128xf32, #tpu.memory_space<vmem>>, vector<8x128xf32>
    tpu.vector_store %arg13[%c40_84, %c0_85], %94 {strides = array<i32>} : memref<112x128xf32, #tpu.memory_space<vmem>>, vector<8x128xf32>,
    %c96 = arith.constant 96 : index
    %c0_86 = arith.constant 0 : index
    %96 = vector.load %arg12[%c96, %c0_86] : memref<240x128xf32, #tpu.memory_space<vmem>>, vector<8x128xf32>
    %c104 = arith.constant 104 : index
    %c0_87 = arith.constant 0 : index
    %97 = vector.load %arg12[%c104, %c0_87] : memref<240x128xf32, #tpu.memory_space<vmem>>, vector<8x128xf32>
    %98 = arith.maximumf %96, %97 : vector<8x128xf32>
    %c48_88 = arith.constant 48 : index
    %c0_89 = arith.constant 0 : index
    %99 = vector.load %arg13[%c48_88, %c0_89] : memref<112x128xf32, #tpu.memory_space<vmem>>, vector<8x128xf32>
    tpu.vector_store %arg13[%c48_88, %c0_89], %98 {strides = array<i32>} : memref<112x128xf32, #tpu.memory_space<vmem>>, vector<8x128xf32>,
    %c128 = arith.constant 128 : index
    %c0_90 = arith.constant 0 : index
    %100 = vector.load %arg12[%c128, %c0_90] : memref<240x128xf32, #tpu.memory_space<vmem>>, vector<8x128xf32>
    %c136 = arith.constant 136 : index
    %c0_91 = arith.constant 0 : index
    %101 = vector.load %arg12[%c136, %c0_91] : memref<240x128xf32, #tpu.memory_space<vmem>>, vector<8x128xf32>
    %102 = arith.maximumf %100, %101 : vector<8x128xf32>
    %c56_92 = arith.constant 56 : index
    %c0_93 = arith.constant 0 : index
    %103 = vector.load %arg13[%c56_92, %c0_93] : memref<112x128xf32, #tpu.memory_space<vmem>>, vector<8x128xf32>
    tpu.vector_store %arg13[%c56_92, %c0_93], %102 {strides = array<i32>} : memref<112x128xf32, #tpu.memory_space<vmem>>, vector<8x128xf32>,
    %c144 = arith.constant 144 : index
    %c0_94 = arith.constant 0 : index
    %104 = vector.load %arg12[%c144, %c0_94] : memref<240x128xf32, #tpu.memory_space<vmem>>, vector<8x128xf32>
    %c152 = arith.constant 152 : index
    %c0_95 = arith.constant 0 : index
    %105 = vector.load %arg12[%c152, %c0_95] : memref<240x128xf32, #tpu.memory_space<vmem>>, vector<8x128xf32>
    %106 = arith.maximumf %104, %105 : vector<8x128xf32>
    %c64_96 = arith.constant 64 : index
    %c0_97 = arith.constant 0 : index
    %107 = vector.load %arg13[%c64_96, %c0_97] : memref<112x128xf32, #tpu.memory_space<vmem>>, vector<8x128xf32>
    tpu.vector_store %arg13[%c64_96, %c0_97], %106 {strides = array<i32>} : memref<112x128xf32, #tpu.memory_space<vmem>>, vector<8x128xf32>,
    %c160 = arith.constant 160 : index
    %c0_98 = arith.constant 0 : index
    %108 = vector.load %arg12[%c160, %c0_98] : memref<240x128xf32, #tpu.memory_space<vmem>>, vector<8x128xf32>
    %c168 = arith.constant 168 : index
    %c0_99 = arith.constant 0 : index
    %109 = vector.load %arg12[%c168, %c0_99] : memref<240x128xf32, #tpu.memory_space<vmem>>, vector<8x128xf32>
    %110 = arith.maximumf %108, %109 : vector<8x128xf32>
    %c72_100 = arith.constant 72 : index
    %c0_101 = arith.constant 0 : index
    %111 = vector.load %arg13[%c72_100, %c0_101] : memref<112x128xf32, #tpu.memory_space<vmem>>, vector<8x128xf32>
    tpu.vector_store %arg13[%c72_100, %c0_101], %110 {strides = array<i32>} : memref<112x128xf32, #tpu.memory_space<vmem>>, vector<8x128xf32>,
    %c176 = arith.constant 176 : index
    %c0_102 = arith.constant 0 : index
    %112 = vector.load %arg12[%c176, %c0_102] : memref<240x128xf32, #tpu.memory_space<vmem>>, vector<8x128xf32>
    %c184 = arith.constant 184 : index
    %c0_103 = arith.constant 0 : index
    %113 = vector.load %arg12[%c184, %c0_103] : memref<240x128xf32, #tpu.memory_space<vmem>>, vector<8x128xf32>
    %114 = arith.maximumf %112, %113 : vector<8x128xf32>
    %c80_104 = arith.constant 80 : index
    %c0_105 = arith.constant 0 : index
    %115 = vector.load %arg13[%c80_104, %c0_105] : memref<112x128xf32, #tpu.memory_space<vmem>>, vector<8x128xf32>
    tpu.vector_store %arg13[%c80_104, %c0_105], %114 {strides = array<i32>} : memref<112x128xf32, #tpu.memory_space<vmem>>, vector<8x128xf32>,
    %c192 = arith.constant 192 : index
    %c0_106 = arith.constant 0 : index
    %116 = vector.load %arg12[%c192, %c0_106] : memref<240x128xf32, #tpu.memory_space<vmem>>, vector<8x128xf32>
    %c200 = arith.constant 200 : index
    %c0_107 = arith.constant 0 : index
    %117 = vector.load %arg12[%c200, %c0_107] : memref<240x128xf32, #tpu.memory_space<vmem>>, vector<8x128xf32>
    %118 = arith.maximumf %116, %117 : vector<8x128xf32>
    %c88_108 = arith.constant 88 : index
    %c0_109 = arith.constant 0 : index
    %119 = vector.load %arg13[%c88_108, %c0_109] : memref<112x128xf32, #tpu.memory_space<vmem>>, vector<8x128xf32>
    tpu.vector_store %arg13[%c88_108, %c0_109], %118 {strides = array<i32>} : memref<112x128xf32, #tpu.memory_space<vmem>>, vector<8x128xf32>,
    %c208 = arith.constant 208 : index
    %c0_110 = arith.constant 0 : index
    %120 = vector.load %arg12[%c208, %c0_110] : memref<240x128xf32, #tpu.memory_space<vmem>>, vector<8x128xf32>
    %c216 = arith.constant 216 : index
    %c0_111 = arith.constant 0 : index
    %121 = vector.load %arg12[%c216, %c0_111] : memref<240x128xf32, #tpu.memory_space<vmem>>, vector<8x128xf32>
    %122 = arith.maximumf %120, %121 : vector<8x128xf32>
    %c96_112 = arith.constant 96 : index
    %c0_113 = arith.constant 0 : index
    %123 = vector.load %arg13[%c96_112, %c0_113] : memref<112x128xf32, #tpu.memory_space<vmem>>, vector<8x128xf32>
    tpu.vector_store %arg13[%c96_112, %c0_113], %122 {strides = array<i32>} : memref<112x128xf32, #tpu.memory_space<vmem>>, vector<8x128xf32>,
    %c224 = arith.constant 224 : index
    %c0_114 = arith.constant 0 : index
    %124 = vector.load %arg12[%c224, %c0_114] : memref<240x128xf32, #tpu.memory_space<vmem>>, vector<8x128xf32>
    %c232 = arith.constant 232 : index
    %c0_115 = arith.constant 0 : index
    %125 = vector.load %arg12[%c232, %c0_115] : memref<240x128xf32, #tpu.memory_space<vmem>>, vector<8x128xf32>
    %126 = arith.maximumf %124, %125 : vector<8x128xf32>
    %c104_116 = arith.constant 104 : index
    %c0_117 = arith.constant 0 : index
    %127 = vector.load %arg13[%c104_116, %c0_117] : memref<112x128xf32, #tpu.memory_space<vmem>>, vector<8x128xf32>
    tpu.vector_store %arg13[%c104_116, %c0_117], %126 {strides = array<i32>} : memref<112x128xf32, #tpu.memory_space<vmem>>, vector<8x128xf32>,
    %c0_118 = arith.constant 0 : index
    %c0_119 = arith.constant 0 : index
    %128 = vector.load %arg13[%c0_118, %c0_119] : memref<112x128xf32, #tpu.memory_space<vmem>>, vector<93x128xf32>
    %129 = arith.truncf %128 : vector<93x128xf32> to vector<93x128xbf16>
    %c0_120 = arith.constant 0 : index
    %c0_121 = arith.constant 0 : index
    %c0_122 = arith.constant 0 : index
    %130 = vector.load %arg4[%c0_120, %c0_121, %c0_122] : memref<9x128x128xbf16, #tpu.memory_space<vmem>>, vector<1x128x128xbf16>
    %131 = vector.shape_cast %130 : vector<1x128x128xbf16> to vector<128x128xbf16>
    %cst_123 = arith.constant dense<0.000000e+00> : vector<93x128xf32>
    %132 = tpu.matmul %129, %131, %cst_123 {dimension_numbers = #tpu.dot_dimension_numbers<[1], [0], [0], [1], [0, 0, 1, 1], [], []>} : vector<93x128xbf16>, vector<128x128xbf16>, vector<93x128xf32> -> vector<93x128xf32>
    %c1_124 = arith.constant 1 : index
    %c0_125 = arith.constant 0 : index
    %133 = vector.load %arg13[%c1_124, %c0_125] : memref<112x128xf32, #tpu.memory_space<vmem>>, vector<93x128xf32>
    %134 = arith.truncf %133 : vector<93x128xf32> to vector<93x128xbf16>
    %c1_126 = arith.constant 1 : index
    %c0_127 = arith.constant 0 : index
    %c0_128 = arith.constant 0 : index
    %135 = vector.load %arg4[%c1_126, %c0_127, %c0_128] : memref<9x128x128xbf16, #tpu.memory_space<vmem>>, vector<1x128x128xbf16>
    %136 = vector.shape_cast %135 : vector<1x128x128xbf16> to vector<128x128xbf16>
    %cst_129 = arith.constant dense<0.000000e+00> : vector<93x128xf32>
    %137 = tpu.matmul %134, %136, %cst_129 {dimension_numbers = #tpu.dot_dimension_numbers<[1], [0], [0], [1], [0, 0, 1, 1], [], []>} : vector<93x128xbf16>, vector<128x128xbf16>, vector<93x128xf32> -> vector<93x128xf32>
    %138 = arith.addf %132, %137 : vector<93x128xf32>
    %c2_130 = arith.constant 2 : index
    %c0_131 = arith.constant 0 : index
    %139 = vector.load %arg13[%c2_130, %c0_131] : memref<112x128xf32, #tpu.memory_space<vmem>>, vector<93x128xf32>
    %140 = arith.truncf %139 : vector<93x128xf32> to vector<93x128xbf16>
    %c2_132 = arith.constant 2 : index
    %c0_133 = arith.constant 0 : index
    %c0_134 = arith.constant 0 : index
    %141 = vector.load %arg4[%c2_132, %c0_133, %c0_134] : memref<9x128x128xbf16, #tpu.memory_space<vmem>>, vector<1x128x128xbf16>
    %142 = vector.shape_cast %141 : vector<1x128x128xbf16> to vector<128x128xbf16>
    %cst_135 = arith.constant dense<0.000000e+00> : vector<93x128xf32>
    %143 = tpu.matmul %140, %142, %cst_135 {dimension_numbers = #tpu.dot_dimension_numbers<[1], [0], [0], [1], [0, 0, 1, 1], [], []>} : vector<93x128xbf16>, vector<128x128xbf16>, vector<93x128xf32> -> vector<93x128xf32>
    %144 = arith.addf %138, %143 : vector<93x128xf32>
    %c8_136 = arith.constant 8 : index
    %c0_137 = arith.constant 0 : index
    %145 = vector.load %arg13[%c8_136, %c0_137] : memref<112x128xf32, #tpu.memory_space<vmem>>, vector<93x128xf32>
    %146 = arith.truncf %145 : vector<93x128xf32> to vector<93x128xbf16>
    %c3_138 = arith.constant 3 : index
    %c0_139 = arith.constant 0 : index
    %c0_140 = arith.constant 0 : index
    %147 = vector.load %arg4[%c3_138, %c0_139, %c0_140] : memref<9x128x128xbf16, #tpu.memory_space<vmem>>, vector<1x128x128xbf16>
    %148 = vector.shape_cast %147 : vector<1x128x128xbf16> to vector<128x128xbf16>
    %cst_141 = arith.constant dense<0.000000e+00> : vector<93x128xf32>
    %149 = tpu.matmul %146, %148, %cst_141 {dimension_numbers = #tpu.dot_dimension_numbers<[1], [0], [0], [1], [0, 0, 1, 1], [], []>} : vector<93x128xbf16>, vector<128x128xbf16>, vector<93x128xf32> -> vector<93x128xf32>
    %150 = arith.addf %144, %149 : vector<93x128xf32>
    %c9 = arith.constant 9 : index
    %c0_142 = arith.constant 0 : index
    %151 = vector.load %arg13[%c9, %c0_142] : memref<112x128xf32, #tpu.memory_space<vmem>>, vector<93x128xf32>
    %152 = arith.truncf %151 : vector<93x128xf32> to vector<93x128xbf16>
    %c4_143 = arith.constant 4 : index
    %c0_144 = arith.constant 0 : index
    %c0_145 = arith.constant 0 : index
    %153 = vector.load %arg4[%c4_143, %c0_144, %c0_145] : memref<9x128x128xbf16, #tpu.memory_space<vmem>>, vector<1x128x128xbf16>
    %154 = vector.shape_cast %153 : vector<1x128x128xbf16> to vector<128x128xbf16>
    %cst_146 = arith.constant dense<0.000000e+00> : vector<93x128xf32>
    %155 = tpu.matmul %152, %154, %cst_146 {dimension_numbers = #tpu.dot_dimension_numbers<[1], [0], [0], [1], [0, 0, 1, 1], [], []>} : vector<93x128xbf16>, vector<128x128xbf16>, vector<93x128xf32> -> vector<93x128xf32>
    %156 = arith.addf %150, %155 : vector<93x128xf32>
    %c10 = arith.constant 10 : index
    %c0_147 = arith.constant 0 : index
    %157 = vector.load %arg13[%c10, %c0_147] : memref<112x128xf32, #tpu.memory_space<vmem>>, vector<93x128xf32>
    %158 = arith.truncf %157 : vector<93x128xf32> to vector<93x128xbf16>
    %c5_148 = arith.constant 5 : index
    %c0_149 = arith.constant 0 : index
    %c0_150 = arith.constant 0 : index
    %159 = vector.load %arg4[%c5_148, %c0_149, %c0_150] : memref<9x128x128xbf16, #tpu.memory_space<vmem>>, vector<1x128x128xbf16>
    %160 = vector.shape_cast %159 : vector<1x128x128xbf16> to vector<128x128xbf16>
    %cst_151 = arith.constant dense<0.000000e+00> : vector<93x128xf32>
    %161 = tpu.matmul %158, %160, %cst_151 {dimension_numbers = #tpu.dot_dimension_numbers<[1], [0], [0], [1], [0, 0, 1, 1], [], []>} : vector<93x128xbf16>, vector<128x128xbf16>, vector<93x128xf32> -> vector<93x128xf32>
    %162 = arith.addf %156, %161 : vector<93x128xf32>
    %c16_152 = arith.constant 16 : index
    %c0_153 = arith.constant 0 : index
    %163 = vector.load %arg13[%c16_152, %c0_153] : memref<112x128xf32, #tpu.memory_space<vmem>>, vector<93x128xf32>
    %164 = arith.truncf %163 : vector<93x128xf32> to vector<93x128xbf16>
    %c6_154 = arith.constant 6 : index
    %c0_155 = arith.constant 0 : index
    %c0_156 = arith.constant 0 : index
    %165 = vector.load %arg4[%c6_154, %c0_155, %c0_156] : memref<9x128x128xbf16, #tpu.memory_space<vmem>>, vector<1x128x128xbf16>
    %166 = vector.shape_cast %165 : vector<1x128x128xbf16> to vector<128x128xbf16>
    %cst_157 = arith.constant dense<0.000000e+00> : vector<93x128xf32>
    %167 = tpu.matmul %164, %166, %cst_157 {dimension_numbers = #tpu.dot_dimension_numbers<[1], [0], [0], [1], [0, 0, 1, 1], [], []>} : vector<93x128xbf16>, vector<128x128xbf16>, vector<93x128xf32> -> vector<93x128xf32>
    %168 = arith.addf %162, %167 : vector<93x128xf32>
    %c17_158 = arith.constant 17 : index
    %c0_159 = arith.constant 0 : index
    %169 = vector.load %arg13[%c17_158, %c0_159] : memref<112x128xf32, #tpu.memory_space<vmem>>, vector<93x128xf32>
    %170 = arith.truncf %169 : vector<93x128xf32> to vector<93x128xbf16>
    %c7_160 = arith.constant 7 : index
    %c0_161 = arith.constant 0 : index
    %c0_162 = arith.constant 0 : index
    %171 = vector.load %arg4[%c7_160, %c0_161, %c0_162] : memref<9x128x128xbf16, #tpu.memory_space<vmem>>, vector<1x128x128xbf16>
    %172 = vector.shape_cast %171 : vector<1x128x128xbf16> to vector<128x128xbf16>
    %cst_163 = arith.constant dense<0.000000e+00> : vector<93x128xf32>
    %173 = tpu.matmul %170, %172, %cst_163 {dimension_numbers = #tpu.dot_dimension_numbers<[1], [0], [0], [1], [0, 0, 1, 1], [], []>} : vector<93x128xbf16>, vector<128x128xbf16>, vector<93x128xf32> -> vector<93x128xf32>
    %174 = arith.addf %168, %173 : vector<93x128xf32>
    %c18_164 = arith.constant 18 : index
    %c0_165 = arith.constant 0 : index
    %175 = vector.load %arg13[%c18_164, %c0_165] : memref<112x128xf32, #tpu.memory_space<vmem>>, vector<93x128xf32>
    %176 = arith.truncf %175 : vector<93x128xf32> to vector<93x128xbf16>
    %c8_166 = arith.constant 8 : index
    %c0_167 = arith.constant 0 : index
    %c0_168 = arith.constant 0 : index
    %177 = vector.load %arg4[%c8_166, %c0_167, %c0_168] : memref<9x128x128xbf16, #tpu.memory_space<vmem>>, vector<1x128x128xbf16>
    %178 = vector.shape_cast %177 : vector<1x128x128xbf16> to vector<128x128xbf16>
    %cst_169 = arith.constant dense<0.000000e+00> : vector<93x128xf32>
    %179 = tpu.matmul %176, %178, %cst_169 {dimension_numbers = #tpu.dot_dimension_numbers<[1], [0], [0], [1], [0, 0, 1, 1], [], []>} : vector<93x128xbf16>, vector<128x128xbf16>, vector<93x128xf32> -> vector<93x128xf32>
    %180 = arith.addf %174, %179 : vector<93x128xf32>
    %c0_170 = arith.constant 0 : index
    %c0_171 = arith.constant 0 : index
    %181 = vector.load %arg5[%c0_170, %c0_171] : memref<1x128xf32, #tpu.memory_space<vmem>>, vector<1x128xf32>
    %182 = vector.broadcast %181 : vector<1x128xf32> to vector<93x128xf32>
    %183 = arith.addf %180, %182 : vector<93x128xf32>
    %cst_172 = arith.constant 0.000000e+00 : f32
    %184 = vector.broadcast %cst_172 : f32 to vector<93x128xf32>
    %185 = arith.maximumf %183, %184 : vector<93x128xf32>
    %c0_173 = arith.constant 0 : index
    %c0_174 = arith.constant 0 : index
    %186 = vector.load %arg14[%c0_173, %c0_174] : memref<96x128xf32, #tpu.memory_space<vmem>>, vector<93x128xf32>
    tpu.vector_store %arg14[%c0_173, %c0_174], %185 {strides = array<i32>} : memref<96x128xf32, #tpu.memory_space<vmem>>, vector<93x128xf32>,
    %c0_175 = arith.constant 0 : index
    %c0_176 = arith.constant 0 : index
    %187 = vector.load %arg14[%c0_175, %c0_176] : memref<96x128xf32, #tpu.memory_space<vmem>>, vector<75x128xf32>
    %188 = arith.truncf %187 : vector<75x128xf32> to vector<75x128xbf16>
    %c0_177 = arith.constant 0 : index
    %c0_178 = arith.constant 0 : index
    %c0_179 = arith.constant 0 : index
    %189 = vector.load %arg6[%c0_177, %c0_178, %c0_179] : memref<9x128x128xbf16, #tpu.memory_space<vmem>>, vector<1x128x128xbf16>
    %190 = vector.shape_cast %189 : vector<1x128x128xbf16> to vector<128x128xbf16>
    %cst_180 = arith.constant dense<0.000000e+00> : vector<75x128xf32>
    %191 = tpu.matmul %188, %190, %cst_180 {dimension_numbers = #tpu.dot_dimension_numbers<[1], [0], [0], [1], [0, 0, 1, 1], [], []>} : vector<75x128xbf16>, vector<128x128xbf16>, vector<75x128xf32> -> vector<75x128xf32>
    %c1_181 = arith.constant 1 : index
    %c0_182 = arith.constant 0 : index
    %192 = vector.load %arg14[%c1_181, %c0_182] : memref<96x128xf32, #tpu.memory_space<vmem>>, vector<75x128xf32>
    %193 = arith.truncf %192 : vector<75x128xf32> to vector<75x128xbf16>
    %c1_183 = arith.constant 1 : index
    %c0_184 = arith.constant 0 : index
    %c0_185 = arith.constant 0 : index
    %194 = vector.load %arg6[%c1_183, %c0_184, %c0_185] : memref<9x128x128xbf16, #tpu.memory_space<vmem>>, vector<1x128x128xbf16>
    %195 = vector.shape_cast %194 : vector<1x128x128xbf16> to vector<128x128xbf16>
    %cst_186 = arith.constant dense<0.000000e+00> : vector<75x128xf32>
    %196 = tpu.matmul %193, %195, %cst_186 {dimension_numbers = #tpu.dot_dimension_numbers<[1], [0], [0], [1], [0, 0, 1, 1], [], []>} : vector<75x128xbf16>, vector<128x128xbf16>, vector<75x128xf32> -> vector<75x128xf32>
    %197 = arith.addf %191, %196 : vector<75x128xf32>
    %c2_187 = arith.constant 2 : index
    %c0_188 = arith.constant 0 : index
    %198 = vector.load %arg14[%c2_187, %c0_188] : memref<96x128xf32, #tpu.memory_space<vmem>>, vector<75x128xf32>
    %199 = arith.truncf %198 : vector<75x128xf32> to vector<75x128xbf16>
    %c2_189 = arith.constant 2 : index
    %c0_190 = arith.constant 0 : index
    %c0_191 = arith.constant 0 : index
    %200 = vector.load %arg6[%c2_189, %c0_190, %c0_191] : memref<9x128x128xbf16, #tpu.memory_space<vmem>>, vector<1x128x128xbf16>
    %201 = vector.shape_cast %200 : vector<1x128x128xbf16> to vector<128x128xbf16>
    %cst_192 = arith.constant dense<0.000000e+00> : vector<75x128xf32>
    %202 = tpu.matmul %199, %201, %cst_192 {dimension_numbers = #tpu.dot_dimension_numbers<[1], [0], [0], [1], [0, 0, 1, 1], [], []>} : vector<75x128xbf16>, vector<128x128xbf16>, vector<75x128xf32> -> vector<75x128xf32>
    %203 = arith.addf %197, %202 : vector<75x128xf32>
    %c8_193 = arith.constant 8 : index
    %c0_194 = arith.constant 0 : index
    %204 = vector.load %arg14[%c8_193, %c0_194] : memref<96x128xf32, #tpu.memory_space<vmem>>, vector<75x128xf32>
    %205 = arith.truncf %204 : vector<75x128xf32> to vector<75x128xbf16>
    %c3_195 = arith.constant 3 : index
    %c0_196 = arith.constant 0 : index
    %c0_197 = arith.constant 0 : index
    %206 = vector.load %arg6[%c3_195, %c0_196, %c0_197] : memref<9x128x128xbf16, #tpu.memory_space<vmem>>, vector<1x128x128xbf16>
    %207 = vector.shape_cast %206 : vector<1x128x128xbf16> to vector<128x128xbf16>
    %cst_198 = arith.constant dense<0.000000e+00> : vector<75x128xf32>
    %208 = tpu.matmul %205, %207, %cst_198 {dimension_numbers = #tpu.dot_dimension_numbers<[1], [0], [0], [1], [0, 0, 1, 1], [], []>} : vector<75x128xbf16>, vector<128x128xbf16>, vector<75x128xf32> -> vector<75x128xf32>
    %209 = arith.addf %203, %208 : vector<75x128xf32>
    %c9_199 = arith.constant 9 : index
    %c0_200 = arith.constant 0 : index
    %210 = vector.load %arg14[%c9_199, %c0_200] : memref<96x128xf32, #tpu.memory_space<vmem>>, vector<75x128xf32>
    %211 = arith.truncf %210 : vector<75x128xf32> to vector<75x128xbf16>
    %c4_201 = arith.constant 4 : index
    %c0_202 = arith.constant 0 : index
    %c0_203 = arith.constant 0 : index
    %212 = vector.load %arg6[%c4_201, %c0_202, %c0_203] : memref<9x128x128xbf16, #tpu.memory_space<vmem>>, vector<1x128x128xbf16>
    %213 = vector.shape_cast %212 : vector<1x128x128xbf16> to vector<128x128xbf16>
    %cst_204 = arith.constant dense<0.000000e+00> : vector<75x128xf32>
    %214 = tpu.matmul %211, %213, %cst_204 {dimension_numbers = #tpu.dot_dimension_numbers<[1], [0], [0], [1], [0, 0, 1, 1], [], []>} : vector<75x128xbf16>, vector<128x128xbf16>, vector<75x128xf32> -> vector<75x128xf32>
    %215 = arith.addf %209, %214 : vector<75x128xf32>
    %c10_205 = arith.constant 10 : index
    %c0_206 = arith.constant 0 : index
    %216 = vector.load %arg14[%c10_205, %c0_206] : memref<96x128xf32, #tpu.memory_space<vmem>>, vector<75x128xf32>
    %217 = arith.truncf %216 : vector<75x128xf32> to vector<75x128xbf16>
    %c5_207 = arith.constant 5 : index
    %c0_208 = arith.constant 0 : index
    %c0_209 = arith.constant 0 : index
    %218 = vector.load %arg6[%c5_207, %c0_208, %c0_209] : memref<9x128x128xbf16, #tpu.memory_space<vmem>>, vector<1x128x128xbf16>
    %219 = vector.shape_cast %218 : vector<1x128x128xbf16> to vector<128x128xbf16>
    %cst_210 = arith.constant dense<0.000000e+00> : vector<75x128xf32>
    %220 = tpu.matmul %217, %219, %cst_210 {dimension_numbers = #tpu.dot_dimension_numbers<[1], [0], [0], [1], [0, 0, 1, 1], [], []>} : vector<75x128xbf16>, vector<128x128xbf16>, vector<75x128xf32> -> vector<75x128xf32>
    %221 = arith.addf %215, %220 : vector<75x128xf32>
    %c16_211 = arith.constant 16 : index
    %c0_212 = arith.constant 0 : index
    %222 = vector.load %arg14[%c16_211, %c0_212] : memref<96x128xf32, #tpu.memory_space<vmem>>, vector<75x128xf32>
    %223 = arith.truncf %222 : vector<75x128xf32> to vector<75x128xbf16>
    %c6_213 = arith.constant 6 : index
    %c0_214 = arith.constant 0 : index
    %c0_215 = arith.constant 0 : index
    %224 = vector.load %arg6[%c6_213, %c0_214, %c0_215] : memref<9x128x128xbf16, #tpu.memory_space<vmem>>, vector<1x128x128xbf16>
    %225 = vector.shape_cast %224 : vector<1x128x128xbf16> to vector<128x128xbf16>
    %cst_216 = arith.constant dense<0.000000e+00> : vector<75x128xf32>
    %226 = tpu.matmul %223, %225, %cst_216 {dimension_numbers = #tpu.dot_dimension_numbers<[1], [0], [0], [1], [0, 0, 1, 1], [], []>} : vector<75x128xbf16>, vector<128x128xbf16>, vector<75x128xf32> -> vector<75x128xf32>
    %227 = arith.addf %221, %226 : vector<75x128xf32>
    %c17_217 = arith.constant 17 : index
    %c0_218 = arith.constant 0 : index
    %228 = vector.load %arg14[%c17_217, %c0_218] : memref<96x128xf32, #tpu.memory_space<vmem>>, vector<75x128xf32>
    %229 = arith.truncf %228 : vector<75x128xf32> to vector<75x128xbf16>
    %c7_219 = arith.constant 7 : index
    %c0_220 = arith.constant 0 : index
    %c0_221 = arith.constant 0 : index
    %230 = vector.load %arg6[%c7_219, %c0_220, %c0_221] : memref<9x128x128xbf16, #tpu.memory_space<vmem>>, vector<1x128x128xbf16>
    %231 = vector.shape_cast %230 : vector<1x128x128xbf16> to vector<128x128xbf16>
    %cst_222 = arith.constant dense<0.000000e+00> : vector<75x128xf32>
    %232 = tpu.matmul %229, %231, %cst_222 {dimension_numbers = #tpu.dot_dimension_numbers<[1], [0], [0], [1], [0, 0, 1, 1], [], []>} : vector<75x128xbf16>, vector<128x128xbf16>, vector<75x128xf32> -> vector<75x128xf32>
    %233 = arith.addf %227, %232 : vector<75x128xf32>
    %c18_223 = arith.constant 18 : index
    %c0_224 = arith.constant 0 : index
    %234 = vector.load %arg14[%c18_223, %c0_224] : memref<96x128xf32, #tpu.memory_space<vmem>>, vector<75x128xf32>
    %235 = arith.truncf %234 : vector<75x128xf32> to vector<75x128xbf16>
    %c8_225 = arith.constant 8 : index
    %c0_226 = arith.constant 0 : index
    %c0_227 = arith.constant 0 : index
    %236 = vector.load %arg6[%c8_225, %c0_226, %c0_227] : memref<9x128x128xbf16, #tpu.memory_space<vmem>>, vector<1x128x128xbf16>
    %237 = vector.shape_cast %236 : vector<1x128x128xbf16> to vector<128x128xbf16>
    %cst_228 = arith.constant dense<0.000000e+00> : vector<75x128xf32>
    %238 = tpu.matmul %235, %237, %cst_228 {dimension_numbers = #tpu.dot_dimension_numbers<[1], [0], [0], [1], [0, 0, 1, 1], [], []>} : vector<75x128xbf16>, vector<128x128xbf16>, vector<75x128xf32> -> vector<75x128xf32>
    %239 = arith.addf %233, %238 : vector<75x128xf32>
    %c0_229 = arith.constant 0 : index
    %c0_230 = arith.constant 0 : index
    %240 = vector.load %arg7[%c0_229, %c0_230] : memref<1x128xf32, #tpu.memory_space<vmem>>, vector<1x128xf32>
    %241 = vector.broadcast %240 : vector<1x128xf32> to vector<75x128xf32>
    %242 = arith.addf %239, %241 : vector<75x128xf32>
    %cst_231 = arith.constant 0.000000e+00 : f32
    %243 = vector.broadcast %cst_231 : f32 to vector<75x128xf32>
    %244 = arith.maximumf %242, %243 : vector<75x128xf32>
    %c0_232 = arith.constant 0 : index
    %c0_233 = arith.constant 0 : index
    %245 = vector.load %arg15[%c0_232, %c0_233] : memref<80x128xf32, #tpu.memory_space<vmem>>, vector<75x128xf32>
    tpu.vector_store %arg15[%c0_232, %c0_233], %244 {strides = array<i32>} : memref<80x128xf32, #tpu.memory_space<vmem>>, vector<75x128xf32>,
    %c0_234 = arith.constant 0 : index
    %c0_235 = arith.constant 0 : index
    %246 = vector.load %arg15[%c0_234, %c0_235] : memref<80x128xf32, #tpu.memory_space<vmem>>, vector<80x128xf32>
    %247 = arith.truncf %246 : vector<80x128xf32> to vector<80x128xbf16>
    %c0_236 = arith.constant 0 : index
    %c0_237 = arith.constant 0 : index
    %248 = vector.load %arg8[%c0_236, %c0_237] : memref<128x128xbf16, #tpu.memory_space<vmem>>, vector<128x128xbf16>
    %cst_238 = arith.constant dense<0.000000e+00> : vector<80x128xf32>
    %249 = tpu.matmul %247, %248, %cst_238 {dimension_numbers = #tpu.dot_dimension_numbers<[1], [0], [0], [1], [0, 0, 1, 1], [], []>} : vector<80x128xbf16>, vector<128x128xbf16>, vector<80x128xf32> -> vector<80x128xf32>
    %c0_239 = arith.constant 0 : index
    %c0_240 = arith.constant 0 : index
    %250 = vector.load %arg9[%c0_239, %c0_240] : memref<1x128xf32, #tpu.memory_space<vmem>>, vector<1x128xf32>
    %251 = vector.broadcast %250 : vector<1x128xf32> to vector<80x128xf32>
    %252 = arith.addf %249, %251 : vector<80x128xf32>
    %253 = vector.extract_strided_slice %252 {offsets = [0, 0], sizes = [80, 1], strides = [1, 1]} : vector<80x128xf32> to vector<80x1xf32>
    %254 = vector.extract_strided_slice %252 {offsets = [0, 1], sizes = [80, 1], strides = [1, 1]} : vector<80x128xf32> to vector<80x1xf32>
    %255 = arith.subf %253, %254 : vector<80x1xf32>
    %cst_241 = arith.constant 0.000000e+00 : f32
    %256 = vector.broadcast %cst_241 : f32 to vector<80x1xf32>
    %257 = arith.subf %256, %255 : vector<80x1xf32>
    %258 = math.exp %257 : vector<80x1xf32>
    %cst_242 = arith.constant 1.000000e+00 : f32
    %259 = vector.broadcast %cst_242 : f32 to vector<80x1xf32>
    %260 = arith.addf %259, %258 : vector<80x1xf32>
    %cst_243 = arith.constant 1.000000e+00 : f32
    %261 = vector.broadcast %cst_243 : f32 to vector<80x1xf32>
    %262 = arith.divf %261, %260 : vector<80x1xf32>
    %263 = tpu.iota {dimensions = array<i32: 1>} : vector<80x128xi32>
    %c0_i32 = arith.constant 0 : i32
    %264 = vector.broadcast %c0_i32 : i32 to vector<80x128xi32>
    %265 = arith.cmpi eq, %263, %264 : vector<80x128xi32>
    %c1_i32 = arith.constant 1 : i32
    %266 = vector.broadcast %c1_i32 : i32 to vector<80x128xi32>
    %267 = arith.cmpi eq, %263, %266 : vector<80x128xi32>
    %cst_244 = arith.constant 1.000000e+00 : f32
    %268 = vector.broadcast %cst_244 : f32 to vector<80x1xf32>
    %269 = arith.subf %268, %262 : vector<80x1xf32>
    %270 = vector.shape_cast %269 : vector<80x1xf32> to vector<80x1xf32>
    %271 = vector.broadcast %270 : vector<80x1xf32> to vector<80x128xf32>
    %272 = arith.select %267, %271, %252 : vector<80x128xi1>, vector<80x128xf32>
    %273 = vector.shape_cast %262 : vector<80x1xf32> to vector<80x1xf32>
    %274 = vector.broadcast %273 : vector<80x1xf32> to vector<80x128xf32>
    %275 = arith.select %265, %274, %272 : vector<80x128xi1>, vector<80x128xf32>
    %c0_245 = arith.constant 0 : index
    %c0_246 = arith.constant 0 : index
    %c0_247 = arith.constant 0 : index
    %276 = vector.load %arg10[%c0_245, %c0_246, %c0_247] : memref<1x80x128xf32, #tpu.memory_space<vmem>>, vector<1x80x128xf32>
    %277 = vector.shape_cast %276 : vector<1x80x128xf32> to vector<80x128xf32>
    %278 = vector.shape_cast %275 : vector<80x128xf32> to vector<1x80x128xf32>
    tpu.vector_store %arg10[%c0_245, %c0_246, %c0_247], %278 {strides = array<i32>} : memref<1x80x128xf32, #tpu.memory_space<vmem>>, vector<1x80x128xf32>,
    return
  }
  func.func @transform_0(%arg0: i32) -> (i32, i32, i32) {
    %c0_i32 = arith.constant 0 : i32
    %c0_i32_0 = arith.constant 0 : i32
    %c0_i32_1 = arith.constant 0 : i32
    return %arg0, %c0_i32, %c0_i32_0 : i32, i32, i32
  }
  func.func @transform_1(%arg0: i32) -> (i32, i32, i32) {
    %c0_i32 = arith.constant 0 : i32
    %c0_i32_0 = arith.constant 0 : i32
    %c0_i32_1 = arith.constant 0 : i32
    %c0_i32_2 = arith.constant 0 : i32
    return %c0_i32, %c0_i32_0, %c0_i32_1 : i32, i32, i32
  }
  func.func @transform_2(%arg0: i32) -> (i32, i32) {
    %c0_i32 = arith.constant 0 : i32
    %c0_i32_0 = arith.constant 0 : i32
    %c0_i32_1 = arith.constant 0 : i32
    return %c0_i32, %c0_i32_0 : i32, i32
  }
  func.func @transform_3(%arg0: i32) -> (i32, i32, i32) {
    %c0_i32 = arith.constant 0 : i32
    %c0_i32_0 = arith.constant 0 : i32
    %c0_i32_1 = arith.constant 0 : i32
    %c0_i32_2 = arith.constant 0 : i32
    return %c0_i32, %c0_i32_0, %c0_i32_1 : i32, i32, i32
  }
  func.func @transform_4(%arg0: i32) -> (i32, i32) {
    %c0_i32 = arith.constant 0 : i32
    %c0_i32_0 = arith.constant 0 : i32
    %c0_i32_1 = arith.constant 0 : i32
    return %c0_i32, %c0_i32_0 : i32, i32
  }
  func.func @transform_5(%arg0: i32) -> (i32, i32, i32) {
    %c0_i32 = arith.constant 0 : i32
    %c0_i32_0 = arith.constant 0 : i32
    %c0_i32_1 = arith.constant 0 : i32
    %c0_i32_2 = arith.constant 0 : i32
    return %c0_i32, %c0_i32_0, %c0_i32_1 : i32, i32, i32
  }
  func.func @transform_6(%arg0: i32) -> (i32, i32) {
    %c0_i32 = arith.constant 0 : i32
    %c0_i32_0 = arith.constant 0 : i32
    %c0_i32_1 = arith.constant 0 : i32
    return %c0_i32, %c0_i32_0 : i32, i32
  }
  func.func @transform_7(%arg0: i32) -> (i32, i32) {
    %c0_i32 = arith.constant 0 : i32
    %c0_i32_0 = arith.constant 0 : i32
    %c0_i32_1 = arith.constant 0 : i32
    return %c0_i32, %c0_i32_0 : i32, i32
  }
  func.func @transform_8(%arg0: i32) -> (i32, i32) {
    %c0_i32 = arith.constant 0 : i32
    %c0_i32_0 = arith.constant 0 : i32
    %c0_i32_1 = arith.constant 0 : i32
    return %c0_i32, %c0_i32_0 : i32, i32
  }
  func.func @transform_9(%arg0: i32) -> (i32, i32, i32) {
    %c0_i32 = arith.constant 0 : i32
    %c0_i32_0 = arith.constant 0 : i32
    %c0_i32_1 = arith.constant 0 : i32
    return %arg0, %c0_i32, %c0_i32_0 : i32, i32, i32
  }
}

</mosaic_0001>

<bundles_post_ra>
// kernel: pnet_forward.1
= control target key start
LH: loop header
LB: loop body
LE: loop exit
PB: predicated region body
PF: predicated region fallthrough
CT: control target
= control target key end

     0   :  { %s8609_s30 = smov 0   ;;  %s11192_s0 = inlined_call_operand.vmem [shape: f32[3,512,3], index: 0, kind: input, shape index: {}]   ;;  %s11193_s1 = inlined_call_operand.vmem [shape: bf16[9,3,128], index: 1, kind: input, shape index: {}]   ;;  %s11194_s2 = inlined_call_operand.vmem [shape: f32[1,128], index: 2, kind: input, shape index: {}]   ;;  %s11195_s3 = inlined_call_operand.vmem [shape: bf16[9,128,128], index: 3, kind: input, shape index: {}]   ;;  %s11196_s4 = inlined_call_operand.vmem [shape: f32[1,128], index: 4, kind: input, shape index: {}]   ;;  %s11197_s5 = inlined_call_operand.vmem [shape: bf16[9,128,128], index: 5, kind: input, shape index: {}]   ;;  %s11198_s6 = inlined_call_operand.vmem [shape: f32[1,128], index: 6, kind: input, shape index: {}]   ;;  %s11199_s7 = inlined_call_operand.vmem [shape: bf16[128,128], index: 7, kind: input, shape index: {}]   ;;  %s11200_s8 = inlined_call_operand.vmem [shape: f32[1,128], index: 8, kind: input, shape index: {}]   ;;  %s11201_s9 = inlined_call_operand.vmem [shape: f32[3,80,128], index: 9, kind: output, shape index: {}]  }
   0x1 LB: > { %s7179_s10 = sadd.s32 4294967295, %s8554_s30   ;;  %p7183_p0 = scmp.ge.s32.totalorder %s8554_s30, 1  ;;  %s8554_s30 = sphi %s8609_s30, %s19_s30  }
   0x2   : > { %p287_p1 = scmp.lt.s32.totalorder %s8554_s30, 4 }
   0x4   : > { %p288_p2 = pnand %p7183_p0, %p287_p1 }
   0x6   : > { %291 = sbr.rel (%p288_p2) target bundleno = 2585 (0xa19), region = 56 }
   0xb   : > { %v7187_v0 = vld [vmem:[%s11193_s1 + $0x2] sm:$0x3]  ;;  %vm608_vm0 = vcmask 1040384   ;;  %vm609_vm1 = vcmask 1041408   ;;  %p323_p3 = scmp.lt.s32.totalorder %s7179_s10, 2  ;;  %v8556_v1 = vmov 65535  }
   0xc   : > { %v610_v2 = vsel %vm608_vm0, 4294967295, %v8556_v1  ;;  %v7310_v3 = vld [vmem:[%s11193_s1 + $0x8] sm:$0x3]  ;;  %v7248_v4 = vld [vmem:[%s11193_s1 + $0x4] sm:$0x3]  ;;  %vm517_vm2 = vcmask 23552  }
   0xd   : > { %v8626_v5 = vsel %vm609_vm1, %v610_v2, 0  ;;  %s11357_s10 = smov (!%p323_p3, %s7179_s10), 2  ;;  %v7279_v6 = vld [vmem:[%s11193_s1 + $0x6] sm:$0x3]  ;;  %v424_v7 = vld [vmem:[%s11193_s1] sm:$0x3] }
   0xe   : > { %v613_v8 = vand.u32 %v7187_v0, %v8626_v5  ;;  %v2017_v9 = vand.u32 %v7310_v3, %v8626_v5  ;;  %v1209_v10 = vand.u32 %v7248_v4, %v8626_v5  ;;  %v1613_v11 = vand.u32 %v7279_v6, %v8626_v5  ;;  %s8331_s21 = sshll.u32 %s11357_s10, 9  ;;  %s8557_s27 = smov 127  }
   0xf   : > { %v865_v12 = vand.u32 %v8626_v5, %v424_v7  ;;  %s8645_s24 = scalar_lea.vmem %s11192_s0, %s8331_s21  ;;  %s8485_s28 = smul.u32 80, %s11357_s10 }
  0x10   : > { %622 = vmatpush.bf16.msra.mxu0 %v613_v8  ;;  %8484 = vmatpush.bf16.msra.mxu1 %v613_v8  ;;  %v425_v13 = vld [vmem:[%s8645_s24 + $0x1] sm:$0xff]  ;;  %v426_v14 = vld [vmem:[%s8645_s24 + $0x9] sm:$0xff]  ;;  %v483_v15 = vld [vmem:[%s8645_s24 + $0x1d1] sm:$0xff] }
  0x11   : > { %1218 = vmatpush.bf16.msra.mxu2 %v1209_v10  ;;  %v485_v16 = vpack.c.bf16 %v426_v14, %v425_v13  ;;  %v484_v17 = vld [vmem:[%s8645_s24 + $0x1d9] sm:$0x3f]  ;;  %1622 = vmatpush.bf16.msra.mxu3 %v1613_v11  ;;  %v1026_v18 = vld [vmem:[%s8645_s24 + $0x2] sm:$0xff]  ;;  %v1027_v19 = vld [vmem:[%s8645_s24 + $0xa] sm:$0xff]  ;;  %s11147_s12 = scalar_lea.vmem %s11201_s9, %s8485_s28 }
  0x12   : > { %v514_v20 = vpack.c.bf16 %v484_v17, %v483_v15  ;;  %v1086_v21 = vpack.c.bf16 %v1027_v19, %v1026_v18  ;;  %v1430_v22 = vld [vmem:[%s8645_s24 + $0x10] sm:$0xff]  ;;  %v1431_v23 = vld [vmem:[%s8645_s24 + $0x18] sm:$0xff]  ;;  %v334_v27 = vld [vmem:[%s8645_s24] sm:$0xff] }
  0x13   : > { %7188 = vmatmul.msk.bf16.vlgmr.msra.gmra.mxu0 %vm517_vm2, %v485_v16  ;;  %v1490_v24 = vpack.c.bf16 %v1431_v23, %v1430_v22  ;;  %v427_v25 = vld [vmem:[%s8645_s24 + $0x11] sm:$0xff]  ;;  %v428_v26 = vld [vmem:[%s8645_s24 + $0x19] sm:$0xff]  ;;  %v335_v28 = vld [vmem:[%s8645_s24 + $0x8] sm:$0xff] }
  0x14   : > { %2026 = vmatpush.bf16.msrb.mxu0 %v2017_v9  ;;  %874 = vmatpush.bf16.msrb.mxu1 %v865_v12  ;;  %v1028_v29 = vld [vmem:[%s8645_s24 + $0x12] sm:$0xff]  ;;  %v1029_v30 = vld [vmem:[%s8645_s24 + $0x1a] sm:$0xff]  ;;  %v1433_v32 = vld [vmem:[%s8645_s24 + $0x28] sm:$0xff]  ;;  %v486_v33 = vpack.c.bf16 %v428_v26, %v427_v25  ;;  %v394_v34 = vpack.c.bf16 %v335_v28, %v334_v27 }
  0x15   : > { %7217 = vmatmul.msk.bf16.vlgmr.msra.gmra.mxu1 %vm517_vm2, %v514_v20  ;;  %7249 = vmatmul.msk.bf16.vlgmr.msra.gmra.mxu2 %vm517_vm2, %v1086_v21  ;;  %v1432_v31 = vld [vmem:[%s8645_s24 + $0x20] sm:$0xff]  ;;  %v1087_v35 = vpack.c.bf16 %v1029_v30, %v1028_v29  ;;  %v430_v38 = vld [vmem:[%s8645_s24 + $0x29] sm:$0xff]  ;;  %v1435_v42 = vld [vmem:[%s8645_s24 + $0x38] sm:$0xff] }
  0x16   : > { %7280 = vmatmul.msk.bf16.vlgmr.msra.gmra.mxu3 %vm517_vm2, %v1490_v24  ;;  %v1491_v36 = vpack.c.bf16 %v1433_v32, %v1432_v31  ;;  %v429_v37 = vld [vmem:[%s8645_s24 + $0x21] sm:$0xff]  ;;  %v1031_v40 = vld [vmem:[%s8645_s24 + $0x2a] sm:$0xff]  ;;  %v432_v47 = vld [vmem:[%s8645_s24 + $0x39] sm:$0xff] }
  0x17   : > { %v1030_v39 = vld [vmem:[%s8645_s24 + $0x22] sm:$0xff]  ;;  %v1434_v41 = vld [vmem:[%s8645_s24 + $0x30] sm:$0xff]  ;;  %v487_v43 = vpack.c.bf16 %v430_v38, %v429_v37  ;;  %v1033_v49 = vld [vmem:[%s8645_s24 + $0x3a] sm:$0xff] }
  0x18   : > { %v1088_v44 = vpack.c.bf16 %v1031_v40, %v1030_v39  ;;  %v1492_v45 = vpack.c.bf16 %v1435_v42, %v1434_v41  ;;  %v431_v46 = vld [vmem:[%s8645_s24 + $0x31] sm:$0xff]  ;;  %v1436_v50 = vld [vmem:[%s8645_s24 + $0x40] sm:$0xff]  ;;  %v1437_v51 = vld [vmem:[%s8645_s24 + $0x48] sm:$0xff] }
  0x19   : > { %v1032_v48 = vld [vmem:[%s8645_s24 + $0x32] sm:$0xff]  ;;  %v488_v52 = vpack.c.bf16 %v432_v47, %v431_v46  ;;  %v1493_v54 = vpack.c.bf16 %v1437_v51, %v1436_v50  ;;  %v433_v55 = vld [vmem:[%s8645_s24 + $0x41] sm:$0xff]  ;;  %v434_v56 = vld [vmem:[%s8645_s24 + $0x49] sm:$0xff] }
  0x1a   : > { %v1089_v53 = vpack.c.bf16 %v1033_v49, %v1032_v48  ;;  %v1034_v57 = vld [vmem:[%s8645_s24 + $0x42] sm:$0xff]  ;;  %v1035_v58 = vld [vmem:[%s8645_s24 + $0x4a] sm:$0xff]  ;;  %v1439_v60 = vld [vmem:[%s8645_s24 + $0x58] sm:$0xff]  ;;  %v489_v61 = vpack.c.bf16 %v434_v56, %v433_v55 }
  0x1b   : > { %v1438_v59 = vld [vmem:[%s8645_s24 + $0x50] sm:$0xff]  ;;  %v1090_v62 = vpack.c.bf16 %v1035_v58, %v1034_v57  ;;  %v436_v1 = vld [vmem:[%s8645_s24 + $0x59] sm:$0xff]  ;;  %v1441_v6 = vld [vmem:[%s8645_s24 + $0x68] sm:$0xff] }
  0x1c   : > { %v1494_v63 = vpack.c.bf16 %v1439_v60, %v1438_v59  ;;  %v435_v0 = vld [vmem:[%s8645_s24 + $0x51] sm:$0xff]  ;;  %v1037_v3 = vld [vmem:[%s8645_s24 + $0x5a] sm:$0xff]  ;;  %v438_v11 = vld [vmem:[%s8645_s24 + $0x69] sm:$0xff] }
  0x1d   : > { %v1036_v2 = vld [vmem:[%s8645_s24 + $0x52] sm:$0xff]  ;;  %v1440_v4 = vld [vmem:[%s8645_s24 + $0x60] sm:$0xff]  ;;  %v490_v7 = vpack.c.bf16 %v436_v1, %v435_v0  ;;  %v1039_v13 = vld [vmem:[%s8645_s24 + $0x6a] sm:$0xff] }
  0x1e   : > { %v1091_v8 = vpack.c.bf16 %v1037_v3, %v1036_v2  ;;  %v1495_v9 = vpack.c.bf16 %v1441_v6, %v1440_v4  ;;  %v437_v10 = vld [vmem:[%s8645_s24 + $0x61] sm:$0xff]  ;;  %v1442_v14 = vld [vmem:[%s8645_s24 + $0x70] sm:$0xff]  ;;  %v1443_v15 = vld [vmem:[%s8645_s24 + $0x78] sm:$0xff] }
  0x1f   : > { %v1038_v12 = vld [vmem:[%s8645_s24 + $0x62] sm:$0xff]  ;;  %v491_v16 = vpack.c.bf16 %v438_v11, %v437_v10  ;;  %v1496_v18 = vpack.c.bf16 %v1443_v15, %v1442_v14  ;;  %v439_v19 = vld [vmem:[%s8645_s24 + $0x71] sm:$0xff]  ;;  %v440_v20 = vld [vmem:[%s8645_s24 + $0x79] sm:$0xff] }
  0x20   : > { %v1092_v17 = vpack.c.bf16 %v1039_v13, %v1038_v12  ;;  %v1040_v21 = vld [vmem:[%s8645_s24 + $0x72] sm:$0xff]  ;;  %v1041_v22 = vld [vmem:[%s8645_s24 + $0x7a] sm:$0xff]  ;;  %v492_v25 = vpack.c.bf16 %v440_v20, %v439_v19  ;;  %v442_v29 = vld [vmem:[%s8645_s24 + $0x89] sm:$0xff] }
  0x21   : > { %v1444_v23 = vld [vmem:[%s8645_s24 + $0x80] sm:$0xff]  ;;  %v1093_v26 = vpack.c.bf16 %v1041_v22, %v1040_v21  ;;  %v1043_v31 = vld [vmem:[%s8645_s24 + $0x8a] sm:$0xff] }
  0x22   : > { %v441_v28 = vld [vmem:[%s8645_s24 + $0x81] sm:$0xff]  ;;  %v1446_v32 = vld [vmem:[%s8645_s24 + $0x90] sm:$0xff] }
  0x23   : > { %7189 = vmatmul.msk.bf16.gmra.mxu0 %vm517_vm2, %v486_v33  ;;  %v1042_v30 = vld [vmem:[%s8645_s24 + $0x82] sm:$0xff]  ;;  %v1447_v33 = vld [vmem:[%s8645_s24 + $0x98] sm:$0xff]  ;;  %v1047_v4 = vld [vmem:[%s8645_s24 + $0xaa] sm:$0xff] }
  0x24   : > { %v1498_v38 = vpack.c.bf16 %v1447_v33, %v1446_v32  ;;  %v1045_v46 = vld [vmem:[%s8645_s24 + $0x9a] sm:$0xff]  ;;  %v1449_v48 = vld [vmem:[%s8645_s24 + $0xa8] sm:$0xff] }
  0x25   : > { %7218 = vmatmul.msk.bf16.vlgmr.msrb.gmra.mxu1 %vm517_vm2, %v394_v34  ;;  %7250 = vmatmul.msk.bf16.gmra.mxu2 %vm517_vm2, %v1087_v35  ;;  %v493_v34 = vpack.c.bf16 %v442_v29, %v441_v28  ;;  %v1448_v47 = vld [vmem:[%s8645_s24 + $0xa0] sm:$0xff]  ;;  %v446_v2 = vld [vmem:[%s8645_s24 + $0xa9] sm:$0xff] }
  0x26   : > { %7281 = vmatmul.msk.bf16.gmra.mxu3 %vm517_vm2, %v1491_v36  ;;  %v1499_v55 = vpack.c.bf16 %v1449_v48, %v1448_v47  ;;  %v445_v1 = vld [vmem:[%s8645_s24 + $0xa1] sm:$0xff] }
  0x27   : > { %v1046_v3 = vld [vmem:[%s8645_s24 + $0xa2] sm:$0xff]  ;;  %v1049_v28 = vld [vmem:[%s8645_s24 + $0xba] sm:$0xff] }
  0x28   : > { %v1096_v13 = vpack.c.bf16 %v1047_v4, %v1046_v3 }
  0x33   : > { %7190 = vmatmul.msk.bf16.gmra.mxu0 %vm517_vm2, %v487_v43  ;;  %v443_v43 = vld [vmem:[%s8645_s24 + $0x91] sm:$0xff] }
  0x35   : > { %7219 = vmatmul.msk.bf16.gmra.mxu1 %vm517_vm2, %v1490_v24  ;;  %7251 = vmatmul.msk.bf16.gmra.mxu2 %vm517_vm2, %v1088_v44  ;;  %v1445_v24 = vld [vmem:[%s8645_s24 + $0x88] sm:$0xff]  ;;  %v444_v44 = vld [vmem:[%s8645_s24 + $0x99] sm:$0xff] }
  0x36   : > { %7282 = vmatmul.msk.bf16.gmra.mxu3 %vm517_vm2, %v1492_v45  ;;  %v1497_v27 = vpack.c.bf16 %v1445_v24, %v1444_v23  ;;  %v494_v49 = vpack.c.bf16 %v444_v44, %v443_v43 }
  0x43   : > { %7191 = vmatmul.msk.bf16.gmra.mxu0 %vm517_vm2, %v488_v52 }
  0x45   : > { %7220 = vmatmul.msk.bf16.gmra.mxu1 %vm517_vm2, %v1491_v36  ;;  %7252 = vmatmul.msk.bf16.gmra.mxu2 %vm517_vm2, %v1089_v53  ;;  %v1094_v36 = vpack.c.bf16 %v1043_v31, %v1042_v30  ;;  %v1452_v30 = vld [vmem:[%s8645_s24 + $0xc0] sm:$0xff]  ;;  %v1453_v31 = vld [vmem:[%s8645_s24 + $0xc8] sm:$0xff] }
  0x46   : > { %7283 = vmatmul.msk.bf16.gmra.mxu3 %vm517_vm2, %v1493_v54 }
  0x53   : > { %7192 = vmatmul.msk.bf16.gmra.mxu0 %vm517_vm2, %v489_v61 }
  0x55   : > { %7221 = vmatmul.msk.bf16.gmra.mxu1 %vm517_vm2, %v1492_v45  ;;  %7253 = vmatmul.msk.bf16.gmra.mxu2 %vm517_vm2, %v1090_v62  ;;  %v1044_v45 = vld [vmem:[%s8645_s24 + $0x92] sm:$0xff] }
  0x56   : > { %7284 = vmatmul.msk.bf16.gmra.mxu3 %vm517_vm2, %v1494_v63  ;;  %v1095_v53 = vpack.c.bf16 %v1045_v46, %v1044_v45 }
  0x63   : > { %7193 = vmatmul.msk.bf16.gmra.mxu0 %vm517_vm2, %v490_v7  ;;  %v1450_v7 = vld [vmem:[%s8645_s24 + $0xb0] sm:$0xff] }
  0x65   : > { %7222 = vmatmul.msk.bf16.gmra.mxu1 %vm517_vm2, %v1493_v54  ;;  %7254 = vmatmul.msk.bf16.gmra.mxu2 %vm517_vm2, %v1091_v8  ;;  %v1451_v8 = vld [vmem:[%s8645_s24 + $0xb8] sm:$0xff] }
  0x66   : > { %7285 = vmatmul.msk.bf16.gmra.mxu3 %vm517_vm2, %v1495_v9  ;;  %v1500_v15 = vpack.c.bf16 %v1451_v8, %v1450_v7 }
  0x73   : > { %7194 = vmatmul.msk.bf16.gmra.mxu0 %vm517_vm2, %v491_v16 }
  0x75   : > { %7223 = vmatmul.msk.bf16.gmra.mxu1 %vm517_vm2, %v1494_v63  ;;  %7255 = vmatmul.msk.bf16.gmra.mxu2 %vm517_vm2, %v1092_v17 }
  0x76   : > { %7286 = vmatmul.msk.bf16.gmra.mxu3 %vm517_vm2, %v1496_v18 }
  0x83   : > { %7195 = vmatmul.msk.bf16.gmra.mxu0 %vm517_vm2, %v492_v25  ;;  %v447_v25 = vld [vmem:[%s8645_s24 + $0xb1] sm:$0xff] }
  0x85   : > { %7224 = vmatmul.msk.bf16.gmra.mxu1 %vm517_vm2, %v1495_v9  ;;  %7256 = vmatmul.msk.bf16.gmra.mxu2 %vm517_vm2, %v1093_v26  ;;  %v495_v9 = vpack.c.bf16 %v446_v2, %v445_v1  ;;  %v448_v26 = vld [vmem:[%s8645_s24 + $0xb9] sm:$0xff] }
  0x86   : > { %7287 = vmatmul.msk.bf16.gmra.mxu3 %vm517_vm2, %v1497_v27  ;;  %v496_v32 = vpack.c.bf16 %v448_v26, %v447_v25 }
  0x90   : > { %v624_v35 = vpop.f32.mrf.mxu0 }
  0x92   : > { %v8737_v37 = vpop.f32.mrf.mxu1 }
  0x93   : > { %7196 = vmatmul.msk.bf16.gmra.mxu0 %vm517_vm2, %v493_v34 }
  0x95   : > { %7225 = vmatmul.msk.bf16.gmra.mxu1 %vm517_vm2, %v1496_v18  ;;  %7257 = vmatmul.msk.bf16.gmra.mxu2 %vm517_vm2, %v1094_v36 }
  0x96   : > { %7288 = vmatmul.msk.bf16.gmra.mxu3 %vm517_vm2, %v1498_v38 }
  0x98   : > { %v1220_v39 = vpop.f32.mrf.mxu2  ;;  %v626_v40 = vpop.f32.mrf.mxu0 }
  0x99   : > { %v1624_v41 = vpop.f32.mrf.mxu3 }
  0x9a   : > { %v8743_v42 = vpop.f32.mrf.mxu1 }
  0xa0   : > { %v1222_v50 = vpop.f32.mrf.mxu2  ;;  %v629_v51 = vpop.f32.mrf.mxu0 }
  0xa1   : > { %v1626_v52 = vpop.f32.mrf.mxu3 }
  0xa2   : > { %v876_v54 = vpop.f32.mrf.mxu1 }
  0xa3   : > { %v877_v56 = vadd.f32 %v876_v54, %v624_v35  ;;  %7197 = vmatmul.msk.bf16.gmra.mxu0 %vm517_vm2, %v494_v49 }
  0xa5   : > { %v1370_v57 = vadd.f32 %v1220_v39, %v877_v56  ;;  %7226 = vmatmul.msk.bf16.gmra.mxu1 %vm517_vm2, %v1497_v27  ;;  %7258 = vmatmul.msk.bf16.gmra.mxu2 %vm517_vm2, %v1095_v53  ;;  %v1048_v27 = vld [vmem:[%s8645_s24 + $0xb2] sm:$0xff]  ;;  %v1501_v39 = vpack.c.bf16 %v1453_v31, %v1452_v30  ;;  %v1051_v53 = vld [vmem:[%s8645_s24 + $0xca] sm:$0xff] }
  0xa6   : > { %7289 = vmatmul.msk.bf16.gmra.mxu3 %vm517_vm2, %v1499_v55  ;;  %v1097_v36 = vpack.c.bf16 %v1049_v28, %v1048_v27  ;;  %v1455_v56 = vld [vmem:[%s8645_s24 + $0xd8] sm:$0xff] }
  0xa7   : > { %v8755_v58 = vadd.f32 %v1624_v41, %v1370_v57 }
  0xa8   : > { %v1225_v59 = vpop.f32.mrf.mxu2  ;;  %v631_v60 = vpop.f32.mrf.mxu0 }
  0xa9   : > { %v1629_v61 = vpop.f32.mrf.mxu3 }
  0xaa   : > { %v878_v62 = vpop.f32.mrf.mxu1 }
  0xab   : > { %v879_v63 = vadd.f32 %v878_v62, %v626_v40 }
  0xad   : > { %v1371_v0 = vadd.f32 %v1222_v50, %v879_v63  ;;  %v449_v50 = vld [vmem:[%s8645_s24 + $0xc1] sm:$0xff] }
  0xaf   : > { %v8761_v6 = vadd.f32 %v1626_v52, %v1371_v0  ;;  %v1050_v52 = vld [vmem:[%s8645_s24 + $0xc2] sm:$0xff] }
  0xb0   : > { %v1227_v10 = vpop.f32.mrf.mxu2  ;;  %v634_v11 = vpop.f32.mrf.mxu0  ;;  %v1098_v62 = vpack.c.bf16 %v1051_v53, %v1050_v52 }
  0xb1   : > { %v1631_v12 = vpop.f32.mrf.mxu3 }
  0xb2   : > { %v881_v14 = vpop.f32.mrf.mxu1 }
  0xb3   : > { %v882_v16 = vadd.f32 %v881_v14, %v629_v51  ;;  %7198 = vmatmul.msk.bf16.gmra.mxu0 %vm517_vm2, %v495_v9  ;;  %v450_v51 = vld [vmem:[%s8645_s24 + $0xc9] sm:$0xff]  ;;  %v1052_v14 = vld [vmem:[%s8645_s24 + $0xd2] sm:$0xff] }
  0xb4   : > { %v497_v57 = vpack.c.bf16 %v450_v51, %v449_v50 }
  0xb5   : > { %v1372_v17 = vadd.f32 %v1225_v59, %v882_v16  ;;  %7227 = vmatmul.msk.bf16.gmra.mxu1 %vm517_vm2, %v1498_v38  ;;  %7259 = vmatmul.msk.bf16.gmra.mxu2 %vm517_vm2, %v1096_v13  ;;  %v452_v13 = vld [vmem:[%s8645_s24 + $0xd9] sm:$0xff] }
  0xb6   : > { %7290 = vmatmul.msk.bf16.gmra.mxu3 %vm517_vm2, %v1500_v15  ;;  %v1053_v16 = vld [vmem:[%s8645_s24 + $0xda] sm:$0xff] }
  0xb7   : > { %v8769_v18 = vadd.f32 %v1629_v61, %v1372_v17 }
  0xb8   : > { %v1230_v19 = vpop.f32.mrf.mxu2  ;;  %v636_v20 = vpop.f32.mrf.mxu0 }
  0xb9   : > { %v1634_v21 = vpop.f32.mrf.mxu3 }
  0xba   : > { %v883_v22 = vpop.f32.mrf.mxu1 }
  0xbb   : > { %v884_v23 = vadd.f32 %v883_v22, %v631_v60 }
  0xbd   : > { %v1373_v24 = vadd.f32 %v1227_v10, %v884_v23 }
  0xbf   : > { %v8775_v29 = vadd.f32 %v1631_v12, %v1373_v24  ;;  %v451_v12 = vld [vmem:[%s8645_s24 + $0xd1] sm:$0xff]  ;;  %v1099_v24 = vpack.c.bf16 %v1053_v16, %v1052_v14 }
  0xc0   : > { %v1232_v33 = vpop.f32.mrf.mxu2  ;;  %v639_v34 = vpop.f32.mrf.mxu0 }
  0xc1   : > { %v1636_v35 = vpop.f32.mrf.mxu3 }
  0xc2   : > { %v886_v38 = vpop.f32.mrf.mxu1 }
  0xc3   : > { %v887_v40 = vadd.f32 %v886_v38, %v634_v11  ;;  %7199 = vmatmul.msk.bf16.gmra.mxu0 %vm517_vm2, %v496_v32  ;;  %v453_v38 = vld [vmem:[%s8645_s24 + $0xe1] sm:$0xff] }
  0xc5   : > { %v1374_v41 = vadd.f32 %v1230_v19, %v887_v40  ;;  %7228 = vmatmul.msk.bf16.gmra.mxu1 %vm517_vm2, %v1499_v55  ;;  %7260 = vmatmul.msk.bf16.gmra.mxu2 %vm517_vm2, %v1097_v36  ;;  %v1454_v55 = vld [vmem:[%s8645_s24 + $0xd0] sm:$0xff]  ;;  %v1457_v19 = vld [vmem:[%s8645_s24 + $0xe8] sm:$0xff] }
  0xc6   : > { %7291 = vmatmul.msk.bf16.gmra.mxu3 %vm517_vm2, %v1501_v39  ;;  %v1502_v0 = vpack.c.bf16 %v1455_v56, %v1454_v55  ;;  %v454_v40 = vld [vmem:[%s8645_s24 + $0xe9] sm:$0xff] }
  0xc7   : > { %v8783_v43 = vadd.f32 %v1634_v21, %v1374_v41  ;;  %v1054_v41 = vld [vmem:[%s8645_s24 + $0xe2] sm:$0xff] }
  0xc8   : > { %v1235_v44 = vpop.f32.mrf.mxu2  ;;  %v641_v45 = vpop.f32.mrf.mxu0 }
  0xc9   : > { %v1639_v46 = vpop.f32.mrf.mxu3 }
  0xca   : > { %v888_v47 = vpop.f32.mrf.mxu1 }
  0xcb   : > { %v889_v48 = vadd.f32 %v888_v47, %v636_v20  ;;  %v498_v20 = vpack.c.bf16 %v452_v13, %v451_v12  ;;  %v499_v47 = vpack.c.bf16 %v454_v40, %v453_v38  ;;  %v1463_v38 = vld [vmem:[%s8645_s24 + $0x118] sm:$0xff] }
  0xcd   : > { %v1375_v49 = vadd.f32 %v1232_v33, %v889_v48 }
  0xcf   : > { %v8789_v54 = vadd.f32 %v1636_v35, %v1375_v49 }
  0xd0   : > { %v1237_v59 = vpop.f32.mrf.mxu2  ;;  %v644_v60 = vpop.f32.mrf.mxu0 }
  0xd1   : > { %v1641_v61 = vpop.f32.mrf.mxu3 }
  0xd2   : > { %v891_v63 = vpop.f32.mrf.mxu1 }
  0xd3   : > { %v892_v1 = vadd.f32 %v891_v63, %v639_v34  ;;  %7200 = vmatmul.msk.bf16.gmra.mxu0 %vm517_vm2, %v497_v57 }
  0xd5   : > { %v1376_v2 = vadd.f32 %v1235_v44, %v892_v1  ;;  %7229 = vmatmul.msk.bf16.gmra.mxu1 %vm517_vm2, %v1500_v15  ;;  %7261 = vmatmul.msk.bf16.gmra.mxu2 %vm517_vm2, %v1098_v62  ;;  %v1456_v15 = vld [vmem:[%s8645_s24 + $0xe0] sm:$0xff]  ;;  %v1055_v44 = vld [vmem:[%s8645_s24 + $0xea] sm:$0xff] }
  0xd6   : > { %7292 = vmatmul.msk.bf16.gmra.mxu3 %vm517_vm2, %v1502_v0  ;;  %v1503_v26 = vpack.c.bf16 %v1457_v19, %v1456_v15  ;;  %v1100_v51 = vpack.c.bf16 %v1055_v44, %v1054_v41 }
  0xd7   : > { %v8797_v3 = vadd.f32 %v1639_v46, %v1376_v2  ;;  %v1459_v46 = vld [vmem:[%s8645_s24 + $0xf8] sm:$0xff] }
  0xd8   : > { %v1240_v4 = vpop.f32.mrf.mxu2  ;;  %v646_v7 = vpop.f32.mrf.mxu0  ;;  %v455_v2 = vld [vmem:[%s8645_s24 + $0xf1] sm:$0xff] }
  0xd9   : > { %v1644_v8 = vpop.f32.mrf.mxu3 }
  0xda   : > { %v893_v9 = vpop.f32.mrf.mxu1 }
  0xdb   : > { %v894_v10 = vadd.f32 %v893_v9, %v641_v45 }
  0xdd   : > { %v1377_v11 = vadd.f32 %v1237_v59, %v894_v10  ;;  %v1461_v10 = vld [vmem:[%s8645_s24 + $0x108] sm:$0xff] }
  0xdf   : > { %v8803_v17 = vadd.f32 %v1641_v61, %v1377_v11 }
  0xe0   : > { %v1242_v21 = vpop.f32.mrf.mxu2  ;;  %v649_v22 = vpop.f32.mrf.mxu0 }
  0xe1   : > { %v1646_v23 = vpop.f32.mrf.mxu3 }
  0xe2   : > { %v896_v25 = vpop.f32.mrf.mxu1 }
  0xe3   : > { %v897_v27 = vadd.f32 %v896_v25, %v644_v60  ;;  %7201 = vmatmul.msk.bf16.gmra.mxu0 %vm517_vm2, %v498_v20 }
  0xe5   : > { %v1378_v28 = vadd.f32 %v1240_v4, %v897_v27  ;;  %7230 = vmatmul.msk.bf16.gmra.mxu1 %vm517_vm2, %v1501_v39  ;;  %7262 = vmatmul.msk.bf16.gmra.mxu2 %vm517_vm2, %v1099_v24  ;;  %v1458_v39 = vld [vmem:[%s8645_s24 + $0xf0] sm:$0xff]  ;;  %v456_v4 = vld [vmem:[%s8645_s24 + $0xf9] sm:$0xff] }
  0xe6   : > { %7293 = vmatmul.msk.bf16.gmra.mxu3 %vm517_vm2, %v1503_v26  ;;  %v1504_v53 = vpack.c.bf16 %v1459_v46, %v1458_v39  ;;  %v500_v11 = vpack.c.bf16 %v456_v4, %v455_v2  ;;  %v1061_v2 = vld [vmem:[%s8645_s24 + $0x11a] sm:$0xff] }
  0xe7   : > { %v8811_v30 = vadd.f32 %v1644_v8, %v1378_v28  ;;  %v1057_v8 = vld [vmem:[%s8645_s24 + $0xfa] sm:$0xff] }
  0xe8   : > { %v1245_v31 = vpop.f32.mrf.mxu2  ;;  %v651_v32 = vpop.f32.mrf.mxu0 }
  0xe9   : > { %v1649_v33 = vpop.f32.mrf.mxu3 }
  0xea   : > { %v898_v34 = vpop.f32.mrf.mxu1 }
  0xeb   : > { %v899_v35 = vadd.f32 %v898_v34, %v646_v7  ;;  %v1056_v7 = vld [vmem:[%s8645_s24 + $0xf2] sm:$0xff]  ;;  %v1058_v34 = vld [vmem:[%s8645_s24 + $0x102] sm:$0xff] }
  0xec   : > { %v1101_v16 = vpack.c.bf16 %v1057_v8, %v1056_v7  ;;  %v1465_v7 = vld [vmem:[%s8645_s24 + $0x128] sm:$0xff] }
  0xed   : > { %v1379_v36 = vadd.f32 %v1242_v21, %v899_v35  ;;  %v1059_v35 = vld [vmem:[%s8645_s24 + $0x10a] sm:$0xff] }
  0xee   : > { %v1102_v46 = vpack.c.bf16 %v1059_v35, %v1058_v34  ;;  %v1063_v34 = vld [vmem:[%s8645_s24 + $0x12a] sm:$0xff] }
  0xef   : > { %v8817_v45 = vadd.f32 %v1646_v23, %v1379_v36 }
  0xf0   : > { %v1247_v48 = vpop.f32.mrf.mxu2  ;;  %v654_v49 = vpop.f32.mrf.mxu0 }
  0xf1   : > { %v1651_v50 = vpop.f32.mrf.mxu3 }
  0xf2   : > { %v901_v52 = vpop.f32.mrf.mxu1 }
  0xf3   : > { %v902_v55 = vadd.f32 %v901_v52, %v649_v22  ;;  %7202 = vmatmul.msk.bf16.gmra.mxu0 %vm517_vm2, %v499_v47 }
  0xf5   : > { %v1380_v56 = vadd.f32 %v1245_v31, %v902_v55  ;;  %7231 = vmatmul.msk.bf16.gmra.mxu1 %vm517_vm2, %v1502_v0  ;;  %7263 = vmatmul.msk.bf16.gmra.mxu2 %vm517_vm2, %v1100_v51  ;;  %v1460_v0 = vld [vmem:[%s8645_s24 + $0x100] sm:$0xff] }
  0xf6   : > { %7294 = vmatmul.msk.bf16.gmra.mxu3 %vm517_vm2, %v1504_v53  ;;  %v1505_v19 = vpack.c.bf16 %v1461_v10, %v1460_v0 }
  0xf7   : > { %v8825_v57 = vadd.f32 %v1649_v33, %v1380_v56  ;;  %v458_v33 = vld [vmem:[%s8645_s24 + $0x109] sm:$0xff] }
  0xf8   : > { %v1250_v59 = vpop.f32.mrf.mxu2  ;;  %v656_v60 = vpop.f32.mrf.mxu0 }
  0xf9   : > { %v1654_v61 = vpop.f32.mrf.mxu3 }
  0xfa   : > { %v903_v62 = vpop.f32.mrf.mxu1 }
  0xfb   : > { %v904_v63 = vadd.f32 %v903_v62, %v651_v32  ;;  %v457_v32 = vld [vmem:[%s8645_s24 + $0x101] sm:$0xff]  ;;  %v459_v62 = vld [vmem:[%s8645_s24 + $0x111] sm:$0xff] }
  0xfc   : > { %v501_v40 = vpack.c.bf16 %v458_v33, %v457_v32  ;;  %v462_v32 = vld [vmem:[%s8645_s24 + $0x129] sm:$0xff] }
  0xfd   : > { %v1381_v1 = vadd.f32 %v1247_v48, %v904_v63  ;;  %v460_v63 = vld [vmem:[%s8645_s24 + $0x119] sm:$0xff]  ;;  %v1062_v33 = vld [vmem:[%s8645_s24 + $0x122] sm:$0xff] }
  0xfe   : > { %v502_v8 = vpack.c.bf16 %v460_v63, %v459_v62  ;;  %v463_v63 = vld [vmem:[%s8645_s24 + $0x131] sm:$0xff] }
  0xff   : > { %v8831_v9 = vadd.f32 %v1651_v50, %v1381_v1  ;;  %v1060_v1 = vld [vmem:[%s8645_s24 + $0x112] sm:$0xff] }
 0x100   : > { %v1252_v12 = vpop.f32.mrf.mxu2  ;;  %v659_v13 = vpop.f32.mrf.mxu0 }
 0x101   : > { %v1656_v14 = vpop.f32.mrf.mxu3 }
 0x102   : > { %v906_v15 = vpop.f32.mrf.mxu1 }
 0x103   : > { %v907_v20 = vadd.f32 %v906_v15, %v654_v49  ;;  %7203 = vmatmul.msk.bf16.gmra.mxu0 %vm517_vm2, %v500_v11 }
 0x105   : > { %v1382_v21 = vadd.f32 %v1250_v59, %v907_v20  ;;  %7232 = vmatmul.msk.bf16.gmra.mxu1 %vm517_vm2, %v1503_v26  ;;  %7264 = vmatmul.msk.bf16.gmra.mxu2 %vm517_vm2, %v1101_v16  ;;  %v1462_v26 = vld [vmem:[%s8645_s24 + $0x110] sm:$0xff] }
 0x106   : > { %7295 = vmatmul.msk.bf16.gmra.mxu3 %vm517_vm2, %v1505_v19  ;;  %v1506_v48 = vpack.c.bf16 %v1463_v38, %v1462_v26  ;;  %v1467_v26 = vld [vmem:[%s8645_s24 + $0x138] sm:$0xff] }
 0x107   : > { %v8839_v22 = vadd.f32 %v1654_v61, %v1382_v21 }
 0x108   : > { %v1255_v23 = vpop.f32.mrf.mxu2  ;;  %v661_v24 = vpop.f32.mrf.mxu0 }
 0x109   : > { %v1659_v25 = vpop.f32.mrf.mxu3 }
 0x10a   : > { %v908_v27 = vpop.f32.mrf.mxu1 }
 0x10b   : > { %v909_v28 = vadd.f32 %v908_v27, %v656_v60 }
 0x10d   : > { %v1383_v31 = vadd.f32 %v1252_v12, %v909_v28  ;;  %v1103_v12 = vpack.c.bf16 %v1061_v2, %v1060_v1  ;;  %v464_v1 = vld [vmem:[%s8645_s24 + $0x139] sm:$0xff] }
 0x10e   : > { %v1064_v2 = vld [vmem:[%s8645_s24 + $0x132] sm:$0xff] }
 0x10f   : > { %v8845_v36 = vadd.f32 %v1656_v14, %v1383_v31  ;;  %v461_v31 = vld [vmem:[%s8645_s24 + $0x121] sm:$0xff] }
 0x110   : > { %v1257_v41 = vpop.f32.mrf.mxu2  ;;  %v664_v44 = vpop.f32.mrf.mxu0  ;;  %v503_v38 = vpack.c.bf16 %v462_v32, %v461_v31 }
 0x111   : > { %v1661_v39 = vpop.f32.mrf.mxu3 }
 0x112   : > { %v911_v47 = vpop.f32.mrf.mxu1 }
 0x113   : > { %v912_v49 = vadd.f32 %v911_v47, %v659_v13  ;;  %7204 = vmatmul.msk.bf16.gmra.mxu0 %vm517_vm2, %v501_v40 }
 0x115   : > { %v1384_v50 = vadd.f32 %v1255_v23, %v912_v49  ;;  %7233 = vmatmul.msk.bf16.gmra.mxu1 %vm517_vm2, %v1504_v53  ;;  %7265 = vmatmul.msk.bf16.gmra.mxu2 %vm517_vm2, %v1102_v46  ;;  %v1464_v53 = vld [vmem:[%s8645_s24 + $0x120] sm:$0xff] }
 0x116   : > { %7296 = vmatmul.msk.bf16.gmra.mxu3 %vm517_vm2, %v1506_v48  ;;  %v1507_v14 = vpack.c.bf16 %v1465_v7, %v1464_v53  ;;  %v1065_v53 = vld [vmem:[%s8645_s24 + $0x13a] sm:$0xff] }
 0x117   : > { %v8853_v51 = vadd.f32 %v1659_v25, %v1384_v50 }
 0x118   : > { %v1260_v52 = vpop.f32.mrf.mxu2  ;;  %v666_v55 = vpop.f32.mrf.mxu0 }
 0x119   : > { %v1664_v56 = vpop.f32.mrf.mxu3 }
 0x11a   : > { %v913_v59 = vpop.f32.mrf.mxu1 }
 0x11b   : > { %v914_v60 = vadd.f32 %v913_v59, %v661_v24 }
 0x11d   : > { %v1385_v61 = vadd.f32 %v1257_v41, %v914_v60 }
 0x11f   : > { %v8859_v4 = vadd.f32 %v1661_v39, %v1385_v61  ;;  %v1104_v39 = vpack.c.bf16 %v1063_v34, %v1062_v33  ;;  %v465_v34 = vld [vmem:[%s8645_s24 + $0x141] sm:$0xff] }
 0x120   : > { %v1262_v0 = vpop.f32.mrf.mxu2  ;;  %v669_v10 = vpop.f32.mrf.mxu0 }
 0x121   : > { %v1666_v11 = vpop.f32.mrf.mxu3 }
 0x122   : > { %v916_v13 = vpop.f32.mrf.mxu1 }
 0x123   : > { %v917_v16 = vadd.f32 %v916_v13, %v664_v44  ;;  %7205 = vmatmul.msk.bf16.gmra.mxu0 %vm517_vm2, %v502_v8  ;;  %v1469_v8 = vld [vmem:[%s8645_s24 + $0x148] sm:$0xff]  ;;  %v1105_v13 = vpack.c.bf16 %v1065_v53, %v1064_v2 }
 0x125   : > { %v1386_v15 = vadd.f32 %v1260_v52, %v917_v16  ;;  %7234 = vmatmul.msk.bf16.gmra.mxu1 %vm517_vm2, %v1505_v19  ;;  %7266 = vmatmul.msk.bf16.gmra.mxu2 %vm517_vm2, %v1103_v12  ;;  %v1466_v19 = vld [vmem:[%s8645_s24 + $0x130] sm:$0xff] }
 0x126   : > { %7297 = vmatmul.msk.bf16.gmra.mxu3 %vm517_vm2, %v1507_v14  ;;  %v1508_v47 = vpack.c.bf16 %v1467_v26, %v1466_v19  ;;  %v466_v19 = vld [vmem:[%s8645_s24 + $0x149] sm:$0xff] }
 0x127   : > { %v8867_v20 = vadd.f32 %v1664_v56, %v1386_v15  ;;  %v1066_v26 = vld [vmem:[%s8645_s24 + $0x142] sm:$0xff] }
 0x128   : > { %v1265_v21 = vpop.f32.mrf.mxu2  ;;  %v671_v23 = vpop.f32.mrf.mxu0 }
 0x129   : > { %v1669_v24 = vpop.f32.mrf.mxu3 }
 0x12a   : > { %v918_v25 = vpop.f32.mrf.mxu1 }
 0x12b   : > { %v919_v27 = vadd.f32 %v918_v25, %v666_v55 }
 0x12d   : > { %v1387_v28 = vadd.f32 %v1262_v0, %v919_v27  ;;  %v504_v0 = vpack.c.bf16 %v464_v1, %v463_v63 }
 0x12f   : > { %v8873_v35 = vadd.f32 %v1666_v11, %v1387_v28 }
 0x130   : > { %v1267_v40 = vpop.f32.mrf.mxu2  ;;  %v674_v41 = vpop.f32.mrf.mxu0 }
 0x131   : > { %v1671_v44 = vpop.f32.mrf.mxu3 }
 0x132   : > { %v921_v46 = vpop.f32.mrf.mxu1 }
 0x133   : > { %v922_v49 = vadd.f32 %v921_v46, %v669_v10  ;;  %7206 = vmatmul.msk.bf16.gmra.mxu0 %vm517_vm2, %v503_v38  ;;  %v1067_v38 = vld [vmem:[%s8645_s24 + $0x14a] sm:$0xff] }
 0x135   : > { %v1388_v50 = vadd.f32 %v1265_v21, %v922_v49  ;;  %7235 = vmatmul.msk.bf16.gmra.mxu1 %vm517_vm2, %v1506_v48  ;;  %7267 = vmatmul.msk.bf16.gmra.mxu2 %vm517_vm2, %v1104_v39  ;;  %v1468_v48 = vld [vmem:[%s8645_s24 + $0x140] sm:$0xff] }
 0x136   : > { %7298 = vmatmul.msk.bf16.gmra.mxu3 %vm517_vm2, %v1508_v47  ;;  %v1509_v15 = vpack.c.bf16 %v1469_v8, %v1468_v48  ;;  %v467_v8 = vld [vmem:[%s8645_s24 + $0x151] sm:$0xff] }
 0x137   : > { %v8881_v52 = vadd.f32 %v1669_v24, %v1388_v50  ;;  %v1106_v50 = vpack.c.bf16 %v1067_v38, %v1066_v26 }
 0x138   : > { %v1270_v55 = vpop.f32.mrf.mxu2  ;;  %v676_v56 = vpop.f32.mrf.mxu0 }
 0x139   : > { %v1674_v59 = vpop.f32.mrf.mxu3 }
 0x13a   : > { %v923_v60 = vpop.f32.mrf.mxu1 }
 0x13b   : > { %v924_v61 = vadd.f32 %v923_v60, %v671_v23 }
 0x13d   : > { %v1389_v62 = vadd.f32 %v1267_v40, %v924_v61 }
 0x13f   : > { %v8887_v7 = vadd.f32 %v1671_v44, %v1389_v62  ;;  %v505_v44 = vpack.c.bf16 %v466_v19, %v465_v34 }
 0x140   : > { %v1272_v10 = vpop.f32.mrf.mxu2  ;;  %v679_v11 = vpop.f32.mrf.mxu0 }
 0x141   : > { %v1676_v12 = vpop.f32.mrf.mxu3 }
 0x142   : > { %v926_v16 = vpop.f32.mrf.mxu1 }
 0x143   : > { %v927_v21 = vadd.f32 %v926_v16, %v674_v41  ;;  %7207 = vmatmul.msk.bf16.gmra.mxu0 %vm517_vm2, %v504_v0  ;;  %v1471_v41 = vld [vmem:[%s8645_s24 + $0x158] sm:$0xff] }
 0x144   : > { %v468_v0 = vld [vmem:[%s8645_s24 + $0x159] sm:$0xff] }
 0x145   : > { %v1390_v23 = vadd.f32 %v1270_v55, %v927_v21  ;;  %7236 = vmatmul.msk.bf16.gmra.mxu1 %vm517_vm2, %v1507_v14  ;;  %7268 = vmatmul.msk.bf16.gmra.mxu2 %vm517_vm2, %v1105_v13  ;;  %v1470_v14 = vld [vmem:[%s8645_s24 + $0x150] sm:$0xff]  ;;  %v1473_v13 = vld [vmem:[%s8645_s24 + $0x168] sm:$0xff]  ;;  %v506_v16 = vpack.c.bf16 %v468_v0, %v467_v8 }
 0x146   : > { %7299 = vmatmul.msk.bf16.gmra.mxu3 %vm517_vm2, %v1509_v15 }
 0x147   : > { %v8895_v24 = vadd.f32 %v1674_v59, %v1390_v23  ;;  %v1510_v59 = vpack.c.bf16 %v1471_v41, %v1470_v14 }
 0x148   : > { %v1275_v25 = vpop.f32.mrf.mxu2  ;;  %v681_v27 = vpop.f32.mrf.mxu0 }
 0x149   : > { %v1679_v28 = vpop.f32.mrf.mxu3 }
 0x14a   : > { %v928_v31 = vpop.f32.mrf.mxu1 }
 0x14b   : > { %v929_v32 = vadd.f32 %v928_v31, %v676_v56 }
 0x14d   : > { %v1391_v33 = vadd.f32 %v1272_v10, %v929_v32  ;;  %v1068_v10 = vld [vmem:[%s8645_s24 + $0x152] sm:$0xff] }
 0x14f   : > { %v8901_v40 = vadd.f32 %v1676_v12, %v1391_v33 }
 0x150   : > { %v1277_v39 = vpop.f32.mrf.mxu2  ;;  %v684_v46 = vpop.f32.mrf.mxu0 }
 0x151   : > { %v1681_v49 = vpop.f32.mrf.mxu3 }
 0x152   : > { %v931_v55 = vpop.f32.mrf.mxu1 }
 0x153   : > { %v932_v56 = vadd.f32 %v931_v55, %v679_v11  ;;  %7208 = vmatmul.msk.bf16.gmra.mxu0 %vm517_vm2, %v505_v44  ;;  %v1069_v11 = vld [vmem:[%s8645_s24 + $0x15a] sm:$0xff] }
 0x155   : > { %v1392_v60 = vadd.f32 %v1275_v25, %v932_v56  ;;  %7237 = vmatmul.msk.bf16.gmra.mxu1 %vm517_vm2, %v1508_v47  ;;  %7269 = vmatmul.msk.bf16.gmra.mxu2 %vm517_vm2, %v1106_v50  ;;  %v1472_v47 = vld [vmem:[%s8645_s24 + $0x160] sm:$0xff]  ;;  %v1071_v50 = vld [vmem:[%s8645_s24 + $0x16a] sm:$0xff]  ;;  %v1475_v56 = vld [vmem:[%s8645_s24 + $0x178] sm:$0xff] }
 0x156   : > { %7300 = vmatmul.msk.bf16.gmra.mxu3 %vm517_vm2, %v1510_v59  ;;  %v1511_v32 = vpack.c.bf16 %v1473_v13, %v1472_v47 }
 0x157   : > { %v8909_v61 = vadd.f32 %v1679_v28, %v1392_v60  ;;  %v1107_v28 = vpack.c.bf16 %v1069_v11, %v1068_v10 }
 0x158   : > { %v1280_v62 = vpop.f32.mrf.mxu2  ;;  %v686_v63 = vpop.f32.mrf.mxu0 }
 0x159   : > { %v1684_v1 = vpop.f32.mrf.mxu3 }
 0x15a   : > { %v933_v2 = vpop.f32.mrf.mxu1 }
 0x15b   : > { %v934_v53 = vadd.f32 %v933_v2, %v681_v27 }
 0x15d   : > { %v1393_v48 = vadd.f32 %v1277_v39, %v934_v53  ;;  %v469_v39 = vld [vmem:[%s8645_s24 + $0x161] sm:$0xff] }
 0x15f   : > { %v8915_v12 = vadd.f32 %v1681_v49, %v1393_v48  ;;  %v1070_v49 = vld [vmem:[%s8645_s24 + $0x162] sm:$0xff] }
 0x160   : > { %v1282_v21 = vpop.f32.mrf.mxu2  ;;  %v689_v23 = vpop.f32.mrf.mxu0 }
 0x161   : > { %v1686_v25 = vpop.f32.mrf.mxu3 }
 0x162   : > { %v936_v31 = vpop.f32.mrf.mxu1 }
 0x163   : > { %v937_v27 = vadd.f32 %v936_v31, %v684_v46  ;;  %7209 = vmatmul.msk.bf16.gmra.mxu0 %vm517_vm2, %v506_v16  ;;  %v470_v46 = vld [vmem:[%s8645_s24 + $0x169] sm:$0xff]  ;;  %v1072_v31 = vld [vmem:[%s8645_s24 + $0x172] sm:$0xff] }
 0x164   : > { %v507_v60 = vpack.c.bf16 %v470_v46, %v469_v39 }
 0x165   : > { %v1394_v33 = vadd.f32 %v1280_v62, %v937_v27  ;;  %7238 = vmatmul.msk.bf16.gmra.mxu1 %vm517_vm2, %v1509_v15  ;;  %7270 = vmatmul.msk.bf16.gmra.mxu2 %vm517_vm2, %v1107_v28  ;;  %v1474_v15 = vld [vmem:[%s8645_s24 + $0x170] sm:$0xff]  ;;  %v472_v28 = vld [vmem:[%s8645_s24 + $0x179] sm:$0xff] }
 0x166   : > { %7301 = vmatmul.msk.bf16.gmra.mxu3 %vm517_vm2, %v1511_v32  ;;  %v1512_v8 = vpack.c.bf16 %v1475_v56, %v1474_v15  ;;  %v1073_v27 = vld [vmem:[%s8645_s24 + $0x17a] sm:$0xff] }
 0x167   : > { %v8923_v34 = vadd.f32 %v1684_v1, %v1394_v33  ;;  %v1108_v1 = vpack.c.bf16 %v1071_v50, %v1070_v49  ;;  %v1109_v39 = vpack.c.bf16 %v1073_v27, %v1072_v31  ;;  %v475_v31 = vld [vmem:[%s8645_s24 + $0x191] sm:$0xff]  ;;  %v476_v27 = vld [vmem:[%s8645_s24 + $0x199] sm:$0xff] }
 0x168   : > { %v1285_v19 = vpop.f32.mrf.mxu2  ;;  %v691_v26 = vpop.f32.mrf.mxu0 }
 0x169   : > { %v1689_v38 = vpop.f32.mrf.mxu3 }
 0x16a   : > { %v938_v14 = vpop.f32.mrf.mxu1 }
 0x16b   : > { %v939_v41 = vadd.f32 %v938_v14, %v686_v63 }
 0x16d   : > { %v1395_v44 = vadd.f32 %v1282_v21, %v939_v41 }
 0x16f   : > { %v8929_v55 = vadd.f32 %v1686_v25, %v1395_v44  ;;  %v471_v25 = vld [vmem:[%s8645_s24 + $0x171] sm:$0xff] }
 0x170   : > { %v1287_v62 = vpop.f32.mrf.mxu2  ;;  %v694_v2 = vpop.f32.mrf.mxu0  ;;  %v508_v14 = vpack.c.bf16 %v472_v28, %v471_v25 }
 0x171   : > { %v1691_v53 = vpop.f32.mrf.mxu3  ;;  %v1074_v2 = vld [vmem:[%s8645_s24 + $0x182] sm:$0xff] }
 0x172   : > { %v941_v48 = vpop.f32.mrf.mxu1 }
 0x173   : > { %v942_v63 = vadd.f32 %v941_v48, %v689_v23  ;;  %7210 = vmatmul.msk.bf16.gmra.mxu0 %vm517_vm2, %v507_v60  ;;  %v473_v60 = vld [vmem:[%s8645_s24 + $0x181] sm:$0xff]  ;;  %v1479_v48 = vld [vmem:[%s8645_s24 + $0x198] sm:$0xff] }
 0x175   : > { %v1396_v0 = vadd.f32 %v1285_v19, %v942_v63  ;;  %7239 = vmatmul.msk.bf16.gmra.mxu1 %vm517_vm2, %v1510_v59  ;;  %7271 = vmatmul.msk.bf16.gmra.mxu2 %vm517_vm2, %v1108_v1  ;;  %v1476_v59 = vld [vmem:[%s8645_s24 + $0x180] sm:$0xff]  ;;  %v1477_v19 = vld [vmem:[%s8645_s24 + $0x188] sm:$0xff]  ;;  %v1478_v1 = vld [vmem:[%s8645_s24 + $0x190] sm:$0xff] }
 0x176   : > { %7302 = vmatmul.msk.bf16.gmra.mxu3 %vm517_vm2, %v1512_v8  ;;  %v1513_v46 = vpack.c.bf16 %v1477_v19, %v1476_v59  ;;  %v1076_v59 = vld [vmem:[%s8645_s24 + $0x192] sm:$0xff]  ;;  %v1077_v19 = vld [vmem:[%s8645_s24 + $0x19a] sm:$0xff] }
 0x177   : > { %v8937_v10 = vadd.f32 %v1689_v38, %v1396_v0 }
 0x178   : > { %v1290_v11 = vpop.f32.mrf.mxu2  ;;  %v696_v47 = vpop.f32.mrf.mxu0 }
 0x179   : > { %v1694_v13 = vpop.f32.mrf.mxu3 }
 0x17a   : > { %v943_v16 = vpop.f32.mrf.mxu1 }
 0x17b   : > { %v944_v21 = vadd.f32 %v943_v16, %v691_v26  ;;  %v1514_v16 = vpack.c.bf16 %v1479_v48, %v1478_v1 }
 0x17d   : > { %v1397_v23 = vadd.f32 %v1287_v62, %v944_v21  ;;  %v474_v62 = vld [vmem:[%s8645_s24 + $0x189] sm:$0xff] }
 0x17e   : > { %v509_v63 = vpack.c.bf16 %v474_v62, %v473_v60 }
 0x17f   : > { %v8943_v33 = vadd.f32 %v1691_v53, %v1397_v23  ;;  %v1075_v53 = vld [vmem:[%s8645_s24 + $0x18a] sm:$0xff] }
 0x180   : > { %v1292_v41 = vpop.f32.mrf.mxu2  ;;  %v699_v38 = vpop.f32.mrf.mxu0  ;;  %v1110_v47 = vpack.c.bf16 %v1075_v53, %v1074_v2 }
 0x181   : > { %v1696_v44 = vpop.f32.mrf.mxu3  ;;  %v1481_v41 = vld [vmem:[%s8645_s24 + $0x1a8] sm:$0xff]  ;;  %v510_v38 = vpack.c.bf16 %v476_v27, %v475_v31 }
 0x182   : > { %v946_v26 = vpop.f32.mrf.mxu1 }
 0x183   : > { %7211 = vmatmul.msk.bf16.gmra.mxu0 %vm517_vm2, %v508_v14  ;;  %v1480_v14 = vld [vmem:[%s8645_s24 + $0x1a0] sm:$0xff] }
 0x185   : > { %7240 = vmatmul.msk.bf16.gmra.mxu1 %vm517_vm2, %v1511_v32  ;;  %7272 = vmatmul.msk.bf16.gmra.mxu2 %vm517_vm2, %v1109_v39 }
 0x186   : > { %7303 = vmatmul.msk.bf16.gmra.mxu3 %vm517_vm2, %v1513_v46 }
 0x188   : > { %v1295_v49 = vpop.f32.mrf.mxu2  ;;  %v701_v50 = vpop.f32.mrf.mxu0 }
 0x189   : > { %v1699_v15 = vpop.f32.mrf.mxu3  ;;  %v1111_v49 = vpack.c.bf16 %v1077_v19, %v1076_v59  ;;  %v8967_v50 = vpack.c.bf16 %v1481_v41, %v1480_v14 }
 0x18a   : > { %v948_v56 = vpop.f32.mrf.mxu1 }
 0x190   : > { %v1297_v0 = vpop.f32.mrf.mxu2  ;;  %v704_v32 = vpop.f32.mrf.mxu0 }
 0x191   : > { %v1701_v11 = vpop.f32.mrf.mxu3  ;;  %v477_v0 = vld [vmem:[%s8645_s24 + $0x1a1] sm:$0xff] }
 0x192   : > { %v951_v13 = vpop.f32.mrf.mxu1  ;;  %v1078_v11 = vld [vmem:[%s8645_s24 + $0x1a2] sm:$0xff] }
 0x193   : > { %7212 = vmatmul.msk.bf16.gmra.mxu0 %vm517_vm2, %v509_v63 }
 0x195   : > { %7241 = vmatmul.msk.bf16.gmra.mxu1 %vm517_vm2, %v1512_v8  ;;  %7273 = vmatmul.msk.bf16.gmra.mxu2 %vm517_vm2, %v1110_v47  ;;  %v1079_v47 = vld [vmem:[%s8645_s24 + $0x1aa] sm:$0xff] }
 0x196   : > { %7304 = vmatmul.msk.bf16.gmra.mxu3 %vm517_vm2, %v1514_v16 }
 0x198   : > { %v1300_v21 = vpop.f32.mrf.mxu2  ;;  %v706_v23 = vpop.f32.mrf.mxu0 }
 0x199   : > { %v1704_v25 = vpop.f32.mrf.mxu3 }
 0x19a   : > { %v953_v28 = vpop.f32.mrf.mxu1 }
 0x1a0   : > { %v1302_v44 = vpop.f32.mrf.mxu2  ;;  %v709_v39 = vpop.f32.mrf.mxu0 }
 0x1a1   : > { %v1706_v26 = vpop.f32.mrf.mxu3 }
 0x1a2   : > { %v956_v8 = vpop.f32.mrf.mxu1 }
 0x1a3   : > { %v957_v15 = vadd.f32 %v956_v8, %v704_v32  ;;  %7213 = vmatmul.msk.bf16.gmra.mxu0 %vm517_vm2, %v510_v38  ;;  %v478_v32 = vld [vmem:[%s8645_s24 + $0x1a9] sm:$0xff] }
 0x1a4   : > { %v511_v28 = vpack.c.bf16 %v478_v32, %v477_v0 }
 0x1a5   : > { %v1402_v56 = vadd.f32 %v1300_v21, %v957_v15  ;;  %7242 = vmatmul.msk.bf16.gmra.mxu1 %vm517_vm2, %v1513_v46  ;;  %7274 = vmatmul.msk.bf16.gmra.mxu2 %vm517_vm2, %v1111_v49  ;;  %v1482_v46 = vld [vmem:[%s8645_s24 + $0x1b0] sm:$0xff]  ;;  %v1483_v21 = vld [vmem:[%s8645_s24 + $0x1b8] sm:$0xff]  ;;  %v7372_v15 = vld [vmem:[%s11193_s1 + $0xc] sm:$0x3] }
 0x1a6   : > { %7305 = vmatmul.msk.bf16.gmra.mxu3 %vm517_vm2, %v8967_v50  ;;  %v8984_v14 = vpack.c.bf16 %v1483_v21, %v1482_v46 }
 0x1a7   : > { %v8974_v60 = vadd.f32 %v1704_v25, %v1402_v56  ;;  %v1112_v25 = vpack.c.bf16 %v1079_v47, %v1078_v11  ;;  %v1485_v11 = vld [vmem:[%s8645_s24 + $0x1c8] sm:$0xff] }
 0x1a8   : > { %v1305_v62 = vpop.f32.mrf.mxu2  ;;  %v711_v2 = vpop.f32.mrf.mxu0  ;;  %v7341_v47 = vld [vmem:[%s11193_s1 + $0xa] sm:$0x3] }
 0x1a9   : > { %v1709_v53 = vpop.f32.mrf.mxu3 }
 0x1aa   : > { %v958_v1 = vpop.f32.mrf.mxu1 }
 0x1ab   : > { %v959_v48 = vadd.f32 %v958_v1, %v706_v23  ;;  %v480_v1 = vld [vmem:[%s8645_s24 + $0x1b9] sm:$0xff] }
 0x1ad   : > { %v1403_v63 = vadd.f32 %v1302_v44, %v959_v48  ;;  %v1080_v48 = vld [vmem:[%s8645_s24 + $0x1b2] sm:$0xff] }
 0x1af   : > { %v8980_v13 = vadd.f32 %v1706_v26, %v1403_v63  ;;  %v1081_v63 = vld [vmem:[%s8645_s24 + $0x1ba] sm:$0xff] }
 0x1b0   : > { %v1307_v31 = vpop.f32.mrf.mxu2  ;;  %v714_v27 = vpop.f32.mrf.mxu0 }
 0x1b1   : > { %v1711_v59 = vpop.f32.mrf.mxu3 }
 0x1b2   : > { %v961_v19 = vpop.f32.mrf.mxu1 }
 0x1b3   : > { %v962_v41 = vadd.f32 %v961_v19, %v709_v39  ;;  %7214 = vmatmul.msk.bf16.gmra.mxu0 %vm517_vm2, %v511_v28  ;;  %v2421_v28 = vand.u32 %v7341_v47, %v8626_v5  ;;  %v1113_v19 = vpack.c.bf16 %v1081_v63, %v1080_v48  ;;  %v482_v48 = vld [vmem:[%s8645_s24 + $0x1c9] sm:$0xff]  ;;  %v1487_v47 = vld [vmem:[%s8645_s24 + $0x1d8] sm:$0xff] }
 0x1b4   : > { %v1082_v63 = vld [vmem:[%s8645_s24 + $0x1c2] sm:$0xff] }
 0x1b5   : > { %v1404_v23 = vadd.f32 %v1305_v62, %v962_v41  ;;  %7243 = vmatmul.msk.bf16.gmra.mxu1 %vm517_vm2, %v1514_v16  ;;  %7275 = vmatmul.msk.bf16.gmra.mxu2 %vm517_vm2, %v1112_v25  ;;  %v2825_v16 = vand.u32 %v7372_v15, %v8626_v5  ;;  %v479_v62 = vld [vmem:[%s8645_s24 + $0x1b1] sm:$0xff] }
 0x1b6   : > { %7306 = vmatmul.msk.bf16.gmra.mxu3 %vm517_vm2, %v8984_v14  ;;  %v512_v46 = vpack.c.bf16 %v480_v1, %v479_v62  ;;  %2430 = vmatpush.bf16.msra.mxu1 %v2421_v28 }
 0x1b7   : > { %v8991_v38 = vadd.f32 %v1709_v53, %v1404_v23  ;;  %v7403_v53 = vld [vmem:[%s11193_s1 + $0xe] sm:$0x3]  ;;  %2834 = vmatpush.bf16.msrb.mxu2 %v2825_v16 }
 0x1b8   : > { %v1310_v44 = vpop.f32.mrf.mxu2  ;;  %v716_v26 = vpop.f32.mrf.mxu0  ;;  %v3229_v0 = vand.u32 %v7403_v53, %v8626_v5  ;;  %v481_v53 = vld [vmem:[%s8645_s24 + $0x1c1] sm:$0xff] }
 0x1b9   : > { %v1714_v39 = vpop.f32.mrf.mxu3 }
 0x1ba   : > { %v963_v49 = vpop.f32.mrf.mxu1  ;;  %3238 = vmatpush.bf16.msrb.mxu3 %v3229_v0  ;;  %v1083_v0 = vld [vmem:[%s8645_s24 + $0x1ca] sm:$0xff] }
 0x1bb   : > { %v964_v8 = vadd.f32 %v963_v49, %v711_v2  ;;  %v1484_v2 = vld [vmem:[%s8645_s24 + $0x1c0] sm:$0xff] }
 0x1bc   : > { %v1517_v23 = vpack.c.bf16 %v1485_v11, %v1484_v2  ;;  %v9031_v11 = vld [vmem:[%s8645_s24 + $0x1d0] sm:$0xff] }
 0x1bd   : > { %v1405_v56 = vadd.f32 %v1307_v31, %v964_v8  ;;  %v7434_v8 = vld [vmem:[%s11193_s1 + $0x10] sm:$0x3] }
 0x1bf   : > { %v9005_v32 = vadd.f32 %v1711_v59, %v1405_v56 }
 0x1c0   : > { %v1312_v21 = vpop.f32.mrf.mxu2  ;;  %v719_v31 = vpop.f32.mrf.mxu0 }
 0x1c1   : > { %v1716_v25 = vpop.f32.mrf.mxu3 }
 0x1c2   : > { %v966_v41 = vpop.f32.mrf.mxu1 }
 0x1c3   : > { %v967_v49 = vadd.f32 %v966_v41, %v714_v27  ;;  %7215 = vmatmul.msk.bf16.gmra.mxu0 %vm517_vm2, %v512_v46  ;;  %v3633_v27 = vand.u32 %v7434_v8, %v8626_v5  ;;  %v513_v46 = vpack.c.bf16 %v482_v48, %v481_v53  ;;  %v1835_v53 = vld [vmem:[%s8645_s24 + $0x19] sm:$0xff] }
 0x1c4   : > { %v1085_v48 = vld [vmem:[%s8645_s24 + $0x1da] sm:$0x3f] }
 0x1c5   : > { %v1406_v59 = vadd.f32 %v1310_v44, %v967_v49  ;;  %7244 = vmatmul.msk.bf16.gmra.mxu1 %vm517_vm2, %v8967_v50  ;;  %7276 = vmatmul.msk.bf16.gmra.mxu2 %vm517_vm2, %v1113_v19  ;;  %v1114_v19 = vpack.c.bf16 %v1083_v0, %v1082_v63  ;;  %v1489_v0 = vld [vmem:[%s8645_s24 + $0x1e8] sm:$0x3f] }
 0x1c6   : > { %7307 = vmatmul.msk.bf16.gmra.mxu3 %vm517_vm2, %v1517_v23  ;;  %3642 = vmatpush.bf16.msra.mxu0 %v3633_v27 }
 0x1c7   : > { %v9022_v15 = vadd.f32 %v1714_v39, %v1406_v59 }
 0x1c8   : > { %v1315_v44 = vpop.f32.mrf.mxu2  ;;  %v721_v16 = vpop.f32.mrf.mxu0 }
 0x1c9   : > { %v1719_v56 = vpop.f32.mrf.mxu3 }
 0x1ca   : > { %v968_v50 = vpop.f32.mrf.mxu1 }
 0x1cb   : > { %v969_v62 = vadd.f32 %v968_v50, %v716_v26  ;;  %v1518_v26 = vpack.c.bf16 %v1487_v47, %v9031_v11 }
 0x1cd   : > { %v1407_v1 = vadd.f32 %v1312_v21, %v969_v62 }
 0x1cf   : > { %v9028_v2 = vadd.f32 %v1716_v25, %v1407_v1  ;;  %v1834_v1 = vld [vmem:[%s8645_s24 + $0x11] sm:$0xff] }
 0x1d0   : > { %v1317_v5 = vpop.f32.mrf.mxu2  ;;  %v724_v39 = vpop.f32.mrf.mxu0  ;;  %v1894_v47 = vpack.c.bf16 %v1835_v53, %v1834_v1 }
 0x1d1   : > { %v1721_v28 = vpop.f32.mrf.mxu3 }
 0x1d2   : > { %v971_v41 = vpop.f32.mrf.mxu1 }
 0x1d3   : > { %v972_v21 = vadd.f32 %v971_v41, %v719_v31  ;;  %7216 = vmatmul.msk.bf16.gmra.mxu0 %vm517_vm2, %v513_v46 }
 0x1d5   : > { %v1408_v25 = vadd.f32 %v1315_v44, %v972_v21  ;;  %7245 = vmatmul.msk.bf16.gmra.mxu1 %vm517_vm2, %v8984_v14  ;;  %7277 = vmatmul.msk.bf16.gmra.mxu2 %vm517_vm2, %v1114_v19  ;;  %v1084_v44 = vld [vmem:[%s8645_s24 + $0x1d2] sm:$0xff]  ;;  %v1488_v14 = vld [vmem:[%s8645_s24 + $0x1e0] sm:$0xff] }
 0x1d6   : > { %7308 = vmatmul.msk.bf16.gmra.mxu3 %vm517_vm2, %v1518_v26  ;;  %v1519_v21 = vpack.c.bf16 %v1489_v0, %v1488_v14  ;;  %v2642_v14 = vld [vmem:[%s8645_s24 + $0x20] sm:$0xff]  ;;  %v2643_v0 = vld [vmem:[%s8645_s24 + $0x28] sm:$0xff] }
 0x1d7   : > { %v9040_v49 = vadd.f32 %v1719_v56, %v1408_v25  ;;  %v1115_v56 = vpack.c.bf16 %v1085_v48, %v1084_v44  ;;  %v1837_v44 = vld [vmem:[%s8645_s24 + $0x29] sm:$0xff]  ;;  %v393_v48 = vld [vmem:[%s8645_s24 + $0x1d8] sm:$0x3f] }
 0x1d8   : > { %v1320_v59 = vpop.f32.mrf.mxu2  ;;  %v726_v8 = vpop.f32.mrf.mxu0 }
 0x1d9   : > { %v1724_v27 = vpop.f32.mrf.mxu3 }
 0x1da   : > { %v973_v50 = vpop.f32.mrf.mxu1 }
 0x1db   : > { %v974_v31 = vadd.f32 %v973_v50, %v721_v16 }
 0x1dd   : > { %v1409_v62 = vadd.f32 %v1317_v5, %v974_v31 }
 0x1df   : > { %v9046_v63 = vadd.f32 %v1721_v28, %v1409_v62 }
 0x1e0   : > { %v1322_v46 = vpop.f32.mrf.mxu2  ;;  %v729_v19 = vpop.f32.mrf.mxu0 }
 0x1e1   : > { %v1726_v41 = vpop.f32.mrf.mxu3 }
 0x1e2   : > { %v976_v26 = vpop.f32.mrf.mxu1 }
 0x1e3   : > { %v977_v16 = vadd.f32 %v976_v26, %v724_v39  ;;  %7311 = vmatmul.msk.bf16.vlgmr.msrb.gmra.mxu0 %vm517_vm2, %v1894_v47  ;;  %v1836_v39 = vld [vmem:[%s8645_s24 + $0x21] sm:$0xff]  ;;  %v423_v26 = vpack.c.bf16 %v393_v48, %v9031_v11  ;;  %v2238_v48 = vld [vmem:[%s8645_s24 + $0x12] sm:$0xff] }
 0x1e5   : > { %v1410_v5 = vadd.f32 %v1320_v59, %v977_v16  ;;  %7246 = vmatmul.msk.bf16.gmra.mxu1 %vm517_vm2, %v1517_v23  ;;  %7278 = vmatmul.msk.bf16.gmra.mxu2 %vm517_vm2, %v1115_v56  ;;  %v1895_v23 = vpack.c.bf16 %v1837_v44, %v1836_v39  ;;  %v1838_v39 = vld [vmem:[%s8645_s24 + $0x31] sm:$0xff]  ;;  %v1839_v44 = vld [vmem:[%s8645_s24 + $0x39] sm:$0xff] }
 0x1e6   : > { %7309 = vmatmul.msk.bf16.gmra.mxu3 %vm517_vm2, %v1519_v21  ;;  %v2702_v21 = vpack.c.bf16 %v2643_v0, %v2642_v14  ;;  %v2239_v14 = vld [vmem:[%s8645_s24 + $0x1a] sm:$0xff] }
 0x1e7   : > { %v9054_v28 = vadd.f32 %v1724_v27, %v1410_v5  ;;  %v2645_v0 = vld [vmem:[%s8645_s24 + $0x38] sm:$0xff] }
 0x1e8   : > { %v1325_v25 = vpop.f32.mrf.mxu2  ;;  %v731_v50 = vpop.f32.mrf.mxu0 }
 0x1e9   : > { %v1729_v31 = vpop.f32.mrf.mxu3 }
 0x1ea   : > { %v978_v62 = vpop.f32.mrf.mxu1 }
 0x1eb   : > { %v979_v1 = vadd.f32 %v978_v62, %v726_v8 }
 0x1ed   : > { %v1411_v53 = vadd.f32 %v1322_v46, %v979_v1 }
 0x1ef   : > { %v9061_v59 = vadd.f32 %v1726_v41, %v1411_v53 }
 0x1f0   : > { %v1327_v47 = vpop.f32.mrf.mxu2  ;;  %v734_v56 = vpop.f32.mrf.mxu0 }
 0x1f1   : > { %11210 = vst [vmem:[#allocation7_spill] sm:$0xff] %v9061_v59  ;;  %v1731_v27 = vpop.f32.mrf.mxu3 }
 0x1f2   : > { %v981_v16 = vpop.f32.mrf.mxu1 }
 0x1f3   : > { %v982_v8 = vadd.f32 %v981_v16, %v729_v19  ;;  %7312 = vmatmul.msk.bf16.gmra.mxu0 %vm517_vm2, %v1895_v23 }
 0x1f5   : > { %v1412_v46 = vadd.f32 %v1325_v25, %v982_v8  ;;  %7247 = vmatmul.msk.bf16.gmra.mxu1 %vm517_vm2, %v423_v26  ;;  %7373 = vmatmul.msk.bf16.vlgmr.msrb.gmra.mxu2 %vm517_vm2, %v2702_v21  ;;  %v2644_v25 = vld [vmem:[%s8645_s24 + $0x30] sm:$0xff]  ;;  %v1896_v26 = vpack.c.bf16 %v1839_v44, %v1838_v39 }
 0x1f6   : > { %7404 = vmatmul.msk.bf16.vlgmr.msrb.gmra.mxu3 %vm517_vm2, %v1895_v23  ;;  %v2298_v23 = vpack.c.bf16 %v2239_v14, %v2238_v48  ;;  %v1841_v48 = vld [vmem:[%s8645_s24 + $0x49] sm:$0xff] }
 0x1f7   : > { %v9068_v11 = vadd.f32 %v1729_v31, %v1412_v46  ;;  %v2703_v46 = vpack.c.bf16 %v2645_v0, %v2644_v25  ;;  %v2240_v14 = vld [vmem:[%s8645_s24 + $0x22] sm:$0xff]  ;;  %v2241_v25 = vld [vmem:[%s8645_s24 + $0x2a] sm:$0xff] }
 0x1f8   : > { %v1330_v41 = vpop.f32.mrf.mxu2  ;;  %v736_v5 = vpop.f32.mrf.mxu0  ;;  %v2647_v0 = vld [vmem:[%s8645_s24 + $0x48] sm:$0xff] }
 0x1f9   : > { %11211 = vst [vmem:[#allocation8_spill] sm:$0xff] %v9068_v11  ;;  %v1734_v62 = vpop.f32.mrf.mxu3 }
 0x1fa   : > { %v983_v1 = vpop.f32.mrf.mxu1 }
 0x1fb   : > { %v984_v53 = vadd.f32 %v983_v1, %v731_v50 }
 0x1fd   : > { %v1413_v19 = vadd.f32 %v1327_v47, %v984_v53 }
 0x1ff   : > { %v9076_v16 = vadd.f32 %v1731_v27, %v1413_v19 }
 0x200   : > { %v1332_v21 = vpop.f32.mrf.mxu2  ;;  %v739_v8 = vpop.f32.mrf.mxu0 }
 0x201   : > { %11212 = vst [vmem:[#allocation9_spill] sm:$0xff] %v9076_v16  ;;  %v1736_v31 = vpop.f32.mrf.mxu3 }
 0x202   : > { %v986_v11 = vpop.f32.mrf.mxu1 }
 0x203   : > { %v987_v50 = vadd.f32 %v986_v11, %v734_v56  ;;  %7313 = vmatmul.msk.bf16.gmra.mxu0 %vm517_vm2, %v1896_v26  ;;  %v1840_v11 = vld [vmem:[%s8645_s24 + $0x41] sm:$0xff] }
 0x205   : > { %v1414_v47 = vadd.f32 %v1330_v41, %v987_v50  ;;  %7342 = vmatmul.msk.bf16.vlgmr.msra.gmra.mxu1 %vm517_vm2, %v2298_v23  ;;  %7374 = vmatmul.msk.bf16.gmra.mxu2 %vm517_vm2, %v2703_v46  ;;  %v2646_v41 = vld [vmem:[%s8645_s24 + $0x40] sm:$0xff]  ;;  %v1897_v23 = vpack.c.bf16 %v1841_v48, %v1840_v11 }
 0x206   : > { %7405 = vmatmul.msk.bf16.gmra.mxu3 %vm517_vm2, %v1896_v26  ;;  %v2299_v26 = vpack.c.bf16 %v2241_v25, %v2240_v14  ;;  %v1843_v14 = vld [vmem:[%s8645_s24 + $0x59] sm:$0xff] }
 0x207   : > { %v9082_v27 = vadd.f32 %v1734_v62, %v1414_v47  ;;  %v2704_v47 = vpack.c.bf16 %v2647_v0, %v2646_v41  ;;  %v2242_v25 = vld [vmem:[%s8645_s24 + $0x32] sm:$0xff]  ;;  %v2243_v41 = vld [vmem:[%s8645_s24 + $0x3a] sm:$0xff] }
 0x208   : > { %v1335_v1 = vpop.f32.mrf.mxu2  ;;  %v741_v53 = vpop.f32.mrf.mxu0  ;;  %v2649_v0 = vld [vmem:[%s8645_s24 + $0x58] sm:$0xff] }
 0x209   : > { %11213 = vst [vmem:[#allocation10_spill] sm:$0xff] %v9082_v27  ;;  %v1739_v19 = vpop.f32.mrf.mxu3 }
 0x20a   : > { %v988_v39 = vpop.f32.mrf.mxu1 }
 0x20b   : > { %v989_v44 = vadd.f32 %v988_v39, %v736_v5 }
 0x20d   : > { %v1415_v56 = vadd.f32 %v1332_v21, %v989_v44 }
 0x20f   : > { %v9090_v50 = vadd.f32 %v1736_v31, %v1415_v56 }
 0x210   : > { %v1337_v46 = vpop.f32.mrf.mxu2  ;;  %v744_v16 = vpop.f32.mrf.mxu0 }
 0x211   : > { %11214 = vst [vmem:[#allocation11_spill] sm:$0xff] %v9090_v50  ;;  %v1741_v62 = vpop.f32.mrf.mxu3 }
 0x212   : > { %v991_v27 = vpop.f32.mrf.mxu1 }
 0x213   : > { %v992_v5 = vadd.f32 %v991_v27, %v739_v8  ;;  %7314 = vmatmul.msk.bf16.gmra.mxu0 %vm517_vm2, %v1897_v23  ;;  %v1842_v27 = vld [vmem:[%s8645_s24 + $0x51] sm:$0xff] }
 0x215   : > { %v1416_v21 = vadd.f32 %v1335_v1, %v992_v5  ;;  %7343 = vmatmul.msk.bf16.gmra.mxu1 %vm517_vm2, %v2299_v26  ;;  %7375 = vmatmul.msk.bf16.gmra.mxu2 %vm517_vm2, %v2704_v47  ;;  %v2648_v1 = vld [vmem:[%s8645_s24 + $0x50] sm:$0xff]  ;;  %v1898_v26 = vpack.c.bf16 %v1843_v14, %v1842_v27 }
 0x216   : > { %7406 = vmatmul.msk.bf16.gmra.mxu3 %vm517_vm2, %v1897_v23  ;;  %v2300_v23 = vpack.c.bf16 %v2243_v41, %v2242_v25  ;;  %v1845_v25 = vld [vmem:[%s8645_s24 + $0x69] sm:$0xff] }
 0x217   : > { %v9096_v31 = vadd.f32 %v1739_v19, %v1416_v21  ;;  %v2705_v21 = vpack.c.bf16 %v2649_v0, %v2648_v1  ;;  %v2244_v41 = vld [vmem:[%s8645_s24 + $0x42] sm:$0xff]  ;;  %v2245_v1 = vld [vmem:[%s8645_s24 + $0x4a] sm:$0xff] }
 0x218   : > { %v1340_v39 = vpop.f32.mrf.mxu2  ;;  %v746_v44 = vpop.f32.mrf.mxu0  ;;  %v2651_v0 = vld [vmem:[%s8645_s24 + $0x68] sm:$0xff] }
 0x219   : > { %11215 = vst [vmem:[#allocation12_spill] sm:$0xff] %v9096_v31  ;;  %v1744_v56 = vpop.f32.mrf.mxu3 }
 0x21a   : > { %v993_v11 = vpop.f32.mrf.mxu1 }
 0x21b   : > { %v994_v48 = vadd.f32 %v993_v11, %v741_v53 }
 0x21d   : > { %v1417_v8 = vadd.f32 %v1337_v46, %v994_v48 }
 0x21f   : > { %v9104_v5 = vadd.f32 %v1741_v62, %v1417_v8 }
 0x220   : > { %v1342_v47 = vpop.f32.mrf.mxu2  ;;  %v749_v50 = vpop.f32.mrf.mxu0 }
 0x221   : > { %11216 = vst [vmem:[#allocation13_spill] sm:$0xff] %v9104_v5  ;;  %v1746_v19 = vpop.f32.mrf.mxu3 }
 0x222   : > { %v996_v31 = vpop.f32.mrf.mxu1 }
 0x223   : > { %v997_v53 = vadd.f32 %v996_v31, %v744_v16  ;;  %7315 = vmatmul.msk.bf16.gmra.mxu0 %vm517_vm2, %v1898_v26  ;;  %v1844_v31 = vld [vmem:[%s8645_s24 + $0x61] sm:$0xff] }
 0x225   : > { %v1418_v46 = vadd.f32 %v1340_v39, %v997_v53  ;;  %7344 = vmatmul.msk.bf16.gmra.mxu1 %vm517_vm2, %v2300_v23  ;;  %7376 = vmatmul.msk.bf16.gmra.mxu2 %vm517_vm2, %v2705_v21  ;;  %v2650_v39 = vld [vmem:[%s8645_s24 + $0x60] sm:$0xff]  ;;  %v1899_v23 = vpack.c.bf16 %v1845_v25, %v1844_v31 }
 0x226   : > { %7407 = vmatmul.msk.bf16.gmra.mxu3 %vm517_vm2, %v1898_v26  ;;  %v2301_v26 = vpack.c.bf16 %v2245_v1, %v2244_v41  ;;  %v1847_v41 = vld [vmem:[%s8645_s24 + $0x79] sm:$0xff] }
 0x227   : > { %v9110_v62 = vadd.f32 %v1744_v56, %v1418_v46  ;;  %v2706_v46 = vpack.c.bf16 %v2651_v0, %v2650_v39  ;;  %v2246_v1 = vld [vmem:[%s8645_s24 + $0x52] sm:$0xff]  ;;  %v2247_v39 = vld [vmem:[%s8645_s24 + $0x5a] sm:$0xff] }
 0x228   : > { %v1345_v11 = vpop.f32.mrf.mxu2  ;;  %v751_v48 = vpop.f32.mrf.mxu0  ;;  %v2653_v0 = vld [vmem:[%s8645_s24 + $0x78] sm:$0xff] }
 0x229   : > { %11217 = vst [vmem:[#allocation14_spill] sm:$0xff] %v9110_v62  ;;  %v1749_v8 = vpop.f32.mrf.mxu3 }
 0x22a   : > { %v998_v27 = vpop.f32.mrf.mxu1 }
 0x22b   : > { %v999_v14 = vadd.f32 %v998_v27, %v746_v44 }
 0x22d   : > { %v1419_v16 = vadd.f32 %v1342_v47, %v999_v14 }
 0x22f   : > { %v9118_v53 = vadd.f32 %v1746_v19, %v1419_v16 }
 0x230   : > { %v1347_v21 = vpop.f32.mrf.mxu2  ;;  %v754_v5 = vpop.f32.mrf.mxu0 }
 0x231   : > { %11218 = vst [vmem:[#allocation15_spill] sm:$0xff] %v9118_v53  ;;  %v1751_v56 = vpop.f32.mrf.mxu3 }
 0x232   : > { %v1001_v62 = vpop.f32.mrf.mxu1 }
 0x233   : > { %v1002_v44 = vadd.f32 %v1001_v62, %v749_v50  ;;  %7316 = vmatmul.msk.bf16.gmra.mxu0 %vm517_vm2, %v1899_v23  ;;  %v1846_v62 = vld [vmem:[%s8645_s24 + $0x71] sm:$0xff] }
 0x235   : > { %v1420_v47 = vadd.f32 %v1345_v11, %v1002_v44  ;;  %7345 = vmatmul.msk.bf16.gmra.mxu1 %vm517_vm2, %v2301_v26  ;;  %7377 = vmatmul.msk.bf16.gmra.mxu2 %vm517_vm2, %v2706_v46  ;;  %v2652_v11 = vld [vmem:[%s8645_s24 + $0x70] sm:$0xff]  ;;  %v1900_v26 = vpack.c.bf16 %v1847_v41, %v1846_v62 }
 0x236   : > { %7408 = vmatmul.msk.bf16.gmra.mxu3 %vm517_vm2, %v1899_v23  ;;  %v2302_v23 = vpack.c.bf16 %v2247_v39, %v2246_v1  ;;  %v1849_v1 = vld [vmem:[%s8645_s24 + $0x89] sm:$0xff] }
 0x237   : > { %v9124_v19 = vadd.f32 %v1749_v8, %v1420_v47  ;;  %v2707_v47 = vpack.c.bf16 %v2653_v0, %v2652_v11  ;;  %v2248_v39 = vld [vmem:[%s8645_s24 + $0x62] sm:$0xff]  ;;  %v2249_v11 = vld [vmem:[%s8645_s24 + $0x6a] sm:$0xff] }
 0x238   : > { %v1350_v27 = vpop.f32.mrf.mxu2  ;;  %v756_v14 = vpop.f32.mrf.mxu0  ;;  %v2655_v0 = vld [vmem:[%s8645_s24 + $0x88] sm:$0xff] }
 0x239   : > { %11219 = vst [vmem:[#allocation16_spill] sm:$0xff] %v9124_v19  ;;  %v1754_v16 = vpop.f32.mrf.mxu3 }
 0x23a   : > { %v1003_v31 = vpop.f32.mrf.mxu1 }
 0x23b   : > { %v1004_v25 = vadd.f32 %v1003_v31, %v751_v48 }
 0x23d   : > { %v1421_v50 = vadd.f32 %v1347_v21, %v1004_v25 }
 0x23f   : > { %v9132_v44 = vadd.f32 %v1751_v56, %v1421_v50 }
 0x240   : > { %v1352_v46 = vpop.f32.mrf.mxu2  ;;  %v759_v53 = vpop.f32.mrf.mxu0 }
 0x241   : > { %11220 = vst [vmem:[#allocation17_spill] sm:$0xff] %v9132_v44  ;;  %v1756_v8 = vpop.f32.mrf.mxu3 }
 0x242   : > { %v1006_v19 = vpop.f32.mrf.mxu1 }
 0x243   : > { %v1007_v48 = vadd.f32 %v1006_v19, %v754_v5  ;;  %7317 = vmatmul.msk.bf16.gmra.mxu0 %vm517_vm2, %v1900_v26  ;;  %v1848_v19 = vld [vmem:[%s8645_s24 + $0x81] sm:$0xff] }
 0x245   : > { %v1422_v21 = vadd.f32 %v1350_v27, %v1007_v48  ;;  %7346 = vmatmul.msk.bf16.gmra.mxu1 %vm517_vm2, %v2302_v23  ;;  %7378 = vmatmul.msk.bf16.gmra.mxu2 %vm517_vm2, %v2707_v47  ;;  %v2654_v27 = vld [vmem:[%s8645_s24 + $0x80] sm:$0xff]  ;;  %v1901_v23 = vpack.c.bf16 %v1849_v1, %v1848_v19 }
 0x246   : > { %7409 = vmatmul.msk.bf16.gmra.mxu3 %vm517_vm2, %v1900_v26  ;;  %v2303_v26 = vpack.c.bf16 %v2249_v11, %v2248_v39  ;;  %v1851_v39 = vld [vmem:[%s8645_s24 + $0x99] sm:$0xff] }
 0x247   : > { %v9138_v56 = vadd.f32 %v1754_v16, %v1422_v21  ;;  %v2708_v21 = vpack.c.bf16 %v2655_v0, %v2654_v27  ;;  %v2250_v11 = vld [vmem:[%s8645_s24 + $0x72] sm:$0xff]  ;;  %v2251_v27 = vld [vmem:[%s8645_s24 + $0x7a] sm:$0xff] }
 0x248   : > { %v1355_v31 = vpop.f32.mrf.mxu2  ;;  %v761_v25 = vpop.f32.mrf.mxu0  ;;  %v2657_v0 = vld [vmem:[%s8645_s24 + $0x98] sm:$0xff] }
 0x249   : > { %11221 = vst [vmem:[#allocation18_spill] sm:$0xff] %v9138_v56  ;;  %v1759_v50 = vpop.f32.mrf.mxu3 }
 0x24a   : > { %v1008_v62 = vpop.f32.mrf.mxu1 }
 0x24b   : > { %v1009_v41 = vadd.f32 %v1008_v62, %v756_v14 }
 0x24d   : > { %v1423_v5 = vadd.f32 %v1352_v46, %v1009_v41 }
 0x24f   : > { %v9146_v48 = vadd.f32 %v1756_v8, %v1423_v5 }
 0x250   : > { %v1357_v47 = vpop.f32.mrf.mxu2  ;;  %v764_v44 = vpop.f32.mrf.mxu0 }
 0x251   : > { %11222 = vst [vmem:[#allocation19_spill] sm:$0xff] %v9146_v48  ;;  %v1761_v16 = vpop.f32.mrf.mxu3 }
 0x252   : > { %v1011_v56 = vpop.f32.mrf.mxu1 }
 0x253   : > { %v1012_v14 = vadd.f32 %v1011_v56, %v759_v53  ;;  %7318 = vmatmul.msk.bf16.gmra.mxu0 %vm517_vm2, %v1901_v23  ;;  %v1850_v56 = vld [vmem:[%s8645_s24 + $0x91] sm:$0xff] }
 0x255   : > { %v1424_v46 = vadd.f32 %v1355_v31, %v1012_v14  ;;  %7347 = vmatmul.msk.bf16.gmra.mxu1 %vm517_vm2, %v2303_v26  ;;  %7379 = vmatmul.msk.bf16.gmra.mxu2 %vm517_vm2, %v2708_v21  ;;  %v2656_v31 = vld [vmem:[%s8645_s24 + $0x90] sm:$0xff]  ;;  %v1902_v26 = vpack.c.bf16 %v1851_v39, %v1850_v56  ;;  %v1852_v56 = vld [vmem:[%s8645_s24 + $0xa1] sm:$0xff] }
 0x256   : > { %7410 = vmatmul.msk.bf16.gmra.mxu3 %vm517_vm2, %v1901_v23  ;;  %v2304_v23 = vpack.c.bf16 %v2251_v27, %v2250_v11  ;;  %v2252_v39 = vld [vmem:[%s8645_s24 + $0x82] sm:$0xff]  ;;  %v2253_v11 = vld [vmem:[%s8645_s24 + $0x8a] sm:$0xff] }
 0x257   : > { %v9152_v8 = vadd.f32 %v1759_v50, %v1424_v46  ;;  %v2709_v46 = vpack.c.bf16 %v2657_v0, %v2656_v31  ;;  %v2658_v27 = vld [vmem:[%s8645_s24 + $0xa0] sm:$0xff]  ;;  %v2659_v31 = vld [vmem:[%s8645_s24 + $0xa8] sm:$0xff] }
 0x258   : > { %v1360_v62 = vpop.f32.mrf.mxu2  ;;  %v766_v41 = vpop.f32.mrf.mxu0 }
 0x259   : > { %11223 = vst [vmem:[#allocation20_spill] sm:$0xff] %v9152_v8  ;;  %v1764_v5 = vpop.f32.mrf.mxu3 }
 0x25a   : > { %v1013_v19 = vpop.f32.mrf.mxu1 }
 0x25b   : > { %v1014_v1 = vadd.f32 %v1013_v19, %v761_v25 }
 0x25d   : > { %v1425_v53 = vadd.f32 %v1357_v47, %v1014_v1 }
 0x25f   : > { %v9160_v14 = vadd.f32 %v1761_v16, %v1425_v53 }
 0x260   : > { %v1362_v21 = vpop.f32.mrf.mxu2  ;;  %v2028_v48 = vpop.f32.mrf.mxu0 }
 0x261   : > { %v1766_v50 = vpop.f32.mrf.mxu3  ;;  %v2178_v59 = vadd.f32 %v2028_v48, %v8755_v58 }
 0x262   : > { %v1016_v8 = vpop.f32.mrf.mxu1 }
 0x263   : > { %v1017_v25 = vadd.f32 %v1016_v8, %v764_v44  ;;  %7319 = vmatmul.msk.bf16.gmra.mxu0 %vm517_vm2, %v1902_v26 }
 0x265   : > { %v1426_v47 = vadd.f32 %v1360_v62, %v1017_v25  ;;  %7348 = vmatmul.msk.bf16.gmra.mxu1 %vm517_vm2, %v2304_v23  ;;  %7380 = vmatmul.msk.bf16.gmra.mxu2 %vm517_vm2, %v2709_v46  ;;  %v1853_v62 = vld [vmem:[%s8645_s24 + $0xa9] sm:$0xff]  ;;  %v2305_v46 = vpack.c.bf16 %v2253_v11, %v2252_v39  ;;  %v2255_v39 = vld [vmem:[%s8645_s24 + $0x9a] sm:$0xff] }
 0x266   : > { %7411 = vmatmul.msk.bf16.gmra.mxu3 %vm517_vm2, %v1902_v26  ;;  %v1903_v23 = vpack.c.bf16 %v1853_v62, %v1852_v56  ;;  %v1855_v56 = vld [vmem:[%s8645_s24 + $0xb9] sm:$0xff]  ;;  %v2660_v11 = vld [vmem:[%s8645_s24 + $0xb0] sm:$0xff] }
 0x267   : > { %v9167_v16 = vadd.f32 %v1764_v5, %v1426_v47  ;;  %v2710_v47 = vpack.c.bf16 %v2659_v31, %v2658_v27  ;;  %v2254_v62 = vld [vmem:[%s8645_s24 + $0x92] sm:$0xff] }
 0x268   : > { %v1365_v19 = vpop.f32.mrf.mxu2  ;;  %v2030_v1 = vpop.f32.mrf.mxu0  ;;  %v2661_v27 = vld [vmem:[%s8645_s24 + $0xb8] sm:$0xff] }
 0x269   : > { %11224 = vst [vmem:[#allocation21_spill] sm:$0xff] %v9167_v16  ;;  %v1769_v58 = vpop.f32.mrf.mxu3  ;;  %v2179_v44 = vadd.f32 %v2030_v1, %v8761_v6 }
 0x26a   : > { %v1018_v48 = vpop.f32.mrf.mxu1 }
 0x26b   : > { %v1019_v8 = vadd.f32 %v1018_v48, %v766_v41 }
 0x26d   : > { %v1427_v53 = vadd.f32 %v1362_v21, %v1019_v8 }
 0x26f   : > { %v9176_v0 = vadd.f32 %v1766_v50, %v1427_v53 }
 0x270   : > { %v1367_v26 = vpop.f32.mrf.mxu2  ;;  %v2033_v5 = vpop.f32.mrf.mxu0 }
 0x271   : > { %v1771_v25 = vpop.f32.mrf.mxu3  ;;  %v2180_v6 = vadd.f32 %v2033_v5, %v8769_v18 }
 0x272   : > { %v1021_v16 = vpop.f32.mrf.mxu1 }
 0x273   : > { %v1022_v41 = vadd.f32 %v1021_v16, %v8737_v37  ;;  %7320 = vmatmul.msk.bf16.gmra.mxu0 %vm517_vm2, %v1903_v23 }
 0x275   : > { %v1428_v21 = vadd.f32 %v1365_v19, %v1022_v41  ;;  %7349 = vmatmul.msk.bf16.gmra.mxu1 %vm517_vm2, %v2305_v46  ;;  %7381 = vmatmul.msk.bf16.gmra.mxu2 %vm517_vm2, %v2710_v47  ;;  %v1854_v19 = vld [vmem:[%s8645_s24 + $0xb1] sm:$0xff]  ;;  %v2306_v46 = vpack.c.bf16 %v2255_v39, %v2254_v62  ;;  %v2711_v41 = vpack.c.bf16 %v2661_v27, %v2660_v11  ;;  %v2256_v62 = vld [vmem:[%s8645_s24 + $0xa2] sm:$0xff] }
 0x276   : > { %7412 = vmatmul.msk.bf16.gmra.mxu3 %vm517_vm2, %v1903_v23  ;;  %v1904_v23 = vpack.c.bf16 %v1855_v56, %v1854_v19  ;;  %v1856_v56 = vld [vmem:[%s8645_s24 + $0xc1] sm:$0xff]  ;;  %v2257_v39 = vld [vmem:[%s8645_s24 + $0xaa] sm:$0xff] }
 0x277   : > { %v9184_v50 = vadd.f32 %v1769_v58, %v1428_v21  ;;  %v2662_v11 = vld [vmem:[%s8645_s24 + $0xc0] sm:$0xff]  ;;  %v2663_v27 = vld [vmem:[%s8645_s24 + $0xc8] sm:$0xff] }
 0x278   : > { %v2836_v1 = vpop.f32.mrf.mxu2  ;;  %v2035_v18 = vpop.f32.mrf.mxu0 }
 0x279   : > { %v3240_v48 = vpop.f32.mrf.mxu3  ;;  %v2181_v37 = vadd.f32 %v2035_v18, %v8775_v29 }
 0x27a   : > { %v1023_v8 = vpop.f32.mrf.mxu1 }
 0x27b   : > { %v1024_v16 = vadd.f32 %v1023_v8, %v8743_v42 }
 0x27d   : > { %v1429_v53 = vadd.f32 %v1367_v26, %v1024_v16 }
 0x27f   : > { %v9194_v31 = vadd.f32 %v1771_v25, %v1429_v53 }
 0x280   : > { %v2838_v58 = vpop.f32.mrf.mxu2  ;;  %v2038_v5 = vpop.f32.mrf.mxu0 }
 0x281   : > { %v3242_v47 = vpop.f32.mrf.mxu3  ;;  %v2182_v21 = vadd.f32 %v2038_v5, %v8783_v43 }
 0x282   : > { %v2432_v29 = vpop.f32.mrf.mxu1 }
 0x283   : > { %v2582_v42 = vadd.f32 %v2432_v29, %v2178_v59  ;;  %7321 = vmatmul.msk.bf16.gmra.mxu0 %vm517_vm2, %v1904_v23 }
 0x285   : > { %v2986_v26 = vadd.f32 %v2836_v1, %v2582_v42  ;;  %7350 = vmatmul.msk.bf16.gmra.mxu1 %vm517_vm2, %v2306_v46  ;;  %7382 = vmatmul.msk.bf16.gmra.mxu2 %vm517_vm2, %v2711_v41  ;;  %v1857_v1 = vld [vmem:[%s8645_s24 + $0xc9] sm:$0xff]  ;;  %v2307_v41 = vpack.c.bf16 %v2257_v39, %v2256_v62  ;;  %v2712_v42 = vpack.c.bf16 %v2663_v27, %v2662_v11  ;;  %v2258_v62 = vld [vmem:[%s8645_s24 + $0xb2] sm:$0xff]  ;;  %v2259_v39 = vld [vmem:[%s8645_s24 + $0xba] sm:$0xff] }
 0x286   : > { %7413 = vmatmul.msk.bf16.gmra.mxu3 %vm517_vm2, %v1904_v23  ;;  %v1905_v46 = vpack.c.bf16 %v1857_v1, %v1856_v56  ;;  %v1858_v1 = vld [vmem:[%s8645_s24 + $0xd1] sm:$0xff] }
 0x287   : > { %v9201_v25 = vadd.f32 %v3240_v48, %v2986_v26  ;;  %v2664_v11 = vld [vmem:[%s8645_s24 + $0xd0] sm:$0xff]  ;;  %v2665_v27 = vld [vmem:[%s8645_s24 + $0xd8] sm:$0xff] }
 0x288   : > { %v2841_v43 = vpop.f32.mrf.mxu2  ;;  %v2040_v18 = vpop.f32.mrf.mxu0 }
 0x289   : > { %v3245_v8 = vpop.f32.mrf.mxu3  ;;  %v2183_v59 = vadd.f32 %v2040_v18, %v8789_v54 }
 0x28a   : > { %v2434_v16 = vpop.f32.mrf.mxu1 }
 0x28b   : > { %v2583_v53 = vadd.f32 %v2434_v16, %v2179_v44 }
 0x28d   : > { %v2987_v19 = vadd.f32 %v2838_v58, %v2583_v53 }
 0x28f   : > { %v9210_v5 = vadd.f32 %v3242_v47, %v2987_v19 }
 0x290   : > { %v2843_v23 = vpop.f32.mrf.mxu2  ;;  %v2043_v48 = vpop.f32.mrf.mxu0 }
 0x291   : > { %v3247_v29 = vpop.f32.mrf.mxu3  ;;  %v2184_v26 = vadd.f32 %v2043_v48, %v8797_v3 }
 0x292   : > { %v2437_v54 = vpop.f32.mrf.mxu1 }
 0x293   : > { %v2584_v44 = vadd.f32 %v2437_v54, %v2180_v6  ;;  %7322 = vmatmul.msk.bf16.gmra.mxu0 %vm517_vm2, %v1905_v46 }
 0x295   : > { %v2988_v58 = vadd.f32 %v2841_v43, %v2584_v44  ;;  %7351 = vmatmul.msk.bf16.gmra.mxu1 %vm517_vm2, %v2307_v41  ;;  %7383 = vmatmul.msk.bf16.gmra.mxu2 %vm517_vm2, %v2712_v42  ;;  %v1859_v43 = vld [vmem:[%s8645_s24 + $0xd9] sm:$0xff]  ;;  %v2308_v42 = vpack.c.bf16 %v2259_v39, %v2258_v62  ;;  %v2713_v44 = vpack.c.bf16 %v2665_v27, %v2664_v11  ;;  %v2260_v62 = vld [vmem:[%s8645_s24 + $0xc2] sm:$0xff]  ;;  %v2261_v39 = vld [vmem:[%s8645_s24 + $0xca] sm:$0xff] }
 0x296   : > { %7414 = vmatmul.msk.bf16.gmra.mxu3 %vm517_vm2, %v1905_v46  ;;  %v1906_v41 = vpack.c.bf16 %v1859_v43, %v1858_v1  ;;  %v1860_v43 = vld [vmem:[%s8645_s24 + $0xe1] sm:$0xff] }
 0x297   : > { %v9217_v47 = vadd.f32 %v3245_v8, %v2988_v58  ;;  %v2666_v11 = vld [vmem:[%s8645_s24 + $0xe0] sm:$0xff]  ;;  %v2667_v27 = vld [vmem:[%s8645_s24 + $0xe8] sm:$0xff] }
 0x298   : > { %v2846_v3 = vpop.f32.mrf.mxu2  ;;  %v2045_v18 = vpop.f32.mrf.mxu0 }
 0x299   : > { %v3250_v16 = vpop.f32.mrf.mxu3  ;;  %v2185_v6 = vadd.f32 %v2045_v18, %v8803_v17 }
 0x29a   : > { %v2439_v53 = vpop.f32.mrf.mxu1 }
 0x29b   : > { %v2585_v19 = vadd.f32 %v2439_v53, %v2181_v37 }
 0x29d   : > { %v2989_v56 = vadd.f32 %v2843_v23, %v2585_v19 }
 0x29f   : > { %v9226_v48 = vadd.f32 %v3247_v29, %v2989_v56 }
 0x2a0   : > { %v2848_v46 = vpop.f32.mrf.mxu2  ;;  %v2048_v8 = vpop.f32.mrf.mxu0 }
 0x2a1   : > { %v3252_v54 = vpop.f32.mrf.mxu3  ;;  %v2186_v58 = vadd.f32 %v2048_v8, %v8811_v30 }
 0x2a2   : > { %v2442_v17 = vpop.f32.mrf.mxu1 }
 0x2a3   : > { %v2586_v37 = vadd.f32 %v2442_v17, %v2182_v21  ;;  %7323 = vmatmul.msk.bf16.gmra.mxu0 %vm517_vm2, %v1906_v41 }
 0x2a5   : > { %v2990_v23 = vadd.f32 %v2846_v3, %v2586_v37  ;;  %7352 = vmatmul.msk.bf16.gmra.mxu1 %vm517_vm2, %v2308_v42  ;;  %7384 = vmatmul.msk.bf16.gmra.mxu2 %vm517_vm2, %v2713_v44  ;;  %v1861_v3 = vld [vmem:[%s8645_s24 + $0xe9] sm:$0xff]  ;;  %v2309_v44 = vpack.c.bf16 %v2261_v39, %v2260_v62  ;;  %v2714_v37 = vpack.c.bf16 %v2667_v27, %v2666_v11  ;;  %v2262_v62 = vld [vmem:[%s8645_s24 + $0xd2] sm:$0xff]  ;;  %v2263_v39 = vld [vmem:[%s8645_s24 + $0xda] sm:$0xff] }
 0x2a6   : > { %7415 = vmatmul.msk.bf16.gmra.mxu3 %vm517_vm2, %v1906_v41  ;;  %v1907_v42 = vpack.c.bf16 %v1861_v3, %v1860_v43  ;;  %v1862_v3 = vld [vmem:[%s8645_s24 + $0xf1] sm:$0xff] }
 0x2a7   : > { %v9233_v29 = vadd.f32 %v3250_v16, %v2990_v23  ;;  %v2668_v11 = vld [vmem:[%s8645_s24 + $0xf0] sm:$0xff]  ;;  %v2669_v27 = vld [vmem:[%s8645_s24 + $0xf8] sm:$0xff] }
 0x2a8   : > { %v2851_v30 = vpop.f32.mrf.mxu2  ;;  %v2050_v18 = vpop.f32.mrf.mxu0 }
 0x2a9   : > { %v3255_v53 = vpop.f32.mrf.mxu3  ;;  %v2187_v21 = vadd.f32 %v2050_v18, %v8817_v45 }
 0x2aa   : > { %v2444_v19 = vpop.f32.mrf.mxu1 }
 0x2ab   : > { %v2587_v56 = vadd.f32 %v2444_v19, %v2183_v59 }
 0x2ad   : > { %v2991_v1 = vadd.f32 %v2848_v46, %v2587_v56 }
 0x2af   : > { %v9242_v8 = vadd.f32 %v3252_v54, %v2991_v1 }
 0x2b0   : > { %v2853_v41 = vpop.f32.mrf.mxu2  ;;  %v2053_v16 = vpop.f32.mrf.mxu0 }
 0x2b1   : > { %v3257_v17 = vpop.f32.mrf.mxu3  ;;  %v2188_v23 = vadd.f32 %v2053_v16, %v8825_v57 }
 0x2b2   : > { %v2447_v45 = vpop.f32.mrf.mxu1 }
 0x2b3   : > { %v2588_v59 = vadd.f32 %v2447_v45, %v2184_v26  ;;  %7324 = vmatmul.msk.bf16.gmra.mxu0 %vm517_vm2, %v1907_v42 }
 0x2b5   : > { %v2992_v46 = vadd.f32 %v2851_v30, %v2588_v59  ;;  %7353 = vmatmul.msk.bf16.gmra.mxu1 %vm517_vm2, %v2309_v44  ;;  %7385 = vmatmul.msk.bf16.gmra.mxu2 %vm517_vm2, %v2714_v37  ;;  %v1863_v30 = vld [vmem:[%s8645_s24 + $0xf9] sm:$0xff]  ;;  %v2310_v37 = vpack.c.bf16 %v2263_v39, %v2262_v62  ;;  %v2715_v59 = vpack.c.bf16 %v2669_v27, %v2668_v11  ;;  %v2264_v62 = vld [vmem:[%s8645_s24 + $0xe2] sm:$0xff]  ;;  %v2265_v39 = vld [vmem:[%s8645_s24 + $0xea] sm:$0xff] }
 0x2b6   : > { %7416 = vmatmul.msk.bf16.gmra.mxu3 %vm517_vm2, %v1907_v42  ;;  %v1908_v44 = vpack.c.bf16 %v1863_v30, %v1862_v3  ;;  %v1864_v30 = vld [vmem:[%s8645_s24 + $0x101] sm:$0xff] }
 0x2b7   : > { %v9249_v54 = vadd.f32 %v3255_v53, %v2992_v46  ;;  %v2670_v11 = vld [vmem:[%s8645_s24 + $0x100] sm:$0xff]  ;;  %v2671_v27 = vld [vmem:[%s8645_s24 + $0x108] sm:$0xff] }
 0x2b8   : > { %v2856_v57 = vpop.f32.mrf.mxu2  ;;  %v2055_v18 = vpop.f32.mrf.mxu0 }
 0x2b9   : > { %v3260_v19 = vpop.f32.mrf.mxu3  ;;  %v2189_v26 = vadd.f32 %v2055_v18, %v8831_v9 }
 0x2ba   : > { %v2449_v56 = vpop.f32.mrf.mxu1 }
 0x2bb   : > { %v2589_v1 = vadd.f32 %v2449_v56, %v2185_v6 }
 0x2bd   : > { %v2993_v43 = vadd.f32 %v2853_v41, %v2589_v1 }
 0x2bf   : > { %v9258_v16 = vadd.f32 %v3257_v17, %v2993_v43 }
 0x2c0   : > { %v2858_v42 = vpop.f32.mrf.mxu2  ;;  %v2058_v53 = vpop.f32.mrf.mxu0 }
 0x2c1   : > { %v3262_v45 = vpop.f32.mrf.mxu3  ;;  %v2190_v46 = vadd.f32 %v2058_v53, %v8839_v22 }
 0x2c2   : > { %v2452_v9 = vpop.f32.mrf.mxu1 }
 0x2c3   : > { %v2590_v6 = vadd.f32 %v2452_v9, %v2186_v58  ;;  %7325 = vmatmul.msk.bf16.gmra.mxu0 %vm517_vm2, %v1908_v44 }
 0x2c5   : > { %v2994_v41 = vadd.f32 %v2856_v57, %v2590_v6  ;;  %7354 = vmatmul.msk.bf16.gmra.mxu1 %vm517_vm2, %v2310_v37  ;;  %7386 = vmatmul.msk.bf16.gmra.mxu2 %vm517_vm2, %v2715_v59  ;;  %v1865_v57 = vld [vmem:[%s8645_s24 + $0x109] sm:$0xff]  ;;  %v2311_v59 = vpack.c.bf16 %v2265_v39, %v2264_v62  ;;  %v2716_v6 = vpack.c.bf16 %v2671_v27, %v2670_v11  ;;  %v2266_v62 = vld [vmem:[%s8645_s24 + $0xf2] sm:$0xff]  ;;  %v2267_v39 = vld [vmem:[%s8645_s24 + $0xfa] sm:$0xff] }
 0x2c6   : > { %7417 = vmatmul.msk.bf16.gmra.mxu3 %vm517_vm2, %v1908_v44  ;;  %v1909_v37 = vpack.c.bf16 %v1865_v57, %v1864_v30  ;;  %v1866_v57 = vld [vmem:[%s8645_s24 + $0x111] sm:$0xff] }
 0x2c7   : > { %v9265_v17 = vadd.f32 %v3260_v19, %v2994_v41  ;;  %v2672_v11 = vld [vmem:[%s8645_s24 + $0x110] sm:$0xff]  ;;  %v2673_v27 = vld [vmem:[%s8645_s24 + $0x118] sm:$0xff] }
 0x2c8   : > { %v2861_v22 = vpop.f32.mrf.mxu2  ;;  %v2060_v18 = vpop.f32.mrf.mxu0 }
 0x2c9   : > { %v3265_v56 = vpop.f32.mrf.mxu3  ;;  %v2191_v58 = vadd.f32 %v2060_v18, %v8845_v36 }
 0x2ca   : > { %v2454_v1 = vpop.f32.mrf.mxu1 }
 0x2cb   : > { %v2591_v43 = vadd.f32 %v2454_v1, %v2187_v21 }
 0x2cd   : > { %v2995_v3 = vadd.f32 %v2858_v42, %v2591_v43 }
 0x2cf   : > { %v9274_v53 = vadd.f32 %v3262_v45, %v2995_v3 }
 0x2d0   : > { %v2863_v44 = vpop.f32.mrf.mxu2  ;;  %v2063_v19 = vpop.f32.mrf.mxu0 }
 0x2d1   : > { %v3267_v9 = vpop.f32.mrf.mxu3  ;;  %v2192_v41 = vadd.f32 %v2063_v19, %v8853_v51 }
 0x2d2   : > { %v2457_v36 = vpop.f32.mrf.mxu1 }
 0x2d3   : > { %v2592_v21 = vadd.f32 %v2457_v36, %v2188_v23  ;;  %7326 = vmatmul.msk.bf16.gmra.mxu0 %vm517_vm2, %v1909_v37 }
 0x2d5   : > { %v2996_v42 = vadd.f32 %v2861_v22, %v2592_v21  ;;  %7355 = vmatmul.msk.bf16.gmra.mxu1 %vm517_vm2, %v2311_v59  ;;  %7387 = vmatmul.msk.bf16.gmra.mxu2 %vm517_vm2, %v2716_v6  ;;  %v1867_v22 = vld [vmem:[%s8645_s24 + $0x119] sm:$0xff]  ;;  %v2312_v6 = vpack.c.bf16 %v2267_v39, %v2266_v62  ;;  %v2717_v21 = vpack.c.bf16 %v2673_v27, %v2672_v11  ;;  %v2268_v62 = vld [vmem:[%s8645_s24 + $0x102] sm:$0xff]  ;;  %v2269_v39 = vld [vmem:[%s8645_s24 + $0x10a] sm:$0xff] }
 0x2d6   : > { %7418 = vmatmul.msk.bf16.gmra.mxu3 %vm517_vm2, %v1909_v37  ;;  %v1910_v59 = vpack.c.bf16 %v1867_v22, %v1866_v57  ;;  %v1868_v22 = vld [vmem:[%s8645_s24 + $0x121] sm:$0xff] }
 0x2d7   : > { %v9281_v45 = vadd.f32 %v3265_v56, %v2996_v42  ;;  %v2674_v11 = vld [vmem:[%s8645_s24 + $0x120] sm:$0xff]  ;;  %v2675_v27 = vld [vmem:[%s8645_s24 + $0x128] sm:$0xff] }
 0x2d8   : > { %v2866_v51 = vpop.f32.mrf.mxu2  ;;  %v2065_v18 = vpop.f32.mrf.mxu0 }
 0x2d9   : > { %v3270_v1 = vpop.f32.mrf.mxu3  ;;  %v2193_v23 = vadd.f32 %v2065_v18, %v8859_v4 }
 0x2da   : > { %v2459_v43 = vpop.f32.mrf.mxu1 }
 0x2db   : > { %v2593_v3 = vadd.f32 %v2459_v43, %v2189_v26 }
 0x2dd   : > { %v2997_v30 = vadd.f32 %v2863_v44, %v2593_v3 }
 0x2df   : > { %v9290_v19 = vadd.f32 %v3267_v9, %v2997_v30 }
 0x2e0   : > { %v2868_v37 = vpop.f32.mrf.mxu2  ;;  %v2068_v56 = vpop.f32.mrf.mxu0 }
 0x2e1   : > { %v3272_v36 = vpop.f32.mrf.mxu3  ;;  %v2194_v42 = vadd.f32 %v2068_v56, %v8867_v20 }
 0x2e2   : > { %v2462_v4 = vpop.f32.mrf.mxu1 }
 0x2e3   : > { %v2594_v26 = vadd.f32 %v2462_v4, %v2190_v46  ;;  %7327 = vmatmul.msk.bf16.gmra.mxu0 %vm517_vm2, %v1910_v59 }
 0x2e5   : > { %v2998_v44 = vadd.f32 %v2866_v51, %v2594_v26  ;;  %7356 = vmatmul.msk.bf16.gmra.mxu1 %vm517_vm2, %v2312_v6  ;;  %7388 = vmatmul.msk.bf16.gmra.mxu2 %vm517_vm2, %v2717_v21  ;;  %v1869_v51 = vld [vmem:[%s8645_s24 + $0x129] sm:$0xff]  ;;  %v2313_v21 = vpack.c.bf16 %v2269_v39, %v2268_v62  ;;  %v2718_v26 = vpack.c.bf16 %v2675_v27, %v2674_v11  ;;  %v2270_v62 = vld [vmem:[%s8645_s24 + $0x112] sm:$0xff]  ;;  %v2271_v39 = vld [vmem:[%s8645_s24 + $0x11a] sm:$0xff] }
 0x2e6   : > { %7419 = vmatmul.msk.bf16.gmra.mxu3 %vm517_vm2, %v1910_v59  ;;  %v1911_v6 = vpack.c.bf16 %v1869_v51, %v1868_v22  ;;  %v1870_v51 = vld [vmem:[%s8645_s24 + $0x131] sm:$0xff] }
 0x2e7   : > { %v9297_v9 = vadd.f32 %v3270_v1, %v2998_v44  ;;  %v2676_v11 = vld [vmem:[%s8645_s24 + $0x130] sm:$0xff]  ;;  %v2677_v27 = vld [vmem:[%s8645_s24 + $0x138] sm:$0xff] }
 0x2e8   : > { %v2871_v20 = vpop.f32.mrf.mxu2  ;;  %v2070_v18 = vpop.f32.mrf.mxu0 }
 0x2e9   : > { %v3275_v43 = vpop.f32.mrf.mxu3  ;;  %v2195_v46 = vadd.f32 %v2070_v18, %v8873_v35 }
 0x2ea   : > { %v2464_v3 = vpop.f32.mrf.mxu1 }
 0x2eb   : > { %v2595_v30 = vadd.f32 %v2464_v3, %v2191_v58 }
 0x2ed   : > { %v2999_v57 = vadd.f32 %v2868_v37, %v2595_v30 }
 0x2ef   : > { %v9306_v56 = vadd.f32 %v3272_v36, %v2999_v57 }
 0x2f0   : > { %v2873_v59 = vpop.f32.mrf.mxu2  ;;  %v2073_v1 = vpop.f32.mrf.mxu0 }
 0x2f1   : > { %v3277_v4 = vpop.f32.mrf.mxu3  ;;  %v2196_v44 = vadd.f32 %v2073_v1, %v8881_v52 }
 0x2f2   : > { %v2467_v35 = vpop.f32.mrf.mxu1 }
 0x2f3   : > { %v2596_v58 = vadd.f32 %v2467_v35, %v2192_v41  ;;  %7328 = vmatmul.msk.bf16.gmra.mxu0 %vm517_vm2, %v1911_v6 }
 0x2f5   : > { %v3000_v37 = vadd.f32 %v2871_v20, %v2596_v58  ;;  %7357 = vmatmul.msk.bf16.gmra.mxu1 %vm517_vm2, %v2313_v21  ;;  %7389 = vmatmul.msk.bf16.gmra.mxu2 %vm517_vm2, %v2718_v26  ;;  %v1871_v20 = vld [vmem:[%s8645_s24 + $0x139] sm:$0xff]  ;;  %v2314_v26 = vpack.c.bf16 %v2271_v39, %v2270_v62  ;;  %v2719_v58 = vpack.c.bf16 %v2677_v27, %v2676_v11  ;;  %v2272_v62 = vld [vmem:[%s8645_s24 + $0x122] sm:$0xff]  ;;  %v2273_v39 = vld [vmem:[%s8645_s24 + $0x12a] sm:$0xff] }
 0x2f6   : > { %7420 = vmatmul.msk.bf16.gmra.mxu3 %vm517_vm2, %v1911_v6  ;;  %v1912_v21 = vpack.c.bf16 %v1871_v20, %v1870_v51  ;;  %v1872_v20 = vld [vmem:[%s8645_s24 + $0x141] sm:$0xff] }
 0x2f7   : > { %v9313_v36 = vadd.f32 %v3275_v43, %v3000_v37  ;;  %v2678_v11 = vld [vmem:[%s8645_s24 + $0x140] sm:$0xff]  ;;  %v2679_v27 = vld [vmem:[%s8645_s24 + $0x148] sm:$0xff] }
 0x2f8   : > { %v2876_v52 = vpop.f32.mrf.mxu2  ;;  %v2075_v18 = vpop.f32.mrf.mxu0 }
 0x2f9   : > { %v3280_v3 = vpop.f32.mrf.mxu3  ;;  %v2197_v41 = vadd.f32 %v2075_v18, %v8887_v7 }
 0x2fa   : > { %v2469_v30 = vpop.f32.mrf.mxu1 }
 0x2fb   : > { %v2597_v57 = vadd.f32 %v2469_v30, %v2193_v23 }
 0x2fd   : > { %v3001_v22 = vadd.f32 %v2873_v59, %v2597_v57 }
 0x2ff   : > { %v9322_v1 = vadd.f32 %v3277_v4, %v3001_v22 }
 0x300   : > { %v2878_v6 = vpop.f32.mrf.mxu2  ;;  %v2078_v43 = vpop.f32.mrf.mxu0 }
 0x301   : > { %v3282_v35 = vpop.f32.mrf.mxu3  ;;  %v2198_v37 = vadd.f32 %v2078_v43, %v8895_v24 }
 0x302   : > { %v2472_v7 = vpop.f32.mrf.mxu1 }
 0x303   : > { %v2598_v23 = vadd.f32 %v2472_v7, %v2194_v42  ;;  %7329 = vmatmul.msk.bf16.gmra.mxu0 %vm517_vm2, %v1912_v21 }
 0x305   : > { %v3002_v59 = vadd.f32 %v2876_v52, %v2598_v23  ;;  %7358 = vmatmul.msk.bf16.gmra.mxu1 %vm517_vm2, %v2314_v26  ;;  %7390 = vmatmul.msk.bf16.gmra.mxu2 %vm517_vm2, %v2719_v58  ;;  %v1873_v52 = vld [vmem:[%s8645_s24 + $0x149] sm:$0xff]  ;;  %v2315_v58 = vpack.c.bf16 %v2273_v39, %v2272_v62  ;;  %v2720_v23 = vpack.c.bf16 %v2679_v27, %v2678_v11  ;;  %v2274_v62 = vld [vmem:[%s8645_s24 + $0x132] sm:$0xff]  ;;  %v2275_v39 = vld [vmem:[%s8645_s24 + $0x13a] sm:$0xff] }
 0x306   : > { %7421 = vmatmul.msk.bf16.gmra.mxu3 %vm517_vm2, %v1912_v21  ;;  %v1913_v26 = vpack.c.bf16 %v1873_v52, %v1872_v20  ;;  %v1874_v52 = vld [vmem:[%s8645_s24 + $0x151] sm:$0xff] }
 0x307   : > { %v9329_v4 = vadd.f32 %v3280_v3, %v3002_v59  ;;  %v2680_v11 = vld [vmem:[%s8645_s24 + $0x150] sm:$0xff]  ;;  %v2681_v27 = vld [vmem:[%s8645_s24 + $0x158] sm:$0xff] }
 0x308   : > { %v2881_v24 = vpop.f32.mrf.mxu2  ;;  %v2080_v18 = vpop.f32.mrf.mxu0 }
 0x309   : > { %v3285_v30 = vpop.f32.mrf.mxu3  ;;  %v2199_v42 = vadd.f32 %v2080_v18, %v8901_v40 }
 0x30a   : > { %v2474_v57 = vpop.f32.mrf.mxu1 }
 0x30b   : > { %v2599_v22 = vadd.f32 %v2474_v57, %v2195_v46 }
 0x30d   : > { %v3003_v51 = vadd.f32 %v2878_v6, %v2599_v22 }
 0x30f   : > { %v9338_v43 = vadd.f32 %v3282_v35, %v3003_v51 }
 0x310   : > { %v2883_v21 = vpop.f32.mrf.mxu2  ;;  %v2083_v3 = vpop.f32.mrf.mxu0 }
 0x311   : > { %v3287_v7 = vpop.f32.mrf.mxu3  ;;  %v2200_v59 = vadd.f32 %v2083_v3, %v8909_v61 }
 0x312   : > { %v2477_v40 = vpop.f32.mrf.mxu1 }
 0x313   : > { %v2600_v46 = vadd.f32 %v2477_v40, %v2196_v44  ;;  %7330 = vmatmul.msk.bf16.gmra.mxu0 %vm517_vm2, %v1913_v26 }
 0x315   : > { %v3004_v6 = vadd.f32 %v2881_v24, %v2600_v46  ;;  %7359 = vmatmul.msk.bf16.gmra.mxu1 %vm517_vm2, %v2315_v58  ;;  %7391 = vmatmul.msk.bf16.gmra.mxu2 %vm517_vm2, %v2720_v23  ;;  %v1875_v24 = vld [vmem:[%s8645_s24 + $0x159] sm:$0xff]  ;;  %v2316_v23 = vpack.c.bf16 %v2275_v39, %v2274_v62  ;;  %v2721_v46 = vpack.c.bf16 %v2681_v27, %v2680_v11  ;;  %v2276_v62 = vld [vmem:[%s8645_s24 + $0x142] sm:$0xff]  ;;  %v2277_v39 = vld [vmem:[%s8645_s24 + $0x14a] sm:$0xff] }
 0x316   : > { %7422 = vmatmul.msk.bf16.gmra.mxu3 %vm517_vm2, %v1913_v26  ;;  %v1914_v58 = vpack.c.bf16 %v1875_v24, %v1874_v52  ;;  %v1876_v24 = vld [vmem:[%s8645_s24 + $0x161] sm:$0xff] }
 0x317   : > { %v9345_v35 = vadd.f32 %v3285_v30, %v3004_v6  ;;  %v2682_v11 = vld [vmem:[%s8645_s24 + $0x160] sm:$0xff]  ;;  %v2683_v27 = vld [vmem:[%s8645_s24 + $0x168] sm:$0xff] }
 0x318   : > { %v2886_v61 = vpop.f32.mrf.mxu2  ;;  %v2085_v18 = vpop.f32.mrf.mxu0 }
 0x319   : > { %v3290_v57 = vpop.f32.mrf.mxu3  ;;  %v2201_v44 = vadd.f32 %v2085_v18, %v8915_v12 }
 0x31a   : > { %v2479_v22 = vpop.f32.mrf.mxu1 }
 0x31b   : > { %v2601_v51 = vadd.f32 %v2479_v22, %v2197_v41 }
 0x31d   : > { %v3005_v20 = vadd.f32 %v2883_v21, %v2601_v51 }
 0x31f   : > { %v9354_v3 = vadd.f32 %v3287_v7, %v3005_v20 }
 0x320   : > { %v2888_v26 = vpop.f32.mrf.mxu2  ;;  %v2088_v30 = vpop.f32.mrf.mxu0 }
 0x321   : > { %v3292_v40 = vpop.f32.mrf.mxu3  ;;  %v2202_v6 = vadd.f32 %v2088_v30, %v8923_v34 }
 0x322   : > { %v2482_v12 = vpop.f32.mrf.mxu1 }
 0x323   : > { %v2602_v41 = vadd.f32 %v2482_v12, %v2198_v37  ;;  %7331 = vmatmul.msk.bf16.gmra.mxu0 %vm517_vm2, %v1914_v58 }
 0x325   : > { %v3006_v21 = vadd.f32 %v2886_v61, %v2602_v41  ;;  %7360 = vmatmul.msk.bf16.gmra.mxu1 %vm517_vm2, %v2316_v23  ;;  %7392 = vmatmul.msk.bf16.gmra.mxu2 %vm517_vm2, %v2721_v46  ;;  %v1877_v61 = vld [vmem:[%s8645_s24 + $0x169] sm:$0xff]  ;;  %v2317_v46 = vpack.c.bf16 %v2277_v39, %v2276_v62  ;;  %v2722_v41 = vpack.c.bf16 %v2683_v27, %v2682_v11  ;;  %v2278_v62 = vld [vmem:[%s8645_s24 + $0x152] sm:$0xff]  ;;  %v2279_v39 = vld [vmem:[%s8645_s24 + $0x15a] sm:$0xff] }
 0x326   : > { %7423 = vmatmul.msk.bf16.gmra.mxu3 %vm517_vm2, %v1914_v58  ;;  %v1915_v23 = vpack.c.bf16 %v1877_v61, %v1876_v24  ;;  %v1878_v61 = vld [vmem:[%s8645_s24 + $0x171] sm:$0xff] }
 0x327   : > { %v9361_v7 = vadd.f32 %v3290_v57, %v3006_v21  ;;  %v2684_v11 = vld [vmem:[%s8645_s24 + $0x170] sm:$0xff]  ;;  %v2685_v27 = vld [vmem:[%s8645_s24 + $0x178] sm:$0xff] }
 0x328   : > { %v2891_v34 = vpop.f32.mrf.mxu2  ;;  %v2090_v18 = vpop.f32.mrf.mxu0 }
 0x329   : > { %v3295_v22 = vpop.f32.mrf.mxu3  ;;  %v2203_v37 = vadd.f32 %v2090_v18, %v8929_v55 }
 0x32a   : > { %v2484_v51 = vpop.f32.mrf.mxu1 }
 0x32b   : > { %v2603_v20 = vadd.f32 %v2484_v51, %v2199_v42 }
 0x32d   : > { %v3007_v52 = vadd.f32 %v2888_v26, %v2603_v20 }
 0x32f   : > { %v9370_v30 = vadd.f32 %v3292_v40, %v3007_v52 }
 0x330   : > { %v2893_v58 = vpop.f32.mrf.mxu2  ;;  %v2093_v57 = vpop.f32.mrf.mxu0 }
 0x331   : > { %v3297_v12 = vpop.f32.mrf.mxu3  ;;  %v2204_v21 = vadd.f32 %v2093_v57, %v8937_v10 }
 0x332   : > { %v2487_v55 = vpop.f32.mrf.mxu1 }
 0x333   : > { %v2604_v42 = vadd.f32 %v2487_v55, %v2200_v59  ;;  %7332 = vmatmul.msk.bf16.gmra.mxu0 %vm517_vm2, %v1915_v23 }
 0x335   : > { %v3008_v26 = vadd.f32 %v2891_v34, %v2604_v42  ;;  %7361 = vmatmul.msk.bf16.gmra.mxu1 %vm517_vm2, %v2317_v46  ;;  %7393 = vmatmul.msk.bf16.gmra.mxu2 %vm517_vm2, %v2722_v41  ;;  %v1879_v34 = vld [vmem:[%s8645_s24 + $0x179] sm:$0xff]  ;;  %v2318_v41 = vpack.c.bf16 %v2279_v39, %v2278_v62  ;;  %v2723_v42 = vpack.c.bf16 %v2685_v27, %v2684_v11  ;;  %v2280_v62 = vld [vmem:[%s8645_s24 + $0x162] sm:$0xff]  ;;  %v2281_v39 = vld [vmem:[%s8645_s24 + $0x16a] sm:$0xff] }
 0x336   : > { %7424 = vmatmul.msk.bf16.gmra.mxu3 %vm517_vm2, %v1915_v23  ;;  %v1916_v46 = vpack.c.bf16 %v1879_v34, %v1878_v61  ;;  %v1880_v61 = vld [vmem:[%s8645_s24 + $0x181] sm:$0xff]  ;;  %v1881_v34 = vld [vmem:[%s8645_s24 + $0x189] sm:$0xff] }
 0x337   : > { %v9377_v40 = vadd.f32 %v3295_v22, %v3008_v26  ;;  %v2687_v11 = vld [vmem:[%s8645_s24 + $0x188] sm:$0xff] }
 0x338   : > { %v2896_v10 = vpop.f32.mrf.mxu2  ;;  %v2095_v18 = vpop.f32.mrf.mxu0 }
 0x339   : > { %v3300_v51 = vpop.f32.mrf.mxu3  ;;  %v2205_v59 = vadd.f32 %v2095_v18, %v8943_v33 }
 0x33a   : > { %v2489_v20 = vpop.f32.mrf.mxu1 }
 0x33b   : > { %v2605_v52 = vadd.f32 %v2489_v20, %v2201_v44 }
 0x33d   : > { %v3009_v24 = vadd.f32 %v2893_v58, %v2605_v52 }
 0x33f   : > { %v9386_v57 = vadd.f32 %v3297_v12, %v3009_v24 }
 0x340   : > { %v2898_v23 = vpop.f32.mrf.mxu2  ;;  %v2098_v22 = vpop.f32.mrf.mxu0 }
 0x341   : > { %v3302_v55 = vpop.f32.mrf.mxu3  ;;  %v1917_v22 = vpack.c.bf16 %v1881_v34, %v1880_v61  ;;  %v1882_v61 = vld [vmem:[%s8645_s24 + $0x191] sm:$0xff]  ;;  %v1883_v34 = vld [vmem:[%s8645_s24 + $0x199] sm:$0xff] }
 0x342   : > { %v2492_v33 = vpop.f32.mrf.mxu1 }
 0x343   : > { %v2606_v44 = vadd.f32 %v2492_v33, %v2202_v6  ;;  %7333 = vmatmul.msk.bf16.gmra.mxu0 %vm517_vm2, %v1916_v46 }
 0x345   : > { %v3010_v58 = vadd.f32 %v2896_v10, %v2606_v44  ;;  %7362 = vmatmul.msk.bf16.gmra.mxu1 %vm517_vm2, %v2318_v41  ;;  %7394 = vmatmul.msk.bf16.gmra.mxu2 %vm517_vm2, %v2723_v42  ;;  %v2686_v10 = vld [vmem:[%s8645_s24 + $0x180] sm:$0xff] }
 0x346   : > { %7425 = vmatmul.msk.bf16.gmra.mxu3 %vm517_vm2, %v1916_v46  ;;  %v2319_v46 = vpack.c.bf16 %v2281_v39, %v2280_v62  ;;  %v2724_v33 = vpack.c.bf16 %v2687_v11, %v2686_v10  ;;  %v2282_v62 = vld [vmem:[%s8645_s24 + $0x172] sm:$0xff]  ;;  %v2283_v39 = vld [vmem:[%s8645_s24 + $0x17a] sm:$0xff] }
 0x347   : > { %v9392_v12 = vadd.f32 %v3300_v51, %v3010_v58  ;;  %v2689_v10 = vld [vmem:[%s8645_s24 + $0x198] sm:$0xff] }
 0x348   : > { %v2901_v26 = vpop.f32.mrf.mxu2  ;;  %v2100_v18 = vpop.f32.mrf.mxu0 }
 0x349   : > { %v3305_v20 = vpop.f32.mrf.mxu3 }
 0x34a   : > { %v2494_v52 = vpop.f32.mrf.mxu1 }
 0x34b   : > { %v2607_v24 = vadd.f32 %v2494_v52, %v2203_v37 }
 0x34d   : > { %v3011_v6 = vadd.f32 %v2898_v23, %v2607_v24 }
 0x34f   : > { %v9400_v27 = vadd.f32 %v3302_v55, %v3011_v6 }
 0x350   : > { %v2903_v41 = vpop.f32.mrf.mxu2  ;;  %v2103_v42 = vpop.f32.mrf.mxu0 }
 0x351   : > { %v3307_v51 = vpop.f32.mrf.mxu3  ;;  %v1918_v42 = vpack.c.bf16 %v1883_v34, %v1882_v61  ;;  %v2691_v61 = vld [vmem:[%s8645_s24 + $0x1a8] sm:$0xff] }
 0x352   : > { %v2497_v44 = vpop.f32.mrf.mxu1 }
 0x353   : > { %v2608_v37 = vadd.f32 %v2497_v44, %v2204_v21  ;;  %7334 = vmatmul.msk.bf16.gmra.mxu0 %vm517_vm2, %v1917_v22 }
 0x355   : > { %v3012_v23 = vadd.f32 %v2901_v26, %v2608_v37  ;;  %7363 = vmatmul.msk.bf16.gmra.mxu1 %vm517_vm2, %v2319_v46  ;;  %7395 = vmatmul.msk.bf16.gmra.mxu2 %vm517_vm2, %v2724_v33  ;;  %v2688_v26 = vld [vmem:[%s8645_s24 + $0x190] sm:$0xff] }
 0x356   : > { %7426 = vmatmul.msk.bf16.gmra.mxu3 %vm517_vm2, %v1917_v22  ;;  %v2725_v44 = vpack.c.bf16 %v2689_v10, %v2688_v26 }
 0x357   : > { %v9406_v55 = vadd.f32 %v3305_v20, %v3012_v23  ;;  %v2320_v20 = vpack.c.bf16 %v2283_v39, %v2282_v62 }
 0x358   : > { %v2906_v58 = vpop.f32.mrf.mxu2  ;;  %v2105_v18 = vpop.f32.mrf.mxu0 }
 0x359   : > { %v3310_v52 = vpop.f32.mrf.mxu3 }
 0x35a   : > { %v2499_v24 = vpop.f32.mrf.mxu1  ;;  %v1884_v52 = vld [vmem:[%s8645_s24 + $0x1a1] sm:$0xff] }
 0x35b   : > { %v2609_v6 = vadd.f32 %v2499_v24, %v2205_v59  ;;  %v1885_v24 = vld [vmem:[%s8645_s24 + $0x1a9] sm:$0xff] }
 0x35c   : > { %v1919_v34 = vpack.c.bf16 %v1885_v24, %v1884_v52  ;;  %v2693_v52 = vld [vmem:[%s8645_s24 + $0x1b8] sm:$0xff] }
 0x35d   : > { %v3013_v21 = vadd.f32 %v2903_v41, %v2609_v6  ;;  %v2284_v6 = vld [vmem:[%s8645_s24 + $0x182] sm:$0xff] }
 0x35f   : > { %v9414_v11 = vadd.f32 %v3307_v51, %v3013_v21  ;;  %v2690_v21 = vld [vmem:[%s8645_s24 + $0x1a0] sm:$0xff] }
 0x360   : > { %v2908_v46 = vpop.f32.mrf.mxu2  ;;  %v2108_v22 = vpop.f32.mrf.mxu0 }
 0x361   : > { %v3312_v33 = vpop.f32.mrf.mxu3  ;;  %v2210_v59 = vadd.f32 %v2108_v22, %v8974_v60  ;;  %v2285_v60 = vld [vmem:[%s8645_s24 + $0x18a] sm:$0xff] }
 0x362   : > { %v2502_v41 = vpop.f32.mrf.mxu1  ;;  %v2321_v26 = vpack.c.bf16 %v2285_v60, %v2284_v6 }
 0x363   : > { %7335 = vmatmul.msk.bf16.gmra.mxu0 %vm517_vm2, %v1918_v42 }
 0x365   : > { %7364 = vmatmul.msk.bf16.gmra.mxu1 %vm517_vm2, %v2320_v20  ;;  %7396 = vmatmul.msk.bf16.gmra.mxu2 %vm517_vm2, %v2725_v44 }
 0x366   : > { %7427 = vmatmul.msk.bf16.gmra.mxu3 %vm517_vm2, %v1918_v42  ;;  %v2726_v42 = vpack.c.bf16 %v2691_v61, %v2690_v21 }
 0x368   : > { %v2911_v51 = vpop.f32.mrf.mxu2  ;;  %v2110_v37 = vpop.f32.mrf.mxu0 }
 0x369   : > { %v3315_v23 = vpop.f32.mrf.mxu3  ;;  %v2211_v58 = vadd.f32 %v2110_v37, %v8980_v13  ;;  %v1886_v51 = vld [vmem:[%s8645_s24 + $0x1b1] sm:$0xff]  ;;  %v1887_v37 = vld [vmem:[%s8645_s24 + $0x1b9] sm:$0xff] }
 0x36a   : > { %v2504_v18 = vpop.f32.mrf.mxu1  ;;  %v2286_v23 = vld [vmem:[%s8645_s24 + $0x192] sm:$0xff]  ;;  %v1920_v24 = vpack.c.bf16 %v1887_v37, %v1886_v51  ;;  %v1889_v37 = vld [vmem:[%s8645_s24 + $0x1c9] sm:$0xff] }
 0x36b   : > { %v2692_v18 = vld [vmem:[%s8645_s24 + $0x1b0] sm:$0xff] }
 0x370   : > { %v2913_v62 = vpop.f32.mrf.mxu2  ;;  %v2113_v39 = vpop.f32.mrf.mxu0 }
 0x371   : > { %v3317_v10 = vpop.f32.mrf.mxu3  ;;  %v2212_v13 = vadd.f32 %v2113_v39, %v8991_v38  ;;  %v2287_v38 = vld [vmem:[%s8645_s24 + $0x19a] sm:$0xff]  ;;  %v2727_v62 = vpack.c.bf16 %v2693_v52, %v2692_v18  ;;  %v2695_v52 = vld [vmem:[%s8645_s24 + $0x1c8] sm:$0xff] }
 0x372   : > { %v2507_v46 = vpop.f32.mrf.mxu1  ;;  %v2322_v21 = vpack.c.bf16 %v2287_v38, %v2286_v23  ;;  %v2288_v23 = vld [vmem:[%s8645_s24 + $0x1a2] sm:$0xff]  ;;  %v2289_v38 = vld [vmem:[%s8645_s24 + $0x1aa] sm:$0xff] }
 0x373   : > { %7336 = vmatmul.msk.bf16.gmra.mxu0 %vm517_vm2, %v1919_v34  ;;  %v2694_v18 = vld [vmem:[%s8645_s24 + $0x1c0] sm:$0xff] }
 0x375   : > { %7365 = vmatmul.msk.bf16.gmra.mxu1 %vm517_vm2, %v2321_v26  ;;  %7397 = vmatmul.msk.bf16.gmra.mxu2 %vm517_vm2, %v2726_v42 }
 0x376   : > { %7428 = vmatmul.msk.bf16.gmra.mxu3 %vm517_vm2, %v1919_v34 }
 0x378   : > { %v2916_v22 = vpop.f32.mrf.mxu2  ;;  %v2115_v20 = vpop.f32.mrf.mxu0 }
 0x379   : > { %v3320_v33 = vpop.f32.mrf.mxu3  ;;  %v2213_v44 = vadd.f32 %v2115_v20, %v9005_v32 }
 0x37a   : > { %v2509_v41 = vpop.f32.mrf.mxu1 }
 0x380   : > { %v2918_v6 = vpop.f32.mrf.mxu2  ;;  %v2118_v60 = vpop.f32.mrf.mxu0 }
 0x381   : > { %v3322_v61 = vpop.f32.mrf.mxu3  ;;  %v2214_v34 = vadd.f32 %v2118_v60, %v9022_v15 }
 0x382   : > { %v2512_v39 = vpop.f32.mrf.mxu1 }
 0x383   : > { %v2614_v26 = vadd.f32 %v2512_v39, %v2210_v59  ;;  %7337 = vmatmul.msk.bf16.gmra.mxu0 %vm517_vm2, %v1920_v24  ;;  %v2728_v39 = vpack.c.bf16 %v2695_v52, %v2694_v18  ;;  %v2696_v18 = vld [vmem:[%s8645_s24 + $0x1d0] sm:$0xff]  ;;  %v2697_v52 = vld [vmem:[%s8645_s24 + $0x1d8] sm:$0xff] }
 0x385   : > { %v3018_v32 = vadd.f32 %v2916_v22, %v2614_v26  ;;  %7366 = vmatmul.msk.bf16.gmra.mxu1 %vm517_vm2, %v2322_v21  ;;  %7398 = vmatmul.msk.bf16.gmra.mxu2 %vm517_vm2, %v2727_v62  ;;  %v1888_v22 = vld [vmem:[%s8645_s24 + $0x1c1] sm:$0xff]  ;;  %v2323_v62 = vpack.c.bf16 %v2289_v38, %v2288_v23  ;;  %v2290_v23 = vld [vmem:[%s8645_s24 + $0x1b2] sm:$0xff] }
 0x386   : > { %7429 = vmatmul.msk.bf16.gmra.mxu3 %vm517_vm2, %v1920_v24  ;;  %v1921_v24 = vpack.c.bf16 %v1889_v37, %v1888_v22  ;;  %v1891_v37 = vld [vmem:[%s8645_s24 + $0x1d9] sm:$0xff] }
 0x387   : > { %v9445_v10 = vadd.f32 %v3320_v33, %v3018_v32  ;;  %v2291_v38 = vld [vmem:[%s8645_s24 + $0x1ba] sm:$0xff] }
 0x388   : > { %v2921_v15 = vpop.f32.mrf.mxu2  ;;  %v2120_v42 = vpop.f32.mrf.mxu0 }
 0x389   : > { %v3325_v46 = vpop.f32.mrf.mxu3  ;;  %v9448_v59 = vadd.f32 %v2120_v42, %v9028_v2 }
 0x38a   : > { %v2514_v20 = vpop.f32.mrf.mxu1 }
 0x38b   : > { %v2615_v41 = vadd.f32 %v2514_v20, %v2211_v58 }
 0x38d   : > { %v3019_v51 = vadd.f32 %v2918_v6, %v2615_v41 }
 0x38f   : > { %v9456_v60 = vadd.f32 %v3322_v61, %v3019_v51 }
 0x390   : > { %v2923_v33 = vpop.f32.mrf.mxu2  ;;  %v2123_v21 = vpop.f32.mrf.mxu0 }
 0x391   : > { %v9459_v26 = vadd.f32 %v2123_v21, %v9040_v49  ;;  %v3327_v58 = vpop.f32.mrf.mxu3 }
 0x392   : > { %v2517_v2 = vpop.f32.mrf.mxu1 }
 0x393   : > { %v2616_v6 = vadd.f32 %v2517_v2, %v2212_v13  ;;  %7338 = vmatmul.msk.bf16.gmra.mxu0 %vm517_vm2, %v1921_v24 }
 0x395   : > { %v3020_v32 = vadd.f32 %v2921_v15, %v2616_v6  ;;  %7367 = vmatmul.msk.bf16.gmra.mxu1 %vm517_vm2, %v2323_v62  ;;  %7399 = vmatmul.msk.bf16.gmra.mxu2 %vm517_vm2, %v2728_v39  ;;  %v1890_v15 = vld [vmem:[%s8645_s24 + $0x1d1] sm:$0xff]  ;;  %v2324_v62 = vpack.c.bf16 %v2291_v38, %v2290_v23  ;;  %v2729_v39 = vpack.c.bf16 %v2697_v52, %v2696_v18  ;;  %v2698_v18 = vld [vmem:[%s8645_s24 + $0x1e0] sm:$0xff]  ;;  %v2699_v52 = vld [vmem:[%s8645_s24 + $0x1e8] sm:$0xff] }
 0x396   : > { %7430 = vmatmul.msk.bf16.gmra.mxu3 %vm517_vm2, %v1921_v24  ;;  %v1922_v24 = vpack.c.bf16 %v1891_v37, %v1890_v15  ;;  %v1893_v15 = vld [vmem:[%s8645_s24 + $0x1e9] sm:$0x3f] }
 0x397   : > { %v9465_v49 = vadd.f32 %v3325_v46, %v3020_v32  ;;  %v8355_v32 = vld [vmem:[%s11195_s3 + $0xb8] sm:$0xff]  ;;  %v2292_v37 = vld [vmem:[%s8645_s24 + $0x1c2] sm:$0xff]  ;;  %v2293_v38 = vld [vmem:[%s8645_s24 + $0x1ca] sm:$0xff] }
 0x398   : > { %v2125_v61 = vpop.f32.mrf.mxu0  ;;  %v2926_v20 = vpop.f32.mrf.mxu2  ;;  %4599 = vmatpush.bf16.msra.mxu3 %v8355_v32 }
 0x399   : > { %v9468_v42 = vadd.f32 %v2125_v61, %v9046_v63  ;;  %v3330_v51 = vpop.f32.mrf.mxu3 }
 0x39a   : > { %v2519_v13 = vpop.f32.mrf.mxu1 }
 0x39b   : > { %v2617_v41 = vadd.f32 %v2519_v13, %v2213_v44  ;;  %v11225_v13 = vld [vmem:[#allocation7_spill] sm:$0xff] }
 0x39d   : > { %v3021_v22 = vadd.f32 %v2923_v33, %v2617_v41 }
 0x39f   : > { %v9476_v21 = vadd.f32 %v3327_v58, %v3021_v22  ;;  %v1892_v22 = vld [vmem:[%s8645_s24 + $0x1e1] sm:$0xff] }
 0x3a0   : > { %v2128_v46 = vpop.f32.mrf.mxu0  ;;  %v9482_v44 = vpop.f32.mrf.mxu2 }
 0x3a1   : > { %v9479_v63 = vadd.f32 %v2128_v46, %v9054_v28  ;;  %v9486_v58 = vpop.f32.mrf.mxu3  ;;  %v1923_v46 = vpack.c.bf16 %v1893_v15, %v1892_v22 }
 0x3a2   : > { %v2522_v2 = vpop.f32.mrf.mxu1 }
 0x3a3   : > { %v2618_v6 = vadd.f32 %v2522_v2, %v2214_v34  ;;  %7339 = vmatmul.msk.bf16.gmra.mxu0 %vm517_vm2, %v1922_v24  ;;  %v8339_v34 = vld [vmem:[%s11195_s3 + $0x38] sm:$0xff]  ;;  %v2325_v2 = vpack.c.bf16 %v2293_v38, %v2292_v37  ;;  %v11231_v38 = vld [vmem:[#allocation9_spill] sm:$0xff] }
 0x3a4   : > { %4477 = vmatpush.bf16.msra.mxu2 %v8339_v34 }
 0x3a5   : > { %v3022_v33 = vadd.f32 %v2926_v20, %v2618_v6  ;;  %7368 = vmatmul.msk.bf16.gmra.mxu1 %vm517_vm2, %v2324_v62  ;;  %7400 = vmatmul.msk.bf16.gmra.mxu2 %vm517_vm2, %v2729_v39  ;;  %v2730_v6 = vpack.c.bf16 %v2699_v52, %v2698_v18 }
 0x3a6   : > { %7431 = vmatmul.msk.bf16.gmra.mxu3 %vm517_vm2, %v1922_v24  ;;  %v3103_v24 = vld [vmem:[%s8645_s24 + $0x1e9] sm:$0xff] }
 0x3a7   : > { %v9489_v28 = vadd.f32 %v3330_v51, %v3022_v33  ;;  %v8347_v51 = vld [vmem:[%s11195_s3 + $0x78] sm:$0xff]  ;;  %v11227_v33 = vld [vmem:[#allocation8_spill] sm:$0xff] }
 0x3a8   : > { %v2130_v61 = vpop.f32.mrf.mxu0  ;;  %4390 = vmatpush.bf16.msrb.mxu1 %v8347_v51  ;;  %v2931_v23 = vpop.f32.mrf.mxu2 }
 0x3a9   : > { %v9498_v20 = vadd.f32 %v2130_v61, %v11225_v13  ;;  %v3335_v62 = vpop.f32.mrf.mxu3  ;;  %v3134_v61 = vpack.c.bf16 %v3103_v24, %v1892_v22  ;;  %v3450_v24 = vld [vmem:[%s8645_s24 + $0x22] sm:$0xff] }
 0x3aa   : > { %v9500_v41 = vpop.f32.mrf.mxu1 }
 0x3ab   : > { %11226 = vst [vmem:[#allocation7_spill] sm:$0xff] %v9498_v20 }
 0x3b0   : > { %v2133_v39 = vpop.f32.mrf.mxu0  ;;  %v9522_v37 = vpop.f32.mrf.mxu2 }
 0x3b1   : > { %v9513_v34 = vadd.f32 %v2133_v39, %v11227_v33  ;;  %11230 = vst [vmem:[#allocation23_spill] sm:$0xff] %v9522_v37  ;;  %v9529_v52 = vpop.f32.mrf.mxu3  ;;  %v2295_v39 = vld [vmem:[%s8645_s24 + $0x1da] sm:$0xff]  ;;  %v3104_v33 = vld [vmem:[%s8645_s24 + $0x1f1] sm:$0xff] }
 0x3b2   : > { %v2527_v32 = vpop.f32.mrf.mxu1  ;;  %11233 = vst [vmem:[#allocation24_spill] sm:$0xff] %v9529_v52 }
 0x3b3   : > { %11228 = vst [vmem:[#allocation8_spill] sm:$0xff] %v9513_v34  ;;  %v2620_v13 = vadd.f32 %v2527_v32, %v9459_v26  ;;  %7340 = vmatmul.msk.bf16.gmra.mxu0 %vm517_vm2, %v1923_v46  ;;  %v3451_v46 = vld [vmem:[%s8645_s24 + $0x2a] sm:$0xff]  ;;  %v3105_v32 = vld [vmem:[%s8645_s24 + $0x1f9] sm:$0x3f] }
 0x3b4   : > { %v11234_v34 = vld [vmem:[#allocation10_spill] sm:$0xff]  ;;  %v3135_v20 = vpack.c.bf16 %v3105_v32, %v3104_v33  ;;  %v11236_v32 = vld [vmem:[#allocation12_spill] sm:$0xff] }
 0x3b5   : > { %v3024_v51 = vadd.f32 %v2931_v23, %v2620_v13  ;;  %7369 = vmatmul.msk.bf16.gmra.mxu1 %vm517_vm2, %v2325_v2  ;;  %7401 = vmatmul.msk.bf16.gmra.mxu2 %vm517_vm2, %v2730_v6  ;;  %v2294_v23 = vld [vmem:[%s8645_s24 + $0x1d2] sm:$0xff] }
 0x3b6   : > { %7432 = vmatmul.msk.bf16.gmra.mxu3 %vm517_vm2, %v3134_v61  ;;  %v2700_v2 = vld [vmem:[%s8645_s24 + $0x1f0] sm:$0xff]  ;;  %v2701_v6 = vld [vmem:[%s8645_s24 + $0x1f8] sm:$0x3f]  ;;  %v2326_v13 = vpack.c.bf16 %v2295_v39, %v2294_v23 }
 0x3b7   : > { %v9520_v15 = vadd.f32 %v3335_v62, %v3024_v51  ;;  %v3510_v62 = vpack.c.bf16 %v3451_v46, %v3450_v24  ;;  %v2731_v51 = vpack.c.bf16 %v2701_v6, %v2700_v2  ;;  %v11235_v24 = vld [vmem:[#allocation11_spill] sm:$0xff]  ;;  %v3452_v39 = vld [vmem:[%s8645_s24 + $0x32] sm:$0xff]  ;;  %v2297_v6 = vld [vmem:[%s8645_s24 + $0x1ea] sm:$0x3f] }
 0x3b8   : > { %v2135_v22 = vpop.f32.mrf.mxu0  ;;  %v2296_v2 = vld [vmem:[%s8645_s24 + $0x1e2] sm:$0xff] }
 0x3b9   : > { %11229 = vst [vmem:[#allocation22_spill] sm:$0xff] %v9520_v15  ;;  %v9525_v26 = vadd.f32 %v2135_v22, %v11231_v38  ;;  %v3340_v37 = vpop.f32.mrf.mxu3 }
 0x3ba   : > { %v9527_v18 = vpop.f32.mrf.mxu1 }
 0x3bb   : > { %11232 = vst [vmem:[#allocation9_spill] sm:$0xff] %v9525_v26  ;;  %v2936_v26 = vpop.f32.mrf.mxu2 }
 0x3c0   : > { %v2138_v61 = vpop.f32.mrf.mxu0 }
 0x3c1   : > { %v9540_v22 = vadd.f32 %v2138_v61, %v11234_v34  ;;  %v3454_v61 = vld [vmem:[%s8645_s24 + $0x42] sm:$0xff] }
 0x3c2   : > { %v2532_v38 = vpop.f32.mrf.mxu1 }
 0x3c3   : > { %v2622_v52 = vadd.f32 %v2532_v38, %v9479_v63  ;;  %7435 = vmatmul.msk.bf16.vlgmr.msra.gmra.mxu0 %vm517_vm2, %v3510_v62  ;;  %v3453_v63 = vld [vmem:[%s8645_s24 + $0x3a] sm:$0xff] }
 0x3c4   : > { %v3511_v33 = vpack.c.bf16 %v3453_v63, %v3452_v39  ;;  %v8338_v39 = vld [vmem:[%s11195_s3 + $0x30] sm:$0xff] }
 0x3c5   : > { %v3026_v15 = vadd.f32 %v2936_v26, %v2622_v52  ;;  %7370 = vmatmul.msk.bf16.gmra.mxu1 %vm517_vm2, %v2326_v13  ;;  %7402 = vmatmul.msk.bf16.gmra.mxu2 %vm517_vm2, %v2731_v51  ;;  %v2327_v52 = vpack.c.bf16 %v2297_v6, %v2296_v2  ;;  %v3455_v13 = vld [vmem:[%s8645_s24 + $0x4a] sm:$0xff] }
 0x3c6   : > { %7433 = vmatmul.msk.bf16.gmra.mxu3 %vm517_vm2, %v3135_v20  ;;  %v3512_v51 = vpack.c.bf16 %v3455_v13, %v3454_v61  ;;  %4478 = vmatpush.bf16.msra.mxu2 %v8338_v39  ;;  %v8354_v63 = vld [vmem:[%s11195_s3 + $0xb0] sm:$0xff]  ;;  %v11243_v61 = vld [vmem:[#allocation16_spill] sm:$0xff] }
 0x3c7   : > { %v9547_v34 = vadd.f32 %v3340_v37, %v3026_v15  ;;  %v11237_v15 = vld [vmem:[#allocation13_spill] sm:$0xff]  ;;  %4600 = vmatpush.bf16.msra.mxu3 %v8354_v63  ;;  %v3458_v39 = vld [vmem:[%s8645_s24 + $0x62] sm:$0xff] }
 0x3c8   : > { %v2140_v23 = vpop.f32.mrf.mxu0  ;;  %v8346_v2 = vld [vmem:[%s11195_s3 + $0x70] sm:$0xff] }
 0x3c9   : > { %v9550_v46 = vadd.f32 %v2140_v23, %v11235_v24  ;;  %v11239_v23 = vld [vmem:[#allocation14_spill] sm:$0xff]  ;;  %4391 = vmatpush.bf16.msrb.mxu1 %v8346_v2  ;;  %v3459_v63 = vld [vmem:[%s8645_s24 + $0x6a] sm:$0xff] }
 0x3ca   : > { %v3514_v2 = vpack.c.bf16 %v3459_v63, %v3458_v39 }
 0x3d0   : > { %v2143_v26 = vpop.f32.mrf.mxu0 }
 0x3d1   : > { %v9557_v62 = vadd.f32 %v2143_v26, %v11236_v32  ;;  %v3457_v32 = vld [vmem:[%s8645_s24 + $0x5a] sm:$0xff] }
 0x3d3   : > { %7436 = vmatmul.msk.bf16.gmra.mxu0 %vm517_vm2, %v3511_v33  ;;  %v11241_v33 = vld [vmem:[#allocation15_spill] sm:$0xff] }
 0x3d5   : > { %7371 = vmatmul.msk.bf16.gmra.mxu1 %vm517_vm2, %v2327_v52  ;;  %v3456_v52 = vld [vmem:[%s8645_s24 + $0x52] sm:$0xff] }
 0x3d8   : > { %v2145_v20 = vpop.f32.mrf.mxu0 }
 0x3d9   : > { %v9562_v37 = vadd.f32 %v2145_v20, %v11237_v15  ;;  %v3513_v20 = vpack.c.bf16 %v3457_v32, %v3456_v52  ;;  %v11249_v32 = vld [vmem:[#allocation19_spill] sm:$0xff] }
 0x3db   : > { %11238 = vst [vmem:[#allocation10_spill] sm:$0xff] %v9562_v37 }
 0x3e0   : > { %v2148_v38 = vpop.f32.mrf.mxu0 }
 0x3e1   : > { %v9567_v24 = vadd.f32 %v2148_v38, %v11239_v23  ;;  %v11245_v38 = vld [vmem:[#allocation17_spill] sm:$0xff] }
 0x3e3   : > { %11240 = vst [vmem:[#allocation11_spill] sm:$0xff] %v9567_v24  ;;  %7437 = vmatmul.msk.bf16.gmra.mxu0 %vm517_vm2, %v3512_v51 }
 0x3e8   : > { %v2150_v6 = vpop.f32.mrf.mxu0 }
 0x3e9   : > { %v9580_v26 = vadd.f32 %v2150_v6, %v11241_v33  ;;  %v11247_v33 = vld [vmem:[#allocation18_spill] sm:$0xff] }
 0x3eb   : > { %11242 = vst [vmem:[#allocation12_spill] sm:$0xff] %v9580_v26 }
 0x3f0   : > { %v2153_v15 = vpop.f32.mrf.mxu0 }
 0x3f1   : > { %v9585_v13 = vadd.f32 %v2153_v15, %v11243_v61  ;;  %v3461_v61 = vld [vmem:[%s8645_s24 + $0x7a] sm:$0xff] }
 0x3f3   : > { %11244 = vst [vmem:[#allocation13_spill] sm:$0xff] %v9585_v13  ;;  %7438 = vmatmul.msk.bf16.gmra.mxu0 %vm517_vm2, %v3513_v20  ;;  %v3460_v20 = vld [vmem:[%s8645_s24 + $0x72] sm:$0xff] }
 0x3f4   : > { %v3515_v13 = vpack.c.bf16 %v3461_v61, %v3460_v20  ;;  %v8345_v61 = vld [vmem:[%s11195_s3 + $0x68] sm:$0xff] }
 0x3f5   : > { %4392 = vmatpush.bf16.msrb.mxu1 %v8345_v61 }
 0x3f8   : > { %v2155_v51 = vpop.f32.mrf.mxu0 }
 0x3f9   : > { %v9589_v23 = vadd.f32 %v2155_v51, %v11245_v38  ;;  %v11251_v38 = vld [vmem:[#allocation20_spill] sm:$0xff] }
 0x3fb   : > { %11246 = vst [vmem:[#allocation14_spill] sm:$0xff] %v9589_v23 }
 0x400   : > { %v2158_v6 = vpop.f32.mrf.mxu0 }
 0x401   : > { %v9594_v26 = vadd.f32 %v2158_v6, %v11247_v33  ;;  %v3463_v6 = vld [vmem:[%s8645_s24 + $0x8a] sm:$0xff] }
 0x402   : > { %v8337_v33 = vld [vmem:[%s11195_s3 + $0x28] sm:$0xff] }
 0x403   : > { %11248 = vst [vmem:[#allocation15_spill] sm:$0xff] %v9594_v26  ;;  %7439 = vmatmul.msk.bf16.gmra.mxu0 %vm517_vm2, %v3514_v2  ;;  %v3462_v2 = vld [vmem:[%s8645_s24 + $0x82] sm:$0xff]  ;;  %4479 = vmatpush.bf16.msra.mxu2 %v8337_v33  ;;  %v3481_v26 = vld [vmem:[%s8645_s24 + $0x11a] sm:$0xff] }
 0x408   : > { %v2160_v52 = vpop.f32.mrf.mxu0 }
 0x409   : > { %v9598_v15 = vadd.f32 %v2160_v52, %v11249_v32  ;;  %v8353_v52 = vld [vmem:[%s11195_s3 + $0xa8] sm:$0xff]  ;;  %v3516_v32 = vpack.c.bf16 %v3463_v6, %v3462_v2  ;;  %v3465_v2 = vld [vmem:[%s8645_s24 + $0x9a] sm:$0xff] }
 0x40a   : > { %4601 = vmatpush.bf16.msra.mxu3 %v8353_v52 }
 0x40b   : > { %11250 = vst [vmem:[#allocation16_spill] sm:$0xff] %v9598_v15  ;;  %v3480_v15 = vld [vmem:[%s8645_s24 + $0x112] sm:$0xff] }
 0x40c   : > { %v3525_v37 = vpack.c.bf16 %v3481_v26, %v3480_v15 }
 0x410   : > { %v2163_v51 = vpop.f32.mrf.mxu0 }
 0x411   : > { %v9603_v23 = vadd.f32 %v2163_v51, %v11251_v38 }
 0x413   : > { %11252 = vst [vmem:[#allocation17_spill] sm:$0xff] %v9603_v23  ;;  %7440 = vmatmul.msk.bf16.gmra.mxu0 %vm517_vm2, %v3515_v13  ;;  %v11254_v13 = vld [vmem:[#allocation21_spill] sm:$0xff] }
 0x418   : > { %v2165_v39 = vpop.f32.mrf.mxu0 }
 0x419   : > { %v9607_v63 = vadd.f32 %v2165_v39, %v9160_v14  ;;  %v3464_v39 = vld [vmem:[%s8645_s24 + $0x92] sm:$0xff] }
 0x41a   : > { %v3517_v6 = vpack.c.bf16 %v3465_v2, %v3464_v39 }
 0x41b   : > { %11253 = vst [vmem:[#allocation18_spill] sm:$0xff] %v9607_v63 }
 0x420   : > { %v2168_v20 = vpop.f32.mrf.mxu0 }
 0x421   : > { %v9618_v14 = vadd.f32 %v2168_v20, %v11254_v13  ;;  %v3466_v13 = vld [vmem:[%s8645_s24 + $0xa2] sm:$0xff] }
 0x423   : > { %11255 = vst [vmem:[#allocation19_spill] sm:$0xff] %v9618_v14  ;;  %7441 = vmatmul.msk.bf16.gmra.mxu0 %vm517_vm2, %v3516_v32  ;;  %v3467_v14 = vld [vmem:[%s8645_s24 + $0xaa] sm:$0xff] }
 0x424   : > { %v3518_v61 = vpack.c.bf16 %v3467_v14, %v3466_v13 }
 0x428   : > { %v2170_v51 = vpop.f32.mrf.mxu0 }
 0x429   : > { %v9625_v38 = vadd.f32 %v2170_v51, %v9176_v0  ;;  %v9641_v0 = vld [vmem:[%s11194_s2] ss:$0 sm:$0xff] }
 0x42b   : > { %11256 = vst [vmem:[#allocation20_spill] sm:$0xff] %v9625_v38 }
 0x430   : > { %v2173_v33 = vpop.f32.mrf.mxu0 }
 0x431   : > { %v9630_v52 = vadd.f32 %v2173_v33, %v9184_v50 }
 0x433   : > { %11257 = vst [vmem:[#allocation21_spill] sm:$0xff] %v9630_v52  ;;  %7442 = vmatmul.msk.bf16.gmra.mxu0 %vm517_vm2, %v3517_v6 }
 0x438   : > { %v2175_v32 = vpop.f32.mrf.mxu0 }
 0x439   : > { %v9634_v20 = vadd.f32 %v2175_v32, %v9194_v31  ;;  %v3468_v32 = vld [vmem:[%s8645_s24 + $0xb2] sm:$0xff] }
 0x43b   : > { %11258 = vst [vmem:[#allocation25_spill] sm:$0xff] %v9634_v20  ;;  %v3469_v20 = vld [vmem:[%s8645_s24 + $0xba] sm:$0xff] }
 0x43c   : > { %v3519_v14 = vpack.c.bf16 %v3469_v20, %v3468_v32  ;;  %v3471_v20 = vld [vmem:[%s8645_s24 + $0xca] sm:$0xff] }
 0x43d   : > { %v8334_v32 = vld [vmem:[%s11195_s3 + $0x10] sm:$0xff] }
 0x440   : > { %v3644_v51 = vpop.f32.mrf.mxu0 }
 0x441   : > { %v3794_v50 = vadd.f32 %v3644_v51, %v9201_v25 }
 0x443   : > { %v3858_v39 = vadd.f32 %v9641_v0, %v3794_v50  ;;  %7443 = vmatmul.msk.bf16.gmra.mxu0 %vm517_vm2, %v3518_v61 }
 0x445   : > { %v3918_v2 = vmax.f32 %v3858_v39, 0.0  ;;  %v8336_v39 = vld [vmem:[%s11195_s3 + $0x20] sm:$0xff] }
 0x446   : > { %4480 = vmatpush.bf16.msra.mxu2 %v8336_v39 }
 0x447   : > { %3978 = vst [vmem:[#allocation2] sm:$0xff] %v3918_v2 }
 0x448   : > { %v3646_v6 = vpop.f32.mrf.mxu0 }
 0x449   : > { %v3795_v31 = vadd.f32 %v3646_v6, %v9210_v5 }
 0x44b   : > { %v3859_v33 = vadd.f32 %v9641_v0, %v3795_v31 }
 0x44d   : > { %v3919_v52 = vmax.f32 %v3859_v33, 0.0 }
 0x44f   : > { %3979 = vst [vmem:[#allocation2 + $0x8] sm:$0xff] %v3919_v52  ;;  %v3470_v52 = vld [vmem:[%s8645_s24 + $0xc2] sm:$0xff] }
 0x450   : > { %v3649_v13 = vpop.f32.mrf.mxu0  ;;  %v3520_v31 = vpack.c.bf16 %v3471_v20, %v3470_v52 }
 0x451   : > { %v3796_v25 = vadd.f32 %v3649_v13, %v9217_v47  ;;  %v8335_v47 = vld [vmem:[%s11195_s3 + $0x18] sm:$0xff] }
 0x452   : > { %4481 = vmatpush.bf16.msra.mxu2 %v8335_v47 }
 0x453   : > { %v3860_v51 = vadd.f32 %v9641_v0, %v3796_v25  ;;  %7444 = vmatmul.msk.bf16.gmra.mxu0 %vm517_vm2, %v3519_v14 }
 0x455   : > { %v3920_v61 = vmax.f32 %v3860_v51, 0.0 }
 0x456   : > { %4482 = vmatpush.bf16.msra.mxu2 %v8334_v32  ;;  %v4038_v13 = vld [vmem:[#allocation2] ss:$2 sm:$0xff]  ;;  %v4098_v25 = vld [vmem:[#allocation2 + $0x1] ss:$2 sm:$0xff] }
 0x457   : > { %3980 = vst [vmem:[#allocation2 + $0x10] sm:$0xff] %v3920_v61  ;;  %v8333_v61 = vld [vmem:[%s11195_s3 + $0x8] sm:$0xff]  ;;  %v3473_v32 = vld [vmem:[%s8645_s24 + $0xda] sm:$0xff] }
 0x458   : > { %v3651_v50 = vpop.f32.mrf.mxu0 }
 0x459   : > { %v3797_v5 = vadd.f32 %v3651_v50, %v9226_v48 }
 0x45a   : > { %4483 = vmatpush.bf16.msra.mxu2 %v8333_v61  ;;  %v9691_v61 = vpop.f32.mrf.mxu2 }
 0x45b   : > { %v3861_v2 = vadd.f32 %v9641_v0, %v3797_v5  ;;  %v4157_v5 = vmax.f32 %v4038_v13, %v4098_v25 }
 0x45d   : > { %v3921_v6 = vmax.f32 %v3861_v2, 0.0 }
 0x45f   : > { %3981 = vst [vmem:[#allocation2 + $0x18] sm:$0xff] %v3921_v6  ;;  %v8332_v6 = vld [vmem:[%s11195_s3] sm:$0xff] }
 0x460   : > { %v3654_v33 = vpop.f32.mrf.mxu0  ;;  %4484 = vmatpush.bf16.msra.mxu2 %v8332_v6  ;;  %v3474_v6 = vld [vmem:[%s8645_s24 + $0xe2] sm:$0xff] }
 0x461   : > { %v3798_v48 = vadd.f32 %v3654_v33, %v9233_v29  ;;  %v8344_v33 = vld [vmem:[%s11195_s3 + $0x60] sm:$0xff] }
 0x462   : > { %4393 = vmatpush.bf16.msrb.mxu1 %v8344_v33 }
 0x463   : > { %v3862_v14 = vadd.f32 %v9641_v0, %v3798_v48  ;;  %7445 = vmatmul.msk.bf16.gmra.mxu0 %vm517_vm2, %v3520_v31  ;;  %v8352_v31 = vld [vmem:[%s11195_s3 + $0xa0] sm:$0xff]  ;;  %v3472_v48 = vld [vmem:[%s8645_s24 + $0xd2] sm:$0xff] }
 0x464   : > { %4602 = vmatpush.bf16.msra.mxu3 %v8352_v31  ;;  %v9701_v31 = vpop.f32.mrf.mxu2 }
 0x465   : > { %v3922_v51 = vmax.f32 %v3862_v14, 0.0  ;;  %v3521_v14 = vpack.c.bf16 %v3473_v32, %v3472_v48 }
 0x466   : > { %v4040_v50 = vld [vmem:[#allocation2 + $0x10] ss:$2 sm:$0xff]  ;;  %v4100_v29 = vld [vmem:[#allocation2 + $0x11] ss:$2 sm:$0xff] }
 0x467   : > { %v4158_v39 = vmax.f32 %v4040_v50, %v4100_v29  ;;  %3982 = vst [vmem:[#allocation2 + $0x20] sm:$0xff] %v3922_v51  ;;  %v9693_v29 = vpop.f32.mrf.mxu1 }
 0x468   : > { %v3656_v2 = vpop.f32.mrf.mxu0 }
 0x469   : > { %v9672_v52 = vmax.f32 %v4157_v5, %v4158_v39  ;;  %v3799_v20 = vadd.f32 %v3656_v2, %v9242_v8 }
 0x46b   : > { %4220 = vst [vmem:[#allocation4] sm:$0xff] %v9672_v52  ;;  %v3863_v47 = vadd.f32 %v9641_v0, %v3799_v20  ;;  %v9697_v20 = vpop.f32.mrf.mxu3 }
 0x46d   : > { %v3923_v8 = vmax.f32 %v3863_v47, 0.0  ;;  %v3475_v47 = vld [vmem:[%s8645_s24 + $0xea] sm:$0xff] }
 0x46e   : > { %v3522_v33 = vpack.c.bf16 %v3475_v47, %v3474_v6 }
 0x46f   : > { %3983 = vst [vmem:[#allocation2 + $0x28] sm:$0xff] %v3923_v8  ;;  %v9703_v48 = vpop.f32.mrf.mxu1 }
 0x470   : > { %v3659_v13 = vpop.f32.mrf.mxu0 }
 0x471   : > { %v3800_v25 = vadd.f32 %v3659_v13, %v9249_v54 }
 0x473   : > { %v3864_v51 = vadd.f32 %v9641_v0, %v3800_v25  ;;  %7446 = vmatmul.msk.bf16.gmra.mxu0 %vm517_vm2, %v3521_v14 }
 0x475   : > { %v3924_v50 = vmax.f32 %v3864_v51, 0.0  ;;  %v8343_v51 = vld [vmem:[%s11195_s3 + $0x58] sm:$0xff] }
 0x476   : > { %v4102_v13 = vld [vmem:[#allocation2 + $0x21] ss:$2 sm:$0xff]  ;;  %4394 = vmatpush.bf16.msrb.mxu1 %v8343_v51  ;;  %v3476_v51 = vld [vmem:[%s8645_s24 + $0xf2] sm:$0xff] }
 0x477   : > { %3984 = vst [vmem:[#allocation2 + $0x30] sm:$0xff] %v3924_v50  ;;  %v8351_v50 = vld [vmem:[%s11195_s3 + $0x98] sm:$0xff] }
 0x478   : > { %v3661_v5 = vpop.f32.mrf.mxu0  ;;  %4603 = vmatpush.bf16.msra.mxu3 %v8351_v50  ;;  %v3477_v50 = vld [vmem:[%s8645_s24 + $0xfa] sm:$0xff] }
 0x479   : > { %v3801_v39 = vadd.f32 %v3661_v5, %v9258_v16  ;;  %v4042_v16 = vld [vmem:[#allocation2 + $0x20] ss:$2 sm:$0xff]  ;;  %v9714_v5 = vpop.f32.mrf.mxu3 }
 0x47b   : > { %v3865_v2 = vadd.f32 %v9641_v0, %v3801_v39 }
 0x47d   : > { %v3925_v54 = vmax.f32 %v3865_v2, 0.0 }
 0x47f   : > { %3985 = vst [vmem:[#allocation2 + $0x38] sm:$0xff] %v3925_v54  ;;  %v9716_v54 = vpop.f32.mrf.mxu2 }
 0x480   : > { %v3664_v32 = vpop.f32.mrf.mxu0 }
 0x481   : > { %v3802_v8 = vadd.f32 %v3664_v32, %v9265_v17  ;;  %v4159_v17 = vmax.f32 %v4042_v16, %v4102_v13  ;;  %v9725_v16 = vpop.f32.mrf.mxu1 }
 0x483   : > { %v3866_v14 = vadd.f32 %v9641_v0, %v3802_v8  ;;  %7447 = vmatmul.msk.bf16.gmra.mxu0 %vm517_vm2, %v3522_v33  ;;  %v8342_v8 = vld [vmem:[%s11195_s3 + $0x50] sm:$0xff] }
 0x484   : > { %4395 = vmatpush.bf16.msrb.mxu1 %v8342_v8 }
 0x485   : > { %v3926_v25 = vmax.f32 %v3866_v14, 0.0  ;;  %v8350_v14 = vld [vmem:[%s11195_s3 + $0x90] sm:$0xff] }
 0x486   : > { %v4044_v39 = vld [vmem:[#allocation2 + $0x30] ss:$2 sm:$0xff]  ;;  %v4104_v2 = vld [vmem:[#allocation2 + $0x31] ss:$2 sm:$0xff]  ;;  %4604 = vmatpush.bf16.msra.mxu3 %v8350_v14 }
 0x487   : > { %v4160_v6 = vmax.f32 %v4044_v39, %v4104_v2  ;;  %3986 = vst [vmem:[#allocation2 + $0x40] sm:$0xff] %v3926_v25  ;;  %v8341_v39 = vld [vmem:[%s11195_s3 + $0x48] sm:$0xff]  ;;  %v9746_v8 = vpop.f32.mrf.mxu2 }
 0x488   : > { %v3666_v47 = vpop.f32.mrf.mxu0  ;;  %v8349_v2 = vld [vmem:[%s11195_s3 + $0x88] sm:$0xff]  ;;  %4396 = vmatpush.bf16.msrb.mxu1 %v8341_v39 }
 0x489   : > { %v4223_v33 = vmax.f32 %v4159_v17, %v4160_v6  ;;  %v3803_v32 = vadd.f32 %v3666_v47, %v9274_v53  ;;  %v3523_v17 = vpack.c.bf16 %v3477_v50, %v3476_v51  ;;  %v9737_v6 = vpop.f32.mrf.mxu3  ;;  %v3478_v39 = vld [vmem:[%s8645_s24 + $0x102] sm:$0xff] }
 0x48a   : > { %4605 = vmatpush.bf16.msra.mxu3 %v8349_v2  ;;  %v3479_v2 = vld [vmem:[%s8645_s24 + $0x10a] sm:$0xff] }
 0x48b   : > { %4224 = vst [vmem:[#allocation4 + $0x8] sm:$0xff] %v4223_v33  ;;  %v3867_v13 = vadd.f32 %v9641_v0, %v3803_v32  ;;  %v4285_v25 = vpack.c.bf16 %v4223_v33, %v9672_v52  ;;  %v8340_v33 = vld [vmem:[%s11195_s3 + $0x40] sm:$0xff] }
 0x48c   : > { %v8348_v32 = vld [vmem:[%s11195_s3 + $0x80] sm:$0xff]  ;;  %4397 = vmatpush.bf16.msrb.mxu1 %v8340_v33 }
 0x48d   : > { %v3927_v53 = vmax.f32 %v3867_v13, 0.0  ;;  %4485 = vmatmul.bf16.vlgmr.msra.gmra.mxu2 %v4285_v25  ;;  %v9750_v13 = vpop.f32.mrf.mxu1 }
 0x48e   : > { %4606 = vmatpush.bf16.msra.mxu3 %v8348_v32 }
 0x48f   : > { %3987 = vst [vmem:[#allocation2 + $0x48] sm:$0xff] %v3927_v53 }
 0x490   : > { %v3669_v52 = vpop.f32.mrf.mxu0 }
 0x491   : > { %v3804_v47 = vadd.f32 %v3669_v52, %v9281_v45  ;;  %v9753_v50 = vpop.f32.mrf.mxu3  ;;  %v9758_v52 = vpop.f32.mrf.mxu2 }
 0x493   : > { %v3868_v14 = vadd.f32 %v9641_v0, %v3804_v47  ;;  %7448 = vmatmul.msk.bf16.gmra.mxu0 %vm517_vm2, %v3523_v17  ;;  %v3524_v17 = vpack.c.bf16 %v3479_v2, %v3478_v39 }
 0x495   : > { %v3928_v45 = vmax.f32 %v3868_v14, 0.0  ;;  %v9760_v38 = vpop.f32.mrf.mxu1 }
 0x497   : > { %3988 = vst [vmem:[#allocation2 + $0x50] sm:$0xff] %v3928_v45  ;;  %v4046_v45 = vld [vmem:[#allocation2 + $0x40] ss:$2 sm:$0xff] }
 0x498   : > { %v3671_v25 = vpop.f32.mrf.mxu0 }
 0x499   : > { %v3805_v51 = vadd.f32 %v3671_v25, %v9290_v19  ;;  %v9765_v19 = vpop.f32.mrf.mxu3  ;;  %v4106_v25 = vld [vmem:[#allocation2 + $0x41] ss:$2 sm:$0xff]  ;;  %v9767_v23 = vpop.f32.mrf.mxu2 }
 0x49a   : > { %11259 = vst [vmem:[#allocation26_spill] sm:$0xff] %v9767_v23 }
 0x49b   : > { %v3869_v53 = vadd.f32 %v9641_v0, %v3805_v51 }
 0x49d   : > { %v3929_v47 = vmax.f32 %v3869_v53, 0.0  ;;  %v9769_v2 = vpop.f32.mrf.mxu1 }
 0x49f   : > { %3989 = vst [vmem:[#allocation2 + $0x58] sm:$0xff] %v3929_v47  ;;  %v4161_v47 = vmax.f32 %v4046_v45, %v4106_v25  ;;  %v4307_v25 = vld [vmem:[#allocation4 + $0x1] sm:$0xff] }
 0x4a0   : > { %v3674_v33 = vpop.f32.mrf.mxu0 }
 0x4a1   : > { %v3806_v32 = vadd.f32 %v3674_v33, %v9297_v9  ;;  %v9777_v45 = vpop.f32.mrf.mxu2 }
 0x4a2   : > { %11261 = vst [vmem:[#allocation28_spill] sm:$0xff] %v9777_v45 }
 0x4a3   : > { %v3870_v14 = vadd.f32 %v9641_v0, %v3806_v32  ;;  %7449 = vmatmul.msk.bf16.gmra.mxu0 %vm517_vm2, %v3524_v17 }
 0x4a5   : > { %v3930_v51 = vmax.f32 %v3870_v14, 0.0  ;;  %v9775_v14 = vpop.f32.mrf.mxu3 }
 0x4a6   : > { %v4048_v63 = vld [vmem:[#allocation2 + $0x50] ss:$2 sm:$0xff]  ;;  %v4108_v53 = vld [vmem:[#allocation2 + $0x51] ss:$2 sm:$0xff]  ;;  %11260 = vst [vmem:[#allocation27_spill] sm:$0xff] %v9775_v14 }
 0x4a7   : > { %v4162_v39 = vmax.f32 %v4048_v63, %v4108_v53  ;;  %3990 = vst [vmem:[#allocation2 + $0x60] sm:$0xff] %v3930_v51  ;;  %v9780_v51 = vpop.f32.mrf.mxu1  ;;  %v3483_v14 = vld [vmem:[%s8645_s24 + $0x12a] sm:$0xff] }
 0x4a8   : > { %v3676_v9 = vpop.f32.mrf.mxu0 }
 0x4a9   : > { %v4227_v33 = vmax.f32 %v4161_v47, %v4162_v39  ;;  %v3807_v17 = vadd.f32 %v3676_v9, %v9306_v56  ;;  %v4516_v56 = vld [vmem:[#allocation4 + $0x2] sm:$0xff] }
 0x4ab   : > { %4228 = vst [vmem:[#allocation4 + $0x10] sm:$0xff] %v4227_v33  ;;  %v3871_v32 = vadd.f32 %v9641_v0, %v3807_v17  ;;  %v9787_v17 = vpop.f32.mrf.mxu2 }
 0x4ac   : > { %11262 = vst [vmem:[#allocation29_spill] sm:$0xff] %v9787_v17  ;;  %v3485_v17 = vld [vmem:[%s8645_s24 + $0x13a] sm:$0xff] }
 0x4ad   : > { %v3931_v24 = vmax.f32 %v3871_v32, 0.0  ;;  %v9784_v15 = vpop.f32.mrf.mxu3 }
 0x4af   : > { %3991 = vst [vmem:[#allocation2 + $0x68] sm:$0xff] %v3931_v24  ;;  %v9790_v45 = vpop.f32.mrf.mxu1 }
 0x4b0   : > { %v3679_v23 = vpop.f32.mrf.mxu0 }
 0x4b1   : > { %v3808_v63 = vadd.f32 %v3679_v23, %v9313_v36 }
 0x4b2   : > { %v4308_v53 = vld [vmem:[#allocation4 + $0x9] sm:$0xff] }
 0x4b3   : > { %v4517_v47 = vld [vmem:[#allocation4 + $0xa] sm:$0xff]  ;;  %v3872_v39 = vadd.f32 %v9641_v0, %v3808_v63  ;;  %7450 = vmatmul.msk.bf16.gmra.mxu0 %vm517_vm2, %v3525_v37  ;;  %v4319_v9 = vpack.c.bf16 %v4308_v53, %v4307_v25  ;;  %v3482_v63 = vld [vmem:[%s8645_s24 + $0x122] sm:$0xff] }
 0x4b4   : > { %v4528_v24 = vpack.c.bf16 %v4517_v47, %v4516_v56  ;;  %v3526_v25 = vpack.c.bf16 %v3483_v14, %v3482_v63 }
 0x4b5   : > { %v3932_v26 = vmax.f32 %v3872_v39, 0.0  ;;  %4398 = vmatmul.bf16.vlgmr.msrb.gmra.mxu1 %v4319_v9  ;;  %v9795_v47 = vpop.f32.mrf.mxu3 }
 0x4b6   : > { %4607 = vmatmul.bf16.vlgmr.msra.gmra.mxu3 %v4528_v24  ;;  %11263 = vst [vmem:[#allocation30_spill] sm:$0xff] %v9795_v47  ;;  %v4110_v9 = vld [vmem:[#allocation2 + $0x61] ss:$2 sm:$0xff]  ;;  %v9799_v24 = vpop.f32.mrf.mxu2 }
 0x4b7   : > { %3992 = vst [vmem:[#allocation2 + $0x70] sm:$0xff] %v3932_v26 }
 0x4b8   : > { %v3681_v36 = vpop.f32.mrf.mxu0  ;;  %11264 = vst [vmem:[#allocation31_spill] sm:$0xff] %v9799_v24  ;;  %v3484_v24 = vld [vmem:[%s8645_s24 + $0x132] sm:$0xff] }
 0x4b9   : > { %v3809_v23 = vadd.f32 %v3681_v36, %v9322_v1  ;;  %v4050_v1 = vld [vmem:[#allocation2 + $0x60] ss:$2 sm:$0xff]  ;;  %v9801_v36 = vpop.f32.mrf.mxu1 }
 0x4ba   : > { %11265 = vst [vmem:[#allocation32_spill] sm:$0xff] %v9801_v36 }
 0x4bb   : > { %v3873_v32 = vadd.f32 %v9641_v0, %v3809_v23 }
 0x4bd   : > { %v3933_v37 = vmax.f32 %v3873_v32, 0.0  ;;  %v4163_v32 = vmax.f32 %v4050_v1, %v4110_v9  ;;  %v9805_v47 = vpop.f32.mrf.mxu3  ;;  %v3527_v1 = vpack.c.bf16 %v3485_v17, %v3484_v24 }
 0x4be   : > { %v9809_v36 = vpop.f32.mrf.mxu2 }
 0x4bf   : > { %3993 = vst [vmem:[#allocation2 + $0x78] sm:$0xff] %v3933_v37 }
 0x4c0   : > { %v3684_v53 = vpop.f32.mrf.mxu0 }
 0x4c1   : > { %v3810_v56 = vadd.f32 %v3684_v53, %v9329_v4  ;;  %v9811_v9 = vpop.f32.mrf.mxu1 }
 0x4c3   : > { %v3874_v39 = vadd.f32 %v9641_v0, %v3810_v56  ;;  %7451 = vmatmul.msk.bf16.gmra.mxu0 %vm517_vm2, %v3526_v25 }
 0x4c5   : > { %v3934_v26 = vmax.f32 %v3874_v39, 0.0  ;;  %v9822_v17 = vpop.f32.mrf.mxu3 }
 0x4c6   : > { %v4052_v23 = vld [vmem:[#allocation2 + $0x70] ss:$2 sm:$0xff]  ;;  %v4112_v14 = vld [vmem:[#allocation2 + $0x71] ss:$2 sm:$0xff] }
 0x4c7   : > { %v4164_v63 = vmax.f32 %v4052_v23, %v4112_v14  ;;  %3994 = vst [vmem:[#allocation2 + $0x80] sm:$0xff] %v3934_v26  ;;  %v9814_v23 = vld [vmem:[#allocation4 + $0x10] sm:$0xff] }
 0x4c8   : > { %v3686_v4 = vpop.f32.mrf.mxu0  ;;  %11266 = vst [vmem:[#allocation33_spill] sm:$0xff] %v9814_v23 }
 0x4c9   : > { %v3811_v37 = vadd.f32 %v3686_v4, %v9338_v43  ;;  %v4231_v53 = vmax.f32 %v4163_v32, %v4164_v63  ;;  %v9824_v4 = vpop.f32.mrf.mxu2 }
 0x4ca   : > { %11268 = vst [vmem:[#allocation35_spill] sm:$0xff] %v9824_v4 }
 0x4cb   : > { %v3875_v25 = vadd.f32 %v9641_v0, %v3811_v37  ;;  %4232 = vst [vmem:[#allocation4 + $0x18] sm:$0xff] %v4231_v53  ;;  %v4286_v56 = vpack.c.bf16 %v4231_v53, %v4227_v33  ;;  %v9827_v37 = vpop.f32.mrf.mxu1 }
 0x4cd   : > { %v3935_v39 = vmax.f32 %v3875_v25, 0.0  ;;  %4490 = vmatmul.bf16.gmra.mxu2 %v4286_v56  ;;  %v3486_v25 = vld [vmem:[%s8645_s24 + $0x142] sm:$0xff]  ;;  %v3487_v56 = vld [vmem:[%s8645_s24 + $0x14a] sm:$0xff] }
 0x4cf   : > { %3995 = vst [vmem:[#allocation2 + $0x88] sm:$0xff] %v3935_v39 }
 0x4d0   : > { %v3689_v26 = vpop.f32.mrf.mxu0 }
 0x4d1   : > { %v3812_v43 = vadd.f32 %v3689_v26, %v9345_v35  ;;  %v9832_v26 = vpop.f32.mrf.mxu3 }
 0x4d2   : > { %v9816_v33 = vld [vmem:[#allocation4 + $0x18] sm:$0xff]  ;;  %11269 = vst [vmem:[#allocation36_spill] sm:$0xff] %v9832_v26 }
 0x4d3   : > { %11267 = vst [vmem:[#allocation34_spill] sm:$0xff] %v9816_v33  ;;  %v3876_v14 = vadd.f32 %v9641_v0, %v3812_v43  ;;  %7452 = vmatmul.msk.bf16.gmra.mxu0 %vm517_vm2, %v3527_v1  ;;  %v3528_v1 = vpack.c.bf16 %v3487_v56, %v3486_v25 }
 0x4d5   : > { %v3936_v63 = vmax.f32 %v3876_v14, 0.0 }
 0x4d7   : > { %3996 = vst [vmem:[#allocation2 + $0x90] sm:$0xff] %v3936_v63  ;;  %v9835_v63 = vpop.f32.mrf.mxu2 }
 0x4d8   : > { %v3691_v24 = vpop.f32.mrf.mxu0  ;;  %11270 = vst [vmem:[#allocation37_spill] sm:$0xff] %v9835_v63  ;;  %v3488_v63 = vld [vmem:[%s8645_s24 + $0x152] sm:$0xff] }
 0x4d9   : > { %v3813_v35 = vadd.f32 %v3691_v24, %v9354_v3  ;;  %v9839_v3 = vpop.f32.mrf.mxu1  ;;  %v4054_v24 = vld [vmem:[#allocation2 + $0x80] ss:$2 sm:$0xff] }
 0x4da   : > { %11271 = vst [vmem:[#allocation38_spill] sm:$0xff] %v9839_v3  ;;  %v3489_v3 = vld [vmem:[%s8645_s24 + $0x15a] sm:$0xff] }
 0x4db   : > { %v3877_v53 = vadd.f32 %v9641_v0, %v3813_v35  ;;  %v4114_v35 = vld [vmem:[#allocation2 + $0x81] ss:$2 sm:$0xff] }
 0x4dc   : > { %v4165_v56 = vmax.f32 %v4054_v24, %v4114_v35  ;;  %v3529_v24 = vpack.c.bf16 %v3489_v3, %v3488_v63 }
 0x4dd   : > { %v3937_v39 = vmax.f32 %v3877_v53, 0.0 }
 0x4df   : > { %3997 = vst [vmem:[#allocation2 + $0x98] sm:$0xff] %v3937_v39  ;;  %v9850_v26 = vpop.f32.mrf.mxu2 }
 0x4e0   : > { %v3694_v43 = vpop.f32.mrf.mxu0  ;;  %11272 = vst [vmem:[#allocation39_spill] sm:$0xff] %v9850_v26 }
 0x4e1   : > { %v3814_v14 = vadd.f32 %v3694_v43, %v9361_v7  ;;  %v9852_v4 = vpop.f32.mrf.mxu1 }
 0x4e2   : > { %11273 = vst [vmem:[#allocation40_spill] sm:$0xff] %v9852_v4 }
 0x4e3   : > { %v3878_v32 = vadd.f32 %v9641_v0, %v3814_v14  ;;  %7453 = vmatmul.msk.bf16.gmra.mxu0 %vm517_vm2, %v3528_v1  ;;  %v9844_v14 = vpop.f32.mrf.mxu3 }
 0x4e5   : > { %v3938_v53 = vmax.f32 %v3878_v32, 0.0 }
 0x4e6   : > { %v4056_v39 = vld [vmem:[#allocation2 + $0x90] ss:$2 sm:$0xff]  ;;  %v4116_v25 = vld [vmem:[#allocation2 + $0x91] ss:$2 sm:$0xff] }
 0x4e7   : > { %v4166_v23 = vmax.f32 %v4056_v39, %v4116_v25  ;;  %3998 = vst [vmem:[#allocation2 + $0xa0] sm:$0xff] %v3938_v53  ;;  %v9859_v53 = vld [vmem:[#allocation4 + $0x12] sm:$0xff] }
 0x4e8   : > { %v3696_v33 = vpop.f32.mrf.mxu0  ;;  %11276 = vst [vmem:[#allocation43_spill] sm:$0xff] %v9859_v53 }
 0x4e9   : > { %v3815_v7 = vadd.f32 %v3696_v33, %v9370_v30  ;;  %v9842_v43 = vmax.f32 %v4165_v56, %v4166_v23  ;;  %v9855_v23 = vld [vmem:[#allocation4 + $0x11] sm:$0xff] }
 0x4ea   : > { %11274 = vst [vmem:[#allocation41_spill] sm:$0xff] %v9855_v23 }
 0x4eb   : > { %v3879_v1 = vadd.f32 %v9641_v0, %v3815_v7  ;;  %4236 = vst [vmem:[#allocation4 + $0x20] sm:$0xff] %v9842_v43  ;;  %v9869_v3 = vpop.f32.mrf.mxu3  ;;  %v9871_v7 = vpop.f32.mrf.mxu2 }
 0x4ec   : > { %11278 = vst [vmem:[#allocation45_spill] sm:$0xff] %v9871_v7 }
 0x4ed   : > { %v3939_v32 = vmax.f32 %v3879_v1, 0.0  ;;  %v9873_v1 = vpop.f32.mrf.mxu1 }
 0x4ef   : > { %3999 = vst [vmem:[#allocation2 + $0xa8] sm:$0xff] %v3939_v32 }
 0x4f0   : > { %v3699_v35 = vpop.f32.mrf.mxu0 }
 0x4f1   : > { %v3816_v30 = vadd.f32 %v3699_v35, %v9377_v40 }
 0x4f2   : > { %v9857_v33 = vld [vmem:[#allocation4 + $0x19] sm:$0xff] }
 0x4f3   : > { %11275 = vst [vmem:[#allocation42_spill] sm:$0xff] %v9857_v33  ;;  %v9861_v39 = vld [vmem:[#allocation4 + $0x1a] sm:$0xff]  ;;  %v3880_v25 = vadd.f32 %v9641_v0, %v3816_v30  ;;  %7454 = vmatmul.msk.bf16.gmra.mxu0 %vm517_vm2, %v3529_v24  ;;  %v4320_v63 = vpack.c.bf16 %v9857_v33, %v9855_v23  ;;  %v3490_v30 = vld [vmem:[%s8645_s24 + $0x162] sm:$0xff]  ;;  %v3491_v23 = vld [vmem:[%s8645_s24 + $0x16a] sm:$0xff]  ;;  %v9879_v4 = vpop.f32.mrf.mxu3 }
 0x4f4   : > { %11277 = vst [vmem:[#allocation44_spill] sm:$0xff] %v9861_v39  ;;  %v4529_v40 = vpack.c.bf16 %v9861_v39, %v9859_v53  ;;  %v3530_v53 = vpack.c.bf16 %v3491_v23, %v3490_v30 }
 0x4f5   : > { %v3940_v56 = vmax.f32 %v3880_v25, 0.0  ;;  %4403 = vmatmul.bf16.gmra.mxu1 %v4320_v63  ;;  %11279 = vst [vmem:[#allocation46_spill] sm:$0xff] %v9879_v4  ;;  %v9881_v63 = vpop.f32.mrf.mxu2 }
 0x4f6   : > { %4612 = vmatmul.bf16.gmra.mxu3 %v4529_v40  ;;  %11280 = vst [vmem:[#allocation47_spill] sm:$0xff] %v9881_v63 }
 0x4f7   : > { %4000 = vst [vmem:[#allocation2 + $0xb0] sm:$0xff] %v3940_v56  ;;  %v9884_v56 = vpop.f32.mrf.mxu1 }
 0x4f8   : > { %v3701_v32 = vpop.f32.mrf.mxu0  ;;  %11281 = vst [vmem:[#allocation48_spill] sm:$0xff] %v9884_v56 }
 0x4f9   : > { %v3817_v35 = vadd.f32 %v3701_v32, %v9386_v57  ;;  %v4058_v57 = vld [vmem:[#allocation2 + $0xa0] ss:$2 sm:$0xff]  ;;  %v4118_v32 = vld [vmem:[#allocation2 + $0xa1] ss:$2 sm:$0xff] }
 0x4fb   : > { %v3881_v24 = vadd.f32 %v9641_v0, %v3817_v35  ;;  %v9888_v30 = vpop.f32.mrf.mxu3 }
 0x4fd   : > { %v3941_v26 = vmax.f32 %v3881_v24, 0.0 }
 0x4ff   : > { %4001 = vst [vmem:[#allocation2 + $0xb8] sm:$0xff] %v3941_v26  ;;  %v4167_v26 = vmax.f32 %v4058_v57, %v4118_v32  ;;  %v9899_v56 = vpop.f32.mrf.mxu1  ;;  %v3493_v57 = vld [vmem:[%s8645_s24 + $0x17a] sm:$0xff] }
 0x500   : > { %v3704_v25 = vpop.f32.mrf.mxu0 }
 0x501   : > { %v3818_v40 = vadd.f32 %v3704_v25, %v9392_v12 }
 0x503   : > { %v3882_v7 = vadd.f32 %v9641_v0, %v3818_v40  ;;  %7455 = vmatmul.msk.bf16.gmra.mxu0 %vm517_vm2, %v3530_v53  ;;  %v9893_v40 = vpop.f32.mrf.mxu2 }
 0x504   : > { %11283 = vst [vmem:[#allocation50_spill] sm:$0xff] %v9893_v40 }
 0x505   : > { %v3942_v35 = vmax.f32 %v3882_v7, 0.0 }
 0x506   : > { %v4060_v24 = vld [vmem:[#allocation2 + $0xb0] ss:$2 sm:$0xff]  ;;  %v4120_v4 = vld [vmem:[#allocation2 + $0xb1] ss:$2 sm:$0xff] }
 0x507   : > { %v4168_v23 = vmax.f32 %v4060_v24, %v4120_v4  ;;  %4002 = vst [vmem:[#allocation2 + $0xc0] sm:$0xff] %v3942_v35  ;;  %v3492_v4 = vld [vmem:[%s8645_s24 + $0x172] sm:$0xff]  ;;  %v9904_v24 = vpop.f32.mrf.mxu3 }
 0x508   : > { %v3706_v63 = vpop.f32.mrf.mxu0  ;;  %v3531_v35 = vpack.c.bf16 %v3493_v57, %v3492_v4  ;;  %11284 = vst [vmem:[#allocation51_spill] sm:$0xff] %v9904_v24  ;;  %v9918_v4 = vpop.f32.mrf.mxu1  ;;  %v3495_v24 = vld [vmem:[%s8645_s24 + $0x18a] sm:$0xff] }
 0x509   : > { %v3819_v12 = vadd.f32 %v3706_v63, %v9400_v27  ;;  %v9891_v25 = vmax.f32 %v4167_v26, %v4168_v23  ;;  %11287 = vst [vmem:[#allocation54_spill] sm:$0xff] %v9918_v4 }
 0x50b   : > { %11282 = vst [vmem:[#allocation49_spill] sm:$0xff] %v9891_v25  ;;  %v3883_v53 = vadd.f32 %v9641_v0, %v3819_v12  ;;  %v4287_v7 = vpack.c.bf16 %v9891_v25, %v9842_v43 }
 0x50c   : > { %4240 = vst [vmem:[#allocation4 + $0x28] sm:$0xff] %v9891_v25  ;;  %v3498_v25 = vld [vmem:[%s8645_s24 + $0x1a2] sm:$0xff] }
 0x50d   : > { %v3943_v32 = vmax.f32 %v3883_v53, 0.0  ;;  %4495 = vmatmul.bf16.gmra.mxu2 %v4287_v7  ;;  %v9916_v7 = vpop.f32.mrf.mxu2 }
 0x50e   : > { %11286 = vst [vmem:[#allocation53_spill] sm:$0xff] %v9916_v7 }
 0x50f   : > { %4003 = vst [vmem:[#allocation2 + $0xc8] sm:$0xff] %v3943_v32 }
 0x510   : > { %v3709_v27 = vpop.f32.mrf.mxu0  ;;  %v9928_v39 = vpop.f32.mrf.mxu1 }
 0x511   : > { %v3820_v63 = vadd.f32 %v3709_v27, %v9406_v55 }
 0x513   : > { %v9906_v26 = vld [vmem:[#allocation4 + $0x21] sm:$0xff]  ;;  %v3884_v43 = vadd.f32 %v9641_v0, %v3820_v63  ;;  %7456 = vmatmul.msk.bf16.gmra.mxu0 %vm517_vm2, %v3531_v35  ;;  %v9922_v63 = vpop.f32.mrf.mxu3 }
 0x514   : > { %11285 = vst [vmem:[#allocation52_spill] sm:$0xff] %v9906_v26  ;;  %v9908_v23 = vld [vmem:[#allocation4 + $0x22] sm:$0xff] }
 0x515   : > { %v3944_v55 = vmax.f32 %v3884_v43, 0.0  ;;  %11288 = vst [vmem:[#allocation55_spill] sm:$0xff] %v9922_v63  ;;  %v3494_v35 = vld [vmem:[%s8645_s24 + $0x182] sm:$0xff]  ;;  %v9926_v12 = vpop.f32.mrf.mxu2 }
 0x516   : > { %11289 = vst [vmem:[#allocation56_spill] sm:$0xff] %v9926_v12  ;;  %v3532_v53 = vpack.c.bf16 %v3495_v24, %v3494_v35  ;;  %v3496_v35 = vld [vmem:[%s8645_s24 + $0x192] sm:$0xff] }
 0x517   : > { %4004 = vst [vmem:[#allocation2 + $0xd0] sm:$0xff] %v3944_v55  ;;  %v4062_v55 = vld [vmem:[#allocation2 + $0xc0] ss:$2 sm:$0xff] }
 0x518   : > { %v3711_v57 = vpop.f32.mrf.mxu0 }
 0x519   : > { %v3821_v32 = vadd.f32 %v3711_v57, %v9414_v11  ;;  %v4122_v11 = vld [vmem:[#allocation2 + $0xc1] ss:$2 sm:$0xff] }
 0x51a   : > { %v4169_v63 = vmax.f32 %v4062_v55, %v4122_v11 }
 0x51b   : > { %v3885_v27 = vadd.f32 %v9641_v0, %v3821_v32  ;;  %v9931_v57 = vpop.f32.mrf.mxu3 }
 0x51c   : > { %11290 = vst [vmem:[#allocation57_spill] sm:$0xff] %v9931_v57 }
 0x51d   : > { %v3945_v40 = vmax.f32 %v3885_v27, 0.0  ;;  %v9937_v24 = vpop.f32.mrf.mxu2 }
 0x51e   : > { %11291 = vst [vmem:[#allocation58_spill] sm:$0xff] %v9937_v24 }
 0x51f   : > { %4005 = vst [vmem:[#allocation2 + $0xd8] sm:$0xff] %v3945_v40  ;;  %v9935_v40 = vpop.f32.mrf.mxu1 }
 0x520   : > { %v3714_v43 = vpop.f32.mrf.mxu0 }
 0x521   : > { %v3497_v43 = vld [vmem:[%s8645_s24 + $0x19a] sm:$0xff] }
 0x522   : > { %v3533_v12 = vpack.c.bf16 %v3497_v43, %v3496_v35 }
 0x523   : > { %7457 = vmatmul.msk.bf16.gmra.mxu0 %vm517_vm2, %v3532_v53  ;;  %v9944_v57 = vpop.f32.mrf.mxu3 }
 0x524   : > { %11292 = vst [vmem:[#allocation59_spill] sm:$0xff] %v9944_v57  ;;  %v3499_v57 = vld [vmem:[%s8645_s24 + $0x1aa] sm:$0xff] }
 0x525   : > { %v4486_v55 = vpop.f32.mrf.mxu2  ;;  %v3534_v24 = vpack.c.bf16 %v3499_v57, %v3498_v25 }
 0x526   : > { %v4064_v32 = vld [vmem:[#allocation2 + $0xd0] ss:$2 sm:$0xff]  ;;  %v4124_v33 = vld [vmem:[#allocation2 + $0xd1] ss:$2 sm:$0xff] }
 0x527   : > { %v4170_v7 = vmax.f32 %v4064_v32, %v4124_v33 }
 0x528   : > { %v3716_v27 = vpop.f32.mrf.mxu0 }
 0x529   : > { %v9933_v4 = vmax.f32 %v4169_v63, %v4170_v7 }
 0x52b   : > { %4244 = vst [vmem:[#allocation4 + $0x30] sm:$0xff] %v9933_v4 }
 0x530   : > { %v3719_v33 = vpop.f32.mrf.mxu0 }
 0x532   : > { %v4399_v7 = vpop.f32.mrf.mxu1  ;;  %v9946_v63 = vld [vmem:[#allocation4 + $0x29] sm:$0xff] }
 0x533   : > { %v9948_v11 = vld [vmem:[#allocation4 + $0x2a] sm:$0xff]  ;;  %v4487_v32 = vadd.f32 %v4486_v55, %v4399_v7  ;;  %7458 = vmatmul.msk.bf16.gmra.mxu0 %vm517_vm2, %v3533_v12  ;;  %v4321_v27 = vpack.c.bf16 %v9946_v63, %v9906_v26 }
 0x534   : > { %v4530_v35 = vpack.c.bf16 %v9948_v11, %v9908_v23 }
 0x535   : > { %4408 = vmatmul.bf16.gmra.mxu1 %v4321_v27 }
 0x536   : > { %4617 = vmatmul.bf16.gmra.mxu3 %v4530_v35 }
 0x538   : > { %v3721_v43 = vpop.f32.mrf.mxu0 }
 0x539   : > { %v4608_v33 = vpop.f32.mrf.mxu3 }
 0x53a   : > { %v9955_v53 = vadd.f32 %v4608_v33, %v4487_v32  ;;  %v3500_v32 = vld [vmem:[%s8645_s24 + $0x1b2] sm:$0xff]  ;;  %v3501_v33 = vld [vmem:[%s8645_s24 + $0x1ba] sm:$0xff] }
 0x53b   : > { %v3535_v25 = vpack.c.bf16 %v3501_v33, %v3500_v32 }
 0x53c   : > { %11293 = vst [vmem:[#allocation60_spill] sm:$0xff] %v9955_v53 }
 0x540   : > { %v3724_v55 = vpop.f32.mrf.mxu0 }
 0x541   : > { %v3826_v12 = vadd.f32 %v3724_v55, %v9445_v10 }
 0x543   : > { %v3890_v7 = vadd.f32 %v9641_v0, %v3826_v12  ;;  %7459 = vmatmul.msk.bf16.gmra.mxu0 %vm517_vm2, %v3534_v24 }
 0x545   : > { %v3950_v26 = vmax.f32 %v3890_v7, 0.0  ;;  %v3502_v7 = vld [vmem:[%s8645_s24 + $0x1c2] sm:$0xff] }
 0x547   : > { %4010 = vst [vmem:[#allocation2 + $0x100] sm:$0xff] %v3950_v26 }
 0x548   : > { %v3726_v27 = vpop.f32.mrf.mxu0 }
 0x549   : > { %v3827_v35 = vadd.f32 %v3726_v27, %v9456_v60  ;;  %v3503_v27 = vld [vmem:[%s8645_s24 + $0x1ca] sm:$0xff] }
 0x54b   : > { %v3891_v43 = vadd.f32 %v9641_v0, %v3827_v35 }
 0x54d   : > { %v3951_v53 = vmax.f32 %v3891_v43, 0.0  ;;  %v3536_v43 = vpack.c.bf16 %v3503_v27, %v3502_v7  ;;  %v9984_v7 = vpop.f32.mrf.mxu1 }
 0x54f   : > { %4011 = vst [vmem:[#allocation2 + $0x108] sm:$0xff] %v3951_v53  ;;  %v2619_v53 = vadd.f32 %v9500_v41, %v9448_v59 }
 0x550   : > { %v3729_v57 = vpop.f32.mrf.mxu0 }
 0x551   : > { %v3828_v10 = vadd.f32 %v3729_v57, %v9465_v49  ;;  %v3023_v33 = vadd.f32 %v9482_v44, %v2619_v53  ;;  %v9982_v44 = vpop.f32.mrf.mxu2  ;;  %v3504_v53 = vld [vmem:[%s8645_s24 + $0x1d2] sm:$0xff] }
 0x553   : > { %v3892_v55 = vadd.f32 %v9641_v0, %v3828_v10  ;;  %7460 = vmatmul.msk.bf16.gmra.mxu0 %vm517_vm2, %v3535_v25  ;;  %v3427_v59 = vadd.f32 %v9486_v58, %v3023_v33  ;;  %v3505_v58 = vld [vmem:[%s8645_s24 + $0x1da] sm:$0xff]  ;;  %v9994_v33 = vpop.f32.mrf.mxu3 }
 0x555   : > { %v3952_v26 = vmax.f32 %v3892_v55, 0.0 }
 0x556   : > { %v4130_v57 = vld [vmem:[#allocation2 + $0x101] ss:$2 sm:$0xff] }
 0x557   : > { %4012 = vst [vmem:[#allocation2 + $0x110] sm:$0xff] %v3952_v26 }
 0x558   : > { %v3731_v24 = vpop.f32.mrf.mxu0 }
 0x559   : > { %v3829_v60 = vadd.f32 %v3731_v24, %v9476_v21  ;;  %v4070_v21 = vld [vmem:[#allocation2 + $0x100] ss:$2 sm:$0xff] }
 0x55a   : > { %v4173_v41 = vmax.f32 %v4070_v21, %v4130_v57  ;;  %v11294_v21 = vld [vmem:[#allocation22_spill] sm:$0xff] }
 0x55b   : > { %v3893_v12 = vadd.f32 %v9641_v0, %v3829_v60 }
 0x55d   : > { %v3953_v35 = vmax.f32 %v3893_v12, 0.0 }
 0x55f   : > { %4013 = vst [vmem:[#allocation2 + $0x118] sm:$0xff] %v3953_v35 }
 0x560   : > { %v3734_v49 = vpop.f32.mrf.mxu0 }
 0x561   : > { %v3830_v32 = vadd.f32 %v3734_v49, %v9489_v28  ;;  %v2621_v49 = vadd.f32 %v9527_v18, %v9468_v42 }
 0x563   : > { %v3894_v25 = vadd.f32 %v9641_v0, %v3830_v32  ;;  %7461 = vmatmul.msk.bf16.gmra.mxu0 %vm517_vm2, %v3536_v43  ;;  %v3537_v32 = vpack.c.bf16 %v3505_v58, %v3504_v53 }
 0x565   : > { %v3954_v10 = vmax.f32 %v3894_v25, 0.0 }
 0x566   : > { %v4072_v55 = vld [vmem:[#allocation2 + $0x110] ss:$2 sm:$0xff]  ;;  %v4132_v26 = vld [vmem:[#allocation2 + $0x111] ss:$2 sm:$0xff] }
 0x567   : > { %v4174_v24 = vmax.f32 %v4072_v55, %v4132_v26  ;;  %4014 = vst [vmem:[#allocation2 + $0x120] sm:$0xff] %v3954_v10  ;;  %v11295_v10 = vld [vmem:[#allocation23_spill] sm:$0xff]  ;;  %v4491_v26 = vpop.f32.mrf.mxu2 }
 0x568   : > { %v3736_v60 = vpop.f32.mrf.mxu0  ;;  %v3025_v55 = vadd.f32 %v11295_v10, %v2621_v49  ;;  %v3507_v10 = vld [vmem:[%s8645_s24 + $0x1ea] sm:$0xff] }
 0x569   : > { %v3831_v28 = vadd.f32 %v3736_v60, %v3427_v59  ;;  %v9980_v12 = vmax.f32 %v4173_v41, %v4174_v24 }
 0x56b   : > { %v3895_v27 = vadd.f32 %v9641_v0, %v3831_v28  ;;  %4248 = vst [vmem:[#allocation4 + $0x38] sm:$0xff] %v9980_v12  ;;  %v4288_v35 = vpack.c.bf16 %v9980_v12, %v9933_v4 }
 0x56d   : > { %v3955_v43 = vmax.f32 %v3895_v27, 0.0  ;;  %4500 = vmatmul.bf16.gmra.mxu2 %v4288_v35  ;;  %v11296_v35 = vld [vmem:[#allocation24_spill] sm:$0xff] }
 0x56e   : > { %v3429_v53 = vadd.f32 %v11296_v35, %v3025_v55 }
 0x56f   : > { %4015 = vst [vmem:[#allocation2 + $0x128] sm:$0xff] %v3955_v43 }
 0x570   : > { %v3739_v25 = vpop.f32.mrf.mxu0 }
 0x571   : > { %v3832_v57 = vadd.f32 %v3739_v25, %v11294_v21 }
 0x572   : > { %v4404_v59 = vpop.f32.mrf.mxu1  ;;  %v9998_v41 = vld [vmem:[#allocation4 + $0x31] sm:$0xff] }
 0x573   : > { %v10000_v24 = vld [vmem:[#allocation4 + $0x32] sm:$0xff]  ;;  %v3896_v60 = vadd.f32 %v9641_v0, %v3832_v57  ;;  %v4492_v42 = vadd.f32 %v4491_v26, %v4404_v59  ;;  %7462 = vmatmul.msk.bf16.gmra.mxu0 %vm517_vm2, %v3537_v32  ;;  %v3506_v57 = vld [vmem:[%s8645_s24 + $0x1e2] sm:$0xff] }
 0x574   : > { %v11297_v26 = vld [vmem:[#allocation7_spill] sm:$0xff]  ;;  %v3538_v18 = vpack.c.bf16 %v3507_v10, %v3506_v57 }
 0x575   : > { %v3956_v27 = vmax.f32 %v3896_v60, 0.0  ;;  %v2623_v59 = vadd.f32 %v9693_v29, %v11297_v26 }
 0x576   : > { %v4134_v35 = vld [vmem:[#allocation2 + $0x121] ss:$2 sm:$0xff] }
 0x577   : > { %4016 = vst [vmem:[#allocation2 + $0x130] sm:$0xff] %v3956_v27  ;;  %v3027_v55 = vadd.f32 %v9691_v61, %v2623_v59  ;;  %v8379_v61 = vld [vmem:[%s11195_s3 + $0x178] sm:$0xff] }
 0x578   : > { %v3741_v58 = vpop.f32.mrf.mxu0  ;;  %5001 = vmatpush.bf16.msrb.mxu3 %v8379_v61  ;;  %v3508_v59 = vld [vmem:[%s8645_s24 + $0x1f2] sm:$0xff] }
 0x579   : > { %v4613_v43 = vpop.f32.mrf.mxu3  ;;  %v3833_v49 = vadd.f32 %v3741_v58, %v3429_v53  ;;  %v8370_v61 = vld [vmem:[%s11195_s3 + $0x130] sm:$0xff] }
 0x57a   : > { %v10009_v25 = vadd.f32 %v4613_v43, %v4492_v42  ;;  %v4074_v42 = vld [vmem:[#allocation2 + $0x120] ss:$2 sm:$0xff] }
 0x57b   : > { %v3897_v21 = vadd.f32 %v9641_v0, %v3833_v49  ;;  %v3431_v49 = vadd.f32 %v9697_v20, %v3027_v55  ;;  %v4175_v57 = vmax.f32 %v4074_v42, %v4134_v35  ;;  %v11299_v42 = vld [vmem:[#allocation9_spill] sm:$0xff] }
 0x57d   : > { %v3957_v32 = vmax.f32 %v3897_v21, 0.0  ;;  %v11298_v21 = vld [vmem:[#allocation8_spill] sm:$0xff] }
 0x57e   : > { %v2624_v29 = vadd.f32 %v9703_v48, %v11298_v21  ;;  %v10035_v48 = vld [vmem:[%s11194_s2] ss:$0 sm:$0xff] }
 0x57f   : > { %4017 = vst [vmem:[#allocation2 + $0x138] sm:$0xff] %v3957_v32 }
 0x580   : > { %v3744_v28 = vpop.f32.mrf.mxu0  ;;  %v3028_v20 = vadd.f32 %v9701_v31, %v2624_v29  ;;  %v2625_v31 = vadd.f32 %v9725_v16, %v11299_v42 }
 0x581   : > { %v3834_v60 = vadd.f32 %v3744_v28, %v9547_v34 }
 0x582   : > { %v3029_v21 = vadd.f32 %v9716_v54, %v2625_v31  ;;  %v2626_v54 = vadd.f32 %v9750_v13, %v9540_v22  ;;  %v8362_v22 = vld [vmem:[%s11195_s3 + $0xf0] sm:$0xff] }
 0x583   : > { %v3898_v27 = vadd.f32 %v9641_v0, %v3834_v60  ;;  %7463 = vmatmul.msk.bf16.gmra.mxu0 %vm517_vm2, %v3538_v18  ;;  %v8371_v0 = vld [vmem:[%s11195_s3 + $0x138] sm:$0xff] }
 0x584   : > { %4867 = vmatpush.bf16.msrb.mxu2 %v8371_v0  ;;  %v3509_v60 = vld [vmem:[%s8645_s24 + $0x1fa] sm:$0x3f] }
 0x585   : > { %v3958_v53 = vmax.f32 %v3898_v27, 0.0  ;;  %v3432_v27 = vadd.f32 %v9714_v5, %v3028_v20  ;;  %v3539_v35 = vpack.c.bf16 %v3509_v60, %v3508_v59  ;;  %v8363_v0 = vld [vmem:[%s11195_s3 + $0xf8] sm:$0xff]  ;;  %v2627_v60 = vadd.f32 %v9760_v38, %v9550_v46  ;;  %v8369_v46 = vld [vmem:[%s11195_s3 + $0x128] sm:$0xff] }
 0x586   : > { %v4076_v58 = vld [vmem:[#allocation2 + $0x130] ss:$2 sm:$0xff]  ;;  %v4136_v43 = vld [vmem:[#allocation2 + $0x131] ss:$2 sm:$0xff]  ;;  %4733 = vmatpush.bf16.msra.mxu1 %v8363_v0  ;;  %v8377_v38 = vld [vmem:[%s11195_s3 + $0x168] sm:$0xff] }
 0x587   : > { %v4176_v34 = vmax.f32 %v4076_v58, %v4136_v43  ;;  %4018 = vst [vmem:[#allocation2 + $0x140] sm:$0xff] %v3958_v53  ;;  %v3031_v42 = vadd.f32 %v9758_v52, %v2627_v60  ;;  %v8361_v52 = vld [vmem:[%s11195_s3 + $0xe8] sm:$0xff]  ;;  %v10114_v60 = vpop.f32.mrf.mxu3 }
 0x588   : > { %v3746_v18 = vpop.f32.mrf.mxu0  ;;  %4868 = vmatpush.bf16.msrb.mxu2 %v8370_v61  ;;  %v11300_v61 = vld [vmem:[#allocation26_spill] sm:$0xff] }
 0x589   : > { %v3835_v28 = vadd.f32 %v3746_v18, %v3431_v49  ;;  %v10029_v10 = vmax.f32 %v4175_v57, %v4176_v34  ;;  %v3433_v34 = vadd.f32 %v9737_v6, %v3029_v21  ;;  %v8378_v18 = vld [vmem:[%s11195_s3 + $0x170] sm:$0xff]  ;;  %v3030_v6 = vadd.f32 %v9746_v8, %v2626_v54 }
 0x58a   : > { %5002 = vmatpush.bf16.msrb.mxu3 %v8378_v18  ;;  %4734 = vmatpush.bf16.msra.mxu1 %v8362_v22 }
 0x58b   : > { %v3899_v32 = vadd.f32 %v10035_v48, %v3835_v28  ;;  %4252 = vst [vmem:[#allocation4 + $0x40] sm:$0xff] %v10029_v10  ;;  %v4665_v26 = vpack.c.bf16 %v10029_v10, %v9980_v12  ;;  %v3434_v59 = vadd.f32 %v9753_v50, %v3030_v6  ;;  %v2628_v50 = vadd.f32 %v9769_v2, %v9557_v62  ;;  %v10099_v62 = vpop.f32.mrf.mxu2  ;;  %v10101_v2 = vpop.f32.mrf.mxu1  ;;  %v11301_v6 = vld [vmem:[#allocation10_spill] sm:$0xff]  ;;  %v8380_v12 = vld [vmem:[%s11195_s3 + $0x180] sm:$0xff] }
 0x58c   : > { %4869 = vmatpush.bf16.msrb.mxu2 %v8369_v46  ;;  %v11304_v46 = vld [vmem:[#allocation11_spill] sm:$0xff] }
 0x58d   : > { %v3959_v55 = vmax.f32 %v3899_v32, 0.0  ;;  %v3032_v18 = vadd.f32 %v11300_v61, %v2628_v50 }
 0x58e   : > { %5003 = vmatpush.bf16.msrb.mxu3 %v8377_v38  ;;  %4735 = vmatpush.bf16.msra.mxu1 %v8361_v52  ;;  %v2630_v38 = vadd.f32 %v9790_v45, %v11304_v46  ;;  %v8368_v52 = vld [vmem:[%s11195_s3 + $0x120] sm:$0xff]  ;;  %v8367_v45 = vld [vmem:[%s11195_s3 + $0x118] sm:$0xff] }
 0x58f   : > { %4019 = vst [vmem:[#allocation2 + $0x148] sm:$0xff] %v3959_v55 }
 0x590   : > { %v3749_v53 = vpop.f32.mrf.mxu0  ;;  %4870 = vmatpush.bf16.msrb.mxu2 %v8368_v52 }
 0x591   : > { %v3836_v58 = vadd.f32 %v3749_v53, %v3432_v27 }
 0x592   : > { %v10046_v43 = vld [vmem:[#allocation4 + $0x39] sm:$0xff] }
 0x593   : > { %v10048_v49 = vld [vmem:[#allocation4 + $0x3a] sm:$0xff]  ;;  %v3900_v29 = vadd.f32 %v10035_v48, %v3836_v58  ;;  %7464 = vmatmul.msk.bf16.gmra.mxu0 %vm517_vm2, %v3539_v35  ;;  %v10055_v5 = vpack.c.bf16 %v10046_v43, %v9998_v41 }
 0x594   : > { %v10059_v16 = vpack.c.bf16 %v10048_v49, %v10000_v24  ;;  %4871 = vmatpush.bf16.msrb.mxu2 %v8367_v45 }
 0x595   : > { %v3960_v57 = vmax.f32 %v3900_v29, 0.0  ;;  %4413 = vmatmul.bf16.gmra.mxu1 %v10055_v5  ;;  %v3435_v29 = vadd.f32 %v9765_v19, %v3031_v42  ;;  %v11303_v42 = vld [vmem:[#allocation28_spill] sm:$0xff] }
 0x596   : > { %4622 = vmatmul.bf16.gmra.mxu3 %v10059_v16  ;;  %v4078_v35 = vld [vmem:[#allocation2 + $0x140] ss:$2 sm:$0xff]  ;;  %v4138_v53 = vld [vmem:[#allocation2 + $0x141] ss:$2 sm:$0xff] }
 0x597   : > { %4020 = vst [vmem:[#allocation2 + $0x150] sm:$0xff] %v3960_v57  ;;  %v4177_v57 = vmax.f32 %v4078_v35, %v4138_v53  ;;  %v4496_v35 = vpop.f32.mrf.mxu2 }
 0x598   : > { %v3751_v28 = vpop.f32.mrf.mxu0 }
 0x599   : > { %v3837_v20 = vadd.f32 %v3751_v28, %v3433_v34 }
 0x59b   : > { %v3901_v13 = vadd.f32 %v10035_v48, %v3837_v20 }
 0x59d   : > { %v3961_v32 = vmax.f32 %v3901_v13, 0.0  ;;  %v2629_v13 = vadd.f32 %v9780_v51, %v11301_v6  ;;  %v11305_v6 = vld [vmem:[#allocation29_spill] sm:$0xff] }
 0x59f   : > { %4021 = vst [vmem:[#allocation2 + $0x158] sm:$0xff] %v3961_v32  ;;  %v11302_v32 = vld [vmem:[#allocation27_spill] sm:$0xff] }
 0x5a0   : > { %v3754_v55 = vpop.f32.mrf.mxu0 }
 0x5a1   : > { %v3838_v27 = vadd.f32 %v3754_v55, %v3434_v59  ;;  %v3436_v59 = vadd.f32 %v11302_v32, %v3032_v18 }
 0x5a3   : > { %v3902_v31 = vadd.f32 %v10035_v48, %v3838_v27 }
 0x5a5   : > { %v3962_v58 = vmax.f32 %v3902_v31, 0.0  ;;  %v3033_v31 = vadd.f32 %v11303_v42, %v2629_v13  ;;  %v3034_v13 = vadd.f32 %v11305_v6, %v2630_v38  ;;  %v11307_v42 = vld [vmem:[#allocation12_spill] sm:$0xff]  ;;  %v8359_v6 = vld [vmem:[%s11195_s3 + $0xd8] sm:$0xff] }
 0x5a6   : > { %v4080_v8 = vld [vmem:[#allocation2 + $0x150] ss:$2 sm:$0xff]  ;;  %v4140_v21 = vld [vmem:[#allocation2 + $0x151] ss:$2 sm:$0xff] }
 0x5a7   : > { %v4178_v34 = vmax.f32 %v4080_v8, %v4140_v21  ;;  %4022 = vst [vmem:[#allocation2 + $0x160] sm:$0xff] %v3962_v58 }
 0x5a8   : > { %v3756_v54 = vpop.f32.mrf.mxu0 }
 0x5a9   : > { %v3839_v19 = vadd.f32 %v3756_v54, %v3435_v29  ;;  %v10097_v0 = vmax.f32 %v4177_v57, %v4178_v34  ;;  %v3437_v34 = vadd.f32 %v9784_v15, %v3033_v31  ;;  %v8376_v54 = vld [vmem:[%s11195_s3 + $0x160] sm:$0xff]  ;;  %v11308_v31 = vld [vmem:[#allocation32_spill] sm:$0xff] }
 0x5aa   : > { %5004 = vmatpush.bf16.msrb.mxu3 %v8376_v54 }
 0x5ab   : > { %v3903_v28 = vadd.f32 %v10035_v48, %v3839_v19  ;;  %4256 = vst [vmem:[#allocation4 + $0x48] sm:$0xff] %v10097_v0  ;;  %v10108_v20 = vpack.c.bf16 %v10097_v0, %v10029_v10  ;;  %v8360_v19 = vld [vmem:[%s11195_s3 + $0xe0] sm:$0xff]  ;;  %v8483_v10 = vld [vmem:[%s11199_s7 + $0x38] sm:$0xff] }
 0x5ac   : > { %4736 = vmatpush.bf16.msra.mxu1 %v8360_v19  ;;  %6706 = vmatpush.bf16.msrb.mxu0 %v8483_v10 }
 0x5ad   : > { %v3963_v22 = vmax.f32 %v3903_v28, 0.0  ;;  %4505 = vmatmul.bf16.gmra.mxu2 %v10108_v20 }
 0x5af   : > { %4023 = vst [vmem:[#allocation2 + $0x168] sm:$0xff] %v3963_v22  ;;  %v8375_v22 = vld [vmem:[%s11195_s3 + $0x158] sm:$0xff] }
 0x5b0   : > { %v3759_v55 = vpop.f32.mrf.mxu0  ;;  %5005 = vmatpush.bf16.msrb.mxu3 %v8375_v22  ;;  %4737 = vmatpush.bf16.msra.mxu1 %v8359_v6  ;;  %v8365_v6 = vld [vmem:[%s11195_s3 + $0x108] sm:$0xff] }
 0x5b1   : > { %v3840_v27 = vadd.f32 %v3759_v55, %v3436_v59  ;;  %v11306_v55 = vld [vmem:[#allocation30_spill] sm:$0xff] }
 0x5b2   : > { %v4409_v53 = vpop.f32.mrf.mxu1  ;;  %v10117_v58 = vld [vmem:[#allocation4 + $0x41] sm:$0xff] }
 0x5b3   : > { %v10119_v8 = vld [vmem:[#allocation4 + $0x42] sm:$0xff]  ;;  %v3904_v21 = vadd.f32 %v10035_v48, %v3840_v27  ;;  %v4497_v29 = vadd.f32 %v4496_v35, %v4409_v53  ;;  %v4799_v51 = vpack.c.bf16 %v10117_v58, %v10046_v43  ;;  %v3438_v27 = vadd.f32 %v11306_v55, %v3034_v13  ;;  %v8366_v13 = vld [vmem:[%s11195_s3 + $0x110] sm:$0xff] }
 0x5b4   : > { %v4933_v50 = vpack.c.bf16 %v10119_v8, %v10048_v49  ;;  %v2631_v35 = vadd.f32 %v11308_v31, %v11307_v42  ;;  %4872 = vmatpush.bf16.msrb.mxu2 %v8366_v13  ;;  %v8373_v13 = vld [vmem:[%s11195_s3 + $0x148] sm:$0xff] }
 0x5b5   : > { %v3964_v57 = vmax.f32 %v3904_v21, 0.0 }
 0x5b6   : > { %v4082_v46 = vld [vmem:[#allocation2 + $0x160] ss:$2 sm:$0xff]  ;;  %v4142_v52 = vld [vmem:[#allocation2 + $0x161] ss:$2 sm:$0xff] }
 0x5b7   : > { %4024 = vst [vmem:[#allocation2 + $0x170] sm:$0xff] %v3964_v57  ;;  %v4179_v45 = vmax.f32 %v4082_v46, %v4142_v52  ;;  %v11312_v52 = vld [vmem:[#allocation35_spill] sm:$0xff] }
 0x5b8   : > { %v3761_v61 = vpop.f32.mrf.mxu0  ;;  %4873 = vmatpush.bf16.msrb.mxu2 %v8365_v6 }
 0x5b9   : > { %v4618_v18 = vpop.f32.mrf.mxu3  ;;  %v3841_v28 = vadd.f32 %v3761_v61, %v3437_v34 }
 0x5ba   : > { %v10138_v15 = vadd.f32 %v4618_v18, %v4497_v29  ;;  %v11309_v29 = vld [vmem:[#allocation31_spill] sm:$0xff]  ;;  %v11310_v18 = vld [vmem:[#allocation13_spill] sm:$0xff] }
 0x5bb   : > { %v3905_v32 = vadd.f32 %v10035_v48, %v3841_v28  ;;  %v3035_v57 = vadd.f32 %v11309_v29, %v2631_v35  ;;  %v2632_v28 = vadd.f32 %v9811_v9, %v11310_v18  ;;  %v8358_v9 = vld [vmem:[%s11195_s3 + $0xd0] sm:$0xff] }
 0x5bc   : > { %4738 = vmatpush.bf16.msra.mxu1 %v8358_v9  ;;  %v11316_v9 = vld [vmem:[#allocation37_spill] sm:$0xff] }
 0x5bd   : > { %v3965_v59 = vmax.f32 %v3905_v32, 0.0  ;;  %v3439_v61 = vadd.f32 %v9805_v47, %v3035_v57  ;;  %v8374_v32 = vld [vmem:[%s11195_s3 + $0x150] sm:$0xff] }
 0x5be   : > { %5006 = vmatpush.bf16.msrb.mxu3 %v8374_v32  ;;  %v8357_v32 = vld [vmem:[%s11195_s3 + $0xc8] sm:$0xff] }
 0x5bf   : > { %4025 = vst [vmem:[#allocation2 + $0x178] sm:$0xff] %v3965_v59 }
 0x5c0   : > { %v3764_v53 = vpop.f32.mrf.mxu0  ;;  %4739 = vmatpush.bf16.msra.mxu1 %v8357_v32 }
 0x5c1   : > { %v3842_v21 = vadd.f32 %v3764_v53, %v3438_v27  ;;  %v3036_v27 = vadd.f32 %v9809_v36, %v2632_v28  ;;  %v11314_v28 = vld [vmem:[#allocation15_spill] sm:$0xff] }
 0x5c2   : > { %5007 = vmatpush.bf16.msrb.mxu3 %v8373_v13 }
 0x5c3   : > { %v3906_v34 = vadd.f32 %v10035_v48, %v3842_v21  ;;  %v3440_v53 = vadd.f32 %v9822_v17, %v3036_v27  ;;  %v11311_v21 = vld [vmem:[#allocation14_spill] sm:$0xff] }
 0x5c4   : > { %v2633_v29 = vadd.f32 %v9827_v37, %v11311_v21  ;;  %v11317_v21 = vld [vmem:[#allocation16_spill] sm:$0xff] }
 0x5c5   : > { %v3966_v38 = vmax.f32 %v3906_v34, 0.0 }
 0x5c6   : > { %v4084_v54 = vld [vmem:[#allocation2 + $0x170] ss:$2 sm:$0xff]  ;;  %v4144_v19 = vld [vmem:[#allocation2 + $0x171] ss:$2 sm:$0xff] }
 0x5c7   : > { %v4180_v22 = vmax.f32 %v4084_v54, %v4144_v19  ;;  %4026 = vst [vmem:[#allocation2 + $0x180] sm:$0xff] %v3966_v38  ;;  %v3037_v38 = vadd.f32 %v11312_v52, %v2633_v29  ;;  %v11318_v29 = vld [vmem:[#allocation40_spill] sm:$0xff] }
 0x5c8   : > { %v3766_v59 = vpop.f32.mrf.mxu0 }
 0x5c9   : > { %v3843_v47 = vadd.f32 %v3766_v59, %v3439_v61  ;;  %v10165_v55 = vmax.f32 %v4179_v45, %v4180_v22  ;;  %v11313_v61 = vld [vmem:[#allocation36_spill] sm:$0xff]  ;;  %v11315_v45 = vld [vmem:[#allocation38_spill] sm:$0xff] }
 0x5ca   : > { %v3441_v18 = vadd.f32 %v11313_v61, %v3037_v38  ;;  %v2634_v22 = vadd.f32 %v11315_v45, %v11314_v28  ;;  %v8364_v38 = vld [vmem:[%s11195_s3 + $0x100] sm:$0xff] }
 0x5cb   : > { %v3907_v42 = vadd.f32 %v10035_v48, %v3843_v47  ;;  %4260 = vst [vmem:[#allocation4 + $0x50] sm:$0xff] %v10165_v55  ;;  %v4666_v31 = vpack.c.bf16 %v10165_v55, %v10097_v0  ;;  %v11319_v61 = vld [vmem:[#allocation39_spill] sm:$0xff]  ;;  %4874 = vmatpush.bf16.msrb.mxu2 %v8364_v38  ;;  %v11322_v38 = vld [vmem:[#allocation18_spill] sm:$0xff] }
 0x5cc   : > { %v3038_v27 = vadd.f32 %v11316_v9, %v2634_v22 }
 0x5cd   : > { %v3967_v35 = vmax.f32 %v3907_v42, 0.0 }
 0x5cf   : > { %4027 = vst [vmem:[#allocation2 + $0x188] sm:$0xff] %v3967_v35 }
 0x5d0   : > { %v3769_v57 = vpop.f32.mrf.mxu0 }
 0x5d1   : > { %v3844_v34 = vadd.f32 %v3769_v57, %v3440_v53  ;;  %v3442_v53 = vadd.f32 %v9844_v14, %v3038_v27  ;;  %v2635_v57 = vadd.f32 %v11318_v29, %v11317_v21 }
 0x5d2   : > { %v10178_v46 = vld [vmem:[#allocation4 + $0x49] sm:$0xff] }
 0x5d3   : > { %v10180_v36 = vld [vmem:[#allocation4 + $0x4a] sm:$0xff]  ;;  %v3908_v54 = vadd.f32 %v10035_v48, %v3844_v34  ;;  %v10186_v19 = vpack.c.bf16 %v10178_v46, %v10117_v58  ;;  %v3039_v14 = vadd.f32 %v11319_v61, %v2635_v57  ;;  %v11324_v61 = vld [vmem:[#allocation46_spill] sm:$0xff] }
 0x5d4   : > { %v10190_v17 = vpack.c.bf16 %v10180_v36, %v10119_v8 }
 0x5d5   : > { %v3968_v37 = vmax.f32 %v3908_v54, 0.0  ;;  %4418 = vmatmul.bf16.gmra.mxu1 %v10186_v19  ;;  %v8372_v54 = vld [vmem:[%s11195_s3 + $0x140] sm:$0xff]  ;;  %v3443_v32 = vadd.f32 %v9869_v3, %v3039_v14  ;;  %v11321_v3 = vld [vmem:[#allocation45_spill] sm:$0xff] }
 0x5d6   : > { %4627 = vmatmul.bf16.gmra.mxu3 %v10190_v17  ;;  %v4086_v28 = vld [vmem:[#allocation2 + $0x180] ss:$2 sm:$0xff]  ;;  %v4146_v45 = vld [vmem:[#allocation2 + $0x181] ss:$2 sm:$0xff] }
 0x5d7   : > { %4028 = vst [vmem:[#allocation2 + $0x190] sm:$0xff] %v3968_v37  ;;  %v8356_v37 = vld [vmem:[%s11195_s3 + $0xc0] sm:$0xff]  ;;  %5008 = vmatpush.bf16.msrb.mxu3 %v8372_v54  ;;  %v4181_v9 = vmax.f32 %v4086_v28, %v4146_v45  ;;  %v11323_v54 = vld [vmem:[#allocation48_spill] sm:$0xff] }
 0x5d8   : > { %v3771_v59 = vpop.f32.mrf.mxu0  ;;  %4740 = vmatpush.bf16.msra.mxu1 %v8356_v37  ;;  %v2637_v37 = vadd.f32 %v11323_v54, %v11322_v38  ;;  %v11325_v45 = vld [vmem:[#allocation47_spill] sm:$0xff]  ;;  %v8387_v38 = vld [vmem:[%s11195_s3 + $0x1b8] sm:$0xff]  ;;  %v8394_v54 = vld [vmem:[%s11195_s3 + $0x1f0] sm:$0xff] }
 0x5d9   : > { %v3845_v47 = vadd.f32 %v3771_v59, %v3441_v18  ;;  %v11320_v59 = vld [vmem:[#allocation17_spill] sm:$0xff] }
 0x5db   : > { %v3909_v42 = vadd.f32 %v10035_v48, %v3845_v47  ;;  %v2636_v47 = vadd.f32 %v9873_v1, %v11320_v59 }
 0x5dc   : > { %5135 = vmatpush.bf16.msrb.mxu1 %v8387_v38 }
 0x5dd   : > { %v3969_v35 = vmax.f32 %v3909_v42, 0.0  ;;  %v8395_v42 = vld [vmem:[%s11195_s3 + $0x1f8] sm:$0xff]  ;;  %v3040_v57 = vadd.f32 %v11321_v3, %v2636_v47 }
 0x5de   : > { %5269 = vmatpush.bf16.msra.mxu2 %v8395_v42 }
 0x5df   : > { %4029 = vst [vmem:[#allocation2 + $0x198] sm:$0xff] %v3969_v35  ;;  %v8403_v35 = vld [vmem:[%s11195_s3 + $0x238] sm:$0xff]  ;;  %v3444_v14 = vadd.f32 %v11324_v61, %v3040_v57 }
 0x5e0   : > { %v3774_v34 = vpop.f32.mrf.mxu0  ;;  %5403 = vmatpush.bf16.msra.mxu3 %v8403_v35 }
 0x5e1   : > { %v3846_v52 = vadd.f32 %v3774_v34, %v3442_v53 }
 0x5e2   : > { %5270 = vmatpush.bf16.msra.mxu2 %v8394_v54  ;;  %v8545_v54 = vld [vmem:[#allocation4 + $0x10] sm:$0xff] }
 0x5e3   : > { %v3910_v18 = vadd.f32 %v10035_v48, %v3846_v52 }
 0x5e5   : > { %v3970_v22 = vmax.f32 %v3910_v18, 0.0 }
 0x5e6   : > { %v4088_v6 = vld [vmem:[#allocation2 + $0x190] ss:$2 sm:$0xff]  ;;  %v4148_v13 = vld [vmem:[#allocation2 + $0x191] ss:$2 sm:$0xff] }
 0x5e7   : > { %v4182_v27 = vmax.f32 %v4088_v6, %v4148_v13  ;;  %4030 = vst [vmem:[#allocation2 + $0x1a0] sm:$0xff] %v3970_v22  ;;  %v3041_v22 = vadd.f32 %v11325_v45, %v2637_v37  ;;  %v8402_v37 = vld [vmem:[%s11195_s3 + $0x230] sm:$0xff] }
 0x5e8   : > { %v3776_v53 = vpop.f32.mrf.mxu0  ;;  %5404 = vmatpush.bf16.msra.mxu3 %v8402_v37  ;;  %v11332_v37 = vld [vmem:[#allocation41_spill] sm:$0xff] }
 0x5e9   : > { %v3847_v21 = vadd.f32 %v3776_v53, %v3443_v32  ;;  %v10231_v29 = vmax.f32 %v4181_v9, %v4182_v27  ;;  %v3445_v57 = vadd.f32 %v9888_v30, %v3041_v22  ;;  %v11327_v30 = vld [vmem:[#allocation50_spill] sm:$0xff]  ;;  %v11328_v22 = vld [vmem:[#allocation51_spill] sm:$0xff] }
 0x5eb   : > { %v3911_v1 = vadd.f32 %v10035_v48, %v3847_v21  ;;  %4264 = vst [vmem:[#allocation4 + $0x58] sm:$0xff] %v10231_v29  ;;  %v5068_v34 = vpack.c.bf16 %v10231_v29, %v10165_v55 }
 0x5ed   : > { %v3971_v52 = vmax.f32 %v3911_v1, 0.0  ;;  %v11326_v1 = vld [vmem:[#allocation19_spill] sm:$0xff] }
 0x5ef   : > { %4031 = vst [vmem:[#allocation2 + $0x1a8] sm:$0xff] %v3971_v52  ;;  %v2638_v52 = vadd.f32 %v9899_v56, %v11326_v1  ;;  %v8386_v56 = vld [vmem:[%s11195_s3 + $0x1b0] sm:$0xff] }
 0x5f0   : > { %v3779_v18 = vpop.f32.mrf.mxu0  ;;  %5136 = vmatpush.bf16.msrb.mxu1 %v8386_v56 }
 0x5f1   : > { %v3848_v28 = vadd.f32 %v3779_v18, %v3444_v14  ;;  %v3042_v18 = vadd.f32 %v11327_v30, %v2638_v52 }
 0x5f2   : > { %v10242_v6 = vld [vmem:[#allocation4 + $0x51] sm:$0xff]  ;;  %v4318_v13 = vld [vmem:[#allocation4 + $0x59] sm:$0x1f] }
 0x5f3   : > { %v4284_v32 = vld [vmem:[#allocation4 + $0x58] sm:$0x1f]  ;;  %v3912_v59 = vadd.f32 %v10035_v48, %v3848_v28  ;;  %v4324_v47 = vpack.c.bf16 %v4318_v13, %v10242_v6  ;;  %v4800_v35 = vpack.c.bf16 %v10242_v6, %v10178_v46  ;;  %v3446_v13 = vadd.f32 %v11328_v22, %v3042_v18  ;;  %v11333_v18 = vld [vmem:[#allocation43_spill] sm:$0xff] }
 0x5f4   : > { %v4290_v9 = vpack.c.bf16 %v4284_v32, %v10165_v55  ;;  %v10247_v27 = vld [vmem:[#allocation4 + $0x52] sm:$0xff]  ;;  %v4527_v42 = vld [vmem:[#allocation4 + $0x5a] sm:$0x1f]  ;;  %v11329_v32 = vld [vmem:[#allocation20_spill] sm:$0xff] }
 0x5f5   : > { %v4533_v53 = vpack.c.bf16 %v4527_v42, %v10247_v27  ;;  %v4934_v21 = vpack.c.bf16 %v10247_v27, %v10180_v36  ;;  %v3972_v3 = vmax.f32 %v3912_v59, 0.0  ;;  %4423 = vmatmul.bf16.gmra.mxu1 %v4324_v47  ;;  %v11330_v59 = vld [vmem:[#allocation54_spill] sm:$0xff]  ;;  %v8408_v55 = vld [vmem:[%s11197_s5 + $0x20] sm:$0xff] }
 0x5f6   : > { %4510 = vmatmul.bf16.gmra.mxu2 %v4290_v9  ;;  %v2639_v47 = vadd.f32 %v11330_v59, %v11329_v32  ;;  %v4090_v56 = vld [vmem:[#allocation2 + $0x1a0] ss:$2 sm:$0xff]  ;;  %v4150_v30 = vld [vmem:[#allocation2 + $0x1a1] ss:$2 sm:$0xff] }
 0x5f7   : > { %4632 = vmatmul.bf16.gmra.mxu3 %v4533_v53  ;;  %4032 = vst [vmem:[#allocation2 + $0x1b0] sm:$0xff] %v3972_v3  ;;  %v4650_v53 = vld [vmem:[#allocation4 + $0x8] sm:$0xff]  ;;  %v11334_v32 = vld [vmem:[#allocation55_spill] sm:$0xff] }
 0x5f8   : > { %v3781_v61 = vpop.f32.mrf.mxu0  ;;  %v4784_v3 = vld [vmem:[#allocation4 + $0x9] sm:$0xff]  ;;  %v4662_v52 = vpack.c.bf16 %v8545_v54, %v4650_v53 }
 0x5f9   : > { %v3849_v14 = vadd.f32 %v3781_v61, %v3445_v57  ;;  %v11331_v57 = vld [vmem:[#allocation53_spill] sm:$0xff]  ;;  %v4796_v61 = vpack.c.bf16 %v11332_v37, %v4784_v3  ;;  %v8393_v3 = vld [vmem:[%s11195_s3 + $0x1e8] sm:$0xff] }
 0x5fa   : > { %v3043_v1 = vadd.f32 %v11331_v57, %v2639_v47  ;;  %v11335_v47 = vld [vmem:[#allocation21_spill] sm:$0xff]  ;;  %v8401_v57 = vld [vmem:[%s11195_s3 + $0x228] sm:$0xff]  ;;  %5271 = vmatpush.bf16.msra.mxu2 %v8393_v3 }
 0x5fb   : > { %v3913_v28 = vadd.f32 %v10035_v48, %v3849_v14  ;;  %v4918_v14 = vld [vmem:[#allocation4 + $0xa] sm:$0xff]  ;;  %5405 = vmatpush.bf16.msra.mxu3 %v8401_v57 }
 0x5fc   : > { %v3447_v59 = vadd.f32 %v11334_v32, %v3043_v1  ;;  %v11338_v32 = vld [vmem:[#allocation25_spill] sm:$0xff] }
 0x5fd   : > { %v3973_v45 = vmax.f32 %v3913_v28, 0.0  ;;  %v4930_v28 = vpack.c.bf16 %v11333_v18, %v4918_v14  ;;  %v10300_v14 = vpop.f32.mrf.mxu1 }
 0x5ff   : > { %4033 = vst [vmem:[#allocation2 + $0x1b8] sm:$0xff] %v3973_v45 }
 0x600   : > { %v3784_v9 = vpop.f32.mrf.mxu0 }
 0x601   : > { %v3850_v42 = vadd.f32 %v3784_v9, %v3446_v13  ;;  %v2640_v9 = vadd.f32 %v9928_v39, %v11335_v47  ;;  %v8392_v39 = vld [vmem:[%s11195_s3 + $0x1e0] sm:$0xff]  ;;  %v10311_v47 = vpop.f32.mrf.mxu3 }
 0x602   : > { %5272 = vmatpush.bf16.msra.mxu2 %v8392_v39 }
 0x603   : > { %v3914_v38 = vadd.f32 %v10035_v48, %v3850_v42  ;;  %v4183_v42 = vmax.f32 %v4090_v56, %v4150_v30  ;;  %v8384_v56 = vld [vmem:[%s11195_s3 + $0x1a0] sm:$0xff]  ;;  %v11336_v30 = vld [vmem:[#allocation56_spill] sm:$0xff] }
 0x604   : > { %v3044_v18 = vadd.f32 %v11336_v30, %v2640_v9 }
 0x605   : > { %v3974_v22 = vmax.f32 %v3914_v38, 0.0  ;;  %4741 = vmatmul.bf16.vlgmr.msra.gmra.mxu1 %v4662_v52  ;;  %v8385_v38 = vld [vmem:[%s11195_s3 + $0x1a8] sm:$0xff]  ;;  %v8400_v52 = vld [vmem:[%s11195_s3 + $0x220] sm:$0xff] }
 0x606   : > { %4875 = vmatmul.bf16.vlgmr.msrb.gmra.mxu2 %v4796_v61  ;;  %v4092_v45 = vld [vmem:[#allocation2 + $0x1b0] ss:$2 sm:$0xff]  ;;  %v4152_v13 = vld [vmem:[#allocation2 + $0x1b1] ss:$2 sm:$0xff]  ;;  %v10298_v61 = vpop.f32.mrf.mxu2  ;;  %5137 = vmatpush.bf16.msrb.mxu1 %v8385_v38 }
 0x607   : > { %5009 = vmatmul.bf16.vlgmr.msrb.gmra.mxu3 %v4930_v28  ;;  %v4184_v53 = vmax.f32 %v4092_v45, %v4152_v13  ;;  %4034 = vst [vmem:[#allocation2 + $0x1c0] sm:$0xff] %v3974_v22  ;;  %v11337_v45 = vld [vmem:[#allocation57_spill] sm:$0xff]  ;;  %v11339_v38 = vld [vmem:[#allocation58_spill] sm:$0xff] }
 0x608   : > { %v3786_v54 = vpop.f32.mrf.mxu0  ;;  %5406 = vmatpush.bf16.msra.mxu3 %v8400_v52  ;;  %v3448_v13 = vadd.f32 %v11337_v45, %v3044_v18  ;;  %v8546_v52 = vld [vmem:[#allocation4 + $0x18] sm:$0xff]  ;;  %v11340_v45 = vld [vmem:[#allocation52_spill] sm:$0xff] }
 0x609   : > { %v3851_v1 = vadd.f32 %v3786_v54, %v3447_v59  ;;  %v10296_v37 = vmax.f32 %v4183_v42, %v4184_v53  ;;  %v2641_v59 = vadd.f32 %v9935_v40, %v11338_v32 }
 0x60a   : > { %5138 = vmatpush.bf16.msrb.mxu1 %v8384_v56  ;;  %v8547_v56 = vld [vmem:[#allocation4 + $0x20] sm:$0xff] }
 0x60b   : > { %v3915_v28 = vadd.f32 %v10035_v48, %v3851_v1  ;;  %4268 = vst [vmem:[#allocation4 + $0x60] sm:$0xff] %v10296_v37  ;;  %v3045_v54 = vadd.f32 %v11339_v38, %v2641_v59  ;;  %v4663_v30 = vpack.c.bf16 %v8547_v56, %v8546_v52  ;;  %v11343_v59 = vld [vmem:[#allocation44_spill] sm:$0xff]  ;;  %v8399_v38 = vld [vmem:[%s11195_s3 + $0x218] sm:$0xff] }
 0x60c   : > { %5407 = vmatpush.bf16.msra.mxu3 %v8399_v38  ;;  %v11349_v38 = vpack.c.bf16 %v10000_v24, %v9948_v11  ;;  %v8381_v11 = vld [vmem:[%s11195_s3 + $0x188] sm:$0xff]  ;;  %v8388_v24 = vld [vmem:[%s11195_s3 + $0x1c0] sm:$0xff] }
 0x60d   : > { %v3975_v22 = vmax.f32 %v3915_v28, 0.0 }
 0x60e   : > { %v4501_v3 = vpop.f32.mrf.mxu2 }
 0x60f   : > { %4035 = vst [vmem:[#allocation2 + $0x1c8] sm:$0xff] %v3975_v22 }
 0x610   : > { %v3789_v42 = vpop.f32.mrf.mxu0 }
 0x611   : > { %v3852_v53 = vadd.f32 %v3789_v42, %v3448_v13  ;;  %v11341_v13 = vld [vmem:[#allocation42_spill] sm:$0xff]  ;;  %v11344_v42 = vpack.c.bf16 %v9908_v23, %v11343_v59  ;;  %v8390_v23 = vld [vmem:[%s11195_s3 + $0x1d0] sm:$0xff] }
 0x612   : > { %v4414_v9 = vpop.f32.mrf.mxu1  ;;  %v10313_v57 = vld [vmem:[#allocation4 + $0x59] sm:$0xff]  ;;  %v11342_v32 = vpack.c.bf16 %v11340_v45, %v11341_v13  ;;  %v4795_v58 = vld [vmem:[#allocation4 + $0x61] sm:$0x1f] }
 0x613   : > { %v3916_v1 = vadd.f32 %v10035_v48, %v3852_v53  ;;  %v4502_v39 = vadd.f32 %v4501_v3, %v4414_v9  ;;  %v10317_v18 = vld [vmem:[#allocation4 + $0x5a] sm:$0xff]  ;;  %v5202_v40 = vpack.c.bf16 %v10313_v57, %v10242_v6  ;;  %v4929_v8 = vld [vmem:[#allocation4 + $0x62] sm:$0x1f]  ;;  %v4801_v36 = vpack.c.bf16 %v4795_v58, %v10313_v57 }
 0x614   : > { %v5336_v28 = vpack.c.bf16 %v10317_v18, %v10247_v27  ;;  %v8391_v53 = vld [vmem:[%s11195_s3 + $0x1d8] sm:$0xff]  ;;  %v11345_v3 = vld [vmem:[#allocation59_spill] sm:$0xff] }
 0x615   : > { %v3976_v22 = vmax.f32 %v3916_v1, 0.0  ;;  %4746 = vmatmul.bf16.gmra.mxu1 %v4663_v30  ;;  %v3449_v9 = vadd.f32 %v11345_v3, %v3045_v54  ;;  %v8383_v1 = vld [vmem:[%s11195_s3 + $0x198] sm:$0xff]  ;;  %5273 = vmatpush.bf16.msra.mxu2 %v8391_v53  ;;  %v8398_v54 = vld [vmem:[%s11195_s3 + $0x210] sm:$0xff]  ;;  %v4661_v0 = vld [vmem:[#allocation4 + $0x60] sm:$0x1f] }
 0x616   : > { %4880 = vmatmul.bf16.gmra.mxu2 %v11342_v32  ;;  %5139 = vmatpush.bf16.msrb.mxu1 %v8383_v1  ;;  %v4094_v32 = vld [vmem:[#allocation2 + $0x1c0] ss:$2 sm:$0xff]  ;;  %v4154_v59 = vld [vmem:[#allocation2 + $0x1c1] ss:$2 sm:$0xff]  ;;  %v4667_v46 = vpack.c.bf16 %v4661_v0, %v10231_v29 }
 0x617   : > { %5014 = vmatmul.bf16.gmra.mxu3 %v11344_v42  ;;  %4036 = vst [vmem:[#allocation2 + $0x1d0] sm:$0xff] %v3976_v22  ;;  %v11346_v42 = vld [vmem:[#allocation49_spill] sm:$0xff]  ;;  %v4185_v1 = vmax.f32 %v4094_v32, %v4154_v59  ;;  %v8424_v29 = vld [vmem:[%s11197_s5 + $0xa0] sm:$0xff] }
 0x618   : > { %v3791_v52 = vpop.f32.mrf.mxu0  ;;  %5408 = vmatpush.bf16.msra.mxu3 %v8398_v54  ;;  %v11347_v53 = vpack.c.bf16 %v9933_v4, %v11346_v42  ;;  %v8389_v4 = vld [vmem:[%s11195_s3 + $0x1c8] sm:$0xff]  ;;  %v5321_v54 = vld [vmem:[#allocation4 + $0x1a] sm:$0xff]  ;;  %v5320_v32 = vld [vmem:[#allocation4 + $0x12] sm:$0xff] }
 0x619   : > { %v4623_v56 = vpop.f32.mrf.mxu3  ;;  %v3853_v30 = vadd.f32 %v3791_v52, %v3449_v9  ;;  %5274 = vmatpush.bf16.msra.mxu2 %v8390_v23  ;;  %v5332_v59 = vpack.c.bf16 %v5321_v54, %v5320_v32  ;;  %v11350_v42 = vld [vmem:[#allocation34_spill] sm:$0xff]  ;;  %v11353_v54 = vld [vmem:[#allocation60_spill] sm:$0xff]  ;;  %v8482_v32 = vld [vmem:[%s11199_s7 + $0x30] sm:$0xff] }
 0x61a   : > { %v10342_v45 = vadd.f32 %v4623_v56, %v4502_v39  ;;  %v11348_v39 = vpack.c.bf16 %v9998_v41, %v9946_v63  ;;  %v8397_v63 = vld [vmem:[%s11195_s3 + $0x208] sm:$0xff]  ;;  %v8396_v56 = vld [vmem:[%s11195_s3 + $0x200] sm:$0xff]  ;;  %v10401_v43 = vpop.f32.mrf.mxu1  ;;  %6707 = vmatpush.bf16.msrb.mxu0 %v8482_v32 }
 0x61b   : > { %v3917_v22 = vadd.f32 %v10035_v48, %v3853_v30  ;;  %v8382_v48 = vld [vmem:[%s11195_s3 + $0x190] sm:$0xff]  ;;  %v5187_v30 = vld [vmem:[#allocation4 + $0x19] sm:$0xff] }
 0x61c   : > { %5140 = vmatpush.bf16.msrb.mxu1 %v8382_v48  ;;  %5409 = vmatpush.bf16.msra.mxu3 %v8397_v63  ;;  %v5189_v48 = vld [vmem:[#allocation4 + $0x29] sm:$0xff]  ;;  %v5054_v63 = vld [vmem:[#allocation4 + $0x20] sm:$0xff] }
 0x61d   : > { %v3977_v13 = vmax.f32 %v3917_v22, 0.0  ;;  %5275 = vmatpush.bf16.msra.mxu2 %v8389_v4  ;;  %v5186_v22 = vld [vmem:[#allocation4 + $0x11] sm:$0xff] }
 0x61f   : > { %4037 = vst [vmem:[#allocation2 + $0x1d8] sm:$0x3f] %v3977_v13  ;;  %v5198_v13 = vpack.c.bf16 %v5187_v30, %v5186_v22 }
 0x620   : > { %5141 = vmatpush.bf16.msrb.mxu1 %v8381_v11  ;;  %5410 = vmatpush.bf16.msra.mxu3 %v8396_v56  ;;  %v5188_v11 = vld [vmem:[#allocation4 + $0x21] sm:$0xff] }
 0x621   : > { %5276 = vmatpush.bf16.msra.mxu2 %v8388_v24  ;;  %v10403_v49 = vpop.f32.mrf.mxu3  ;;  %v5199_v24 = vpack.c.bf16 %v5189_v48, %v5188_v11  ;;  %v5322_v56 = vld [vmem:[#allocation4 + $0x22] sm:$0xff]  ;;  %v8411_v48 = vld [vmem:[%s11197_s5 + $0x38] sm:$0xff] }
 0x624   : > { %5142 = vmatpush.bf16.msrb.mxu1 %v8380_v12 }
 0x625   : > { %4751 = vmatmul.bf16.gmra.mxu1 %v11347_v53  ;;  %v11351_v53 = vld [vmem:[#allocation33_spill] sm:$0xff]  ;;  %5687 = vmatpush.bf16.msrb.mxu2 %v8411_v48 }
 0x626   : > { %4885 = vmatmul.bf16.gmra.mxu2 %v11348_v39  ;;  %v4096_v3 = vld [vmem:[#allocation2 + $0x1d0] ss:$2 sm:$0xff]  ;;  %v4156_v9 = vld [vmem:[#allocation2 + $0x1d1] ss:$2 sm:$0xff]  ;;  %v11352_v39 = vpack.c.bf16 %v11350_v42, %v11351_v53 }
 0x627   : > { %5019 = vmatmul.bf16.gmra.mxu3 %v11349_v38  ;;  %v4186_v52 = vmax.f32 %v4096_v3, %v4156_v9  ;;  %v5055_v38 = vld [vmem:[#allocation4 + $0x28] sm:$0xff] }
 0x629   : > { %v4271_v41 = vmax.f32 %v4185_v1, %v4186_v52  ;;  %v5323_v52 = vld [vmem:[#allocation4 + $0x2a] sm:$0xff] }
 0x62a   : > { %v5333_v12 = vpack.c.bf16 %v5323_v52, %v5322_v56  ;;  %v8427_v52 = vld [vmem:[%s11197_s5 + $0xb8] sm:$0xff] }
 0x62b   : > { %4272 = vst [vmem:[#allocation4 + $0x68] sm:$0xff] %v4271_v41  ;;  %v5065_v41 = vpack.c.bf16 %v5055_v38, %v5054_v63  ;;  %5801 = vmatpush.bf16.msrb.mxu3 %v8427_v52 }
 0x632   : > { %v5063_v6 = vld [vmem:[#allocation4 + $0x68] sm:$0x1f] }
 0x633   : > { %v5196_v27 = vld [vmem:[#allocation4 + $0x61] sm:$0xff]  ;;  %v5197_v57 = vld [vmem:[#allocation4 + $0x69] sm:$0x1f]  ;;  %v5069_v32 = vpack.c.bf16 %v5063_v6, %v10296_v37  ;;  %v8407_v37 = vld [vmem:[%s11197_s5 + $0x18] sm:$0xff] }
 0x635   : > { %4756 = vmatmul.bf16.gmra.mxu1 %v4665_v26  ;;  %v10399_v26 = vpop.f32.mrf.mxu2 }
 0x636   : > { %4890 = vmatmul.bf16.gmra.mxu2 %v4799_v51 }
 0x637   : > { %5024 = vmatmul.bf16.gmra.mxu3 %v4933_v50 }
 0x63d   : > { %v4506_v51 = vpop.f32.mrf.mxu2 }
 0x645   : > { %4761 = vmatmul.bf16.gmra.mxu1 %v4666_v31  ;;  %v10415_v9 = vpop.f32.mrf.mxu2 }
 0x646   : > { %4895 = vmatmul.bf16.gmra.mxu2 %v4800_v35  ;;  %v4935_v35 = vpack.c.bf16 %v4929_v8, %v10317_v18 }
 0x647   : > { %5029 = vmatmul.bf16.gmra.mxu3 %v4934_v21 }
 0x652   : > { %v4419_v50 = vpop.f32.mrf.mxu1 }
 0x653   : > { %v4507_v31 = vadd.f32 %v4506_v51, %v4419_v50 }
 0x655   : > { %4766 = vmatmul.bf16.gmra.mxu1 %v4667_v46 }
 0x656   : > { %4900 = vmatmul.bf16.gmra.mxu2 %v4801_v36 }
 0x657   : > { %5034 = vmatmul.bf16.gmra.mxu3 %v4935_v35 }
 0x659   : > { %v4628_v21 = vpop.f32.mrf.mxu3 }
 0x65a   : > { %v10408_v23 = vadd.f32 %v4628_v21, %v4507_v31  ;;  %v10413_v3 = vpop.f32.mrf.mxu1  ;;  %v5057_v31 = vld [vmem:[#allocation4 + $0x38] sm:$0xff]  ;;  %v5056_v21 = vld [vmem:[#allocation4 + $0x30] sm:$0xff] }
 0x661   : > { %v10417_v1 = vpop.f32.mrf.mxu3 }
 0x665   : > { %5143 = vmatmul.bf16.vlgmr.msrb.gmra.mxu1 %v11352_v39 }
 0x666   : > { %5277 = vmatmul.bf16.vlgmr.msra.gmra.mxu2 %v5198_v13  ;;  %v5066_v13 = vpack.c.bf16 %v5057_v31, %v5056_v21  ;;  %v8425_v31 = vld [vmem:[%s11197_s5 + $0xa8] sm:$0xff] }
 0x667   : > { %5411 = vmatmul.bf16.vlgmr.msra.gmra.mxu3 %v5332_v59 }
 0x672   : > { %v4424_v4 = vpop.f32.mrf.mxu1 }
 0x675   : > { %5148 = vmatmul.bf16.gmra.mxu1 %v5065_v41  ;;  %v8410_v41 = vld [vmem:[%s11197_s5 + $0x30] sm:$0xff] }
 0x676   : > { %5282 = vmatmul.bf16.gmra.mxu2 %v5199_v24  ;;  %v8426_v24 = vld [vmem:[%s11197_s5 + $0xb0] sm:$0xff] }
 0x677   : > { %5416 = vmatmul.bf16.gmra.mxu3 %v5333_v12  ;;  %5688 = vmatpush.bf16.msrb.mxu2 %v8410_v41  ;;  %v8415_v41 = vld [vmem:[%s11197_s5 + $0x58] sm:$0xff] }
 0x678   : > { %5802 = vmatpush.bf16.msrb.mxu3 %v8426_v24  ;;  %v8481_v24 = vld [vmem:[%s11199_s7 + $0x28] sm:$0xff] }
 0x679   : > { %v4511_v10 = vpop.f32.mrf.mxu2  ;;  %6708 = vmatpush.bf16.msrb.mxu0 %v8481_v24  ;;  %v8412_v24 = vld [vmem:[%s11197_s5 + $0x40] sm:$0xff] }
 0x67a   : > { %v4512_v0 = vadd.f32 %v4511_v10, %v4424_v4  ;;  %v4633_v58 = vpop.f32.mrf.mxu3  ;;  %v4426_v8 = vpop.f32.mrf.mxu1 }
 0x67c   : > { %v10419_v51 = vadd.f32 %v4633_v58, %v4512_v0  ;;  %5803 = vmatpush.bf16.msrb.mxu3 %v8425_v31 }
 0x680   : > { %5804 = vmatpush.bf16.msrb.mxu3 %v8424_v29 }
 0x681   : > { %v4513_v50 = vpop.f32.mrf.mxu2 }
 0x682   : > { %v4514_v46 = vadd.f32 %v4513_v50, %v4426_v8  ;;  %v4635_v36 = vpop.f32.mrf.mxu3  ;;  %v4742_v35 = vpop.f32.mrf.mxu1  ;;  %v8409_v50 = vld [vmem:[%s11197_s5 + $0x28] sm:$0xff] }
 0x683   : > { %v4772_v22 = vadd.f32 %v4742_v35, %v11353_v54  ;;  %5689 = vmatpush.bf16.msrb.mxu2 %v8409_v50 }
 0x684   : > { %v10421_v30 = vadd.f32 %v4635_v36, %v4514_v46  ;;  %v8417_v46 = vld [vmem:[%s11197_s5 + $0x68] sm:$0xff] }
 0x685   : > { %5153 = vmatmul.bf16.gmra.mxu1 %v5066_v13 }
 0x686   : > { %5287 = vmatmul.bf16.gmra.mxu2 %v10055_v5  ;;  %v8419_v5 = vld [vmem:[%s11197_s5 + $0x78] sm:$0xff] }
 0x687   : > { %5421 = vmatmul.bf16.gmra.mxu3 %v10059_v16  ;;  %5605 = vmatpush.bf16.msra.mxu1 %v8419_v5 }
 0x688   : > { %5690 = vmatpush.bf16.msrb.mxu2 %v8408_v55  ;;  %v8414_v55 = vld [vmem:[%s11197_s5 + $0x50] sm:$0xff] }
 0x689   : > { %v4876_v59 = vpop.f32.mrf.mxu2 }
 0x68a   : > { %v4906_v42 = vadd.f32 %v4876_v59, %v4772_v22  ;;  %v5010_v53 = vpop.f32.mrf.mxu3  ;;  %v10429_v39 = vpop.f32.mrf.mxu1  ;;  %v5203_v59 = vpack.c.bf16 %v5197_v57, %v5196_v27  ;;  %v8405_v27 = vld [vmem:[%s11197_s5 + $0x8] sm:$0xff]  ;;  %v8404_v57 = vld [vmem:[%s11197_s5] sm:$0xff] }
 0x68c   : > { %v10431_v38 = vadd.f32 %v5010_v53, %v4906_v42  ;;  %v8416_v42 = vld [vmem:[%s11197_s5 + $0x60] sm:$0xff]  ;;  %5691 = vmatpush.bf16.msrb.mxu2 %v8407_v37 }
 0x691   : > { %v10442_v16 = vpop.f32.mrf.mxu2 }
 0x692   : > { %v10444_v4 = vpop.f32.mrf.mxu3  ;;  %v4747_v63 = vpop.f32.mrf.mxu1 }
 0x693   : > { %v4774_v11 = vadd.f32 %v4747_v63, %v10009_v25 }
 0x695   : > { %5158 = vmatmul.bf16.gmra.mxu1 %v10108_v20 }
 0x696   : > { %5292 = vmatmul.bf16.gmra.mxu2 %v10186_v19  ;;  %v8418_v19 = vld [vmem:[%s11197_s5 + $0x70] sm:$0xff] }
 0x697   : > { %5426 = vmatmul.bf16.gmra.mxu3 %v10190_v17  ;;  %5606 = vmatpush.bf16.msra.mxu1 %v8418_v19 }
 0x699   : > { %v4881_v56 = vpop.f32.mrf.mxu2 }
 0x69a   : > { %v4908_v12 = vadd.f32 %v4881_v56, %v4774_v11  ;;  %v5015_v10 = vpop.f32.mrf.mxu3  ;;  %v10456_v25 = vpop.f32.mrf.mxu1 }
 0x69b   : > { %5607 = vmatpush.bf16.msra.mxu1 %v8417_v46 }
 0x69c   : > { %v10458_v20 = vadd.f32 %v5015_v10, %v4908_v12 }
 0x69f   : > { %5608 = vmatpush.bf16.msra.mxu1 %v8416_v42 }
 0x6a1   : > { %v10463_v17 = vpop.f32.mrf.mxu2 }
 0x6a2   : > { %v10465_v0 = vpop.f32.mrf.mxu3  ;;  %v4752_v58 = vpop.f32.mrf.mxu1 }
 0x6a3   : > { %v4776_v8 = vadd.f32 %v4752_v58, %v10138_v15  ;;  %5609 = vmatpush.bf16.msra.mxu1 %v8415_v41  ;;  %v8406_v58 = vld [vmem:[%s11197_s5 + $0x10] sm:$0xff] }
 0x6a4   : > { %5692 = vmatpush.bf16.msrb.mxu2 %v8406_v58 }
 0x6a5   : > { %5163 = vmatmul.bf16.gmra.mxu1 %v5068_v34 }
 0x6a6   : > { %5297 = vmatmul.bf16.gmra.mxu2 %v5202_v40  ;;  %v5330_v40 = vld [vmem:[#allocation4 + $0x62] sm:$0xff] }
 0x6a7   : > { %5431 = vmatmul.bf16.gmra.mxu3 %v5336_v28  ;;  %v5331_v28 = vld [vmem:[#allocation4 + $0x6a] sm:$0x1f]  ;;  %5610 = vmatpush.bf16.msra.mxu1 %v8414_v55 }
 0x6a8   : > { %v5337_v53 = vpack.c.bf16 %v5331_v28, %v5330_v40  ;;  %5693 = vmatpush.bf16.msrb.mxu2 %v8405_v27 }
 0x6a9   : > { %v4886_v15 = vpop.f32.mrf.mxu2 }
 0x6aa   : > { %v4910_v36 = vadd.f32 %v4886_v15, %v4776_v8  ;;  %v5020_v35 = vpop.f32.mrf.mxu3  ;;  %v10486_v21 = vpop.f32.mrf.mxu1  ;;  %v8422_v8 = vld [vmem:[%s11197_s5 + $0x90] sm:$0xff] }
 0x6ac   : > { %v10488_v54 = vadd.f32 %v5020_v35, %v4910_v36  ;;  %5694 = vmatpush.bf16.msrb.mxu2 %v8404_v57  ;;  %v4494_v57 = vadd.f32 %v10099_v62, %v10101_v2 }
 0x6b1   : > { %v10496_v34 = vpop.f32.mrf.mxu2 }
 0x6b2   : > { %v10498_v18 = vpop.f32.mrf.mxu3  ;;  %v4757_v22 = vpop.f32.mrf.mxu1 }
 0x6b3   : > { %v4778_v13 = vadd.f32 %v4757_v22, %v10342_v45  ;;  %v8423_v45 = vld [vmem:[%s11197_s5 + $0x98] sm:$0xff] }
 0x6b4   : > { %5805 = vmatpush.bf16.msrb.mxu3 %v8423_v45 }
 0x6b5   : > { %5168 = vmatmul.bf16.gmra.mxu1 %v5069_v32 }
 0x6b6   : > { %5302 = vmatmul.bf16.gmra.mxu2 %v5203_v59 }
 0x6b7   : > { %5436 = vmatmul.bf16.gmra.mxu3 %v5337_v53 }
 0x6b8   : > { %5806 = vmatpush.bf16.msrb.mxu3 %v8422_v8 }
 0x6b9   : > { %v4891_v48 = vpop.f32.mrf.mxu2 }
 0x6ba   : > { %v4912_v52 = vadd.f32 %v4891_v48, %v4778_v13  ;;  %v5025_v5 = vpop.f32.mrf.mxu3  ;;  %v10505_v63 = vpop.f32.mrf.mxu1  ;;  %v8421_v13 = vld [vmem:[%s11197_s5 + $0x88] sm:$0xff]  ;;  %v8420_v48 = vld [vmem:[%s11197_s5 + $0x80] sm:$0xff] }
 0x6bc   : > { %v10507_v11 = vadd.f32 %v5025_v5, %v4912_v52  ;;  %5807 = vmatpush.bf16.msrb.mxu3 %v8421_v13  ;;  %v4489_v5 = vadd.f32 %v9982_v44, %v9984_v7  ;;  %v10579_v44 = vld [vmem:[%s11196_s4] ss:$0 sm:$0xff] }
 0x6be   : > { %v4639_v37 = vadd.f32 %v9994_v33, %v4489_v5 }
 0x6c0   : > { %5808 = vmatpush.bf16.msrb.mxu3 %v8420_v48  ;;  %v4773_v45 = vadd.f32 %v10429_v39, %v4639_v37 }
 0x6c1   : > { %v10521_v56 = vpop.f32.mrf.mxu2 }
 0x6c2   : > { %v10523_v12 = vpop.f32.mrf.mxu3  ;;  %v4762_v10 = vpop.f32.mrf.mxu1 }
 0x6c3   : > { %v4780_v19 = vadd.f32 %v4762_v10, %v10408_v23 }
 0x6c9   : > { %v4896_v50 = vpop.f32.mrf.mxu2 }
 0x6ca   : > { %v4914_v31 = vadd.f32 %v4896_v50, %v4780_v19  ;;  %v5030_v46 = vpop.f32.mrf.mxu3  ;;  %v10532_v15 = vpop.f32.mrf.mxu1  ;;  %v4907_v19 = vadd.f32 %v10442_v16, %v4773_v45 }
 0x6cc   : > { %v10534_v36 = vadd.f32 %v5030_v46, %v4914_v31  ;;  %v5041_v39 = vadd.f32 %v10444_v4, %v4907_v19  ;;  %v8435_v4 = vld [vmem:[%s11197_s5 + $0xf8] sm:$0xff] }
 0x6d1   : > { %v10536_v35 = vpop.f32.mrf.mxu2 }
 0x6d2   : > { %v10538_v23 = vpop.f32.mrf.mxu3  ;;  %v4767_v29 = vpop.f32.mrf.mxu1 }
 0x6d3   : > { %v4782_v6 = vadd.f32 %v4767_v29, %v10419_v51  ;;  %v8413_v51 = vld [vmem:[%s11197_s5 + $0x48] sm:$0xff]  ;;  %v8443_v29 = vld [vmem:[%s11197_s5 + $0x138] sm:$0xff] }
 0x6d4   : > { %5611 = vmatpush.bf16.msra.mxu1 %v8413_v51  ;;  %6049 = vmatpush.bf16.msra.mxu2 %v8443_v29 }
 0x6d8   : > { %5612 = vmatpush.bf16.msra.mxu1 %v8412_v24 }
 0x6d9   : > { %v4901_v40 = vpop.f32.mrf.mxu2 }
 0x6da   : > { %v4916_v28 = vadd.f32 %v4901_v40, %v4782_v6  ;;  %v5035_v22 = vpop.f32.mrf.mxu3  ;;  %v10556_v32 = vpop.f32.mrf.mxu1  ;;  %v8451_v6 = vld [vmem:[%s11197_s5 + $0x178] sm:$0xff] }
 0x6db   : > { %6173 = vmatpush.bf16.msra.mxu3 %v8451_v6 }
 0x6dc   : > { %v10558_v59 = vadd.f32 %v5035_v22, %v4916_v28  ;;  %5925 = vmatpush.bf16.msrb.mxu1 %v8435_v4  ;;  %v4641_v28 = vadd.f32 %v10114_v60, %v4494_v57  ;;  %v8442_v60 = vld [vmem:[%s11197_s5 + $0x130] sm:$0xff] }
 0x6dd   : > { %6050 = vmatpush.bf16.msra.mxu2 %v8442_v60 }
 0x6de   : > { %v4775_v13 = vadd.f32 %v10456_v25, %v4641_v28  ;;  %v8450_v25 = vld [vmem:[%s11197_s5 + $0x170] sm:$0xff] }
 0x6df   : > { %6174 = vmatpush.bf16.msra.mxu3 %v8450_v25 }
 0x6e0   : > { %v4909_v5 = vadd.f32 %v10463_v17, %v4775_v13 }
 0x6e1   : > { %v10560_v42 = vpop.f32.mrf.mxu2 }
 0x6e2   : > { %v10562_v53 = vpop.f32.mrf.mxu3  ;;  %v5144_v52 = vpop.f32.mrf.mxu1 }
 0x6e3   : > { %v5174_v41 = vadd.f32 %v5144_v52, %v10431_v38 }
 0x6e9   : > { %v5278_v10 = vpop.f32.mrf.mxu2 }
 0x6ea   : > { %v5308_v58 = vadd.f32 %v5278_v10, %v5174_v41  ;;  %v5412_v8 = vpop.f32.mrf.mxu3  ;;  %v5146_v7 = vpop.f32.mrf.mxu1  ;;  %v5043_v41 = vadd.f32 %v10465_v0, %v4909_v5  ;;  %v8449_v0 = vld [vmem:[%s11197_s5 + $0x168] sm:$0xff] }
 0x6eb   : > { %v5175_v31 = vadd.f32 %v5146_v7, %v5041_v39  ;;  %v8441_v39 = vld [vmem:[%s11197_s5 + $0x128] sm:$0xff]  ;;  %6175 = vmatpush.bf16.msra.mxu3 %v8449_v0 }
 0x6ec   : > { %v5442_v33 = vadd.f32 %v5412_v8, %v5308_v58  ;;  %6051 = vmatpush.bf16.msra.mxu2 %v8441_v39 }
 0x6ee   : > { %v5458_v38 = vadd.f32 %v10579_v44, %v5442_v33  ;;  %v8480_v33 = vld [vmem:[%s11199_s7 + $0x20] sm:$0xff] }
 0x6ef   : > { %6709 = vmatpush.bf16.msrb.mxu0 %v8480_v33 }
 0x6f0   : > { %v5470_v50 = vmax.f32 %v5458_v38, 0.0 }
 0x6f1   : > { %v5280_v46 = vpop.f32.mrf.mxu2 }
 0x6f2   : > { %5482 = vst [vmem:[#allocation5] sm:$0xff] %v5470_v50  ;;  %v5309_v55 = vadd.f32 %v5280_v46, %v5175_v31  ;;  %v5414_v16 = vpop.f32.mrf.mxu3  ;;  %v5149_v27 = vpop.f32.mrf.mxu1 }
 0x6f3   : > { %v5176_v48 = vadd.f32 %v5149_v27, %v10458_v20  ;;  %v8434_v20 = vld [vmem:[%s11197_s5 + $0xf0] sm:$0xff] }
 0x6f4   : > { %v5443_v40 = vadd.f32 %v5414_v16, %v5309_v55  ;;  %5926 = vmatpush.bf16.msrb.mxu1 %v8434_v20 }
 0x6f6   : > { %v5459_v22 = vadd.f32 %v10579_v44, %v5443_v40 }
 0x6f8   : > { %v10597_v51 = vmax.f32 %v5459_v22, 0.0 }
 0x6f9   : > { %v5283_v52 = vpop.f32.mrf.mxu2 }
 0x6fa   : > { %5483 = vst [vmem:[#allocation5 + $0x8] sm:$0xff] %v10597_v51  ;;  %v5310_v62 = vadd.f32 %v5283_v52, %v5176_v48  ;;  %v5417_v2 = vpop.f32.mrf.mxu3  ;;  %v5504_v37 = vpack.c.bf16 %v10597_v51, %v5470_v50  ;;  %v5151_v45 = vpop.f32.mrf.mxu1  ;;  %v4499_v50 = vadd.f32 %v10298_v61, %v10300_v14  ;;  %v8440_v48 = vld [vmem:[%s11197_s5 + $0x120] sm:$0xff] }
 0x6fb   : > { %v5177_v19 = vadd.f32 %v5151_v45, %v5043_v41  ;;  %6052 = vmatpush.bf16.msra.mxu2 %v8440_v48  ;;  %v8448_v41 = vld [vmem:[%s11197_s5 + $0x160] sm:$0xff] }
 0x6fc   : > { %v5444_v17 = vadd.f32 %v5417_v2, %v5310_v62  ;;  %5695 = vmatmul.bf16.vlgmr.msrb.gmra.mxu2 %v5504_v37  ;;  %v4643_v55 = vadd.f32 %v10311_v47, %v4499_v50  ;;  %6176 = vmatpush.bf16.msra.mxu3 %v8448_v41 }
 0x6fe   : > { %v5460_v24 = vadd.f32 %v10579_v44, %v5444_v17  ;;  %v4777_v29 = vadd.f32 %v10486_v21, %v4643_v55 }
 0x700   : > { %v10614_v10 = vmax.f32 %v5460_v24, 0.0  ;;  %v4911_v57 = vadd.f32 %v10496_v34, %v4777_v29  ;;  %v8433_v34 = vld [vmem:[%s11197_s5 + $0xe8] sm:$0xff] }
 0x701   : > { %v5285_v58 = vpop.f32.mrf.mxu2  ;;  %v5525_v27 = vld [vmem:[#allocation5 + $0x1] sm:$0xff]  ;;  %5927 = vmatpush.bf16.msrb.mxu1 %v8433_v34 }
 0x702   : > { %5484 = vst [vmem:[#allocation5 + $0x10] sm:$0xff] %v10614_v10  ;;  %v5311_v8 = vadd.f32 %v5285_v58, %v5177_v19  ;;  %v5419_v7 = vpop.f32.mrf.mxu3  ;;  %v5855_v38 = vpack.c.bf16 %v10614_v10, %v10597_v51  ;;  %v5154_v31 = vpop.f32.mrf.mxu1  ;;  %v5721_v14 = vld [vmem:[#allocation5 + $0x2] sm:$0xff]  ;;  %v5045_v62 = vadd.f32 %v10498_v18, %v4911_v57  ;;  %v8432_v18 = vld [vmem:[%s11197_s5 + $0xe0] sm:$0xff]  ;;  %v4504_v58 = vadd.f32 %v10399_v26, %v10401_v43 }
 0x703   : > { %v5178_v4 = vadd.f32 %v5154_v31, %v10488_v54  ;;  %v8431_v57 = vld [vmem:[%s11197_s5 + $0xd8] sm:$0xff] }
 0x704   : > { %v5445_v46 = vadd.f32 %v5419_v7, %v5311_v8  ;;  %v4645_v33 = vadd.f32 %v10403_v49, %v4504_v58  ;;  %v8471_v51 = vld [vmem:[%s11197_s5 + $0x218] sm:$0xff] }
 0x705   : > { %5928 = vmatpush.bf16.msrb.mxu1 %v8432_v18 }
 0x706   : > { %v5461_v16 = vadd.f32 %v10579_v44, %v5445_v46  ;;  %v4779_v0 = vadd.f32 %v10505_v63, %v4645_v33 }
 0x708   : > { %v10633_v6 = vmax.f32 %v5461_v16, 0.0  ;;  %v4913_v46 = vadd.f32 %v10521_v56, %v4779_v0 }
 0x709   : > { %v5288_v40 = vpop.f32.mrf.mxu2  ;;  %v10637_v61 = vld [vmem:[#allocation5 + $0x9] sm:$0xff]  ;;  %5929 = vmatpush.bf16.msrb.mxu1 %v8431_v57 }
 0x70a   : > { %v10639_v28 = vld [vmem:[#allocation5 + $0xa] sm:$0xff]  ;;  %5485 = vst [vmem:[#allocation5 + $0x18] sm:$0xff] %v10633_v6  ;;  %v5312_v47 = vadd.f32 %v5288_v40, %v5178_v4  ;;  %v5422_v22 = vpop.f32.mrf.mxu3  ;;  %v5535_v13 = vpack.c.bf16 %v10637_v61, %v5525_v27  ;;  %v10646_v54 = vpack.c.bf16 %v10633_v6, %v10614_v10  ;;  %v5156_v52 = vpop.f32.mrf.mxu1 }
 0x70b   : > { %v5731_v21 = vpack.c.bf16 %v10639_v28, %v5721_v14  ;;  %v5179_v60 = vadd.f32 %v5156_v52, %v5045_v62  ;;  %v8439_v4 = vld [vmem:[%s11197_s5 + $0x118] sm:$0xff]  ;;  %v8438_v62 = vld [vmem:[%s11197_s5 + $0x110] sm:$0xff]  ;;  %v8444_v57 = vld [vmem:[%s11197_s5 + $0x140] sm:$0xff] }
 0x70c   : > { %v5446_v5 = vadd.f32 %v5422_v22, %v5312_v47  ;;  %5613 = vmatmul.bf16.vlgmr.msra.gmra.mxu1 %v5535_v13  ;;  %5700 = vmatmul.bf16.gmra.mxu2 %v10646_v54  ;;  %v8447_v27 = vld [vmem:[%s11197_s5 + $0x158] sm:$0xff]  ;;  %v5047_v47 = vadd.f32 %v10523_v12, %v4913_v46  ;;  %v8446_v12 = vld [vmem:[%s11197_s5 + $0x150] sm:$0xff] }
 0x70d   : > { %5809 = vmatmul.bf16.vlgmr.msrb.gmra.mxu3 %v5731_v21  ;;  %6053 = vmatpush.bf16.msra.mxu2 %v8439_v4  ;;  %v8455_v10 = vld [vmem:[%s11197_s5 + $0x198] sm:$0xff] }
 0x70e   : > { %v5462_v2 = vadd.f32 %v10579_v44, %v5446_v5  ;;  %6177 = vmatpush.bf16.msra.mxu3 %v8447_v27 }
 0x710   : > { %v10657_v37 = vmax.f32 %v5462_v2, 0.0  ;;  %v8430_v2 = vld [vmem:[%s11197_s5 + $0xd0] sm:$0xff] }
 0x711   : > { %v5290_v25 = vpop.f32.mrf.mxu2  ;;  %v10659_v20 = vld [vmem:[#allocation5 + $0x12] sm:$0xff]  ;;  %6054 = vmatpush.bf16.msra.mxu2 %v8438_v62  ;;  %5930 = vmatpush.bf16.msrb.mxu1 %v8430_v2 }
 0x712   : > { %5486 = vst [vmem:[#allocation5 + $0x20] sm:$0xff] %v10657_v37  ;;  %v5313_v45 = vadd.f32 %v5290_v25, %v5179_v60  ;;  %v5424_v17 = vpop.f32.mrf.mxu3  ;;  %v6103_v24 = vpack.c.bf16 %v10659_v20, %v10639_v28  ;;  %v5856_v19 = vpack.c.bf16 %v10657_v37, %v10633_v6  ;;  %v5159_v8 = vpop.f32.mrf.mxu1  ;;  %v10681_v16 = vld [vmem:[#allocation5 + $0x11] sm:$0xff]  ;;  %6178 = vmatpush.bf16.msra.mxu3 %v8446_v12  ;;  %v8470_v28 = vld [vmem:[%s11197_s5 + $0x210] sm:$0xff] }
 0x713   : > { %v5180_v31 = vadd.f32 %v5159_v8, %v10507_v11 }
 0x714   : > { %v5447_v7 = vadd.f32 %v5424_v17, %v5313_v45  ;;  %v4509_v45 = vadd.f32 %v10415_v9, %v10413_v3 }
 0x716   : > { %v5463_v39 = vadd.f32 %v10579_v44, %v5447_v7  ;;  %v4647_v18 = vadd.f32 %v10417_v1, %v4509_v45 }
 0x718   : > { %v10677_v50 = vmax.f32 %v5463_v39, 0.0  ;;  %v4781_v8 = vadd.f32 %v10532_v15, %v4647_v18  ;;  %v8467_v18 = vld [vmem:[%s11197_s5 + $0x1f8] sm:$0xff] }
 0x719   : > { %v5293_v55 = vpop.f32.mrf.mxu2  ;;  %v10683_v26 = vld [vmem:[#allocation5 + $0x19] sm:$0xff] }
 0x71a   : > { %v10685_v43 = vld [vmem:[#allocation5 + $0x1a] sm:$0xff]  ;;  %5487 = vst [vmem:[#allocation5 + $0x28] sm:$0xff] %v10677_v50  ;;  %v5314_v49 = vadd.f32 %v5293_v55, %v5180_v31  ;;  %v5427_v29 = vpop.f32.mrf.mxu3  ;;  %v10690_v63 = vpack.c.bf16 %v10683_v26, %v10681_v16  ;;  %v10698_v56 = vpack.c.bf16 %v10677_v50, %v10657_v37  ;;  %v5161_v40 = vpop.f32.mrf.mxu1  ;;  %v4915_v39 = vadd.f32 %v10536_v35, %v4781_v8 }
 0x71b   : > { %v10694_v11 = vpack.c.bf16 %v10685_v43, %v10659_v20  ;;  %v5181_v21 = vadd.f32 %v5161_v40, %v5047_v47  ;;  %v8437_v55 = vld [vmem:[%s11197_s5 + $0x108] sm:$0xff]  ;;  %v8436_v47 = vld [vmem:[%s11197_s5 + $0x100] sm:$0xff]  ;;  %v4783_v8 = vadd.f32 %v10556_v32, %v10421_v30  ;;  %v8454_v20 = vld [vmem:[%s11197_s5 + $0x190] sm:$0xff] }
 0x71c   : > { %v5448_v14 = vadd.f32 %v5427_v29, %v5314_v49  ;;  %5618 = vmatmul.bf16.gmra.mxu1 %v10690_v63  ;;  %5705 = vmatmul.bf16.gmra.mxu2 %v10698_v56  ;;  %v8445_v49 = vld [vmem:[%s11197_s5 + $0x148] sm:$0xff]  ;;  %v5049_v40 = vadd.f32 %v10538_v23, %v4915_v39  ;;  %v8478_v37 = vld [vmem:[%s11199_s7 + $0x10] sm:$0xff] }
 0x71d   : > { %5814 = vmatmul.bf16.gmra.mxu3 %v10694_v11  ;;  %v8429_v29 = vld [vmem:[%s11197_s5 + $0xc8] sm:$0xff]  ;;  %6055 = vmatpush.bf16.msra.mxu2 %v8437_v55 }
 0x71e   : > { %v5464_v22 = vadd.f32 %v10579_v44, %v5448_v14  ;;  %6179 = vmatpush.bf16.msra.mxu3 %v8445_v49  ;;  %5931 = vmatpush.bf16.msrb.mxu1 %v8429_v29 }
 0x720   : > { %v10714_v13 = vmax.f32 %v5464_v22, 0.0  ;;  %v8428_v22 = vld [vmem:[%s11197_s5 + $0xc0] sm:$0xff] }
 0x721   : > { %v5295_v34 = vpop.f32.mrf.mxu2  ;;  %v10716_v48 = vld [vmem:[#allocation5 + $0x22] sm:$0xff]  ;;  %6056 = vmatpush.bf16.msra.mxu2 %v8436_v47 }
 0x722   : > { %5488 = vst [vmem:[#allocation5 + $0x30] sm:$0xff] %v10714_v13  ;;  %v5315_v52 = vadd.f32 %v5295_v34, %v5181_v21  ;;  %v5429_v5 = vpop.f32.mrf.mxu3  ;;  %v6104_v60 = vpack.c.bf16 %v10716_v48, %v10685_v43  ;;  %v5857_v25 = vpack.c.bf16 %v10714_v13, %v10677_v50  ;;  %v5164_v17 = vpop.f32.mrf.mxu1  ;;  %v10741_v31 = vld [vmem:[#allocation5 + $0x21] sm:$0xff]  ;;  %6180 = vmatpush.bf16.msra.mxu3 %v8444_v57  ;;  %v8452_v50 = vld [vmem:[%s11197_s5 + $0x180] sm:$0xff] }
 0x723   : > { %v5182_v33 = vadd.f32 %v5164_v17, %v10534_v36  ;;  %5932 = vmatpush.bf16.msrb.mxu1 %v8428_v22  ;;  %v8459_v57 = vld [vmem:[%s11197_s5 + $0x1b8] sm:$0xff] }
 0x724   : > { %v5449_v41 = vadd.f32 %v5429_v5, %v5315_v52 }
 0x725   : > { %6421 = vmatpush.bf16.msrb.mxu2 %v8467_v18 }
 0x726   : > { %v5465_v58 = vadd.f32 %v10579_v44, %v5449_v41  ;;  %v8479_v41 = vld [vmem:[%s11199_s7 + $0x18] sm:$0xff] }
 0x727   : > { %6710 = vmatpush.bf16.msrb.mxu0 %v8479_v41  ;;  %6297 = vmatpush.bf16.msra.mxu1 %v8459_v57 }
 0x728   : > { %v10737_v7 = vmax.f32 %v5465_v58, 0.0 }
 0x729   : > { %v5298_v0 = vpop.f32.mrf.mxu2  ;;  %v10743_v3 = vld [vmem:[#allocation5 + $0x29] sm:$0xff] }
 0x72a   : > { %v10745_v9 = vld [vmem:[#allocation5 + $0x2a] sm:$0xff]  ;;  %5489 = vst [vmem:[#allocation5 + $0x38] sm:$0xff] %v10737_v7  ;;  %v5316_v1 = vadd.f32 %v5298_v0, %v5182_v33  ;;  %v5432_v46 = vpop.f32.mrf.mxu3  ;;  %v10750_v15 = vpack.c.bf16 %v10743_v3, %v10741_v31  ;;  %v10758_v35 = vpack.c.bf16 %v10737_v7, %v10714_v13  ;;  %v5166_v4 = vpop.f32.mrf.mxu1  ;;  %v4917_v0 = vadd.f32 %v10560_v42, %v4783_v8  ;;  %v8474_v8 = vld [vmem:[%s11197_s5 + $0x230] sm:$0xff] }
 0x72b   : > { %v10754_v36 = vpack.c.bf16 %v10745_v9, %v10716_v48  ;;  %v5183_v34 = vadd.f32 %v5166_v4, %v5049_v40  ;;  %6711 = vmatpush.bf16.msrb.mxu0 %v8478_v37  ;;  %v8460_v48 = vld [vmem:[%s11197_s5 + $0x1c0] sm:$0xff] }
 0x72c   : > { %v5450_v27 = vadd.f32 %v5432_v46, %v5316_v1  ;;  %5623 = vmatmul.bf16.gmra.mxu1 %v10750_v15  ;;  %5710 = vmatmul.bf16.gmra.mxu2 %v10758_v35 }
 0x72d   : > { %5819 = vmatmul.bf16.gmra.mxu3 %v10754_v36 }
 0x72e   : > { %v5466_v14 = vadd.f32 %v10579_v44, %v5450_v27  ;;  %v8475_v27 = vld [vmem:[%s11197_s5 + $0x238] sm:$0xff] }
 0x72f   : > { %6545 = vmatpush.bf16.msrb.mxu3 %v8475_v27 }
 0x730   : > { %v10783_v21 = vmax.f32 %v5466_v14, 0.0  ;;  %v5051_v14 = vadd.f32 %v10562_v53, %v4917_v0 }
 0x731   : > { %v5300_v52 = vpop.f32.mrf.mxu2  ;;  %v10785_v5 = vld [vmem:[#allocation5 + $0x32] sm:$0xff] }
 0x732   : > { %5490 = vst [vmem:[#allocation5 + $0x40] sm:$0xff] %v10783_v21  ;;  %v5317_v23 = vadd.f32 %v5300_v52, %v5183_v34  ;;  %v5434_v62 = vpop.f32.mrf.mxu3  ;;  %v6105_v12 = vpack.c.bf16 %v10785_v5, %v10745_v9  ;;  %v5169_v2 = vpop.f32.mrf.mxu1  ;;  %v5858_v45 = vpack.c.bf16 %v10783_v21, %v10737_v7  ;;  %v10805_v46 = vld [vmem:[#allocation5 + $0x31] sm:$0xff] }
 0x733   : > { %v5184_v39 = vadd.f32 %v5169_v2, %v10558_v59  ;;  %6546 = vmatpush.bf16.msrb.mxu3 %v8474_v8  ;;  %v5981_v6 = vpack.c.bf16 %v10805_v46, %v10743_v3 }
 0x734   : > { %v5451_v17 = vadd.f32 %v5434_v62, %v5317_v23 }
 0x736   : > { %v5467_v58 = vadd.f32 %v10579_v44, %v5451_v17 }
 0x738   : > { %v10801_v33 = vmax.f32 %v5467_v58, 0.0  ;;  %v8466_v58 = vld [vmem:[%s11197_s5 + $0x1f0] sm:$0xff] }
 0x739   : > { %v5303_v1 = vpop.f32.mrf.mxu2  ;;  %v10807_v55 = vld [vmem:[#allocation5 + $0x39] sm:$0xff]  ;;  %6422 = vmatpush.bf16.msrb.mxu2 %v8466_v58  ;;  %v5980_v58 = vpack.c.bf16 %v10741_v31, %v10683_v26  ;;  %v8468_v31 = vld [vmem:[%s11197_s5 + $0x200] sm:$0xff] }
 0x73a   : > { %v10809_v49 = vld [vmem:[#allocation5 + $0x3a] sm:$0xff]  ;;  %5491 = vst [vmem:[#allocation5 + $0x48] sm:$0xff] %v10801_v33  ;;  %v5318_v29 = vadd.f32 %v5303_v1, %v5184_v39  ;;  %v5437_v4 = vpop.f32.mrf.mxu3  ;;  %v10814_v30 = vpack.c.bf16 %v10807_v55, %v10805_v46  ;;  %v6230_v59 = vpack.c.bf16 %v10801_v33, %v10783_v21  ;;  %v5171_v40 = vpop.f32.mrf.mxu1 }
 0x73b   : > { %v10818_v32 = vpack.c.bf16 %v10809_v49, %v10785_v5  ;;  %v5185_v34 = vadd.f32 %v5171_v40, %v5051_v14  ;;  %v8458_v39 = vld [vmem:[%s11197_s5 + $0x1b0] sm:$0xff]  ;;  %v8453_v26 = vld [vmem:[%s11197_s5 + $0x188] sm:$0xff] }
 0x73c   : > { %v5452_v42 = vadd.f32 %v5437_v4, %v5318_v29  ;;  %5628 = vmatmul.bf16.gmra.mxu1 %v10814_v30 }
 0x73d   : > { %5824 = vmatmul.bf16.gmra.mxu3 %v10818_v32  ;;  %6298 = vmatpush.bf16.msra.mxu1 %v8458_v39 }
 0x73e   : > { %v10832_v47 = vadd.f32 %v10579_v44, %v5452_v42 }
 0x740   : > { %v5480_v22 = vmax.f32 %v10832_v47, 0.0 }
 0x741   : > { %v5305_v52 = vpop.f32.mrf.mxu2  ;;  %v5503_v23 = vld [vmem:[#allocation5 + $0x48] sm:$0x7] }
 0x742   : > { %5492 = vst [vmem:[#allocation5 + $0x50] sm:$0xff] %v5480_v22  ;;  %v5319_v62 = vadd.f32 %v5305_v52, %v5185_v34  ;;  %v5508_v2 = vpack.c.bf16 %v5503_v23, %v10783_v21  ;;  %v10838_v17 = vld [vmem:[#allocation5 + $0x42] sm:$0xff]  ;;  %v5439_v41 = vpop.f32.mrf.mxu3  ;;  %v5730_v4 = vld [vmem:[#allocation5 + $0x4a] sm:$0x7]  ;;  %v8465_v52 = vld [vmem:[%s11197_s5 + $0x1e8] sm:$0xff] }
 0x743   : > { %v6106_v53 = vpack.c.bf16 %v10838_v17, %v10809_v49  ;;  %v10852_v1 = vld [vmem:[#allocation5 + $0x41] sm:$0xff]  ;;  %v5534_v29 = vld [vmem:[#allocation5 + $0x49] sm:$0x7]  ;;  %v5735_v40 = vpack.c.bf16 %v5730_v4, %v10838_v17  ;;  %v8473_v23 = vld [vmem:[%s11197_s5 + $0x228] sm:$0xff]  ;;  %6423 = vmatpush.bf16.msrb.mxu2 %v8465_v52 }
 0x744   : > { %v5453_v18 = vadd.f32 %v5439_v41, %v5319_v62  ;;  %5715 = vmatmul.bf16.gmra.mxu2 %v5508_v2  ;;  %v5539_v57 = vpack.c.bf16 %v5534_v29, %v10852_v1  ;;  %v8457_v62 = vld [vmem:[%s11197_s5 + $0x1a8] sm:$0xff]  ;;  %6547 = vmatpush.bf16.msrb.mxu3 %v8473_v23  ;;  %v5979_v2 = vpack.c.bf16 %v10681_v16, %v10637_v61  ;;  %v8464_v41 = vld [vmem:[%s11197_s5 + $0x1e0] sm:$0xff]  ;;  %v8463_v16 = vld [vmem:[%s11197_s5 + $0x1d8] sm:$0xff] }
 0x745   : > { %6299 = vmatpush.bf16.msra.mxu1 %v8457_v62  ;;  %v8456_v61 = vld [vmem:[%s11197_s5 + $0x1a0] sm:$0xff] }
 0x746   : > { %v5469_v0 = vadd.f32 %v10579_v44, %v5453_v18  ;;  %v8472_v18 = vld [vmem:[%s11197_s5 + $0x220] sm:$0xff] }
 0x747   : > { %6424 = vmatpush.bf16.msrb.mxu2 %v8464_v41 }
 0x748   : > { %v5481_v42 = vmax.f32 %v5469_v0, 0.0  ;;  %6548 = vmatpush.bf16.msrb.mxu3 %v8472_v18 }
 0x749   : > { %v10854_v27 = vld [vmem:[#allocation5 + $0x49] sm:$0xff]  ;;  %6300 = vmatpush.bf16.msra.mxu1 %v8456_v61  ;;  %v5978_v5 = vld [vmem:[#allocation5 + $0x51] sm:$0x7] }
 0x74a   : > { %5493 = vst [vmem:[#allocation5 + $0x58] sm:$0x1f] %v5481_v42  ;;  %v10858_v14 = vld [vmem:[#allocation5 + $0x4a] sm:$0xff]  ;;  %v6354_v44 = vpack.c.bf16 %v10854_v27, %v10852_v1  ;;  %v5983_v39 = vpack.c.bf16 %v5978_v5, %v10854_v27  ;;  %v6102_v4 = vld [vmem:[#allocation5 + $0x52] sm:$0x7] }
 0x74b   : > { %v6478_v34 = vpack.c.bf16 %v10858_v14, %v10838_v17  ;;  %6425 = vmatpush.bf16.msrb.mxu2 %v8463_v16  ;;  %v5854_v29 = vld [vmem:[#allocation5 + $0x50] sm:$0x7] }
 0x74c   : > { %5633 = vmatmul.bf16.gmra.mxu1 %v5539_v57  ;;  %6549 = vmatpush.bf16.msrb.mxu3 %v8471_v51  ;;  %v5859_v49 = vpack.c.bf16 %v5854_v29, %v10801_v33 }
 0x74d   : > { %5829 = vmatmul.bf16.gmra.mxu3 %v5735_v40  ;;  %6301 = vmatpush.bf16.msra.mxu1 %v8455_v10 }
 0x750   : > { %6550 = vmatpush.bf16.msrb.mxu3 %v8470_v28 }
 0x751   : > { %6302 = vmatpush.bf16.msra.mxu1 %v8454_v20  ;;  %v6350_v27 = vld [vmem:[#allocation5 + $0x59] sm:$0x7] }
 0x752   : > { %v6226_v33 = vld [vmem:[#allocation5 + $0x58] sm:$0x7] }
 0x754   : > { %6057 = vmatmul.bf16.vlgmr.msra.gmra.mxu2 %v5979_v2 }
 0x755   : > { %6303 = vmatpush.bf16.msra.mxu1 %v8453_v26 }
 0x759   : > { %6304 = vmatpush.bf16.msra.mxu1 %v8452_v50 }
 0x75c   : > { %5933 = vmatmul.bf16.vlgmr.msrb.gmra.mxu1 %v5855_v38  ;;  %v8462_v38 = vld [vmem:[%s11197_s5 + $0x1d0] sm:$0xff] }
 0x75d   : > { %6181 = vmatmul.bf16.vlgmr.msra.gmra.mxu3 %v6103_v24  ;;  %6426 = vmatpush.bf16.msrb.mxu2 %v8462_v38  ;;  %v8461_v24 = vld [vmem:[%s11197_s5 + $0x1c8] sm:$0xff] }
 0x75e   : > { %v8477_v38 = vld [vmem:[%s11199_s7 + $0x8] sm:$0xff] }
 0x75f   : > { %6712 = vmatpush.bf16.msrb.mxu0 %v8477_v38 }
 0x761   : > { %6427 = vmatpush.bf16.msrb.mxu2 %v8461_v24 }
 0x764   : > { %6062 = vmatmul.bf16.gmra.mxu2 %v5980_v58 }
 0x765   : > { %6428 = vmatpush.bf16.msrb.mxu2 %v8460_v48 }
 0x76c   : > { %5938 = vmatmul.bf16.gmra.mxu1 %v5856_v19  ;;  %v8469_v19 = vld [vmem:[%s11197_s5 + $0x208] sm:$0xff] }
 0x76d   : > { %6186 = vmatmul.bf16.gmra.mxu3 %v6104_v60  ;;  %v5982_v60 = vpack.c.bf16 %v10852_v1, %v10807_v55  ;;  %v6349_v1 = vld [vmem:[#allocation5 + $0x51] sm:$0xff] }
 0x76e   : > { %6551 = vmatpush.bf16.msrb.mxu3 %v8469_v19 }
 0x772   : > { %6552 = vmatpush.bf16.msrb.mxu3 %v8468_v31 }
 0x774   : > { %6067 = vmatmul.bf16.gmra.mxu2 %v5981_v6 }
 0x77c   : > { %5943 = vmatmul.bf16.gmra.mxu1 %v5857_v25 }
 0x77d   : > { %6191 = vmatmul.bf16.gmra.mxu3 %v6105_v12 }
 0x77f   : > { %v5696_v43 = vpop.f32.mrf.mxu2 }
 0x784   : > { %6072 = vmatmul.bf16.gmra.mxu2 %v5982_v60 }
 0x787   : > { %v5698_v13 = vpop.f32.mrf.mxu2 }
 0x789   : > { %v5614_v25 = vpop.f32.mrf.mxu1 }
 0x78a   : > { %v5697_v3 = vadd.f32 %v5696_v43, %v5614_v25 }
 0x78c   : > { %5948 = vmatmul.bf16.gmra.mxu1 %v5858_v45 }
 0x78d   : > { %6196 = vmatmul.bf16.gmra.mxu3 %v6106_v53  ;;  %v6107_v53 = vpack.c.bf16 %v6102_v4, %v10858_v14  ;;  %v6355_v4 = vpack.c.bf16 %v6350_v27, %v6349_v1 }
 0x78f   : > { %v5701_v46 = vpop.f32.mrf.mxu2 }
 0x790   : > { %v5810_v9 = vpop.f32.mrf.mxu3 }
 0x791   : > { %v10953_v12 = vadd.f32 %v5810_v9, %v5697_v3  ;;  %v5616_v55 = vpop.f32.mrf.mxu1 }
 0x792   : > { %v5699_v8 = vadd.f32 %v5698_v13, %v5616_v55 }
 0x794   : > { %6077 = vmatmul.bf16.gmra.mxu2 %v5983_v39 }
 0x797   : > { %v5703_v7 = vpop.f32.mrf.mxu2 }
 0x798   : > { %v5812_v0 = vpop.f32.mrf.mxu3 }
 0x799   : > { %v10956_v42 = vadd.f32 %v5812_v0, %v5699_v8  ;;  %v5619_v45 = vpop.f32.mrf.mxu1 }
 0x79a   : > { %v5702_v57 = vadd.f32 %v5701_v46, %v5619_v45  ;;  %v6474_v45 = vld [vmem:[#allocation5 + $0x5a] sm:$0x7] }
 0x79c   : > { %5953 = vmatmul.bf16.gmra.mxu1 %v5859_v49 }
 0x79d   : > { %6201 = vmatmul.bf16.gmra.mxu3 %v6107_v53 }
 0x79f   : > { %v5706_v62 = vpop.f32.mrf.mxu2 }
 0x7a0   : > { %v5815_v40 = vpop.f32.mrf.mxu3 }
 0x7a1   : > { %v10960_v52 = vadd.f32 %v5815_v40, %v5702_v57  ;;  %v5621_v23 = vpop.f32.mrf.mxu1  ;;  %v6231_v57 = vpack.c.bf16 %v6226_v33, %v5480_v22 }
 0x7a2   : > { %v5704_v2 = vadd.f32 %v5703_v7, %v5621_v23 }
 0x7a4   : > { %6429 = vmatmul.bf16.vlgmr.msrb.gmra.mxu2 %v10690_v63 }
 0x7a7   : > { %v5708_v58 = vpop.f32.mrf.mxu2 }
 0x7a8   : > { %v5817_v41 = vpop.f32.mrf.mxu3 }
 0x7a9   : > { %v10963_v18 = vadd.f32 %v5817_v41, %v5704_v2  ;;  %v5624_v61 = vpop.f32.mrf.mxu1 }
 0x7aa   : > { %v5707_v16 = vadd.f32 %v5706_v62, %v5624_v61 }
 0x7ac   : > { %6305 = vmatmul.bf16.vlgmr.msra.gmra.mxu1 %v10646_v54 }
 0x7ad   : > { %6553 = vmatmul.bf16.vlgmr.msrb.gmra.mxu3 %v10694_v11 }
 0x7af   : > { %v5711_v63 = vpop.f32.mrf.mxu2 }
 0x7b0   : > { %v5820_v51 = vpop.f32.mrf.mxu3 }
 0x7b1   : > { %v10967_v10 = vadd.f32 %v5820_v51, %v5707_v16  ;;  %v5626_v28 = vpop.f32.mrf.mxu1 }
 0x7b2   : > { %v5709_v20 = vadd.f32 %v5708_v58, %v5626_v28 }
 0x7b4   : > { %6434 = vmatmul.bf16.gmra.mxu2 %v10750_v15 }
 0x7b7   : > { %v5713_v11 = vpop.f32.mrf.mxu2 }
 0x7b8   : > { %v5822_v6 = vpop.f32.mrf.mxu3 }
 0x7b9   : > { %v10973_v37 = vadd.f32 %v5822_v6, %v5709_v20  ;;  %v5629_v24 = vpop.f32.mrf.mxu1 }
 0x7ba   : > { %v5712_v54 = vadd.f32 %v5711_v63, %v5629_v24 }
 0x7bc   : > { %6310 = vmatmul.bf16.gmra.mxu1 %v10698_v56 }
 0x7bd   : > { %6558 = vmatmul.bf16.gmra.mxu3 %v10754_v36 }
 0x7c0   : > { %v5825_v19 = vpop.f32.mrf.mxu3 }
 0x7c1   : > { %v10977_v26 = vadd.f32 %v5825_v19, %v5712_v54  ;;  %v5631_v43 = vpop.f32.mrf.mxu1 }
 0x7c2   : > { %v5714_v48 = vadd.f32 %v5713_v11, %v5631_v43 }
 0x7c4   : > { %6439 = vmatmul.bf16.gmra.mxu2 %v10814_v30 }
 0x7c7   : > { %v5716_v60 = vpop.f32.mrf.mxu2 }
 0x7c8   : > { %v5827_v15 = vpop.f32.mrf.mxu3 }
 0x7c9   : > { %v10980_v31 = vadd.f32 %v5827_v15, %v5714_v48  ;;  %v5634_v50 = vpop.f32.mrf.mxu1 }
 0x7ca   : > { %v5717_v13 = vadd.f32 %v5716_v60, %v5634_v50 }
 0x7cc   : > { %6315 = vmatmul.bf16.gmra.mxu1 %v10758_v35 }
 0x7cd   : > { %6563 = vmatmul.bf16.gmra.mxu3 %v10818_v32 }
 0x7cf   : > { %v5718_v56 = vpop.f32.mrf.mxu2 }
 0x7d0   : > { %v5830_v36 = vpop.f32.mrf.mxu3 }
 0x7d1   : > { %v10984_v25 = vadd.f32 %v5830_v36, %v5717_v13  ;;  %v5636_v3 = vpop.f32.mrf.mxu1 }
 0x7d2   : > { %v5719_v9 = vadd.f32 %v5718_v56, %v5636_v3 }
 0x7d4   : > { %6444 = vmatmul.bf16.gmra.mxu2 %v6354_v44 }
 0x7d7   : > { %v6058_v5 = vpop.f32.mrf.mxu2 }
 0x7d8   : > { %v5832_v30 = vpop.f32.mrf.mxu3 }
 0x7d9   : > { %v10989_v46 = vadd.f32 %v5832_v30, %v5719_v9  ;;  %v5934_v55 = vpop.f32.mrf.mxu1 }
 0x7da   : > { %v5959_v8 = vadd.f32 %v5934_v55, %v10953_v12 }
 0x7dc   : > { %6320 = vmatmul.bf16.gmra.mxu1 %v6230_v59  ;;  %v6083_v35 = vadd.f32 %v6058_v5, %v5959_v8  ;;  %v6473_v59 = vld [vmem:[#allocation5 + $0x52] sm:$0xff] }
 0x7dd   : > { %6568 = vmatmul.bf16.gmra.mxu3 %v6478_v34  ;;  %v6479_v49 = vpack.c.bf16 %v6474_v45, %v6473_v59 }
 0x7df   : > { %v6060_v32 = vpop.f32.mrf.mxu2 }
 0x7e0   : > { %v6182_v39 = vpop.f32.mrf.mxu3 }
 0x7e1   : > { %v10998_v44 = vadd.f32 %v6182_v39, %v6083_v35  ;;  %v5936_v0 = vpop.f32.mrf.mxu1 }
 0x7e2   : > { %v5960_v29 = vadd.f32 %v5936_v0, %v10956_v42  ;;  %v8476_v42 = vld [vmem:[%s11199_s7] sm:$0xff] }
 0x7e3   : > { %6713 = vmatpush.bf16.msrb.mxu0 %v8476_v42 }
 0x7e4   : > { %6449 = vmatmul.bf16.gmra.mxu2 %v6355_v4  ;;  %v6084_v12 = vadd.f32 %v6060_v32, %v5960_v29 }
 0x7e7   : > { %v6063_v7 = vpop.f32.mrf.mxu2 }
 0x7e8   : > { %v6184_v21 = vpop.f32.mrf.mxu3 }
 0x7e9   : > { %v11001_v17 = vadd.f32 %v6184_v21, %v6084_v12  ;;  %v5939_v14 = vpop.f32.mrf.mxu1 }
 0x7ea   : > { %v5961_v34 = vadd.f32 %v5939_v14, %v10960_v52 }
 0x7ec   : > { %6325 = vmatmul.bf16.gmra.mxu1 %v6231_v57  ;;  %v6085_v53 = vadd.f32 %v6063_v7, %v5961_v34 }
 0x7ed   : > { %6573 = vmatmul.bf16.gmra.mxu3 %v6479_v49 }
 0x7ef   : > { %v6065_v40 = vpop.f32.mrf.mxu2 }
 0x7f0   : > { %v6187_v23 = vpop.f32.mrf.mxu3 }
 0x7f1   : > { %v6209_v62 = vadd.f32 %v6187_v23, %v6085_v53  ;;  %v5941_v2 = vpop.f32.mrf.mxu1 }
 0x7f2   : > { %v5962_v41 = vadd.f32 %v5941_v2, %v10963_v18 }
 0x7f4   : > { %v6086_v61 = vadd.f32 %v6065_v40, %v5962_v41 }
 0x7f7   : > { %v6068_v52 = vpop.f32.mrf.mxu2 }
 0x7f8   : > { %v6189_v16 = vpop.f32.mrf.mxu3 }
 0x7f9   : > { %v11010_v47 = vadd.f32 %v6189_v16, %v6086_v61  ;;  %v5944_v22 = vpop.f32.mrf.mxu1 }
 0x7fa   : > { %v5963_v58 = vadd.f32 %v5944_v22, %v10967_v10 }
 0x7fc   : > { %v6087_v51 = vadd.f32 %v6068_v52, %v5963_v58 }
 0x7ff   : > { %v6070_v38 = vpop.f32.mrf.mxu2 }
 0x800   : > { %v6192_v28 = vpop.f32.mrf.mxu3 }
 0x801   : > { %v11013_v20 = vadd.f32 %v6192_v28, %v6087_v51  ;;  %v5946_v63 = vpop.f32.mrf.mxu1 }
 0x802   : > { %v5964_v6 = vadd.f32 %v5946_v63, %v10973_v37 }
 0x804   : > { %v6088_v24 = vadd.f32 %v6070_v38, %v5964_v6 }
 0x807   : > { %v6073_v54 = vpop.f32.mrf.mxu2 }
 0x808   : > { %v6194_v11 = vpop.f32.mrf.mxu3 }
 0x809   : > { %v11016_v18 = vadd.f32 %v6194_v11, %v6088_v24  ;;  %v5949_v19 = vpop.f32.mrf.mxu1 }
 0x80a   : > { %v5965_v43 = vadd.f32 %v5949_v19, %v10977_v26 }
 0x80c   : > { %v6089_v48 = vadd.f32 %v6073_v54, %v5965_v43 }
 0x80f   : > { %v6075_v60 = vpop.f32.mrf.mxu2 }
 0x810   : > { %v6197_v15 = vpop.f32.mrf.mxu3 }
 0x811   : > { %v11019_v10 = vadd.f32 %v6197_v15, %v6089_v48  ;;  %v5951_v50 = vpop.f32.mrf.mxu1 }
 0x812   : > { %v5966_v13 = vadd.f32 %v5951_v50, %v10980_v31 }
 0x814   : > { %v6090_v56 = vadd.f32 %v6075_v60, %v5966_v13 }
 0x817   : > { %v6078_v36 = vpop.f32.mrf.mxu2 }
 0x818   : > { %v6199_v3 = vpop.f32.mrf.mxu3 }
 0x819   : > { %v11022_v37 = vadd.f32 %v6199_v3, %v6090_v56  ;;  %v5954_v9 = vpop.f32.mrf.mxu1 }
 0x81a   : > { %v5967_v30 = vadd.f32 %v5954_v9, %v10984_v25  ;;  %v11034_v25 = vld [vmem:[%s11198_s6] ss:$0 sm:$0xff] }
 0x81c   : > { %v6091_v5 = vadd.f32 %v6078_v36, %v5967_v30 }
 0x81f   : > { %v6080_v55 = vpop.f32.mrf.mxu2 }
 0x820   : > { %v6202_v8 = vpop.f32.mrf.mxu3 }
 0x821   : > { %v11025_v26 = vadd.f32 %v6202_v8, %v6091_v5  ;;  %v5956_v35 = vpop.f32.mrf.mxu1 }
 0x822   : > { %v5968_v32 = vadd.f32 %v5956_v35, %v10989_v46 }
 0x824   : > { %v6092_v39 = vadd.f32 %v6080_v55, %v5968_v32 }
 0x827   : > { %v6430_v27 = vpop.f32.mrf.mxu2 }
 0x828   : > { %v6204_v1 = vpop.f32.mrf.mxu3 }
 0x829   : > { %v11028_v31 = vadd.f32 %v6204_v1, %v6092_v39  ;;  %v6306_v0 = vpop.f32.mrf.mxu1 }
 0x82a   : > { %v6331_v29 = vadd.f32 %v6306_v0, %v10998_v44 }
 0x82c   : > { %v6455_v4 = vadd.f32 %v6430_v27, %v6331_v29 }
 0x82f   : > { %v6432_v12 = vpop.f32.mrf.mxu2 }
 0x830   : > { %v6554_v7 = vpop.f32.mrf.mxu3 }
 0x831   : > { %v6579_v21 = vadd.f32 %v6554_v7, %v6455_v4  ;;  %v6308_v33 = vpop.f32.mrf.mxu1 }
 0x832   : > { %v6332_v59 = vadd.f32 %v6308_v33, %v11001_v17 }
 0x833   : > { %v6593_v46 = vadd.f32 %v11034_v25, %v6579_v21 }
 0x834   : > { %v6456_v14 = vadd.f32 %v6432_v12, %v6332_v59 }
 0x835   : > { %v6603_v45 = vmax.f32 %v6593_v46, 0.0 }
 0x837   : > { %v6435_v34 = vpop.f32.mrf.mxu2 }
 0x838   : > { %v6556_v57 = vpop.f32.mrf.mxu3 }
 0x839   : > { %v6580_v49 = vadd.f32 %v6556_v57, %v6456_v14  ;;  %v6311_v44 = vpop.f32.mrf.mxu1 }
 0x83a   : > { %v6333_v53 = vadd.f32 %v6311_v44, %v6209_v62 }
 0x83b   : > { %v6594_v42 = vadd.f32 %v11034_v25, %v6580_v49 }
 0x83c   : > { %v6457_v23 = vadd.f32 %v6435_v34, %v6333_v53 }
 0x83d   : > { %v6604_v40 = vmax.f32 %v6594_v42, 0.0 }
 0x83f   : > { %v6633_v2 = vpack.c.bf16 %v6604_v40, %v6603_v45  ;;  %v6437_v41 = vpop.f32.mrf.mxu2 }
 0x840   : > { %v6559_v61 = vpop.f32.mrf.mxu3 }
 0x841   : > { %v6581_v52 = vadd.f32 %v6559_v61, %v6457_v23  ;;  %6714 = vmatmul.bf16.vlgmr.msrb.gmra.mxu0 %v6633_v2  ;;  %v6313_v16 = vpop.f32.mrf.mxu1 }
 0x842   : > { %v6334_v17 = vadd.f32 %v6313_v16, %v11010_v47  ;;  %v8503_v16 = vld [vmem:[%s11200_s8] ss:$0 sm:$0xff] }
 0x843   : > { %v6595_v22 = vadd.f32 %v11034_v25, %v6581_v52 }
 0x844   : > { %v6458_v51 = vadd.f32 %v6437_v41, %v6334_v17 }
 0x845   : > { %v6605_v58 = vmax.f32 %v6595_v22, 0.0 }
 0x847   : > { %v6440_v38 = vpop.f32.mrf.mxu2 }
 0x848   : > { %v6561_v28 = vpop.f32.mrf.mxu3 }
 0x849   : > { %v6582_v63 = vadd.f32 %v6561_v28, %v6458_v51  ;;  %v6316_v6 = vpop.f32.mrf.mxu1 }
 0x84a   : > { %v6335_v24 = vadd.f32 %v6316_v6, %v11013_v20 }
 0x84b   : > { %v6596_v62 = vadd.f32 %v11034_v25, %v6582_v63 }
 0x84c   : > { %v6459_v11 = vadd.f32 %v6440_v38, %v6335_v24 }
 0x84d   : > { %v6606_v54 = vmax.f32 %v6596_v62, 0.0 }
 0x84f   : > { %v6634_v19 = vpack.c.bf16 %v6606_v54, %v6605_v58  ;;  %v6442_v43 = vpop.f32.mrf.mxu2 }
 0x850   : > { %v6564_v48 = vpop.f32.mrf.mxu3 }
 0x851   : > { %v6583_v60 = vadd.f32 %v6564_v48, %v6459_v11  ;;  %6719 = vmatmul.bf16.gmra.mxu0 %v6634_v19  ;;  %v6318_v15 = vpop.f32.mrf.mxu1 }
 0x852   : > { %v6336_v50 = vadd.f32 %v6318_v15, %v11016_v18 }
 0x853   : > { %v6597_v47 = vadd.f32 %v11034_v25, %v6583_v60 }
 0x854   : > { %v6460_v56 = vadd.f32 %v6442_v43, %v6336_v50 }
 0x855   : > { %v6607_v13 = vmax.f32 %v6597_v47, 0.0 }
 0x857   : > { %v6445_v36 = vpop.f32.mrf.mxu2 }
 0x858   : > { %v6566_v3 = vpop.f32.mrf.mxu3 }
 0x859   : > { %v6584_v9 = vadd.f32 %v6566_v3, %v6460_v56  ;;  %v6321_v30 = vpop.f32.mrf.mxu1  ;;  %v8558_v56 = vmov 0  }
 0x85a   : > { %v6337_v5 = vadd.f32 %v6321_v30, %v11019_v10  ;;  %8497 = vset.pattern.permute.xlu0 %v8558_v56  ;;  %8498 = vset.pattern.permute.xlu1 %v8558_v56 }
 0x85b   : > { %v6598_v20 = vadd.f32 %v11034_v25, %v6584_v9  ;;  %8499 = vset.pattern.permute.xlu2 %v8558_v56 }
 0x85c   : > { %v6461_v8 = vadd.f32 %v6445_v36, %v6337_v5 }
 0x85d   : > { %v6608_v55 = vmax.f32 %v6598_v20, 0.0 }
 0x85f   : > { %v6635_v35 = vpack.c.bf16 %v6608_v55, %v6607_v13  ;;  %v6447_v1 = vpop.f32.mrf.mxu2 }
 0x860   : > { %v6569_v32 = vpop.f32.mrf.mxu3 }
 0x861   : > { %v6585_v39 = vadd.f32 %v6569_v32, %v6461_v8  ;;  %6724 = vmatmul.bf16.gmra.mxu0 %v6635_v35  ;;  %v6323_v27 = vpop.f32.mrf.mxu1 }
 0x862   : > { %v6338_v0 = vadd.f32 %v6323_v27, %v11022_v37 }
 0x863   : > { %v6599_v18 = vadd.f32 %v11034_v25, %v6585_v39 }
 0x864   : > { %v6462_v4 = vadd.f32 %v6447_v1, %v6338_v0 }
 0x865   : > { %v6609_v29 = vmax.f32 %v6599_v18, 0.0 }
 0x867   : > { %v6450_v46 = vpop.f32.mrf.mxu2 }
 0x868   : > { %v6571_v12 = vpop.f32.mrf.mxu3 }
 0x869   : > { %v6586_v7 = vadd.f32 %v6571_v12, %v6462_v4  ;;  %v6326_v21 = vpop.f32.mrf.mxu1 }
 0x86a   : > { %v6339_v10 = vadd.f32 %v6326_v21, %v11025_v26 }
 0x86b   : > { %v6600_v33 = vadd.f32 %v11034_v25, %v6586_v7 }
 0x86c   : > { %v6463_v45 = vadd.f32 %v6450_v46, %v6339_v10 }
 0x86d   : > { %v6610_v59 = vmax.f32 %v6600_v33, 0.0 }
 0x86f   : > { %v6636_v14 = vpack.c.bf16 %v6610_v59, %v6609_v29  ;;  %v6452_v53 = vpop.f32.mrf.mxu2 }
 0x870   : > { %v6574_v34 = vpop.f32.mrf.mxu3 }
 0x871   : > { %v6587_v57 = vadd.f32 %v6574_v34, %v6463_v45  ;;  %6729 = vmatmul.bf16.gmra.mxu0 %v6636_v14  ;;  %v6328_v49 = vpop.f32.mrf.mxu1 }
 0x872   : > { %v6340_v37 = vadd.f32 %v6328_v49, %v11028_v31 }
 0x873   : > { %v6601_v44 = vadd.f32 %v11034_v25, %v6587_v57 }
 0x874   : > { %v6464_v40 = vadd.f32 %v6452_v53, %v6340_v37 }
 0x875   : > { %v6611_v42 = vmax.f32 %v6601_v44, 0.0 }
 0x878   : > { %v6576_v23 = vpop.f32.mrf.mxu3 }
 0x879   : > { %v6588_v2 = vadd.f32 %v6576_v23, %v6464_v40 }
 0x87b   : > { %v6602_v41 = vadd.f32 %v11034_v25, %v6588_v2 }
 0x87d   : > { %v6612_v26 = vmax.f32 %v6602_v41, 0.0 }
 0x87f   : > { %6622 = vst [vmem:[#allocation6 + $0x38] sm:$0x7] %v6612_v26 }
 0x886   : > { %v6632_v61 = vld [vmem:[#allocation6 + $0x38] sm:$0xff] }
 0x887   : > { %v6637_v52 = vpack.c.bf16 %v6632_v61, %v6611_v42 }
 0x889   : > { %6734 = vmatmul.bf16.gmra.mxu0 %v6637_v52 }
 0x8be   : > { %v6715_v22 = vpop.f32.mrf.mxu0 }
 0x8bf   : > { %v11057_v17 = vadd.f32 %v8503_v16, %v6715_v22 }
 0x8c1   : > { %6750 = vrot.lane.b32.xlu0 %v11057_v17, %s8557_s27 }
 0x8c6   : > { %v6717_v31 = vpop.f32.mrf.mxu0 }
 0x8c7   : > { %v11060_v58 = vadd.f32 %v8503_v16, %v6717_v31 }
 0x8c9   : > { %6752 = vrot.lane.b32.xlu0 %v11060_v58, %s8557_s27 }
 0x8ce   : > { %v6720_v25 = vpop.f32.mrf.mxu0 }
 0x8cf   : > { %v11063_v51 = vadd.f32 %v8503_v16, %v6720_v25 }
 0x8d1   : > { %6754 = vrot.lane.b32.xlu1 %v11063_v51, %s8557_s27 }
 0x8d6   : > { %v6722_v38 = vpop.f32.mrf.mxu0 }
 0x8d7   : > { %v11066_v28 = vadd.f32 %v8503_v16, %v6722_v38 }
 0x8d9   : > { %6756 = vrot.lane.b32.xlu1 %v11066_v28, %s8557_s27 }
 0x8de   : > { %v6725_v63 = vpop.f32.mrf.mxu0 }
 0x8df   : > { %v11069_v6 = vadd.f32 %v8503_v16, %v6725_v63 }
 0x8e1   : > { %6758 = vrot.lane.b32.xlu2 %v11069_v6, %s8557_s27 }
 0x8e6   : > { %v6727_v62 = vpop.f32.mrf.mxu0 }
 0x8e7   : > { %v11072_v24 = vadd.f32 %v8503_v16, %v6727_v62 }
 0x8e9   : > { %6760 = vrot.lane.b32.xlu2 %v11072_v24, %s8557_s27 }
 0x8ee   : > { %v6730_v54 = vpop.f32.mrf.mxu0 }
 0x8ef   : > { %v11075_v11 = vadd.f32 %v8503_v16, %v6730_v54 }
 0x8f1   : > { %6762 = vrot.lane.b32.xlu0 %v11075_v11, %s8557_s27 }
 0x8f6   : > { %v6732_v19 = vpop.f32.mrf.mxu0 }
 0x8f7   : > { %v11078_v43 = vadd.f32 %v8503_v16, %v6732_v19 }
 0x8f9   : > { %6764 = vrot.lane.b32.xlu1 %v11078_v43, %s8557_s27 }
 0x906   : > { %v6735_v48 = vpop.f32.mrf.mxu0 }
 0x907   : > { %v11081_v60 = vadd.f32 %v8503_v16, %v6735_v48 }
 0x909   : > { %6766 = vrot.lane.b32.xlu2 %v11081_v60, %s8557_s27 }
 0x90e   : > { %v6737_v15 = vpop.f32.mrf.mxu0 }
 0x90f   : > { %v11084_v47 = vadd.f32 %v8503_v16, %v6737_v15 }
 0x911   : > { %6768 = vrot.lane.b32.xlu0 %v11084_v47, %s8557_s27 }
 0x933   : > { %v6751_v50 = vpop.permute.xlu0 %6750 }
 0x934   : > { %v6780_v13 = vsub.f32 %v11057_v17, %v6751_v50 }
 0x936   : > { %v6790_v36 = vsub.f32 0.0, %v6780_v13 }
 0x938   : > { %v6800_v3 = vmul.f32 1.442695, %v6790_v36 }
 0x93a   : > { %8504 = vpow2.f32 %v6800_v3 }
 0x93b   : > { %v6759_v9 = vpop.permute.xlu2 %6758  ;;  %v6753_v30 = vpop.permute.xlu0 %6752 }
 0x93c   : > { %v6784_v20 = vsub.f32 %v11069_v6, %v6759_v9  ;;  %v6781_v5 = vsub.f32 %v11060_v58, %v6753_v30 }
 0x93e   : > { %v6794_v55 = vsub.f32 0.0, %v6784_v20  ;;  %v6791_v8 = vsub.f32 0.0, %v6781_v5 }
 0x940   : > { %v8505_v35 = vpop.eup %8504  ;;  %v6808_v32 = vmul.f32 1.442695, %v6794_v55  ;;  %v6802_v39 = vmul.f32 1.442695, %v6791_v8 }
 0x941   : > { %v6820_v1 = vadd.f32 1.0, %v8505_v35 }
 0x942   : > { %8506 = vpow2.f32 %v6808_v32 }
 0x943   : > { %8508 = vrcp.f32 %v6820_v1  ;;  %v6761_v27 = vpop.permute.xlu2 %6760  ;;  %v6755_v18 = vpop.permute.xlu1 %6754  ;;  %v6839_v44 = vand.u32 2147483647, %v6820_v1  ;;  %v6841_v37 = vand.u32 2147483648, %v6820_v1  ;;  %vm6835_vm4 = vweird.f32 %v6820_v1 }
 0x944   : > { %8510 = vpow2.f32 %v6802_v39  ;;  %v6785_v0 = vsub.f32 %v11072_v24, %v6761_v27  ;;  %v6782_v29 = vsub.f32 %v11063_v51, %v6755_v18 }
 0x945   : > { %v6842_v41 = vor.u32 1.1754944e-38, %v6841_v37  ;;  %vm6840_vm6 = vcmp.eq.f32.partialorder %v6839_v44, 8.507059e+37 }
 0x946   : > { %v6795_v4 = vsub.f32 0.0, %v6785_v0  ;;  %v6792_v12 = vsub.f32 0.0, %v6782_v29 }
 0x948   : > { %v8507_v7 = vpop.eup %8506  ;;  %v6810_v21 = vmul.f32 1.442695, %v6795_v4  ;;  %v6804_v33 = vmul.f32 1.442695, %v6792_v12 }
 0x949   : > { %v8509_v10 = vpop.eup %8508  ;;  %v11092_v59 = vadd.f32 1.0, %v8507_v7 }
 0x94a   : > { %v8511_v46 = vpop.eup %8510  ;;  %v6831_v45 = vmul.f32 %v8509_v10, %v6820_v1  ;;  %8512 = vpow2.f32 %v6810_v21  ;;  %vm6836_vm3 = vweird.f32 %v8509_v10 }
 0x94b   : > { %v6821_v14 = vadd.f32 1.0, %v8511_v46  ;;  %v6757_v34 = vpop.permute.xlu1 %6756  ;;  %8514 = vpow2.f32 %v6804_v33  ;;  %vm6837_vm5 = vmor %vm6835_vm4, %vm6836_vm3  ;;  %vm6895_vm12 = vweird.f32 %v11092_v59  ;;  %v6899_v0 = vand.u32 2147483647, %v11092_v59 }
 0x94c   : > { %v6783_v57 = vsub.f32 %v11066_v28, %v6757_v34  ;;  %v6832_v49 = vsub.f32 1.0, %v6831_v45  ;;  %v6901_v29 = vand.u32 2147483648, %v11092_v59 }
 0x94d   : > { %8516 = vrcp.f32 %v6821_v14  ;;  %v6856_v54 = vand.u32 2147483648, %v6821_v14  ;;  %v6854_v50 = vand.u32 2147483647, %v6821_v14  ;;  %vm6850_vm8 = vweird.f32 %v6821_v14 }
 0x94e   : > { %8518 = vrcp.f32 %v11092_v59  ;;  %v6793_v42 = vsub.f32 0.0, %v6783_v57  ;;  %v6833_v53 = vmul.f32 %v8509_v10, %v6832_v49 }
 0x94f   : > { %v6857_v3 = vor.u32 1.1754944e-38, %v6856_v54  ;;  %vm6855_vm10 = vcmp.eq.f32.partialorder %v6854_v50, 8.507059e+37 }
 0x950   : > { %v6806_v40 = vmul.f32 1.442695, %v6793_v42  ;;  %v6834_v23 = vadd.f32 %v8509_v10, %v6833_v53  ;;  %v8513_v2 = vpop.eup %8512 }
 0x951   : > { %v8515_v26 = vpop.eup %8514  ;;  %v11098_v63 = vadd.f32 1.0, %v8513_v2 }
 0x952   : > { %8520 = vpow2.f32 %v6806_v40  ;;  %v6838_v61 = vsel %vm6837_vm5, %v8509_v10, %v6834_v23  ;;  %v6822_v16 = vadd.f32 1.0, %v8515_v26 }
 0x953   : > { %v8517_v52 = vpop.eup %8516  ;;  %v6843_v22 = vsel %vm6840_vm6, %v6842_v41, %v6838_v61  ;;  %vm6900_vm6 = vcmp.eq.f32.partialorder %v6899_v0, 8.507059e+37 }
 0x954   : > { %v11096_v31 = vpop.eup %8518  ;;  %7056 = vperm.xlu0 %8497, %v6843_v22   ;;  %v6984_v25 = vsub.f32 1.0, %v6843_v22  ;;  %v6846_v38 = vmul.f32 %v8517_v52, %v6821_v14  ;;  %8522 = vrcp.f32 %v6822_v16  ;;  %vm6851_vm7 = vweird.f32 %v8517_v52 }
 0x955   : > { %v6891_v19 = vmul.f32 %v11096_v31, %v11092_v59  ;;  %8524 = vrcp.f32 %v11098_v63  ;;  %vm6852_vm9 = vmor %vm6850_vm8, %vm6851_vm7  ;;  %v6869_v35 = vand.u32 2147483647, %v6822_v16  ;;  %v6871_v32 = vand.u32 2147483648, %v6822_v16 }
 0x956   : > { %6996 = vperm.xlu1 %8498, %v6984_v25   ;;  %v6847_v62 = vsub.f32 1.0, %v6846_v38  ;;  %vm6865_vm13 = vweird.f32 %v6822_v16  ;;  %vm6896_vm14 = vweird.f32 %v11096_v31  ;;  %v6902_v59 = vor.u32 1.1754944e-38, %v6901_v29 }
 0x957   : > { %v6892_v9 = vsub.f32 1.0, %v6891_v19  ;;  %vm6870_vm0 = vcmp.eq.f32.partialorder %v6869_v35, 8.507059e+37  ;;  %v6872_v33 = vor.u32 1.1754944e-38, %v6871_v32  ;;  %vm11125_vm2 = vmor %vm6895_vm12, %vm6896_vm14  ;;  %vm6910_vm8 = vweird.f32 %v11098_v63 }
 0x958   : > { %v8521_v48 = vpop.eup %8520  ;;  %v6848_v15 = vmul.f32 %v8517_v52, %v6847_v62 }
 0x959   : > { %v11102_v13 = vadd.f32 1.0, %v8521_v48  ;;  %v6893_v39 = vmul.f32 %v11096_v31, %v6892_v9 }
 0x95a   : > { %v6849_v56 = vadd.f32 %v8517_v52, %v6848_v15  ;;  %v8523_v36 = vpop.eup %8522 }
 0x95b   : > { %8526 = vrcp.f32 %v11102_v13  ;;  %v6861_v20 = vmul.f32 %v8523_v36, %v6822_v16  ;;  %v11107_v1 = vpop.eup %8524  ;;  %vm6866_vm11 = vweird.f32 %v8523_v36  ;;  %v6894_v10 = vadd.f32 %v11096_v31, %v6893_v39 }
 0x95c   : > { %v6853_v30 = vsel %vm6852_vm9, %v8517_v52, %v6849_v56  ;;  %vm6867_vm15 = vmor %vm6865_vm13, %vm6866_vm11  ;;  %v6906_v46 = vmul.f32 %v11107_v1, %v11098_v63  ;;  %v6884_v44 = vand.u32 2147483647, %v11102_v13  ;;  %v6886_v37 = vand.u32 2147483648, %v11102_v13 }
 0x95d   : > { %v6858_v5 = vsel %vm6855_vm10, %v6857_v3, %v6853_v30  ;;  %v6862_v8 = vsub.f32 1.0, %v6861_v20  ;;  %vm6880_vm3 = vweird.f32 %v11102_v13  ;;  %v6898_v41 = vsel %vm11125_vm2, %v11096_v31, %v6894_v10 }
 0x95e   : > { %7061 = vperm.xlu1 %8498, %v6858_v5   ;;  %v6985_v55 = vsub.f32 1.0, %v6858_v5  ;;  %v6907_v16 = vsub.f32 1.0, %v6906_v46  ;;  %v6887_v22 = vor.u32 1.1754944e-38, %v6886_v37  ;;  %vm6885_vm5 = vcmp.eq.f32.partialorder %v6884_v44, 8.507059e+37 }
 0x95f   : > { %v6863_v27 = vmul.f32 %v8523_v36, %v6862_v8  ;;  %v6903_v54 = vsel %vm6900_vm6, %v6902_v59, %v6898_v41  ;;  %vm6911_vm7 = vweird.f32 %v11107_v1  ;;  %v6916_v30 = vand.u32 2147483648, %v11098_v63 }
 0x960   : > { %7001 = vperm.xlu2 %8499, %v6985_v55   ;;  %v6908_v48 = vmul.f32 %v11107_v1, %v6907_v16  ;;  %v6988_v50 = vsub.f32 1.0, %v6903_v54  ;;  %v6914_v5 = vand.u32 2147483647, %v11098_v63  ;;  %vm6912_vm9 = vmor %vm6910_vm8, %vm6911_vm7 }
 0x961   : > { %v8527_v18 = vpop.eup %8526  ;;  %v6864_v4 = vadd.f32 %v8523_v36, %v6863_v27  ;;  %v6917_v8 = vor.u32 1.1754944e-38, %v6916_v30 }
 0x962   : > { %v6876_v12 = vmul.f32 %v8527_v18, %v11102_v13  ;;  %vm6881_vm1 = vweird.f32 %v8527_v18  ;;  %vm6915_vm10 = vcmp.eq.f32.partialorder %v6914_v5, 8.507059e+37 }
 0x963   : > { %v6767_v7 = vpop.permute.xlu2 %6766  ;;  %v6763_v21 = vpop.permute.xlu0 %6762  ;;  %v6868_v34 = vsel %vm6867_vm15, %v8523_v36, %v6864_v4  ;;  %vm6882_vm4 = vmor %vm6880_vm3, %vm6881_vm1  ;;  %v6909_v36 = vadd.f32 %v11107_v1, %v6908_v48 }
 0x964   : > { %v6788_v45 = vsub.f32 %v11081_v60, %v6767_v7  ;;  %v6786_v14 = vsub.f32 %v11075_v11, %v6763_v21  ;;  %v6877_v57 = vsub.f32 1.0, %v6876_v12  ;;  %v6873_v49 = vsel %vm6870_vm0, %v6872_v33, %v6868_v34 }
 0x965   : > { %v6986_v40 = vsub.f32 1.0, %v6873_v49  ;;  %v6913_v55 = vsel %vm6912_vm9, %v11107_v1, %v6909_v36 }
 0x966   : > { %v6798_v42 = vsub.f32 0.0, %v6788_v45  ;;  %v6796_v53 = vsub.f32 0.0, %v6786_v14  ;;  %v6878_v23 = vmul.f32 %v8527_v18, %v6877_v57  ;;  %v6918_v35 = vsel %vm6915_vm10, %v6917_v8, %v6913_v55 }
 0x967   : > { %7006 = vperm.xlu0 %8497, %v6986_v40   ;;  %v6989_v4 = vsub.f32 1.0, %v6918_v35 }
 0x968   : > { %v6816_v26 = vmul.f32 1.442695, %v6798_v42  ;;  %v6812_v61 = vmul.f32 1.442695, %v6796_v53  ;;  %7066 = vperm.xlu2 %8499, %v6873_v49   ;;  %v6879_v52 = vadd.f32 %v8527_v18, %v6878_v23 }
 0x96a   : > { %8528 = vpow2.f32 %v6816_v26  ;;  %v6883_v25 = vsel %vm6882_vm4, %v8527_v18, %v6879_v52 }
 0x96b   : > { %8530 = vpow2.f32 %v6812_v61  ;;  %v6765_v38 = vpop.permute.xlu1 %6764  ;;  %v6888_v62 = vsel %vm6885_vm5, %v6887_v22, %v6883_v25 }
 0x96c   : > { %v6787_v31 = vsub.f32 %v11078_v43, %v6765_v38  ;;  %v6987_v19 = vsub.f32 1.0, %v6888_v62 }
 0x96e   : > { %v6797_v15 = vsub.f32 0.0, %v6787_v31  ;;  %7011 = vperm.xlu1 %8498, %v6987_v19  }
 0x96f   : > { %7071 = vperm.xlu0 %8497, %v6888_v62  }
 0x970   : > { %v8529_v13 = vpop.eup %8528  ;;  %v6814_v56 = vmul.f32 1.442695, %v6797_v15  ;;  %7016 = vperm.xlu2 %8499, %v6988_v50  }
 0x971   : > { %v8531_v3 = vpop.eup %8530  ;;  %v6828_v9 = vadd.f32 1.0, %v8529_v13 }
 0x972   : > { %v6826_v20 = vadd.f32 1.0, %v8531_v3  ;;  %8532 = vpow2.f32 %v6814_v56 }
 0x973   : > { %8534 = vrcp.f32 %v6828_v9  ;;  %v6961_v7 = vand.u32 2147483648, %v6828_v9  ;;  %v6959_v1 = vand.u32 2147483647, %v6828_v9  ;;  %vm6955_vm13 = vweird.f32 %v6828_v9 }
 0x974   : > { %8536 = vrcp.f32 %v6826_v20  ;;  %v6931_v21 = vand.u32 2147483648, %v6826_v20  ;;  %v6929_v46 = vand.u32 2147483647, %v6826_v20  ;;  %vm6925_vm14 = vweird.f32 %v6826_v20 }
 0x975   : > { %v6962_v57 = vor.u32 1.1754944e-38, %v6961_v7  ;;  %vm6960_vm1 = vcmp.eq.f32.partialorder %v6959_v1, 8.507059e+37 }
 0x976   : > { %7076 = vperm.xlu1 %8498, %v6903_v54   ;;  %v6932_v49 = vor.u32 1.1754944e-38, %v6931_v21  ;;  %vm6930_vm2 = vcmp.eq.f32.partialorder %v6929_v46, 8.507059e+37 }
 0x978   : > { %v8533_v32 = vpop.eup %8532  ;;  %7081 = vperm.xlu2 %8499, %v6918_v35   ;;  %v6980_v35 = vlaneseq }
 0x979   : > { %v8535_v39 = vpop.eup %8534  ;;  %v6827_v27 = vadd.f32 1.0, %v8533_v32 }
 0x97a   : > { %v8537_v18 = vpop.eup %8536  ;;  %v6951_v0 = vmul.f32 %v8535_v39, %v6828_v9  ;;  %vm6956_vm11 = vweird.f32 %v8535_v39  ;;  %v6981_v32 = vand.u32 127, %v6980_v35 }
 0x97b   : > { %8538 = vrcp.f32 %v6827_v27  ;;  %v6921_v29 = vmul.f32 %v8537_v18, %v6826_v20  ;;  %vm6926_vm12 = vweird.f32 %v8537_v18  ;;  %vm6957_vm15 = vmor %vm6955_vm13, %vm6956_vm11  ;;  %v6946_v52 = vand.u32 2147483648, %v6827_v27 }
 0x97c   : > { %v6952_v12 = vsub.f32 1.0, %v6951_v0  ;;  %vm6927_vm0 = vmor %vm6925_vm14, %vm6926_vm12  ;;  %v6944_v59 = vand.u32 2147483647, %v6827_v27  ;;  %vm6940_vm4 = vweird.f32 %v6827_v27  ;;  %vm6982_vm11 = vcmp.eq.s32.totalorder %v6981_v32, 0 }
 0x97d   : > { %v6922_v63 = vsub.f32 1.0, %v6921_v29  ;;  %v6947_v62 = vor.u32 1.1754944e-38, %v6946_v52  ;;  %vm6983_vm12 = vcmp.eq.s32.totalorder %v6981_v32, 1 }
 0x97e   : > { %7021 = vperm.xlu1 %8498, %v6989_v4   ;;  %v6953_v33 = vmul.f32 %v8535_v39, %v6952_v12  ;;  %vm6945_vm6 = vcmp.eq.f32.partialorder %v6944_v59, 8.507059e+37 }
 0x97f   : > { %v6923_v10 = vmul.f32 %v8537_v18, %v6922_v63 }
 0x980   : > { %v6954_v45 = vadd.f32 %v8535_v39, %v6953_v33 }
 0x981   : > { %v8539_v14 = vpop.eup %8538  ;;  %v6924_v34 = vadd.f32 %v8537_v18, %v6923_v10 }
 0x982   : > { %v6958_v44 = vsel %vm6957_vm15, %v8535_v39, %v6954_v45  ;;  %v6936_v37 = vmul.f32 %v8539_v14, %v6827_v27  ;;  %vm6941_vm3 = vweird.f32 %v8539_v14 }
 0x983   : > { %v6769_v42 = vpop.permute.xlu0 %6768  ;;  %v6928_v53 = vsel %vm6927_vm0, %v8537_v18, %v6924_v34  ;;  %v6963_v40 = vsel %vm6960_vm1, %v6962_v57, %v6958_v44  ;;  %vm6942_vm5 = vmor %vm6940_vm4, %vm6941_vm3 }
 0x984   : > { %v6789_v23 = vsub.f32 %v11084_v47, %v6769_v42  ;;  %v6933_v2 = vsel %vm6930_vm2, %v6932_v49, %v6928_v53  ;;  %v6992_v41 = vsub.f32 1.0, %v6963_v40  ;;  %v6937_v26 = vsub.f32 1.0, %v6936_v37 }
 0x985   : > { %7086 = vperm.xlu0 %8497, %v6933_v2   ;;  %v6990_v61 = vsub.f32 1.0, %v6933_v2 }
 0x986   : > { %v6799_v16 = vsub.f32 0.0, %v6789_v23  ;;  %7036 = vperm.xlu1 %8498, %v6992_v41   ;;  %v6938_v22 = vmul.f32 %v8539_v14, %v6937_v26 }
 0x987   : > { %7026 = vperm.xlu2 %8499, %v6990_v61  }
 0x988   : > { %v6818_v25 = vmul.f32 1.442695, %v6799_v16  ;;  %v6939_v38 = vadd.f32 %v8539_v14, %v6938_v22 }
 0x98a   : > { %8540 = vpow2.f32 %v6818_v25  ;;  %v6943_v54 = vsel %vm6942_vm5, %v8539_v14, %v6939_v38 }
 0x98b   : > { %v6948_v31 = vsel %vm6945_vm6, %v6947_v62, %v6943_v54 }
 0x98c   : > { %v6991_v19 = vsub.f32 1.0, %v6948_v31 }
 0x98e   : > { %7091 = vperm.xlu1 %8498, %v6948_v31   ;;  %7031 = vperm.xlu0 %8497, %v6991_v19  }
 0x990   : > { %v8541_v48 = vpop.eup %8540 }
 0x991   : > { %v6829_v15 = vadd.f32 1.0, %v8541_v48 }
 0x993   : > { %8542 = vrcp.f32 %v6829_v15  ;;  %v6976_v36 = vand.u32 2147483648, %v6829_v15  ;;  %v6974_v9 = vand.u32 2147483647, %v6829_v15  ;;  %vm6970_vm8 = vweird.f32 %v6829_v15 }
 0x995   : > { %v6977_v20 = vor.u32 1.1754944e-38, %v6976_v36  ;;  %vm6975_vm10 = vcmp.eq.f32.partialorder %v6974_v9, 8.507059e+37 }
 0x999   : > { %v8543_v50 = vpop.eup %8542 }
 0x99a   : > { %v6966_v13 = vmul.f32 %v8543_v50, %v6829_v15  ;;  %vm6971_vm7 = vweird.f32 %v8543_v50 }
 0x99b   : > { %vm6972_vm9 = vmor %vm6970_vm8, %vm6971_vm7 }
 0x99c   : > { %v6967_v56 = vsub.f32 1.0, %v6966_v13 }
 0x99e   : > { %v6968_v3 = vmul.f32 %v8543_v50, %v6967_v56 }
 0x9a0   : > { %v6969_v30 = vadd.f32 %v8543_v50, %v6968_v3 }
 0x9a2   : > { %v6973_v5 = vsel %vm6972_vm9, %v8543_v50, %v6969_v30 }
 0x9a3   : > { %v6978_v55 = vsel %vm6975_vm10, %v6977_v20, %v6973_v5 }
 0x9a4   : > { %7101 = vperm.xlu0 %8497, %v6978_v55   ;;  %v6993_v8 = vsub.f32 1.0, %v6978_v55 }
 0x9a6   : > { %7041 = vperm.xlu2 %8499, %v6993_v8  }
 0x9ae   : > { %7096 = vperm.xlu2 %8499, %v6963_v40  }
 0x9ba   : > { %v7002_v29 = vpop.permute.xlu2 %7001 }
 0x9bb   : > { %v7045_v4 = vsel %vm6983_vm12, %v7002_v29, %v11060_v58 }
 0x9c2   : > { %v7067_v7 = vpop.permute.xlu2 %7066 }
 0x9c6   : > { %v7057_v27 = vpop.permute.xlu0 %7056 }
 0x9c8   : > { %v6997_v39 = vpop.permute.xlu1 %6996 }
 0x9c9   : > { %v7044_v18 = vsel %vm6983_vm12, %v6997_v39, %v11057_v17 }
 0x9ca   : > { %v7104_v0 = vsel %vm6982_vm11, %v7057_v27, %v7044_v18  ;;  %v7017_v46 = vpop.permute.xlu2 %7016 }
 0x9cb   : > { %7114 = vst [vmem:[%s11147_s12] sm:$0xff] %v7104_v0  ;;  %v7048_v14 = vsel %vm6983_vm12, %v7017_v46, %v11069_v6 }
 0x9d0   : > { %v7062_v12 = vpop.permute.xlu1 %7061 }
 0x9d1   : > { %v7105_v63 = vsel %vm6982_vm11, %v7062_v12, %v7045_v4 }
 0x9d2   : > { %7115 = vst [vmem:[%s11147_s12 + $0x8] sm:$0xff] %v7105_v63  ;;  %v7082_v57 = vpop.permute.xlu2 %7081 }
 0x9d9   : > { %v7007_v21 = vpop.permute.xlu0 %7006 }
 0x9da   : > { %v7046_v33 = vsel %vm6983_vm12, %v7007_v21, %v11063_v51 }
 0x9db   : > { %v7106_v17 = vsel %vm6982_vm11, %v7067_v7, %v7046_v33 }
 0x9dc   : > { %7116 = vst [vmem:[%s11147_s12 + $0x10] sm:$0xff] %v7106_v17 }
 0x9e0   : > { %v7012_v1 = vpop.permute.xlu1 %7011 }
 0x9e1   : > { %v7047_v10 = vsel %vm6983_vm12, %v7012_v1, %v11066_v28  ;;  %v7072_v58 = vpop.permute.xlu0 %7071  ;;  %v7027_v37 = vpop.permute.xlu2 %7026 }
 0x9e2   : > { %v7107_v45 = vsel %vm6982_vm11, %v7072_v58, %v7047_v10  ;;  %v7050_v42 = vsel %vm6983_vm12, %v7027_v37, %v11075_v11 }
 0x9e3   : > { %7117 = vst [vmem:[%s11147_s12 + $0x18] sm:$0xff] %v7107_v45 }
 0x9e8   : > { %v7077_v34 = vpop.permute.xlu1 %7076 }
 0x9e9   : > { %v7108_v51 = vsel %vm6982_vm11, %v7077_v34, %v7048_v14 }
 0x9ea   : > { %7118 = vst [vmem:[%s11147_s12 + $0x20] sm:$0xff] %v7108_v51 }
 0x9f0   : > { %v7022_v49 = vpop.permute.xlu1 %7021 }
 0x9f1   : > { %v7049_v44 = vsel %vm6983_vm12, %v7022_v49, %v11072_v24 }
 0x9f2   : > { %v7109_v28 = vsel %vm6982_vm11, %v7082_v57, %v7049_v44 }
 0x9f3   : > { %7119 = vst [vmem:[%s11147_s12 + $0x28] sm:$0xff] %v7109_v28 }
 0x9f7   : > { %v7087_v53 = vpop.permute.xlu0 %7086 }
 0x9f8   : > { %v7110_v6 = vsel %vm6982_vm11, %v7087_v53, %v7050_v42  ;;  %v7037_v40 = vpop.permute.xlu1 %7036 }
 0x9f9   : > { %7120 = vst [vmem:[%s11147_s12 + $0x30] sm:$0xff] %v7110_v6  ;;  %v7052_v61 = vsel %vm6983_vm12, %v7037_v40, %v11081_v60 }
 0xa00   : > { %v7042_v23 = vpop.permute.xlu2 %7041  ;;  %v7092_v2 = vpop.permute.xlu1 %7091 }
 0xa01   : > { %v7032_v41 = vpop.permute.xlu0 %7031  ;;  %v7053_v16 = vsel %vm6983_vm12, %v7042_v23, %v11084_v47 }
 0xa02   : > { %v7051_v24 = vsel %vm6983_vm12, %v7032_v41, %v11078_v43 }
 0xa03   : > { %v7111_v26 = vsel %vm6982_vm11, %v7092_v2, %v7051_v24 }
 0xa04   : > { %7121 = vst [vmem:[%s11147_s12 + $0x38] sm:$0xff] %v7111_v26 }
 0xa08   : > { %v7097_v52 = vpop.permute.xlu2 %7096 }
 0xa09   : > { %v7112_v11 = vsel %vm6982_vm11, %v7097_v52, %v7052_v61 }
 0xa0a   : > { %7122 = vst [vmem:[%s11147_s12 + $0x40] sm:$0xff] %v7112_v11 }
 0xa16   : > { %v7102_v22 = vpop.permute.xlu0 %7101 }
 0xa17   : > { %v7113_v59 = vsel %vm6982_vm11, %v7102_v22, %v7053_v16 }
 0xa18   : > { %7123 = vst [vmem:[%s11147_s12 + $0x48] sm:$0xff] %v7113_v59 }
 0xa19 PF: > { %s19_s30 = sadd.s32 1, %s8554_s30  }
 0xa1a   : > { %p16_p4 = scmp.ge.s32.totalorder %s19_s30, 5  }
 0xa1c   :  { %18 = sbr.rel (!%p16_p4) target bundleno = 1 (0x1), region = 169 }

</bundles_post_ra>
